<compile_context>
chip_gen: v6e
topology: v6e:2x2x1
jax: 0.10.0
libtpu: 0.0.40
codegen_flags: <defaults>
</compile_context>

<pallas_src>
import functools
import math

import jax
import jax.numpy as jnp
from jax import lax
from jax.experimental import pallas as pl
from jax.experimental.pallas import tpu as pltpu

LN_EPS = 1e-5                                # nn.LayerNorm default eps
_INV_SQRT2 = 1.0 / math.sqrt(2.0)
_SQRT_2_OVER_PI = math.sqrt(2.0 / math.pi)


def _resblock_kernel(x_ref, params_ref, w1_ref, w2_ref, o_ref, *,
                     n_rows, tile_m, mask_rows, approximate, mid_dtype):
    """Processes one (tile_m, C) tile of tokens; params/weights are resident."""
    x = x_ref[...].astype(jnp.float32)

    # Ragged final tile: zero the out-of-range rows so uninitialized VMEM never feeds the
    # math. (Rows are independent and OOB rows are never written back, so this is purely
    # defensive and costs one cheap select per tile, only emitted when N % tile_m != 0.)
    if mask_rows:
        rows = pl.program_id(0) * tile_m + lax.broadcasted_iota(jnp.int32, (tile_m, 1), 0)
        x = jnp.where(rows < n_rows, x, 0.0)

    gamma = params_ref[0:1, :].astype(jnp.float32)        # (1, C)
    beta = params_ref[1:2, :].astype(jnp.float32)
    b1 = params_ref[2:3, :].astype(mid_dtype)
    b2 = params_ref[3:4, :].astype(jnp.float32)

    # --- pre_norm: LayerNorm over channels (statistics always in f32) ---
    mean = jnp.mean(x, axis=-1, keepdims=True)
    xc = x - mean
    var = jnp.mean(xc * xc, axis=-1, keepdims=True)
    r = lax.rsqrt(var + LN_EPS)                           # (TM, 1)
    xn = xc * (r * gamma) + beta                          # (TM, C) f32

    # --- proj: Linear -> GELU -> Linear ---
    # MXU operands in the weights' native dtype: bf16 weights take the single-pass bf16
    # MXU path; f32 weights use the slower multi-pass f32 MXU path but stay exact.
    w1 = w1_ref[...]
    w2 = w2_ref[...]
    h = jnp.dot(xn.astype(w1.dtype), w1, preferred_element_type=jnp.float32)
    h = h.astype(mid_dtype) + b1                          # bias + GELU in mid_dtype

    if approximate:
        # tanh-form GELU: transcendental goes to the (otherwise idle) EUP slot instead of
        # a long erf polynomial on the VALU slot that bounds this kernel.
        g = 0.5 * h * (1.0 + jnp.tanh(_SQRT_2_OVER_PI * (h + 0.044715 * (h * h * h))))
    else:
        # Exact erf GELU == torch.nn.GELU() default.
        g = 0.5 * h * (1.0 + lax.erf(h * _INV_SQRT2))

    y = jnp.dot(g.astype(w2.dtype), w2, preferred_element_type=jnp.float32)
    y = y + b2

    # --- residual: x_norm + proj(x_norm); final add in f32 ---
    o_ref[...] = (xn + y).astype(o_ref.dtype)


def _round_up(n, m):
    return ((n + m - 1) // m) * m


def _choose_tile_m(n_rows, tile_cap):
    """Largest 8-aligned token tile <= tile_cap, keeping >=2 grid steps when possible so
    the 'parallel' token axis can be split across v7x's two TensorCores."""
    if n_rows <= 8:
        return max(1, n_rows)                 # block dim == full dim is always legal
    tm = min(tile_cap, _round_up(n_rows, 8))
    if pl.cdiv(n_rows, tm) < 2:
        tm = _round_up(pl.cdiv(n_rows, 2), 8)
    return max(8, tm)


def _vmem_capacity_bytes():
    """Generation-aware VMEM size (128 MiB v5e/v6e, 64 MiB per TensorCore v7x).

    Pure capability probe with a conservative fallback; it never wraps the kernel build,
    so lowering/compile errors always propagate from pallas_call itself.
    """
    try:
        return int(pltpu.get_tpu_info().vmem_capacity_bytes)
    except Exception:  # capability query only; fall back to the smallest generation
        return 64 << 20


def simple_res_block(x, gamma, beta, w1_t, b1, w2_t, b2, *,
                     tile_m=512, approximate_gelu=True, elementwise_dtype=None):
    """Forward pass of SimpleResBlock.

    x: (..., C).  w1_t / w2_t are (in, out) = the PyTorch nn.Linear weights transposed.
    tile_m is an upper bound on the rows per grid step.
    approximate_gelu=True uses the tanh GELU (EUP transcendental, fastest); pass False
    for bit-exact torch.nn.GELU() (erf) semantics.
    elementwise_dtype controls the bias+GELU stage dtype; default is bf16 when weights
    are bf16 (native bf16 VALU on v6e/v7x) and f32 otherwise.  Pass jnp.float32
    explicitly when targeting v5e (no bf16 VALU there).
    """
    orig_shape = x.shape
    C = orig_shape[-1]
    x2 = x.reshape(-1, C)
    N = x2.shape[0]

    tm = _choose_tile_m(N, tile_m)
    grid_steps = pl.cdiv(N, tm)
    ragged = (N % tm) != 0

    if elementwise_dtype is None:
        elementwise_dtype = (jnp.bfloat16
                             if (approximate_gelu and w1_t.dtype == jnp.bfloat16)
                             else jnp.float32)

    # gamma/beta/b1/b2 packed into one (4, C) operand: one DMA + one padded VMEM tile.
    params = jnp.stack([gamma, beta, b1, b2], axis=0)

    # Resident-weight VMEM budget check: fail loudly instead of silently spilling.
    # TODO(synk): for large C (2*C*C*itemsize > ~1/3 VMEM, e.g. C>=4096 bf16 on v7x), add
    # a hidden-dim grid axis tiling W1 columns / W2 rows with an f32 scratch accumulator.
    cap = _vmem_capacity_bytes()
    footprint = (2 * tm * C * x.dtype.itemsize            # input tile, double-buffered
                 + 2 * tm * C * x.dtype.itemsize          # output tile, double-buffered
                 + 2 * 2 * C * C * w1_t.dtype.itemsize    # both (C, C) weights (2 buffers each)
                 + 2 * 8 * C * params.dtype.itemsize)     # packed params (8-sublane padded)
    if footprint > (3 * cap) // 4:
        raise ValueError(
            f"SimpleResBlock kernel needs ~{footprint >> 20} MiB VMEM "
            f"(tile_m={tm}, C={C}) but only ~{cap >> 20} MiB is available; reduce tile_m "
            "or add hidden-dim weight tiling (see TODO above).")
    vmem_limit = int(min((3 * cap) // 4, max(32 << 20, 2 * footprint)))

    kernel = functools.partial(
        _resblock_kernel,
        n_rows=N, tile_m=tm, mask_rows=ragged,
        approximate=approximate_gelu, mid_dtype=elementwise_dtype)

    row_spec = pl.BlockSpec((tm, C), lambda i: (i, 0))
    out = pl.pallas_call(
        kernel,
        out_shape=jax.ShapeDtypeStruct((N, C), x.dtype),
        grid_spec=pltpu.PrefetchScalarGridSpec(
            num_scalar_prefetch=0,
            grid=(grid_steps,),
            in_specs=[row_spec,
                      pl.BlockSpec((4, C), lambda i: (0, 0)),    # packed gamma/beta/b1/b2
                      pl.BlockSpec((C, C), lambda i: (0, 0)),    # W1 (in, out), resident
                      pl.BlockSpec((C, C), lambda i: (0, 0))],   # W2 (in, out), resident
            out_specs=row_spec,
        ),
        compiler_params=pltpu.CompilerParams(
            dimension_semantics=("parallel",),   # token tiles are independent (v7x: 2 TCs)
            vmem_limit_bytes=vmem_limit,
        ),
    )(x2, params, w1_t, w2_t)

    return out.reshape(orig_shape)


def _ref_forward(x, gamma, beta, w1_t, b1, w2_t, b2, *, approximate=True):
    """Pure-JAX reference in f32 (PyTorch module semantics; approximate toggles GELU form)."""
    xf = x.astype(jnp.float32)
    mean = jnp.mean(xf, axis=-1, keepdims=True)
    var = jnp.mean((xf - mean) ** 2, axis=-1, keepdims=True)
    xn = ((xf - mean) * lax.rsqrt(var + LN_EPS) * gamma.astype(jnp.float32)
          + beta.astype(jnp.float32))
    h = xn @ w1_t.astype(jnp.float32) + b1.astype(jnp.float32)
    if approximate:
        h = 0.5 * h * (1.0 + jnp.tanh(_SQRT_2_OVER_PI * (h + 0.044715 * h ** 3)))
    else:
        h = 0.5 * h * (1.0 + lax.erf(h * _INV_SQRT2))
    y = h @ w2_t.astype(jnp.float32) + b2.astype(jnp.float32)
    return xn + y


if __name__ == "__main__":
    # (batch, seq, channels); N = 2*300 = 600 tokens -> 2 grid steps with tile_m=512 and a
    # ragged 88-row final tile (exercises the partial-block path with no pad/slice ops).
    B, S, C = 2, 300, 256
    key = jax.random.PRNGKey(0)
    kx, kg, kb, kw1, kb1, kw2, kb2 = jax.random.split(key, 7)

    x = jax.random.normal(kx, (B, S, C), dtype=jnp.float32)
    gamma = 1.0 + 0.1 * jax.random.normal(kg, (C,), jnp.float32)
    beta = 0.1 * jax.random.normal(kb, (C,), jnp.float32)
    w1 = jax.random.normal(kw1, (C, C), jnp.float32) * 0.05     # PyTorch layout (out, in)
    b1 = jax.random.normal(kb1, (C,), jnp.float32) * 0.01
    w2 = jax.random.normal(kw2, (C, C), jnp.float32) * 0.05
    b2 = jax.random.normal(kb2, (C,), jnp.float32) * 0.01
    w1_t, w2_t = w1.T, w2.T                                     # (in, out) for x @ W.T

    # 1) Exact-GELU f32 path: matches torch.nn.GELU() (erf) semantics bit-for-bit in form.
    out_exact = jax.block_until_ready(
        simple_res_block(x, gamma, beta, w1_t, b1, w2_t, b2, approximate_gelu=False))
    ref_exact = _ref_forward(x, gamma, beta, w1_t, b1, w2_t, b2, approximate=False)
    assert out_exact.shape == x.shape and out_exact.dtype == x.dtype
    err0 = float(jnp.max(jnp.abs(out_exact - ref_exact)))
    assert jnp.allclose(out_exact, ref_exact, atol=1e-4, rtol=1e-4), err0

    # 2) Default fast path (tanh GELU -> EUP), f32.
    out_fast = jax.block_until_ready(simple_res_block(x, gamma, beta, w1_t, b1, w2_t, b2))
    ref_fast = _ref_forward(x, gamma, beta, w1_t, b1, w2_t, b2, approximate=True)
    err1 = float(jnp.max(jnp.abs(out_fast - ref_fast)))
    assert jnp.allclose(out_fast, ref_fast, atol=1e-4, rtol=1e-4), err1
    # tanh-GELU approximation stays very close to the exact module forward.
    err2 = float(jnp.max(jnp.abs(out_fast - ref_exact)))
    assert jnp.allclose(out_fast, ref_exact, atol=5e-3, rtol=5e-3), err2

    # 3) bf16 fast path: bf16 MXU operands + bf16 bias/GELU, f32 LN stats & accumulation.
    tb = lambda a: a.astype(jnp.bfloat16)
    out_bf = jax.block_until_ready(
        simple_res_block(tb(x), tb(gamma), tb(beta), tb(w1_t), tb(b1), tb(w2_t), tb(b2)))
    ref_bf = _ref_forward(tb(x), tb(gamma), tb(beta), tb(w1_t), tb(b1), tb(w2_t), tb(b2),
                          approximate=True)
    assert out_bf.shape == x.shape and out_bf.dtype == jnp.bfloat16
    err3 = float(jnp.max(jnp.abs(out_bf.astype(jnp.float32) - ref_bf)))
    assert jnp.allclose(out_bf.astype(jnp.float32), ref_bf, atol=8e-2, rtol=8e-2), err3

    print("KERNEL_OK")
</pallas_src>

<mosaic_0001>
module attributes {stable_mosaic.version = 11 : i64} {
  func.func @_resblock_kernel(%arg0: i32, %arg1: memref<512x256xf32, #tpu.memory_space<vmem>>, %arg2: memref<4x256xf32, #tpu.memory_space<vmem>>, %arg3: memref<256x256xf32, #tpu.memory_space<vmem>>, %arg4: memref<256x256xf32, #tpu.memory_space<vmem>>, %arg5: memref<512x256xf32, #tpu.memory_space<vmem>>) attributes {dimension_semantics = [#tpu.dimension_semantics<parallel>], iteration_bounds = array<i64: 2>, scalar_prefetch = 0 : i64, scratch_operands = 0 : i64, tpu.core_type = #tpu.core_type<tc>, window_params = [{transform_indices = @transform_0, window_bounds = array<i64: 512, 256>}, {pipeline_mode = #tpu.pipeline_mode<synchronous>, transform_indices = @transform_1, window_bounds = array<i64: 4, 256>}, {pipeline_mode = #tpu.pipeline_mode<synchronous>, transform_indices = @transform_2, window_bounds = array<i64: 256, 256>}, {pipeline_mode = #tpu.pipeline_mode<synchronous>, transform_indices = @transform_3, window_bounds = array<i64: 256, 256>}, {transform_indices = @transform_4, window_bounds = array<i64: 512, 256>}]} {
    %c0 = arith.constant 0 : index
    %c0_0 = arith.constant 0 : index
    %0 = vector.load %arg1[%c0, %c0_0] : memref<512x256xf32, #tpu.memory_space<vmem>>, vector<512x256xf32>
    %c512_i32 = arith.constant 512 : i32
    %1 = arith.muli %arg0, %c512_i32 : i32
    %2 = tpu.iota {dimensions = array<i32: 0>} : vector<512x1xi32>
    %3 = vector.broadcast %1 : i32 to vector<512x1xi32>
    %4 = arith.addi %3, %2 : vector<512x1xi32>
    %c600_i32 = arith.constant 600 : i32
    %5 = vector.broadcast %c600_i32 : i32 to vector<512x1xi32>
    %6 = arith.cmpi slt, %4, %5 : vector<512x1xi32>
    %cst = arith.constant 0.000000e+00 : f32
    %7 = vector.shape_cast %6 : vector<512x1xi1> to vector<512x1xi1>
    %8 = vector.broadcast %7 : vector<512x1xi1> to vector<512x256xi1>
    %9 = vector.broadcast %cst : f32 to vector<512x256xf32>
    %10 = arith.select %8, %0, %9 : vector<512x256xi1>, vector<512x256xf32>
    %c0_1 = arith.constant 0 : index
    %c0_2 = arith.constant 0 : index
    %11 = vector.load %arg2[%c0_1, %c0_2] : memref<4x256xf32, #tpu.memory_space<vmem>>, vector<1x256xf32>
    %c1 = arith.constant 1 : index
    %c0_3 = arith.constant 0 : index
    %12 = vector.load %arg2[%c1, %c0_3] : memref<4x256xf32, #tpu.memory_space<vmem>>, vector<1x256xf32>
    %c2 = arith.constant 2 : index
    %c0_4 = arith.constant 0 : index
    %13 = vector.load %arg2[%c2, %c0_4] : memref<4x256xf32, #tpu.memory_space<vmem>>, vector<1x256xf32>
    %c3 = arith.constant 3 : index
    %c0_5 = arith.constant 0 : index
    %14 = vector.load %arg2[%c3, %c0_5] : memref<4x256xf32, #tpu.memory_space<vmem>>, vector<1x256xf32>
    %cst_6 = arith.constant dense<0.000000e+00> : vector<512xf32>
    %15 = vector.multi_reduction <add>, %10, %cst_6 [1] : vector<512x256xf32> to vector<512xf32>
    %16 = vector.shape_cast %15 : vector<512xf32> to vector<512x1xf32>
    %cst_7 = arith.constant 2.560000e+02 : f32
    %17 = vector.broadcast %cst_7 : f32 to vector<512x1xf32>
    %18 = arith.divf %16, %17 : vector<512x1xf32>
    %19 = vector.broadcast %18 : vector<512x1xf32> to vector<512x256xf32>
    %20 = arith.subf %10, %19 : vector<512x256xf32>
    %21 = arith.mulf %20, %20 : vector<512x256xf32>
    %cst_8 = arith.constant dense<0.000000e+00> : vector<512xf32>
    %22 = vector.multi_reduction <add>, %21, %cst_8 [1] : vector<512x256xf32> to vector<512xf32>
    %23 = vector.shape_cast %22 : vector<512xf32> to vector<512x1xf32>
    %cst_9 = arith.constant 2.560000e+02 : f32
    %24 = vector.broadcast %cst_9 : f32 to vector<512x1xf32>
    %25 = arith.divf %23, %24 : vector<512x1xf32>
    %cst_10 = arith.constant 9.99999974E-6 : f32
    %26 = vector.broadcast %cst_10 : f32 to vector<512x1xf32>
    %27 = arith.addf %25, %26 : vector<512x1xf32>
    %28 = math.rsqrt %27 : vector<512x1xf32>
    %29 = vector.broadcast %28 : vector<512x1xf32> to vector<512x256xf32>
    %30 = vector.broadcast %11 : vector<1x256xf32> to vector<512x256xf32>
    %31 = arith.mulf %29, %30 : vector<512x256xf32>
    %32 = arith.mulf %20, %31 : vector<512x256xf32>
    %33 = vector.broadcast %12 : vector<1x256xf32> to vector<512x256xf32>
    %34 = arith.addf %32, %33 : vector<512x256xf32>
    %c0_11 = arith.constant 0 : index
    %c0_12 = arith.constant 0 : index
    %35 = vector.load %arg3[%c0_11, %c0_12] : memref<256x256xf32, #tpu.memory_space<vmem>>, vector<256x256xf32>
    %c0_13 = arith.constant 0 : index
    %c0_14 = arith.constant 0 : index
    %36 = vector.load %arg4[%c0_13, %c0_14] : memref<256x256xf32, #tpu.memory_space<vmem>>, vector<256x256xf32>
    %cst_15 = arith.constant dense<0.000000e+00> : vector<512x256xf32>
    %37 = tpu.matmul %34, %35, %cst_15 {dimension_numbers = #tpu.dot_dimension_numbers<[1], [0], [0], [1], [0, 0, 1, 1], [], []>} : vector<512x256xf32>, vector<256x256xf32>, vector<512x256xf32> -> vector<512x256xf32>
    %38 = vector.broadcast %13 : vector<1x256xf32> to vector<512x256xf32>
    %39 = arith.addf %37, %38 : vector<512x256xf32>
    %cst_16 = arith.constant 5.000000e-01 : f32
    %40 = vector.broadcast %cst_16 : f32 to vector<512x256xf32>
    %41 = arith.mulf %40, %39 : vector<512x256xf32>
    %cst_17 = arith.constant 0.707106769 : f32
    %42 = vector.broadcast %cst_17 : f32 to vector<512x256xf32>
    %43 = arith.mulf %39, %42 : vector<512x256xf32>
    %44 = math.erf %43 : vector<512x256xf32>
    %cst_18 = arith.constant 1.000000e+00 : f32
    %45 = vector.broadcast %cst_18 : f32 to vector<512x256xf32>
    %46 = arith.addf %45, %44 : vector<512x256xf32>
    %47 = arith.mulf %41, %46 : vector<512x256xf32>
    %cst_19 = arith.constant dense<0.000000e+00> : vector<512x256xf32>
    %48 = tpu.matmul %47, %36, %cst_19 {dimension_numbers = #tpu.dot_dimension_numbers<[1], [0], [0], [1], [0, 0, 1, 1], [], []>} : vector<512x256xf32>, vector<256x256xf32>, vector<512x256xf32> -> vector<512x256xf32>
    %49 = vector.broadcast %14 : vector<1x256xf32> to vector<512x256xf32>
    %50 = arith.addf %48, %49 : vector<512x256xf32>
    %51 = arith.addf %34, %50 : vector<512x256xf32>
    %c0_20 = arith.constant 0 : index
    %c0_21 = arith.constant 0 : index
    %52 = vector.load %arg5[%c0_20, %c0_21] : memref<512x256xf32, #tpu.memory_space<vmem>>, vector<512x256xf32>
    tpu.vector_store %arg5[%c0_20, %c0_21], %51 {strides = array<i32>} : memref<512x256xf32, #tpu.memory_space<vmem>>, vector<512x256xf32>,
    return
  }
  func.func @transform_0(%arg0: i32) -> (i32, i32) {
    %c0_i32 = arith.constant 0 : i32
    %c0_i32_0 = arith.constant 0 : i32
    return %arg0, %c0_i32 : i32, i32
  }
  func.func @transform_1(%arg0: i32) -> (i32, i32) {
    %c0_i32 = arith.constant 0 : i32
    %c0_i32_0 = arith.constant 0 : i32
    %c0_i32_1 = arith.constant 0 : i32
    return %c0_i32, %c0_i32_0 : i32, i32
  }
  func.func @transform_2(%arg0: i32) -> (i32, i32) {
    %c0_i32 = arith.constant 0 : i32
    %c0_i32_0 = arith.constant 0 : i32
    %c0_i32_1 = arith.constant 0 : i32
    return %c0_i32, %c0_i32_0 : i32, i32
  }
  func.func @transform_3(%arg0: i32) -> (i32, i32) {
    %c0_i32 = arith.constant 0 : i32
    %c0_i32_0 = arith.constant 0 : i32
    %c0_i32_1 = arith.constant 0 : i32
    return %c0_i32, %c0_i32_0 : i32, i32
  }
  func.func @transform_4(%arg0: i32) -> (i32, i32) {
    %c0_i32 = arith.constant 0 : i32
    %c0_i32_0 = arith.constant 0 : i32
    return %arg0, %c0_i32 : i32, i32
  }
}

</mosaic_0001>

<bundles_post_ra>
// kernel: tpu_custom_call.1
= control target key start
LH: loop header
LB: loop body
LE: loop exit
PB: predicated region body
PF: predicated region fallthrough
CT: control target
= control target key end

     0   :  { %9 = vsyncpa [#allocation3], 0  ;;  %s8422_s0 = inlined_call_operand.hbm [shape: f32[600,256], index: 0, kind: input, shape index: {}]   ;;  %s8423_s1 = inlined_call_operand.hbm [shape: f32[4,256], index: 1, kind: input, shape index: {}]   ;;  %s8424_s2 = inlined_call_operand.hbm [shape: f32[256,256], index: 2, kind: input, shape index: {}]   ;;  %s8425_s3 = inlined_call_operand.hbm [shape: f32[256,256], index: 3, kind: input, shape index: {}]   ;;  %s8426_s4 = inlined_call_operand.hbm [shape: f32[600,256], index: 4, kind: output, shape index: {}]  }
   0x1   :  { %11 = vsyncpa [#allocation3 + $0x1], 0 }
   0x2   :  { %12 = vsyncpa [#allocation6], 0 }
   0x3   :  { %13 = vsyncpa [#allocation9], 0 }
   0x4   :  { %14 = vsyncpa [#allocation4], 0 }
   0x5   :  { %16 = vsyncpa [#allocation4 + $0x1], 0  ;;  %s4948_s15 = smov 0   ;;  %s4950_s16 = smov 0  }
   0x6   :  { %s4952_s17 = smov 0   ;;  %s4954_s18 = smov 0  }
   0x7 LB: > { %s4969_s19 = sadd.s32 4294967295, %s4910_s18   ;;  %s4235_s20 = sadd.s32 4294967294, %s4910_s18   ;;  %s4910_s18 = sphi %s4954_s18, %s9239_s18   ;;  %s4906_s17 = sphi %s4952_s17, %s9238_s17   ;;  %s4902_s16 = sphi %s4950_s16, %s9237_s16   ;;  %s4898_s15 = sphi %s4948_s15, %s9236_s15  }
   0x8   : > { %s4973_s21 = sadd.s32 1, %s4910_s18   ;;  %s29_s22 = sadd.s32 1, %s4906_s17 }
   0x9   : > { %s26_s23 = ssub.s32 %s4910_s18, %s4973_s21  ;;  %p36_p0 = scmp.ne.s32.totalorder %s4906_s17, %s4902_s16 }
   0xa   : > { %p27_p1 = scmp.eq.s32.totalorder %s26_s23, 0  ;;  %p37_p2 = scmp.eq.s32.totalorder %s4910_s18, 0 }
   0xb   : > { %p42_p3 = scmp.ne.s32.totalorder %s4902_s16, %s4898_s15  ;;  %p8427_p4 = scmp.eq.s32.totalorder %s4969_s19, 0 }
   0xc   : > { %s4985_s24 = scalar_select %p27_p1, %s4906_s17, %s29_s22  }
   0xd   : > { %p4987_p5 = por %p37_p2, %p36_p0  ;;  %p4993_p6 = por %p8427_p4, %p42_p3 }
   0xe   : > { %p129_p7 = scmp.eq.s32.totalorder %s4969_s19, 1  ;;  %p135_p8 = scmp.eq.s32.totalorder %s4235_s20, 1 }
   0xf   : > { %s8695_s25 = scalar_select %p4987_p5, 1, 0 }
  0x10   : > { %s8696_s26 = scalar_select %p4993_p6, 1, 0 }
  0x11   : > { %p4236_p9 = scmp.ge.s32.totalorder %s4910_s18, 1  ;;  %p142_p10 = scmp.lt.s32.totalorder %s4910_s18, 3 }
  0x12   : > { %p5000_p11 = por %p129_p7, %p36_p0  ;;  %p5004_p12 = por %p135_p8, %p42_p3 }
  0x13   : > { %p5008_p13 = pnand %p4236_p9, %p142_p10  ;;  %s4912_s30 = smov [#allocation5]  }
  0x14   : > { %s8697_s27 = scalar_select %p5000_p11, 1, 0 }
  0x15   : > { %s8698_s28 = scalar_select %p5004_p12, 1, 0 }
  0x16   : > { %s8699_s29 = scalar_select %p5008_p13, 1, 0 }
  0x17   : > { %p4288_p1 = pneg %p5008_p13  ;;  %s155_s5 = sshll.u32 %s4912_s30, 4  ;;  %s156_s5 = int_to_ptr.vmem [resolvable:$true] %s155_s5 }
  0x18   : > { %s4913_s6 = smov [#allocation7]   ;;  %s4745_s9 = scalar_lea.vmem %s156_s5, 128 }
  0x19   : > { %s165_s7 = sshll.u32 %s4913_s6, 4  ;;  %p5016_p0 = pnand %p4288_p1, %p8427_p4  ;;  %s166_s7 = int_to_ptr.vmem [resolvable:$true] %s165_s7 }
  0x1a   : > { %p4746_p3 = scmp.ne.s32.totalorder %s156_s5, %s4745_s9  ;;  %p4753_p9 = scmp.lt.s32.totalorder %s156_s5, %s156_s5 }
  0x1b   : > { %p4736_p2 = pneg %p5016_p0  ;;  %p4754_p10 = scmp.lt.s32.totalorder %s4745_s9, %s4745_s9 }
  0x1d   : > { %p4748_p7 = pnand %p4746_p3, %p4736_p2  ;;  %p4755_p12 = por %p4754_p10, %p4753_p9 }
  0x1f   : > { %p4749_p8 = pneg %p4748_p7 }
  0x21   : > { %p4756_p11 = pnand %p4755_p12, %p4749_p8 }
  0x23   : > { %4759 = shalt.err (!%p4756_p11)
}
  0x24   : > { %4291 = dma.hbm_to_vmem [thread:$0]  (!%p5016_p0), %s8423_s1, 128, %s156_s5, [#allocation6]  }
  0x25   : > { %s4771_s12 = scalar_lea.vmem %s166_s7, 8192  ;;  %p4779_p3 = scmp.lt.s32.totalorder %s166_s7, %s166_s7 }
  0x26   : > { %p4772_p1 = scmp.ne.s32.totalorder %s166_s7, %s4771_s12  ;;  %p4780_p7 = scmp.lt.s32.totalorder %s4771_s12, %s4771_s12 }
  0x28   : > { %p4774_p4 = pnand %p4772_p1, %p4736_p2  ;;  %p4781_p13 = por %p4780_p7, %p4779_p3 }
  0x2a   : > { %p4775_p6 = pneg %p4774_p4 }
  0x2c   : > { %p4782_p5 = pnand %p4781_p13, %p4775_p6 }
  0x2e   : > { %4785 = shalt.err (!%p4782_p5)
}
  0x2f   : > { %s4914_s13 = smov 256   ;;  %s4915_s14 = smov 16  }
  0x30   : > { %4294 = dma.hbm_to_vmem [thread:$0]  (!%p5016_p0), %s8424_s2, 8192, %s166_s7, [#allocation6], %s4914_s13, %s4914_s13, %s4915_s14  }
  0x31   : > { %s4916_s23 = smov [#allocation8]  }
  0x32   : > { %s178_s30 = sshll.u32 %s4916_s23, 4  ;;  %s179_s30 = int_to_ptr.vmem [resolvable:$true] %s178_s30 }
  0x33   : > { %s4797_s5 = scalar_lea.vmem %s179_s30, 8192  ;;  %p4805_p6 = scmp.lt.s32.totalorder %s179_s30, %s179_s30 }
  0x34   : > { %p4798_p11 = scmp.ne.s32.totalorder %s179_s30, %s4797_s5  ;;  %p4806_p5 = scmp.lt.s32.totalorder %s4797_s5, %s4797_s5 }
  0x36   : > { %p4800_p4 = pnand %p4798_p11, %p4736_p2  ;;  %p4807_p13 = por %p4806_p5, %p4805_p6 }
  0x38   : > { %p4801_p12 = pneg %p4800_p4 }
  0x3a   : > { %p4808_p8 = pnand %p4807_p13, %p4801_p12 }
  0x3c   : > { %4811 = shalt.err (!%p4808_p8)
}
  0x3d   : > { %4297 = dma.hbm_to_vmem [thread:$0]  (!%p5016_p0), %s8425_s3, 8192, %s179_s30, [#allocation9], %s4914_s13, %s4914_s13, %s4915_s14  }
  0x3e   : > { %p4240_p9 = scmp.ge.s32.totalorder %s4910_s18, 2 }
  0x3f   : > { %p8701_p10 = scmp.ne.s32.totalorder (!%p4240_p9), %s8695_s25, 0 }
  0x40   : > { %188 = sbr.rel (%p4240_p9) target bundleno = 101 (0x65), region = 28 }
  0x45   : > { %191 = sbr.rel (!%p8701_p10) target bundleno = 101 (0x65), region = 32  ;;  %s192_s7 = sand.u32 (%p8701_p10), 1, %s4906_s17  }
  0x46   : > { %s4242_s10 = sshll.u32 (%p8701_p10), %s4910_s18, 6  ;;  %s4241_s11 = sshll.u32 (%p8701_p10), %s192_s7, 10 }
  0x47   : > { %s198_s12 = ssub.s32 (%p8701_p10), 75, %s4242_s10  ;;  %s5056_s14 = scalar_lea.sflag (%p8701_p10), [#allocation3], %s192_s7 }
  0x48   : > { %p199_p2 = scmp.lt.s32.totalorder (%p8701_p10), %s198_s12, 64  ;;  %s196_s20 = scalar_lea.vmem (%p8701_p10), [#allocation2], %s4241_s11 }
  0x4a   : > { %s9241_s12 = smov (!%p199_p2, %s198_s12), 64 }
  0x4b   : > { %s5053_s8 = sshll.u32 %s9241_s12, 8 }
  0x4c   : > { %s204_s13 = ssub.s32 16384, %s5053_s8 }
  0x4d   : > { %205 = vsyncadd %s5056_s14, %s204_s13  ;;  %p4245_p0 = scmp.ne.s32.totalorder %s5053_s8, 0  ;;  %s4270_s25 = sshll.u32 %s4910_s18, 14 }
  0x4e   : > { %s5064_s30 = scalar_lea.hbm %s8422_s0, %s4270_s25  ;;  %s211_s5 = sshll.u32 %s196_s20, 4  ;;  %s5066_s5 = int_to_ptr.vmem [resolvable:$true] %s211_s5 }
  0x4f   : > { %s4812_s6 = scalar_lea.hbm %s5064_s30, %s5053_s8  ;;  %s4816_s10 = scalar_lea.hbm %s8422_s0, 19200 }
  0x50   : > { %p4813_p1 = scmp.ne.s32.totalorder %s5064_s30, %s4812_s6  ;;  %p4817_p11 = scmp.lt.s32.totalorder %s5064_s30, %s8422_s0 }
  0x51   : > { %p4818_p4 = scmp.lt.s32.totalorder %s4816_s10, %s4812_s6 }
  0x52   : > { %p4814_p3 = pnand %p4813_p1, %p4245_p0 }
  0x53   : > { %p4819_p12 = por %p4818_p4, %p4817_p11 }
  0x54   : > { %p4815_p7 = pneg %p4814_p3 }
  0x56   : > { %p4820_p6 = pnand %p4819_p12, %p4815_p7 }
  0x58   : > { %4823 = shalt.err (!%p4820_p6)
}
  0x59   : > { %s4824_s13 = scalar_lea.vmem %s5066_s5, %s5053_s8  ;;  %s4917_s20 = smov [#allocation2]  }
  0x5a   : > { %p4825_p5 = scmp.ne.s32.totalorder %s5066_s5, %s4824_s13  ;;  %s4828_s25 = sshll.u32 %s4917_s20, 4  ;;  %s4829_s25 = int_to_ptr.vmem [resolvable:$false] %s4828_s25 }
  0x5b   : > { %s4830_s22 = scalar_lea.vmem %s4829_s25, 32768  ;;  %p4831_p10 = scmp.lt.s32.totalorder %s5066_s5, %s4829_s25 }
  0x5c   : > { %p4826_p13 = pnand %p4825_p5, %p4245_p0  ;;  %p4832_p2 = scmp.lt.s32.totalorder %s4830_s22, %s4824_s13 }
  0x5e   : > { %p4827_p8 = pneg %p4826_p13  ;;  %p4833_p1 = por %p4832_p2, %p4831_p10 }
  0x60   : > { %p4834_p3 = pnand %p4833_p1, %p4827_p8 }
  0x62   : > { %4837 = shalt.err (!%p4834_p3)
}
  0x63   : > { %s4918_s23 = smov 256   ;;  %s4919_s6 = smov 16  }
  0x64   : > { %217 = dma.hbm_to_vmem [thread:$0]  (%p4245_p0), %s5064_s30, %s5053_s8, %s5066_s5, %s5056_s14, %s4918_s23, %s4918_s23, %s4919_s6  }
  0x65 PF: > { %p8702_p7 = scmp.ne.s32.totalorder %s8699_s29, 0 }
  0x67   : > { %223 = sbr.rel (%p8702_p7) target bundleno = 1137 (0x471), region = 36 }
  0x6c   : > { %s5095_s9 = sand.u32 1, %s4902_s16   ;;  %p8703_p11 = scmp.ne.s32.totalorder %s8696_s26, 0 }
  0x6d   : > { %s4251_s7 = sshll.u32 %s5095_s9, 10  ;;  %s226_s10 = scalar_lea.sflag [#allocation3], %s5095_s9 }
  0x6e   : > { %s5101_s11 = scalar_lea.vmem [#allocation2], %s4251_s7 }
  0x6f   : > { %4881 = dma.done.wait (%p8703_p11), %s226_s10, 16384  }
  0x70   : > { %4883 = vsyncadd (%p8703_p11), %s226_s10, 4294950912  ;;  %p8704_p0 = scmp.eq.s32.totalorder %s4969_s19, 0 }
  0x72   : > { %4885 = dma.done.wait (%p8704_p0), [#allocation6], 8320   ;;  %p8705_p4 = pmov %p8704_p0 }
  0x73   : > { %p8706_p12 = pmov %p8704_p0 }
  0x74   : > { %4887 = vsyncadd (%p8705_p4), [#allocation6], 4294958976 }
  0x75   : > { %4889 = dma.done.wait (%p8706_p12), [#allocation9], 8192   ;;  %p8707_p6 = pmov %p8704_p0 }
  0x76   : > { %s4256_s29 = sshll.u32 %s4969_s19, 9  ;;  %v407_v0 = vlaneseq  ;;  %v278_v13 = vld [vmem:[%s5101_s11] sm:$0xff]  ;;  %v279_v14 = vld [vmem:[%s5101_s11 + $0x8] sm:$0xff]  ;;  %v280_v22 = vld [vmem:[%s5101_s11 + $0x10] sm:$0xff]  ;;  %s7887_s26 = scalar_lea.vmem [#allocation10], %s4251_s7 }
  0x77   : > { %4891 = vsyncadd (%p8707_p6), [#allocation9], 4294959104  ;;  %v5116_v1 = vstv %s4256_s29  ;;  %v282_v15 = vld [vmem:[%s5101_s11 + $0x20] sm:$0xff]  ;;  %v283_v21 = vld [vmem:[%s5101_s11 + $0x28] sm:$0xff]  ;;  %s4112_s8 = scalar_lea.sflag [#allocation4], %s5095_s9  ;;  %p9234_p5 = scmp.ne.s32.totalorder %s8697_s27, 0 }
  0x78   : > { %v5118_v2 = vshrl.u32 %v407_v0, 7  ;;  %v281_v23 = vld [vmem:[%s5101_s11 + $0x18] sm:$0xff]  ;;  %v284_v28 = vld [vmem:[%s5101_s11 + $0x30] sm:$0xff]  ;;  %v286_v38 = vld [vmem:[%s5101_s11 + $0x40] sm:$0xff]  ;;  %s4258_s14 = sshll.u32 (%p9234_p5), %s4969_s19, 6 }
  0x79   : > { %v285_v29 = vld [vmem:[%s5101_s11 + $0x38] sm:$0xff]  ;;  %v288_v33 = vld [vmem:[%s5101_s11 + $0x50] sm:$0xff]  ;;  %v287_v39 = vld [vmem:[%s5101_s11 + $0x48] sm:$0xff]  ;;  %s4120_s30 = ssub.s32 (%p9234_p5), 75, %s4258_s14 }
  0x7a   : > { %v473_v3 = vadd.s32 %v5116_v1, %v5118_v2  ;;  %v410_v4 = vadd.s32 16, %v5118_v2  ;;  %v409_v5 = vadd.s32 8, %v5118_v2  ;;  %v411_v6 = vadd.s32 24, %v5118_v2  ;;  %v289_v34 = vld [vmem:[%s5101_s11 + $0x58] sm:$0xff]  ;;  %v292_v44 = vld [vmem:[%s5101_s11 + $0x70] sm:$0xff]  ;;  %v290_v59 = vld [vmem:[%s5101_s11 + $0x60] sm:$0xff] }
  0x7b   : > { %v413_v7 = vadd.s32 40, %v5118_v2  ;;  %v415_v8 = vadd.s32 56, %v5118_v2  ;;  %v412_v9 = vadd.s32 32, %v5118_v2  ;;  %v417_v18 = vadd.s32 72, %v5118_v2  ;;  %v293_v45 = vld [vmem:[%s5101_s11 + $0x78] sm:$0xff]  ;;  %v296_v54 = vld [vmem:[%s5101_s11 + $0x90] sm:$0xff] }
  0x7c   : > { %vm537_vm0 = vcmp.lt.s32.totalorder %v473_v3, 600  ;;  %v475_v10 = vadd.s32 %v5116_v1, %v410_v4  ;;  %v474_v11 = vadd.s32 %v5116_v1, %v409_v5  ;;  %v476_v12 = vadd.s32 %v5116_v1, %v411_v6  ;;  %v297_v55 = vld [vmem:[%s5101_s11 + $0x98] sm:$0xff]  ;;  %v291_v60 = vld [vmem:[%s5101_s11 + $0x68] sm:$0xff]  ;;  %v294_v4 = vld [vmem:[%s5101_s11 + $0x80] sm:$0xff]  ;;  %p4121_p13 = scmp.lt.s32.totalorder (%p9234_p5), %s4120_s30, 64 }
  0x7d   : > { %v478_v16 = vadd.s32 %v5116_v1, %v413_v7  ;;  %v480_v17 = vadd.s32 %v5116_v1, %v415_v8  ;;  %v5137_v19 = vsel %vm537_vm0, %v278_v13, 0.0  ;;  %v5139_v20 = vsel %vm537_vm0, %v279_v14, 0.0 }
  0x7e   : > { %vm539_vm1 = vcmp.lt.s32.totalorder %v475_v10, 600  ;;  %v477_v24 = vadd.s32 %v5116_v1, %v412_v9  ;;  %v864_v25 = vadd.f32 %v5139_v20, %v5137_v19  ;;  %vm538_vm2 = vcmp.lt.s32.totalorder %v474_v11, 600  ;;  %v295_v9 = vld [vmem:[%s5101_s11 + $0x88] sm:$0xff]  ;;  %v300_v10 = vld [vmem:[%s5101_s11 + $0xb0] sm:$0xff]  ;;  %v301_v11 = vld [vmem:[%s5101_s11 + $0xb8] sm:$0xff] }
  0x7f   : > { %v5147_v26 = vsel %vm539_vm1, %v282_v15, 0.0  ;;  %v5149_v27 = vsel %vm539_vm1, %v283_v21, 0.0  ;;  %v5155_v31 = vsel %vm538_vm2, %v280_v22, 0.0  ;;  %v5157_v32 = vsel %vm538_vm2, %v281_v23, 0.0  ;;  %v304_v21 = vld [vmem:[%s5101_s11 + $0xd0] sm:$0xff]  ;;  %v305_v23 = vld [vmem:[%s5101_s11 + $0xd8] sm:$0xff] }
  0x80   : > { %v870_v30 = vadd.f32 %v5149_v27, %v5147_v26  ;;  %vm540_vm3 = vcmp.lt.s32.totalorder %v476_v12, 600  ;;  %865 = vadd.xlane.f32.xlu0 %v864_v25  ;;  %v867_v35 = vadd.f32 %v5157_v32, %v5155_v31  ;;  %vm542_vm4 = vcmp.lt.s32.totalorder %v478_v16, 600 }
  0x81   : > { %v5163_v36 = vsel %vm540_vm3, %v284_v28, 0.0  ;;  %v5165_v37 = vsel %vm540_vm3, %v285_v29, 0.0  ;;  %v482_v41 = vadd.s32 %v5116_v1, %v417_v18  ;;  %v5172_v42 = vsel %vm542_vm4, %v288_v33, 0.0  ;;  %v298_v28 = vld [vmem:[%s5101_s11 + $0xa0] sm:$0xff]  ;;  %v299_v29 = vld [vmem:[%s5101_s11 + $0xa8] sm:$0xff] }
  0x82   : > { %871 = vadd.xlane.f32.xlu1 %v870_v30  ;;  %v873_v40 = vadd.f32 %v5165_v37, %v5163_v36  ;;  %v5174_v43 = vsel %vm542_vm4, %v289_v34, 0.0  ;;  %vm544_vm5 = vcmp.lt.s32.totalorder %v480_v17, 600  ;;  %vm541_vm6 = vcmp.lt.s32.totalorder %v477_v24, 600 }
  0x83   : > { %v5178_v46 = vsel %vm541_vm6, %v286_v38, 0.0  ;;  %v5180_v47 = vsel %vm541_vm6, %v287_v39, 0.0  ;;  %v419_v49 = vadd.s32 88, %v5118_v2  ;;  %v879_v50 = vadd.f32 %v5174_v43, %v5172_v42 }
  0x84   : > { %868 = vadd.xlane.f32.xlu0 %v867_v35  ;;  %v876_v48 = vadd.f32 %v5180_v47, %v5178_v46  ;;  %v5187_v51 = vsel %vm544_vm5, %v292_v44, 0.0  ;;  %v414_v52 = vadd.s32 48, %v5118_v2  ;;  %v5190_v53 = vsel %vm544_vm5, %v293_v45, 0.0  ;;  %v302_v44 = vld [vmem:[%s5101_s11 + $0xc0] sm:$0xff] }
  0x85   : > { %vm546_vm7 = vcmp.lt.s32.totalorder %v482_v41, 600  ;;  %v421_v56 = vadd.s32 104, %v5118_v2  ;;  %v416_v57 = vadd.s32 64, %v5118_v2  ;;  %v484_v58 = vadd.s32 %v5116_v1, %v419_v49  ;;  %v309_v49 = vld [vmem:[%s5101_s11 + $0xf8] sm:$0xff] }
  0x86   : > { %874 = vadd.xlane.f32.xlu1 %v873_v40  ;;  %v479_v61 = vadd.s32 %v5116_v1, %v414_v52  ;;  %v885_v63 = vadd.f32 %v5190_v53, %v5187_v51  ;;  %v5203_v0 = vsel %vm546_vm7, %v296_v54, 0.0  ;;  %v5205_v3 = vsel %vm546_vm7, %v297_v55, 0.0  ;;  %v303_v54 = vld [vmem:[%s5101_s11 + $0xc8] sm:$0xff] }
  0x87   : > { %v481_v62 = vadd.s32 %v5116_v1, %v416_v57  ;;  %v486_v7 = vadd.s32 %v5116_v1, %v421_v56  ;;  %v423_v8 = vadd.s32 120, %v5118_v2  ;;  %vm548_vm9 = vcmp.lt.s32.totalorder %v484_v58, 600 }
  0x88   : > { %877 = vadd.xlane.f32.xlu0 %v876_v48  ;;  %vm543_vm8 = vcmp.lt.s32.totalorder %v479_v61, 600  ;;  %v418_v13 = vadd.s32 80, %v5118_v2  ;;  %v891_v15 = vadd.f32 %v5205_v3, %v5203_v0  ;;  %v5226_v17 = vsel %vm548_vm9, %v300_v10, 0.0  ;;  %v308_v48 = vld [vmem:[%s5101_s11 + $0xf0] sm:$0xff] }
  0x89   : > { %v5208_v5 = vsel %vm543_vm8, %v290_v59, 0.0  ;;  %v5210_v6 = vsel %vm543_vm8, %v291_v60, 0.0  ;;  %vm545_vm10 = vcmp.lt.s32.totalorder %v481_v62, 600  ;;  %v5228_v18 = vsel %vm548_vm9, %v301_v11, 0.0  ;;  %v312_v62 = vld [vmem:[%s5101_s11 + $0x110] sm:$0xff] }
  0x8a   : > { %880 = vadd.xlane.f32.xlu1 %v879_v50  ;;  %v882_v12 = vadd.f32 %v5210_v6, %v5208_v5  ;;  %v5220_v14 = vsel %vm545_vm10, %v294_v4, 0.0  ;;  %v5224_v16 = vsel %vm545_vm10, %v295_v9, 0.0  ;;  %vm550_vm11 = vcmp.lt.s32.totalorder %v486_v7, 600  ;;  %v307_v9 = vld [vmem:[%s5101_s11 + $0xe8] sm:$0xff] }
  0x8b   : > { %v888_v22 = vadd.f32 %v5224_v16, %v5220_v14  ;;  %v488_v24 = vadd.s32 %v5116_v1, %v423_v8  ;;  %v425_v25 = vadd.s32 136, %v5118_v2  ;;  %v483_v30 = vadd.s32 %v5116_v1, %v418_v13  ;;  %v306_v8 = vld [vmem:[%s5101_s11 + $0xe0] sm:$0xff] }
  0x8c   : > { %883 = vadd.xlane.f32.xlu0 %v882_v12  ;;  %v420_v33 = vadd.s32 96, %v5118_v2  ;;  %v897_v34 = vadd.f32 %v5228_v18, %v5226_v17  ;;  %v5242_v35 = vsel %vm550_vm11, %v304_v21, 0.0  ;;  %v427_v38 = vadd.s32 152, %v5118_v2 }
  0x8d   : > { %vm547_vm12 = vcmp.lt.s32.totalorder %v483_v30, 600  ;;  %v5245_v39 = vsel %vm550_vm11, %v305_v23, 0.0  ;;  %vm552_vm13 = vcmp.lt.s32.totalorder %v488_v24, 600  ;;  %v490_v50 = vadd.s32 %v5116_v1, %v425_v25  ;;  %v317_v23 = vld [vmem:[%s5101_s11 + $0x138] sm:$0xff] }
  0x8e   : > { %886 = vadd.xlane.f32.xlu1 %v885_v63  ;;  %v5247_v40 = vsel %vm547_vm12, %v298_v28, 0.0  ;;  %v5249_v41 = vsel %vm547_vm12, %v299_v29, 0.0  ;;  %v485_v45 = vadd.s32 %v5116_v1, %v420_v33  ;;  %v422_v55 = vadd.s32 112, %v5118_v2  ;;  %v313_v63 = vld [vmem:[%s5101_s11 + $0x118] sm:$0xff]  ;;  %v310_v29 = vld [vmem:[%s5101_s11 + $0x100] sm:$0xff] }
  0x8f   : > { %v894_v52 = vadd.f32 %v5249_v41, %v5247_v40  ;;  %v903_v56 = vadd.f32 %v5245_v39, %v5242_v35  ;;  %v492_v57 = vadd.s32 %v5116_v1, %v427_v38  ;;  %v5265_v59 = vsel %vm552_vm13, %v308_v48, 0.0 }
  0x90   : > { %889 = vadd.xlane.f32.xlu0 %v888_v22  ;;  %vm549_vm14 = vcmp.lt.s32.totalorder %v485_v45, 600  ;;  %v5267_v60 = vsel %vm552_vm13, %v309_v49, 0.0  ;;  %vm554_vm15 = vcmp.lt.s32.totalorder %v490_v50, 600  ;;  %v428_v4 = vadd.s32 160, %v5118_v2  ;;  %v316_v22 = vld [vmem:[%s5101_s11 + $0x130] sm:$0xff]  ;;  %v318_v50 = vld [vmem:[%s5101_s11 + $0x140] sm:$0xff] }
  0x91   : > { %v5263_v58 = vsel %vm549_vm14, %v302_v44, 0.0  ;;  %v5269_v61 = vsel %vm549_vm14, %v303_v54, 0.0  ;;  %v487_v10 = vadd.s32 %v5116_v1, %v422_v55  ;;  %v909_v11 = vadd.f32 %v5267_v60, %v5265_v59 }
  0x92   : > { %892 = vadd.xlane.f32.xlu1 %v891_v15  ;;  %v900_v7 = vadd.f32 %v5269_v61, %v5263_v58  ;;  %vm556_vm0 = vcmp.lt.s32.totalorder %v492_v57, 600  ;;  %v424_v12 = vadd.s32 128, %v5118_v2  ;;  %v5282_v13 = vsel %vm554_vm15, %v312_v62, 0.0 }
  0x93   : > { %v5284_v15 = vsel %vm554_vm15, %v313_v63, 0.0  ;;  %v429_v21 = vadd.s32 168, %v5118_v2  ;;  %vm551_vm1 = vcmp.lt.s32.totalorder %v487_v10, 600  ;;  %v493_v24 = vadd.s32 %v5116_v1, %v428_v4  ;;  %v314_v63 = vld [vmem:[%s5101_s11 + $0x120] sm:$0xff]  ;;  %v315_v4 = vld [vmem:[%s5101_s11 + $0x128] sm:$0xff]  ;;  %v320_v10 = vld [vmem:[%s5101_s11 + $0x150] sm:$0xff] }
  0x94   : > { %895 = vadd.xlane.f32.xlu0 %v894_v52  ;;  %v5290_v25 = vsel %vm551_vm1, %v306_v8, 0.0  ;;  %v5292_v28 = vsel %vm551_vm1, %v307_v9, 0.0  ;;  %v489_v30 = vadd.s32 %v5116_v1, %v424_v12  ;;  %v915_v38 = vadd.f32 %v5284_v15, %v5282_v13  ;;  %v319_v52 = vld [vmem:[%s5101_s11 + $0x148] sm:$0xff] }
  0x95   : > { %v906_v33 = vadd.f32 %v5292_v28, %v5290_v25  ;;  %v426_v44 = vadd.s32 144, %v5118_v2  ;;  %v5303_v45 = vsel %vm556_vm0, %v316_v22, 0.0  ;;  %v5306_v48 = vsel %vm556_vm0, %v317_v23, 0.0 }
  0x96   : > { %898 = vadd.xlane.f32.xlu1 %v897_v34  ;;  %v311_v34 = vld [vmem:[%s5101_s11 + $0x108] sm:$0xff]  ;;  %vm553_vm2 = vcmp.lt.s32.totalorder %v489_v30, 600  ;;  %vm557_vm3 = vcmp.lt.s32.totalorder %v493_v24, 600  ;;  %v494_v54 = vadd.s32 %v5116_v1, %v429_v21  ;;  %v430_v55 = vadd.s32 176, %v5118_v2 }
  0x97   : > { %v5308_v49 = vsel %vm553_vm2, %v310_v29, 0.0  ;;  %v921_v57 = vadd.f32 %v5306_v48, %v5303_v45  ;;  %v5323_v8 = vsel %vm557_vm3, %v318_v50, 0.0  ;;  %v5325_v9 = vsel %vm557_vm3, %v319_v52, 0.0 }
  0x98   : > { %901 = vadd.xlane.f32.xlu0 %v900_v7  ;;  %v491_v7 = vadd.s32 %v5116_v1, %v426_v44  ;;  %8708 = vst [vmem:[#allocation15_spill] sm:$0xff] %v5325_v9  ;;  %vm558_vm4 = vcmp.lt.s32.totalorder %v494_v54, 600  ;;  %v495_v12 = vadd.s32 %v5116_v1, %v430_v55  ;;  %v431_v21 = vadd.s32 184, %v5118_v2 }
  0x99   : > { %v924_v24 = vadd.f32 %v5325_v9, %v5323_v8  ;;  %v5339_v30 = vsel %vm558_vm4, %v320_v10, 0.0  ;;  %v432_v50 = vadd.s32 192, %v5118_v2  ;;  %v459_v9 = vadd.s32 408, %v5118_v2 }
  0x9a   : > { %904 = vadd.xlane.f32.xlu1 %v903_v56  ;;  %v5314_v56 = vsel %vm553_vm2, %v311_v34, 0.0  ;;  %vm555_vm5 = vcmp.lt.s32.totalorder %v491_v7, 600  ;;  %8709 = vst [vmem:[#allocation16_spill] sm:$0xff] %v5339_v30  ;;  %v322_v34 = vld [vmem:[%s5101_s11 + $0x160] sm:$0xff]  ;;  %vm559_vm6 = vcmp.lt.s32.totalorder %v495_v12, 600  ;;  %v496_v44 = vadd.s32 %v5116_v1, %v431_v21  ;;  %v327_v21 = vld [vmem:[%s5101_s11 + $0x188] sm:$0xff] }
  0x9b   : > { %v912_v62 = vadd.f32 %v5314_v56, %v5308_v49  ;;  %v5331_v22 = vsel %vm555_vm5, %v314_v63, 0.0  ;;  %v5333_v23 = vsel %vm555_vm5, %v315_v4, 0.0  ;;  %v5349_v54 = vsel %vm559_vm6, %v322_v34, 0.0  ;;  %v326_v12 = vld [vmem:[%s5101_s11 + $0x180] sm:$0xff] }
  0x9c   : > { %907 = vadd.xlane.f32.xlu0 %v906_v33  ;;  %v918_v29 = vadd.f32 %v5333_v23, %v5331_v22  ;;  %8711 = vst [vmem:[#allocation18_spill] sm:$0xff] %v5349_v54  ;;  %vm560_vm7 = vcmp.lt.s32.totalorder %v496_v44, 600  ;;  %v497_v63 = vadd.s32 %v5116_v1, %v432_v50  ;;  %v433_v4 = vadd.s32 200, %v5118_v2  ;;  %v328_v50 = vld [vmem:[%s5101_s11 + $0x190] sm:$0xff] }
  0x9e   : > { %910 = vadd.xlane.f32.xlu1 %v909_v11  ;;  %v321_v11 = vld [vmem:[%s5101_s11 + $0x158] sm:$0xff]  ;;  %vm561_vm8 = vcmp.lt.s32.totalorder %v497_v63, 600 }
  0x9f   : > { %v5341_v33 = vsel %vm558_vm4, %v321_v11, 0.0  ;;  %v5371_v44 = vsel %vm561_vm8, %v327_v21, 0.0  ;;  %v331_v21 = vld [vmem:[%s5101_s11 + $0x1a8] sm:$0xff] }
  0xa0   : > { %913 = vadd.xlane.f32.xlu0 %v912_v62  ;;  %8710 = vst [vmem:[#allocation17_spill] sm:$0xff] %v5341_v33  ;;  %v927_v52 = vadd.f32 %v5341_v33, %v5339_v30  ;;  %v324_v62 = vld [vmem:[%s5101_s11 + $0x170] sm:$0xff]  ;;  %8716 = vst [vmem:[#allocation23_spill] sm:$0xff] %v5371_v44 }
  0xa1   : > { %v5359_v10 = vsel %vm560_vm7, %v324_v62, 0.0 }
  0xa2   : > { %916 = vadd.xlane.f32.xlu1 %v915_v38  ;;  %v323_v38 = vld [vmem:[%s5101_s11 + $0x168] sm:$0xff]  ;;  %8713 = vst [vmem:[#allocation20_spill] sm:$0xff] %v5359_v10 }
  0xa3   : > { %v5351_v55 = vsel %vm559_vm6, %v323_v38, 0.0  ;;  %v5369_v38 = vsel %vm561_vm8, %v326_v12, 0.0  ;;  %v330_v12 = vld [vmem:[%s5101_s11 + $0x1a0] sm:$0xff] }
  0xa4   : > { %919 = vadd.xlane.f32.xlu0 %v918_v29  ;;  %8712 = vst [vmem:[#allocation19_spill] sm:$0xff] %v5351_v55  ;;  %v930_v7 = vadd.f32 %v5351_v55, %v5349_v54  ;;  %v434_v29 = vadd.s32 208, %v5118_v2  ;;  %8715 = vst [vmem:[#allocation22_spill] sm:$0xff] %v5369_v38  ;;  %v936_v63 = vadd.f32 %v5371_v44, %v5369_v38  ;;  %v363_v55 = vld [vmem:[%s5101_s11 + $0x2a8] sm:$0xff]  ;;  %v369_v54 = vld [vmem:[%s5101_s11 + $0x2d8] sm:$0xff] }
  0xa6   : > { %922 = vadd.xlane.f32.xlu1 %v921_v57  ;;  %v325_v57 = vld [vmem:[%s5101_s11 + $0x178] sm:$0xff]  ;;  %v499_v62 = vadd.s32 %v5116_v1, %v434_v29  ;;  %v436_v29 = vadd.s32 224, %v5118_v2 }
  0xa7   : > { %v5361_v11 = vsel %vm560_vm7, %v325_v57, 0.0  ;;  %v435_v57 = vadd.s32 216, %v5118_v2 }
  0xa8   : > { %8714 = vst [vmem:[#allocation21_spill] sm:$0xff] %v5361_v11  ;;  %v933_v34 = vadd.f32 %v5361_v11, %v5359_v10  ;;  %vm563_vm10 = vcmp.lt.s32.totalorder %v499_v62, 600  ;;  %v501_v62 = vadd.s32 %v5116_v1, %v436_v29  ;;  %v438_v29 = vadd.s32 240, %v5118_v2 }
  0xa9   : > { %v5389_v11 = vsel %vm563_vm10, %v330_v12, 0.0  ;;  %v5391_v44 = vsel %vm563_vm10, %v331_v21, 0.0  ;;  %v334_v12 = vld [vmem:[%s5101_s11 + $0x1c0] sm:$0xff]  ;;  %v335_v21 = vld [vmem:[%s5101_s11 + $0x1c8] sm:$0xff] }
  0xaa   : > { %925 = vadd.xlane.f32.xlu1 %v924_v24  ;;  %v498_v24 = vadd.s32 %v5116_v1, %v433_v4  ;;  %8719 = vst [vmem:[#allocation26_spill] sm:$0xff] %v5389_v11  ;;  %8720 = vst [vmem:[#allocation27_spill] sm:$0xff] %v5391_v44  ;;  %vm565_vm12 = vcmp.lt.s32.totalorder %v501_v62, 600  ;;  %v503_v62 = vadd.s32 %v5116_v1, %v438_v29  ;;  %v440_v29 = vadd.s32 256, %v5118_v2 }
  0xac   : > { %vm562_vm9 = vcmp.lt.s32.totalorder %v498_v24, 600  ;;  %v500_v24 = vadd.s32 %v5116_v1, %v435_v57  ;;  %v437_v57 = vadd.s32 232, %v5118_v2  ;;  %vm567_vm14 = vcmp.lt.s32.totalorder %v503_v62, 600 }
  0xad   : > { %v5379_v4 = vsel %vm562_vm9, %v328_v50, 0.0  ;;  %v332_v50 = vld [vmem:[%s5101_s11 + $0x1b0] sm:$0xff]  ;;  %v505_v62 = vadd.s32 %v5116_v1, %v440_v29  ;;  %v442_v29 = vadd.s32 272, %v5118_v2 }
  0xae   : > { %928 = vadd.xlane.f32.xlu1 %v927_v52  ;;  %v329_v52 = vld [vmem:[%s5101_s11 + $0x198] sm:$0xff]  ;;  %8717 = vst [vmem:[#allocation24_spill] sm:$0xff] %v5379_v4  ;;  %vm564_vm11 = vcmp.lt.s32.totalorder %v500_v24, 600  ;;  %v502_v24 = vadd.s32 %v5116_v1, %v437_v57  ;;  %v439_v57 = vadd.s32 248, %v5118_v2 }
  0xaf   : > { %v5399_v38 = vsel %vm564_vm11, %v332_v50, 0.0  ;;  %v336_v50 = vld [vmem:[%s5101_s11 + $0x1d0] sm:$0xff]  ;;  %vm569_vm0 = vcmp.lt.s32.totalorder %v505_v62, 600  ;;  %v507_v62 = vadd.s32 %v5116_v1, %v442_v29  ;;  %v444_v29 = vadd.s32 288, %v5118_v2 }
  0xb0   : > { %8721 = vst [vmem:[#allocation28_spill] sm:$0xff] %v5399_v38  ;;  %vm566_vm13 = vcmp.lt.s32.totalorder %v502_v24, 600  ;;  %v504_v24 = vadd.s32 %v5116_v1, %v439_v57  ;;  %v441_v57 = vadd.s32 264, %v5118_v2 }
  0xb1   : > { %vm571_vm2 = vcmp.lt.s32.totalorder %v507_v62, 600  ;;  %v509_v62 = vadd.s32 %v5116_v1, %v444_v29  ;;  %v446_v29 = vadd.s32 304, %v5118_v2 }
  0xb2   : > { %931 = vadd.xlane.f32.xlu1 %v930_v7  ;;  %v5381_v7 = vsel %vm562_vm9, %v329_v52, 0.0  ;;  %v333_v52 = vld [vmem:[%s5101_s11 + $0x1b8] sm:$0xff]  ;;  %vm568_vm15 = vcmp.lt.s32.totalorder %v504_v24, 600  ;;  %v506_v24 = vadd.s32 %v5116_v1, %v441_v57  ;;  %v443_v57 = vadd.s32 280, %v5118_v2 }
  0xb3   : > { %8718 = vst [vmem:[#allocation25_spill] sm:$0xff] %v5381_v7  ;;  %vm573_vm4 = vcmp.lt.s32.totalorder %v509_v62, 600  ;;  %v511_v62 = vadd.s32 %v5116_v1, %v446_v29  ;;  %v448_v29 = vadd.s32 320, %v5118_v2 }
  0xb4   : > { %vm570_vm1 = vcmp.lt.s32.totalorder %v506_v24, 600  ;;  %v508_v24 = vadd.s32 %v5116_v1, %v443_v57  ;;  %v445_v57 = vadd.s32 296, %v5118_v2 }
  0xb5   : > { %vm575_vm6 = vcmp.lt.s32.totalorder %v511_v62, 600  ;;  %v513_v62 = vadd.s32 %v5116_v1, %v448_v29 }
  0xb6   : > { %934 = vadd.xlane.f32.xlu1 %v933_v34  ;;  %v939_v34 = vadd.f32 %v5381_v7, %v5379_v4  ;;  %v5401_v7 = vsel %vm564_vm11, %v333_v52, 0.0  ;;  %v5409_v4 = vsel %vm565_vm12, %v334_v12, 0.0  ;;  %v337_v52 = vld [vmem:[%s5101_s11 + $0x1d8] sm:$0xff]  ;;  %v338_v12 = vld [vmem:[%s5101_s11 + $0x1e0] sm:$0xff]  ;;  %vm572_vm3 = vcmp.lt.s32.totalorder %v508_v24, 600 }
  0xb7   : > { %8722 = vst [vmem:[#allocation29_spill] sm:$0xff] %v5401_v7  ;;  %8723 = vst [vmem:[#allocation30_spill] sm:$0xff] %v5409_v4  ;;  %v510_v24 = vadd.s32 %v5116_v1, %v445_v57  ;;  %v447_v57 = vadd.s32 312, %v5118_v2  ;;  %vm577_vm8 = vcmp.lt.s32.totalorder %v513_v62, 600  ;;  %v451_v62 = vadd.s32 344, %v5118_v2 }
  0xb9   : > { %vm574_vm5 = vcmp.lt.s32.totalorder %v510_v24, 600  ;;  %v512_v24 = vadd.s32 %v5116_v1, %v447_v57  ;;  %v449_v57 = vadd.s32 328, %v5118_v2 }
  0xba   : > { %937 = vadd.xlane.f32.xlu1 %v936_v63  ;;  %v942_v63 = vadd.f32 %v5391_v44, %v5389_v11  ;;  %v5411_v44 = vsel %vm565_vm12, %v335_v21, 0.0  ;;  %v5419_v11 = vsel %vm566_vm13, %v336_v50, 0.0  ;;  %v339_v21 = vld [vmem:[%s5101_s11 + $0x1e8] sm:$0xff]  ;;  %v340_v50 = vld [vmem:[%s5101_s11 + $0x1f0] sm:$0xff] }
  0xbb   : > { %8724 = vst [vmem:[#allocation31_spill] sm:$0xff] %v5411_v44  ;;  %8725 = vst [vmem:[#allocation32_spill] sm:$0xff] %v5419_v11  ;;  %vm576_vm7 = vcmp.lt.s32.totalorder %v512_v24, 600  ;;  %v450_v24 = vadd.s32 336, %v5118_v2 }
  0xbe   : > { %940 = vadd.xlane.f32.xlu1 %v939_v34  ;;  %v945_v34 = vadd.f32 %v5401_v7, %v5399_v38  ;;  %v5421_v7 = vsel %vm566_vm13, %v337_v52, 0.0  ;;  %v5429_v38 = vsel %vm567_vm14, %v338_v12, 0.0  ;;  %v341_v52 = vld [vmem:[%s5101_s11 + $0x1f8] sm:$0xff]  ;;  %v342_v12 = vld [vmem:[%s5101_s11 + $0x200] sm:$0xff] }
  0xbf   : > { %8726 = vst [vmem:[#allocation33_spill] sm:$0xff] %v5421_v7  ;;  %8727 = vst [vmem:[#allocation34_spill] sm:$0xff] %v5429_v38 }
  0xc2   : > { %943 = vadd.xlane.f32.xlu1 %v942_v63  ;;  %v948_v63 = vadd.f32 %v5411_v44, %v5409_v4  ;;  %v5431_v44 = vsel %vm567_vm14, %v339_v21, 0.0  ;;  %v5439_v4 = vsel %vm568_vm15, %v340_v50, 0.0  ;;  %v343_v21 = vld [vmem:[%s5101_s11 + $0x208] sm:$0xff]  ;;  %v344_v50 = vld [vmem:[%s5101_s11 + $0x210] sm:$0xff] }
  0xc3   : > { %8728 = vst [vmem:[#allocation35_spill] sm:$0xff] %v5431_v44  ;;  %8729 = vst [vmem:[#allocation36_spill] sm:$0xff] %v5439_v4 }
  0xc6   : > { %946 = vadd.xlane.f32.xlu1 %v945_v34  ;;  %v951_v34 = vadd.f32 %v5421_v7, %v5419_v11  ;;  %v5441_v7 = vsel %vm568_vm15, %v341_v52, 0.0  ;;  %v5449_v11 = vsel %vm569_vm0, %v342_v12, 0.0  ;;  %v345_v52 = vld [vmem:[%s5101_s11 + $0x218] sm:$0xff]  ;;  %v346_v12 = vld [vmem:[%s5101_s11 + $0x220] sm:$0xff] }
  0xc7   : > { %8730 = vst [vmem:[#allocation37_spill] sm:$0xff] %v5441_v7  ;;  %8731 = vst [vmem:[#allocation38_spill] sm:$0xff] %v5449_v11 }
  0xca   : > { %949 = vadd.xlane.f32.xlu1 %v948_v63  ;;  %v954_v63 = vadd.f32 %v5431_v44, %v5429_v38  ;;  %v5451_v44 = vsel %vm569_vm0, %v343_v21, 0.0  ;;  %v5459_v38 = vsel %vm570_vm1, %v344_v50, 0.0  ;;  %v347_v21 = vld [vmem:[%s5101_s11 + $0x228] sm:$0xff]  ;;  %v348_v50 = vld [vmem:[%s5101_s11 + $0x230] sm:$0xff] }
  0xcb   : > { %8732 = vst [vmem:[#allocation39_spill] sm:$0xff] %v5451_v44  ;;  %8733 = vst [vmem:[#allocation40_spill] sm:$0xff] %v5459_v38 }
  0xce   : > { %952 = vadd.xlane.f32.xlu1 %v951_v34  ;;  %v957_v34 = vadd.f32 %v5441_v7, %v5439_v4  ;;  %v5461_v7 = vsel %vm570_vm1, %v345_v52, 0.0  ;;  %v5469_v4 = vsel %vm571_vm2, %v346_v12, 0.0  ;;  %v349_v52 = vld [vmem:[%s5101_s11 + $0x238] sm:$0xff]  ;;  %v350_v12 = vld [vmem:[%s5101_s11 + $0x240] sm:$0xff] }
  0xcf   : > { %8734 = vst [vmem:[#allocation41_spill] sm:$0xff] %v5461_v7  ;;  %8735 = vst [vmem:[#allocation42_spill] sm:$0xff] %v5469_v4 }
  0xd2   : > { %955 = vadd.xlane.f32.xlu1 %v954_v63  ;;  %v960_v63 = vadd.f32 %v5451_v44, %v5449_v11  ;;  %v5471_v44 = vsel %vm571_vm2, %v347_v21, 0.0  ;;  %v5479_v11 = vsel %vm572_vm3, %v348_v50, 0.0  ;;  %v351_v21 = vld [vmem:[%s5101_s11 + $0x248] sm:$0xff]  ;;  %v352_v50 = vld [vmem:[%s5101_s11 + $0x250] sm:$0xff] }
  0xd3   : > { %8736 = vst [vmem:[#allocation43_spill] sm:$0xff] %v5471_v44  ;;  %8737 = vst [vmem:[#allocation44_spill] sm:$0xff] %v5479_v11 }
  0xd6   : > { %958 = vadd.xlane.f32.xlu1 %v957_v34  ;;  %v963_v34 = vadd.f32 %v5461_v7, %v5459_v38  ;;  %v5481_v7 = vsel %vm572_vm3, %v349_v52, 0.0  ;;  %v5489_v38 = vsel %vm573_vm4, %v350_v12, 0.0  ;;  %v353_v52 = vld [vmem:[%s5101_s11 + $0x258] sm:$0xff]  ;;  %v354_v12 = vld [vmem:[%s5101_s11 + $0x260] sm:$0xff] }
  0xd7   : > { %8738 = vst [vmem:[#allocation45_spill] sm:$0xff] %v5481_v7  ;;  %8739 = vst [vmem:[#allocation46_spill] sm:$0xff] %v5489_v38 }
  0xda   : > { %961 = vadd.xlane.f32.xlu1 %v960_v63  ;;  %v966_v63 = vadd.f32 %v5471_v44, %v5469_v4  ;;  %v5491_v44 = vsel %vm573_vm4, %v351_v21, 0.0  ;;  %v5499_v4 = vsel %vm574_vm5, %v352_v50, 0.0  ;;  %v355_v21 = vld [vmem:[%s5101_s11 + $0x268] sm:$0xff]  ;;  %v356_v50 = vld [vmem:[%s5101_s11 + $0x270] sm:$0xff] }
  0xdb   : > { %8740 = vst [vmem:[#allocation47_spill] sm:$0xff] %v5491_v44  ;;  %8741 = vst [vmem:[#allocation48_spill] sm:$0xff] %v5499_v4 }
  0xde   : > { %964 = vadd.xlane.f32.xlu1 %v963_v34  ;;  %v969_v34 = vadd.f32 %v5481_v7, %v5479_v11  ;;  %v5501_v7 = vsel %vm574_vm5, %v353_v52, 0.0  ;;  %v5509_v11 = vsel %vm575_vm6, %v354_v12, 0.0  ;;  %v357_v52 = vld [vmem:[%s5101_s11 + $0x278] sm:$0xff]  ;;  %v358_v12 = vld [vmem:[%s5101_s11 + $0x280] sm:$0xff] }
  0xdf   : > { %8742 = vst [vmem:[#allocation49_spill] sm:$0xff] %v5501_v7  ;;  %8743 = vst [vmem:[#allocation50_spill] sm:$0xff] %v5509_v11  ;;  %v5529_v10 = vsel %vm577_vm8, %v358_v12, 0.0 }
  0xe0   : > { %8747 = vst [vmem:[#allocation54_spill] sm:$0xff] %v5529_v10 }
  0xe2   : > { %967 = vadd.xlane.f32.xlu1 %v966_v63  ;;  %v972_v63 = vadd.f32 %v5491_v44, %v5489_v38  ;;  %v5511_v44 = vsel %vm575_vm6, %v355_v21, 0.0  ;;  %v5519_v38 = vsel %vm576_vm7, %v356_v50, 0.0  ;;  %v359_v21 = vld [vmem:[%s5101_s11 + $0x288] sm:$0xff]  ;;  %v360_v50 = vld [vmem:[%s5101_s11 + $0x290] sm:$0xff] }
  0xe3   : > { %8744 = vst [vmem:[#allocation51_spill] sm:$0xff] %v5511_v44  ;;  %8745 = vst [vmem:[#allocation52_spill] sm:$0xff] %v5519_v38 }
  0xe6   : > { %970 = vadd.xlane.f32.xlu1 %v969_v34  ;;  %v975_v34 = vadd.f32 %v5501_v7, %v5499_v4  ;;  %v5521_v7 = vsel %vm576_vm7, %v357_v52, 0.0  ;;  %v514_v4 = vadd.s32 %v5116_v1, %v449_v57  ;;  %v361_v52 = vld [vmem:[%s5101_s11 + $0x298] sm:$0xff]  ;;  %v2198_v57 = vld [vmem:[#allocation7 + $0xf8] sm:$0xff] }
  0xe7   : > { %8746 = vst [vmem:[#allocation53_spill] sm:$0xff] %v5521_v7  ;;  %v981_v29 = vadd.f32 %v5521_v7, %v5519_v38  ;;  %2306 = vmatprep.subr.mxu0 %v2198_v57  ;;  %v2197_v7 = vld [vmem:[#allocation7 + $0xf0] sm:$0xff]  ;;  %v2194_v57 = vld [vmem:[#allocation7 + $0xd8] sm:$0xff] }
  0xe8   : > { %vm578_vm9 = vcmp.lt.s32.totalorder %v514_v4, 600  ;;  %2307 = vmatpush1.msra.mxu0 %v2197_v7  ;;  %v516_v4 = vadd.s32 %v5116_v1, %v451_v62  ;;  %v2193_v7 = vld [vmem:[#allocation7 + $0xd0] sm:$0xff] }
  0xe9   : > { %v5539_v12 = vsel %vm578_vm9, %v360_v50, 0.0  ;;  %v5541_v38 = vsel %vm578_vm9, %v361_v52, 0.0  ;;  %v365_v62 = vld [vmem:[%s5101_s11 + $0x2b8] sm:$0xff] }
  0xea   : > { %973 = vadd.xlane.f32.xlu1 %v972_v63  ;;  %v978_v63 = vadd.f32 %v5511_v44, %v5509_v11  ;;  %v515_v44 = vadd.s32 %v5116_v1, %v450_v24  ;;  %8749 = vst [vmem:[#allocation56_spill] sm:$0xff] %v5539_v12  ;;  %8750 = vst [vmem:[#allocation57_spill] sm:$0xff] %v5541_v38  ;;  %v362_v11 = vld [vmem:[%s5101_s11 + $0x2a0] sm:$0xff]  ;;  %v452_v24 = vadd.s32 352, %v5118_v2  ;;  %vm580_vm11 = vcmp.lt.s32.totalorder %v516_v4, 600  ;;  %v2188_v4 = vld [vmem:[#allocation7 + $0xa8] sm:$0xff] }
  0xeb   : > { %v987_v50 = vadd.f32 %v5541_v38, %v5539_v12  ;;  %v5561_v38 = vsel %vm580_vm11, %v365_v62, 0.0  ;;  %v366_v12 = vld [vmem:[%s5101_s11 + $0x2c0] sm:$0xff]  ;;  %v455_v62 = vadd.s32 376, %v5118_v2 }
  0xec   : > { %vm579_vm10 = vcmp.lt.s32.totalorder %v515_v44, 600  ;;  %v2192_v44 = vld [vmem:[#allocation7 + $0xc8] sm:$0xff]  ;;  %8754 = vst [vmem:[#allocation61_spill] sm:$0xff] %v5561_v38 }
  0xed   : > { %v5549_v52 = vsel %vm579_vm10, %v362_v11, 0.0  ;;  %v2189_v11 = vld [vmem:[#allocation7 + $0xb0] sm:$0xff] }
  0xee   : > { %976 = vadd.xlane.f32.xlu1 %v975_v34  ;;  %v5531_v34 = vsel %vm577_vm8, %v359_v21, 0.0  ;;  %v2196_v21 = vld [vmem:[#allocation7 + $0xe8] sm:$0xff]  ;;  %8751 = vst [vmem:[#allocation58_spill] sm:$0xff] %v5549_v52 }
  0xef   : > { %8748 = vst [vmem:[#allocation55_spill] sm:$0xff] %v5531_v34  ;;  %2308 = vmatprep.subr.mxu0 %v2196_v21  ;;  %v517_v21 = vadd.s32 %v5116_v1, %v452_v24  ;;  %v367_v24 = vld [vmem:[%s5101_s11 + $0x2c8] sm:$0xff] }
  0xf1   : > { %vm581_vm12 = vcmp.lt.s32.totalorder %v517_v21, 600 }
  0xf2   : > { %979 = vadd.xlane.f32.xlu1 %v978_v63  ;;  %v984_v63 = vadd.f32 %v5531_v34, %v5529_v10  ;;  %v5551_v34 = vsel %vm579_vm10, %v363_v55, 0.0  ;;  %v364_v10 = vld [vmem:[%s5101_s11 + $0x2b0] sm:$0xff]  ;;  %v5572_v21 = vsel %vm581_vm12, %v367_v24, 0.0  ;;  %v520_v24 = vadd.s32 %v5116_v1, %v455_v62  ;;  %v2178_v62 = vld [vmem:[#allocation7 + $0x58] sm:$0xff] }
  0xf3   : > { %8752 = vst [vmem:[#allocation59_spill] sm:$0xff] %v5551_v34  ;;  %v990_v55 = vadd.f32 %v5551_v34, %v5549_v52  ;;  %v5570_v34 = vsel %vm581_vm12, %v366_v12, 0.0  ;;  %8756 = vst [vmem:[#allocation63_spill] sm:$0xff] %v5572_v21  ;;  %v368_v52 = vld [vmem:[%s5101_s11 + $0x2d0] sm:$0xff] }
  0xf4   : > { %8755 = vst [vmem:[#allocation62_spill] sm:$0xff] %v5570_v34  ;;  %v996_v12 = vadd.f32 %v5572_v21, %v5570_v34  ;;  %v2179_v21 = vld [vmem:[#allocation7 + $0x60] sm:$0xff]  ;;  %v373_v34 = vld [vmem:[%s5101_s11 + $0x2f8] sm:$0xff]  ;;  %vm584_vm15 = vcmp.lt.s32.totalorder %v520_v24, 600 }
  0xf6   : > { %982 = vadd.xlane.f32.xlu1 %v981_v29  ;;  %v2195_v29 = vld [vmem:[#allocation7 + $0xe0] sm:$0xff] }
  0xf7   : > { %2309 = vmatpush1.msra.mxu0 %v2195_v29  ;;  %v2191_v29 = vld [vmem:[#allocation7 + $0xc0] sm:$0xff] }
  0xf8   : > { %2310 = vmatprep.subr.mxu0 %v2194_v57  ;;  %v2190_v57 = vld [vmem:[#allocation7 + $0xb8] sm:$0xff] }
  0xf9   : > { %2311 = vmatpush1.msra.mxu0 %v2193_v7  ;;  %v5559_v7 = vsel %vm580_vm11, %v364_v10, 0.0 }
  0xfa   : > { %985 = vadd.xlane.f32.xlu1 %v984_v63  ;;  %v453_v63 = vadd.s32 360, %v5118_v2  ;;  %2312 = vmatprep.subr.mxu0 %v2192_v44  ;;  %8753 = vst [vmem:[#allocation60_spill] sm:$0xff] %v5559_v7  ;;  %v993_v10 = vadd.f32 %v5561_v38, %v5559_v7  ;;  %v371_v7 = vld [vmem:[%s5101_s11 + $0x2e8] sm:$0xff] }
  0xfb   : > { %2313 = vmatpush1.msra.mxu0 %v2191_v29  ;;  %v2187_v29 = vld [vmem:[#allocation7 + $0xa0] sm:$0xff] }
  0xfc   : > { %2314 = vmatprep.subr.mxu0 %v2190_v57  ;;  %v518_v44 = vadd.s32 %v5116_v1, %v453_v63  ;;  %v2186_v57 = vld [vmem:[#allocation7 + $0x98] sm:$0xff]  ;;  %v2184_v63 = vld [vmem:[#allocation7 + $0x88] sm:$0xff] }
  0xfd   : > { %2315 = vmatpush1.msra.mxu0 %v2189_v11  ;;  %v2185_v11 = vld [vmem:[#allocation7 + $0x90] sm:$0xff] }
  0xfe   : > { %988 = vadd.xlane.f32.xlu1 %v987_v50  ;;  %v454_v50 = vadd.s32 368, %v5118_v2  ;;  %2316 = vmatprep.subr.mxu0 %v2188_v4  ;;  %vm582_vm13 = vcmp.lt.s32.totalorder %v518_v44, 600 }
  0xff   : > { %2317 = vmatpush1.msra.mxu0 %v2187_v29  ;;  %v2183_v29 = vld [vmem:[#allocation7 + $0x80] sm:$0xff]  ;;  %v5581_v38 = vsel %vm582_vm13, %v368_v52, 0.0  ;;  %v5583_v44 = vsel %vm582_vm13, %v369_v54, 0.0 }
 0x100   : > { %2318 = vmatprep.subr.mxu0 %v2186_v57  ;;  %v519_v4 = vadd.s32 %v5116_v1, %v454_v50  ;;  %v2182_v57 = vld [vmem:[#allocation7 + $0x78] sm:$0xff]  ;;  %8757 = vst [vmem:[#allocation64_spill] sm:$0xff] %v5581_v38  ;;  %8758 = vst [vmem:[#allocation65_spill] sm:$0xff] %v5583_v44  ;;  %v2180_v50 = vld [vmem:[#allocation7 + $0x68] sm:$0xff]  ;;  %v999_v54 = vadd.f32 %v5583_v44, %v5581_v38 }
 0x101   : > { %2319 = vmatpush1.msra.mxu0 %v2185_v11  ;;  %v2181_v11 = vld [vmem:[#allocation7 + $0x70] sm:$0xff] }
 0x102   : > { %991 = vadd.xlane.f32.xlu1 %v990_v55  ;;  %v456_v55 = vadd.s32 384, %v5118_v2  ;;  %2320 = vmatprep.subr.mxu0 %v2184_v63  ;;  %v370_v63 = vld [vmem:[%s5101_s11 + $0x2e0] sm:$0xff]  ;;  %vm583_vm14 = vcmp.lt.s32.totalorder %v519_v4, 600 }
 0x103   : > { %2321 = vmatpush1.msra.mxu0 %v2183_v29  ;;  %v457_v29 = vadd.s32 392, %v5118_v2  ;;  %v374_v4 = vld [vmem:[%s5101_s11 + $0x300] sm:$0xff] }
 0x104   : > { %2322 = vmatprep.subr.mxu0 %v2182_v57  ;;  %v372_v57 = vld [vmem:[%s5101_s11 + $0x2f0] sm:$0xff] }
 0x105   : > { %2323 = vmatpush1.msra.mxu0 %v2181_v11  ;;  %v2177_v11 = vld [vmem:[#allocation7 + $0x50] sm:$0xff]  ;;  %v5600_v44 = vadd.s32 %v5116_v1, %v457_v29  ;;  %v2174_v29 = vld [vmem:[#allocation7 + $0x38] sm:$0xff] }
 0x106   : > { %994 = vadd.xlane.f32.xlu1 %v993_v10  ;;  %v521_v10 = vadd.s32 %v5116_v1, %v456_v55  ;;  %2324 = vmatprep.subr.mxu0 %v2180_v50  ;;  %v5594_v55 = vsel %vm583_vm14, %v370_v63, 0.0  ;;  %v5597_v50 = vsel %vm583_vm14, %v371_v7, 0.0  ;;  %v5610_v7 = vsel %vm584_vm15, %v372_v57, 0.0  ;;  %v2173_v57 = vld [vmem:[#allocation7 + $0x30] sm:$0xff] }
 0x107   : > { %2325 = vmatpush1.msra.mxu0 %v2179_v21  ;;  %8759 = vst [vmem:[#allocation66_spill] sm:$0xff] %v5594_v55  ;;  %8760 = vst [vmem:[#allocation67_spill] sm:$0xff] %v5597_v50  ;;  %v2176_v21 = vld [vmem:[#allocation7 + $0x48] sm:$0xff]  ;;  %vm586_vm1 = vcmp.lt.s32.totalorder %v5600_v44, 600 }
 0x108   : > { %2326 = vmatprep.subr.mxu0 %v2178_v62  ;;  %vm585_vm0 = vcmp.lt.s32.totalorder %v521_v10, 600  ;;  %v458_v62 = vadd.s32 400, %v5118_v2  ;;  %v2169_v10 = vld [vmem:[#allocation7 + $0x10] sm:$0xff] }
 0x109   : > { %v866_v52 = vpop.xlane.xlu0 %865  ;;  %2327 = vmatpush1.msra.mxu0 %v2177_v11 }
 0x10a   : > { %997 = vadd.xlane.f32.xlu1 %v996_v12  ;;  %v1057_v33 = vmul.f32 0.00390625, %v866_v52  ;;  %2328 = vmatprep.subr.mxu0 %v2176_v21  ;;  %v2175_v52 = vld [vmem:[#allocation7 + $0x40] sm:$0xff] }
 0x10b   : > { %v872_v30 = vpop.xlane.xlu1 %871  ;;  %2329 = vmatpush1.msra.mxu0 %v2175_v52 }
 0x10c   : > { %v1059_v12 = vmul.f32 0.00390625, %v872_v30  ;;  %v5604_v38 = vsub.f32 %v5137_v19, %v1057_v33  ;;  %v5607_v63 = vsub.f32 %v5139_v20, %v1057_v33  ;;  %v5613_v30 = vsel %vm584_vm15, %v373_v34, 0.0  ;;  %v375_v33 = vld [vmem:[%s5101_s11 + $0x308] sm:$0xff]  ;;  %2330 = vmatprep.subr.mxu0 %v2174_v29 }
 0x10d   : > { %8763 = vst [vmem:[#allocation70_spill] sm:$0xff] %v5613_v30  ;;  %v869_v19 = vpop.xlane.xlu0 %868  ;;  %v1002_v20 = vadd.f32 %v5597_v50, %v5594_v55  ;;  %2331 = vmatpush1.msra.mxu0 %v2173_v57  ;;  %v5633_v29 = vsel %vm585_vm0, %v374_v4, 0.0  ;;  %v2170_v55 = vld [vmem:[#allocation7 + $0x18] sm:$0xff] }
 0x10e   : > { %8761 = vst [vmem:[#allocation68_spill] sm:$0xff] %v5604_v38  ;;  %8762 = vst [vmem:[#allocation69_spill] sm:$0xff] %v5607_v63  ;;  %v5617_v11 = vsub.f32 %v5147_v26, %v1059_v12  ;;  %v5620_v21 = vsub.f32 %v5149_v27, %v1059_v12  ;;  %1000 = vadd.xlane.f32.xlu1 %v999_v54  ;;  %v1058_v24 = vmul.f32 0.00390625, %v869_v19  ;;  %v2172_v27 = vld [vmem:[#allocation7 + $0x28] sm:$0xff] }
 0x10f   : > { %v875_v34 = vpop.xlane.xlu1 %874  ;;  %v1249_v52 = vmul.f32 %v5604_v38, %v5604_v38  ;;  %v1250_v26 = vmul.f32 %v5607_v63, %v5607_v63  ;;  %v1005_v12 = vadd.f32 %v5613_v30, %v5610_v7  ;;  %v523_v19 = vadd.s32 %v5116_v1, %v458_v62  ;;  %2332 = vmatprep.subr.mxu0 %v2172_v27  ;;  %v2171_v38 = vld [vmem:[#allocation7 + $0x20] sm:$0xff]  ;;  %v376_v27 = vld [vmem:[%s5101_s11 + $0x310] sm:$0xff] }
 0x110   : > { %8764 = vst [vmem:[#allocation71_spill] sm:$0xff] %v5617_v11  ;;  %8765 = vst [vmem:[#allocation72_spill] sm:$0xff] %v5620_v21  ;;  %v1060_v54 = vmul.f32 0.00390625, %v875_v34  ;;  %v5637_v50 = vsub.f32 %v5155_v31, %v1058_v24  ;;  %v5640_v63 = vsub.f32 %v5157_v32, %v1058_v24  ;;  %v5643_v34 = vsel %vm585_vm0, %v375_v33, 0.0  ;;  %2333 = vmatpush1.msra.mxu0 %v2171_v38  ;;  %v377_v32 = vld [vmem:[%s5101_s11 + $0x318] sm:$0xff] }
 0x111   : > { %v1377_v57 = vadd.f32 %v1250_v26, %v1249_v52  ;;  %v878_v30 = vpop.xlane.xlu0 %877  ;;  %v1253_v62 = vmul.f32 %v5617_v11, %v5617_v11  ;;  %v1254_v31 = vmul.f32 %v5620_v21, %v5620_v21  ;;  %2334 = vmatprep.subr.mxu0 %v2170_v55  ;;  %v2168_v52 = vld [vmem:[#allocation7 + $0x8] sm:$0xff]  ;;  %v1008_v55 = vadd.f32 %v5643_v34, %v5633_v29 }
 0x112   : > { %8766 = vst [vmem:[#allocation73_spill] sm:$0xff] %v5637_v50  ;;  %8767 = vst [vmem:[#allocation74_spill] sm:$0xff] %v5640_v63  ;;  %v5646_v4 = vsub.f32 %v5163_v36, %v1060_v54  ;;  %1003 = vadd.xlane.f32.xlu1 %v1002_v20  ;;  %v5656_v38 = vsub.f32 %v5165_v37, %v1060_v54  ;;  %v1251_v36 = vmul.f32 %v5637_v50, %v5637_v50  ;;  %v2167_v37 = vld [vmem:[#allocation7] sm:$0xff]  ;;  %v378_v50 = vld [vmem:[%s5101_s11 + $0x320] sm:$0xff] }
 0x113   : > { %v881_v33 = vpop.xlane.xlu1 %880  ;;  %1378 = vadd.xlane.f32.xlu0 %v1377_v57  ;;  %v1252_v20 = vmul.f32 %v5640_v63, %v5640_v63  ;;  %v1061_v24 = vmul.f32 0.00390625, %v878_v30  ;;  %2335 = vmatpush1.msra.mxu0 %v2169_v10  ;;  %vm587_vm2 = vcmp.lt.s32.totalorder %v523_v19, 600  ;;  %v5666_v54 = vsel %vm586_vm1, %v376_v27, 0.0  ;;  %v2230_v10 = vld [vmem:[#allocation7 + $0x1f8] sm:$0xff]  ;;  %v2229_v27 = vld [vmem:[#allocation7 + $0x1f0] sm:$0xff] }
 0x114   : > { %8768 = vst [vmem:[#allocation75_spill] sm:$0xff] %v5646_v4  ;;  %8769 = vst [vmem:[#allocation76_spill] sm:$0xff] %v5656_v38  ;;  %2336 = vmatprep.subr.mxu0 %v2168_v52  ;;  %v5670_v57 = vsel %vm586_vm1, %v377_v32, 0.0  ;;  %v524_v30 = vadd.s32 %v5116_v1, %v459_v9  ;;  %v1062_v11 = vmul.f32 0.00390625, %v881_v33  ;;  %v1383_v21 = vadd.f32 %v1254_v31, %v1253_v62  ;;  %v2228_v62 = vld [vmem:[#allocation7 + $0x1e8] sm:$0xff]  ;;  %v2227_v32 = vld [vmem:[#allocation7 + $0x1e0] sm:$0xff] }
 0x115   : > { %v1380_v26 = vadd.f32 %v1252_v20, %v1251_v36  ;;  %2337 = vmatpush1.msra.mxu0 %v2167_v37  ;;  %v1255_v52 = vmul.f32 %v5646_v4, %v5646_v4  ;;  %v379_v36 = vld [vmem:[%s5101_s11 + $0x328] sm:$0xff]  ;;  %v460_v20 = vadd.s32 416, %v5118_v2  ;;  %v5679_v44 = vsub.f32 %v5178_v46, %v1061_v24  ;;  %v884_v31 = vpop.xlane.xlu0 %883  ;;  %v2225_v4 = vld [vmem:[#allocation7 + $0x1d0] sm:$0xff] }
 0x116   : > { %1006 = vadd.xlane.f32.xlu1 %v1005_v12  ;;  %2338 = vmatprep.subr.mxu0 %v2230_v10  ;;  %v5682_v9 = vsub.f32 %v5180_v47, %v1061_v24  ;;  %v1256_v12 = vmul.f32 %v5656_v38, %v5656_v38  ;;  %v1011_v33 = vadd.f32 %v5670_v57, %v5666_v54  ;;  %v5689_v37 = vsel %vm587_vm2, %v378_v50, 0.0  ;;  %v2226_v24 = vld [vmem:[#allocation7 + $0x1d8] sm:$0xff] }
 0x117   : > { %v887_v63 = vpop.xlane.xlu1 %886  ;;  %1381 = vadd.xlane.f32.xlu0 %v1380_v26  ;;  %8770 = vst [vmem:[#allocation77_spill] sm:$0xff] %v5679_v44  ;;  %2339 = vmatpush2.msra.mxu0 %v2229_v27  ;;  %8772 = vst [vmem:[#allocation79_spill] sm:$0xff] %v5689_v37  ;;  %v5692_v46 = vsel %vm587_vm2, %v379_v36, 0.0  ;;  %v461_v47 = vadd.s32 424, %v5118_v2  ;;  %v5696_v26 = vsub.f32 %v5172_v42, %v1062_v11  ;;  %v380_v27 = vld [vmem:[%s5101_s11 + $0x330] sm:$0xff]  ;;  %vm588_vm3 = vcmp.lt.s32.totalorder %v524_v30, 600 }
 0x118   : > { %8771 = vst [vmem:[#allocation78_spill] sm:$0xff] %v5682_v9  ;;  %2340 = vmatprep.subr.mxu0 %v2228_v62  ;;  %8773 = vst [vmem:[#allocation80_spill] sm:$0xff] %v5692_v46  ;;  %v5699_v10 = vsub.f32 %v5174_v43, %v1062_v11  ;;  %v381_v62 = vld [vmem:[%s5101_s11 + $0x338] sm:$0xff]  ;;  %v525_v50 = vadd.s32 %v5116_v1, %v460_v20  ;;  %v1386_v36 = vadd.f32 %v1256_v12, %v1255_v52  ;;  %v2224_v43 = vld [vmem:[#allocation7 + $0x1c8] sm:$0xff] }
 0x119   : > { %2341 = vmatpush2.msra.mxu0 %v2227_v32  ;;  %8774 = vst [vmem:[#allocation81_spill] sm:$0xff] %v5696_v26  ;;  %v1063_v38 = vmul.f32 0.00390625, %v884_v31  ;;  %v1257_v32 = vmul.f32 %v5679_v44, %v5679_v44  ;;  %v1258_v42 = vmul.f32 %v5682_v9, %v5682_v9  ;;  %v1014_v11 = vadd.f32 %v5692_v46, %v5689_v37  ;;  %v2222_v12 = vld [vmem:[#allocation7 + $0x1b8] sm:$0xff]  ;;  %v2220_v9 = vld [vmem:[#allocation7 + $0x1a8] sm:$0xff] }
 0x11a   : > { %8775 = vst [vmem:[#allocation82_spill] sm:$0xff] %v5699_v10  ;;  %1009 = vadd.xlane.f32.xlu1 %v1008_v55  ;;  %2342 = vmatprep.subr.mxu0 %v2226_v24  ;;  %v2223_v55 = vld [vmem:[#allocation7 + $0x1c0] sm:$0xff]  ;;  %v5712_v30 = vsel %vm588_vm3, %v380_v27, 0.0  ;;  %v5714_v20 = vsel %vm588_vm3, %v381_v62, 0.0  ;;  %v462_v52 = vadd.s32 432, %v5118_v2  ;;  %v1064_v31 = vmul.f32 0.00390625, %v887_v63 }
 0x11b   : > { %v5704_v19 = vpop.xlane.xlu1 %892  ;;  %1384 = vadd.xlane.f32.xlu0 %v1383_v21  ;;  %2343 = vmatpush2.msra.mxu0 %v2225_v4  ;;  %v526_v21 = vadd.s32 %v5116_v1, %v461_v47  ;;  %v1259_v24 = vmul.f32 %v5696_v26, %v5696_v26  ;;  %v1260_v4 = vmul.f32 %v5699_v10, %v5699_v10  ;;  %v382_v44 = vld [vmem:[%s5101_s11 + $0x340] sm:$0xff]  ;;  %vm589_vm4 = vcmp.lt.s32.totalorder %v525_v50, 600  ;;  %v2221_v27 = vld [vmem:[#allocation7 + $0x1b0] sm:$0xff]  ;;  %v890_v26 = vpop.xlane.xlu0 %889 }
 0x11c   : > { %2344 = vmatprep.subr.mxu0 %v2224_v43  ;;  %v5726_v47 = vsub.f32 %v5208_v5, %v1063_v38  ;;  %v5729_v43 = vsub.f32 %v5210_v6, %v1063_v38  ;;  %v1389_v63 = vadd.f32 %v1258_v42, %v1257_v32  ;;  %v1017_v10 = vadd.f32 %v5714_v20, %v5712_v30  ;;  %v2219_v6 = vld [vmem:[#allocation7 + $0x1a0] sm:$0xff] }
 0x11d   : > { %2345 = vmatpush2.msra.mxu0 %v2223_v55  ;;  %v5735_v46 = vsel %vm589_vm4, %v382_v44, 0.0  ;;  %v463_v5 = vadd.s32 440, %v5118_v2  ;;  %v5740_v38 = vsub.f32 %v5187_v51, %v1064_v31  ;;  %v5743_v32 = vsub.f32 %v5190_v53, %v1064_v31  ;;  %v384_v55 = vld [vmem:[%s5101_s11 + $0x350] sm:$0xff]  ;;  %v2218_v44 = vld [vmem:[#allocation7 + $0x198] sm:$0xff]  ;;  %v385_v53 = vld [vmem:[%s5101_s11 + $0x358] sm:$0xff] }
 0x11e   : > { %1012 = vadd.xlane.f32.xlu1 %v1011_v33  ;;  %8776 = vst [vmem:[#allocation83_spill] sm:$0xff] %v5726_v47  ;;  %8777 = vst [vmem:[#allocation84_spill] sm:$0xff] %v5729_v43  ;;  %v383_v33 = vld [vmem:[%s5101_s11 + $0x348] sm:$0xff]  ;;  %2346 = vmatprep.subr.mxu0 %v2222_v12  ;;  %vm590_vm5 = vcmp.lt.s32.totalorder %v526_v21, 600  ;;  %v1065_v37 = vmul.f32 0.00390625, %v890_v26  ;;  %v1262_v51 = vmul.f32 %v5729_v43, %v5729_v43  ;;  %v464_v50 = vadd.s32 448, %v5118_v2 }
 0x11f   : > { %v5723_v62 = vpop.xlane.xlu1 %898  ;;  %1387 = vadd.xlane.f32.xlu0 %v1386_v36  ;;  %8778 = vst [vmem:[#allocation85_spill] sm:$0xff] %v5735_v46  ;;  %v527_v36 = vadd.s32 %v5116_v1, %v462_v52  ;;  %2347 = vmatpush2.msra.mxu0 %v2221_v27  ;;  %8779 = vst [vmem:[#allocation86_spill] sm:$0xff] %v5740_v38  ;;  %v5746_v42 = vsel %vm589_vm4, %v383_v33, 0.0  ;;  %v1392_v52 = vadd.f32 %v1260_v4, %v1259_v24  ;;  %v2216_v24 = vld [vmem:[#allocation7 + $0x188] sm:$0xff]  ;;  %v387_v21 = vld [vmem:[%s5101_s11 + $0x368] sm:$0xff] }
 0x120   : > { %8780 = vst [vmem:[#allocation87_spill] sm:$0xff] %v5743_v32  ;;  %8781 = vst [vmem:[#allocation88_spill] sm:$0xff] %v5746_v42  ;;  %v1261_v27 = vmul.f32 %v5726_v47, %v5726_v47  ;;  %2348 = vmatprep.subr.mxu0 %v2220_v9  ;;  %v1020_v31 = vadd.f32 %v5746_v42, %v5735_v46  ;;  %v528_v26 = vadd.s32 %v5116_v1, %v463_v5  ;;  %v2215_v47 = vld [vmem:[#allocation7 + $0x180] sm:$0xff] }
 0x121   : > { %2349 = vmatpush2.msra.mxu0 %v2219_v6  ;;  %vm591_vm6 = vcmp.lt.s32.totalorder %v527_v36, 600  ;;  %v1066_v4 = vmul.f32 0.00390625, %v5704_v19  ;;  %v5765_v9 = vsel %vm590_vm5, %v385_v53, 0.0  ;;  %v1263_v33 = vmul.f32 %v5740_v38, %v5740_v38  ;;  %v896_v53 = vpop.xlane.xlu0 %895  ;;  %v2210_v36 = vld [vmem:[#allocation7 + $0x158] sm:$0xff] }
 0x122   : > { %1015 = vadd.xlane.f32.xlu1 %v1014_v11  ;;  %v2217_v11 = vld [vmem:[#allocation7 + $0x190] sm:$0xff]  ;;  %2350 = vmatprep.subr.mxu0 %v2218_v44  ;;  %v1264_v6 = vmul.f32 %v5743_v32, %v5743_v32  ;;  %v5775_v5 = vsub.f32 %v5220_v14, %v1065_v37  ;;  %v5778_v19 = vsub.f32 %v5224_v16, %v1065_v37  ;;  %v2214_v44 = vld [vmem:[#allocation7 + $0x178] sm:$0xff]  ;;  %v465_v16 = vadd.s32 456, %v5118_v2  ;;  %v2212_v37 = vld [vmem:[#allocation7 + $0x168] sm:$0xff] }
 0x123   : > { %v5749_v12 = vpop.xlane.xlu1 %904  ;;  %1390 = vadd.xlane.f32.xlu0 %v1389_v63  ;;  %v5760_v63 = vsel %vm590_vm5, %v384_v55, 0.0  ;;  %v386_v55 = vld [vmem:[%s5101_s11 + $0x360] sm:$0xff]  ;;  %2351 = vmatpush2.msra.mxu0 %v2217_v11  ;;  %v529_v38 = vadd.s32 %v5116_v1, %v464_v50  ;;  %v2213_v32 = vld [vmem:[#allocation7 + $0x170] sm:$0xff]  ;;  %v5795_v50 = vsel %vm591_vm6, %v387_v21, 0.0  ;;  %v388_v11 = vld [vmem:[%s5101_s11 + $0x370] sm:$0xff]  ;;  %vm592_vm7 = vcmp.lt.s32.totalorder %v528_v26, 600 }
 0x124   : > { %8782 = vst [vmem:[#allocation89_spill] sm:$0xff] %v5775_v5  ;;  %8783 = vst [vmem:[#allocation90_spill] sm:$0xff] %v5778_v19  ;;  %2352 = vmatprep.subr.mxu0 %v2216_v24  ;;  %v5785_v14 = vsel %vm591_vm6, %v386_v55, 0.0  ;;  %v389_v24 = vld [vmem:[%s5101_s11 + $0x378] sm:$0xff]  ;;  %v2211_v55 = vld [vmem:[#allocation7 + $0x160] sm:$0xff]  ;;  %v1067_v46 = vmul.f32 0.00390625, %v896_v53 }
 0x125   : > { %2353 = vmatpush2.msra.mxu0 %v2215_v47  ;;  %v1398_v47 = vadd.f32 %v1264_v6, %v1263_v33  ;;  %vm593_vm8 = vcmp.lt.s32.totalorder %v529_v38, 600  ;;  %v5811_v33 = vsel %vm592_vm7, %v389_v24, 0.0  ;;  %v530_v6 = vadd.s32 %v5116_v1, %v465_v16  ;;  %v2208_v21 = vld [vmem:[#allocation7 + $0x148] sm:$0xff]  ;;  %v2207_v26 = vld [vmem:[#allocation7 + $0x140] sm:$0xff] }
 0x126   : > { %1018 = vadd.xlane.f32.xlu1 %v1017_v10  ;;  %v1395_v10 = vadd.f32 %v1262_v51, %v1261_v27  ;;  %v5789_v27 = vsub.f32 %v5203_v0, %v1066_v4  ;;  %v5792_v51 = vsub.f32 %v5205_v3, %v1066_v4  ;;  %2354 = vmatprep.subr.mxu0 %v2214_v44  ;;  %v2203_v38 = vld [vmem:[#allocation7 + $0x120] sm:$0xff] }
 0x127   : > { %v5772_v43 = vpop.xlane.xlu1 %910  ;;  %1393 = vadd.xlane.f32.xlu0 %v1392_v52  ;;  %v1023_v52 = vadd.f32 %v5765_v9, %v5760_v63  ;;  %v1265_v0 = vmul.f32 %v5775_v5, %v5775_v5  ;;  %v1266_v3 = vmul.f32 %v5778_v19, %v5778_v19  ;;  %2355 = vmatpush2.msra.mxu0 %v2213_v32  ;;  %v1068_v32 = vmul.f32 0.00390625, %v5723_v62  ;;  %v391_v5 = vld [vmem:[%s5101_s11 + $0x388] sm:$0xff] }
 0x128   : > { %8784 = vst [vmem:[#allocation91_spill] sm:$0xff] %v5789_v27  ;;  %8785 = vst [vmem:[#allocation92_spill] sm:$0xff] %v5792_v51  ;;  %2356 = vmatprep.subr.mxu0 %v2212_v37  ;;  %v1026_v4 = vadd.f32 %v5795_v50, %v5785_v14  ;;  %v1267_v44 = vmul.f32 %v5789_v27, %v5789_v27  ;;  %v1268_v53 = vmul.f32 %v5792_v51, %v5792_v51  ;;  %v390_v37 = vld [vmem:[%s5101_s11 + $0x380] sm:$0xff]  ;;  %v902_v27 = vpop.xlane.xlu0 %901  ;;  %v2205_v51 = vld [vmem:[#allocation7 + $0x130] sm:$0xff] }
 0x129   : > { %2357 = vmatpush2.msra.mxu0 %v2211_v55  ;;  %v5825_v16 = vsub.f32 %v5247_v40, %v1067_v46  ;;  %v5828_v62 = vsub.f32 %v5249_v41, %v1067_v46  ;;  %v2206_v55 = vld [vmem:[#allocation7 + $0x138] sm:$0xff]  ;;  %v5833_v19 = vsel %vm593_vm8, %v390_v37, 0.0  ;;  %v5836_v40 = vsel %vm593_vm8, %v391_v5, 0.0  ;;  %v2204_v46 = vld [vmem:[#allocation7 + $0x128] sm:$0xff] }
 0x12a   : > { %1021 = vadd.xlane.f32.xlu1 %v1020_v31  ;;  %v2209_v31 = vld [vmem:[#allocation7 + $0x150] sm:$0xff]  ;;  %2358 = vmatprep.subr.mxu0 %v2210_v36  ;;  %v467_v41 = vadd.s32 472, %v5118_v2  ;;  %vm594_vm9 = vcmp.lt.s32.totalorder %v530_v6, 600  ;;  %v1404_v37 = vadd.f32 %v1268_v53, %v1267_v44  ;;  %v2202_v6 = vld [vmem:[#allocation7 + $0x118] sm:$0xff] }
 0x12b   : > { %v5799_v42 = vpop.xlane.xlu1 %916  ;;  %1396 = vadd.xlane.f32.xlu0 %v1395_v10  ;;  %v5808_v10 = vsel %vm592_vm7, %v388_v11, 0.0  ;;  %v466_v11 = vadd.s32 464, %v5118_v2  ;;  %8786 = vst [vmem:[#allocation93_spill] sm:$0xff] %v5825_v16  ;;  %8787 = vst [vmem:[#allocation94_spill] sm:$0xff] %v5828_v62  ;;  %2359 = vmatpush2.msra.mxu0 %v2209_v31  ;;  %v393_v31 = vld [vmem:[%s5101_s11 + $0x398] sm:$0xff] }
 0x12c   : > { %2360 = vmatprep.subr.mxu0 %v2208_v21  ;;  %v1029_v36 = vadd.f32 %v5811_v33, %v5808_v10  ;;  %v532_v44 = vadd.s32 %v5116_v1, %v467_v41  ;;  %v2201_v53 = vld [vmem:[#allocation7 + $0x110] sm:$0xff] }
 0x12d   : > { %2361 = vmatpush2.msra.mxu0 %v2207_v26  ;;  %v531_v21 = vadd.s32 %v5116_v1, %v466_v11  ;;  %v1069_v26 = vmul.f32 0.00390625, %v902_v27  ;;  %v5858_v11 = vsel %vm594_vm9, %v393_v31, 0.0  ;;  %v468_v27 = vadd.s32 480, %v5118_v2 }
 0x12e   : > { %1024 = vadd.xlane.f32.xlu1 %v1023_v52  ;;  %v1401_v52 = vadd.f32 %v1266_v3, %v1265_v0  ;;  %v5843_v0 = vsub.f32 %v5228_v18, %v1068_v32  ;;  %v392_v3 = vld [vmem:[%s5101_s11 + $0x390] sm:$0xff]  ;;  %2362 = vmatprep.subr.mxu0 %v2206_v55  ;;  %v1270_v18 = vmul.f32 %v5828_v62, %v5828_v62  ;;  %vm596_vm11 = vcmp.lt.s32.totalorder %v532_v44, 600 }
 0x12f   : > { %v5822_v24 = vpop.xlane.xlu1 %922  ;;  %1399 = vadd.xlane.f32.xlu0 %v1398_v47  ;;  %v5840_v47 = vsub.f32 %v5226_v17, %v1068_v32  ;;  %v1269_v17 = vmul.f32 %v5825_v16, %v5825_v16  ;;  %2363 = vmatpush2.msra.mxu0 %v2205_v51  ;;  %v5856_v32 = vsel %vm594_vm9, %v392_v3, 0.0  ;;  %vm595_vm10 = vcmp.lt.s32.totalorder %v531_v21, 600  ;;  %v2200_v3 = vld [vmem:[#allocation7 + $0x108] sm:$0xff]  ;;  %v2199_v16 = vld [vmem:[#allocation7 + $0x100] sm:$0xff] }
 0x130   : > { %8789 = vst [vmem:[#allocation96_spill] sm:$0xff] %v5843_v0  ;;  %2364 = vmatprep.subr.mxu0 %v2204_v46  ;;  %v1272_v55 = vmul.f32 %v5843_v0, %v5843_v0  ;;  %v394_v46 = vld [vmem:[%s5101_s11 + $0x3a0] sm:$0xff]  ;;  %v5871_v41 = vsub.f32 %v5263_v58, %v1069_v26  ;;  %v1035_v0 = vadd.f32 %v5858_v11, %v5856_v32  ;;  %v469_v58 = vadd.s32 488, %v5118_v2 }
 0x131   : > { %8788 = vst [vmem:[#allocation95_spill] sm:$0xff] %v5840_v47  ;;  %2365 = vmatpush2.msra.mxu0 %v2203_v38  ;;  %v1271_v51 = vmul.f32 %v5840_v47, %v5840_v47  ;;  %v5874_v38 = vsub.f32 %v5269_v61, %v1069_v26  ;;  %v908_v47 = vpop.xlane.xlu0 %907  ;;  %v5880_v62 = vsel %vm595_vm10, %v394_v46, 0.0 }
 0x132   : > { %1027 = vadd.xlane.f32.xlu1 %v1026_v4  ;;  %v1032_v4 = vadd.f32 %v5836_v40, %v5833_v19  ;;  %8790 = vst [vmem:[#allocation97_spill] sm:$0xff] %v5871_v41  ;;  %2366 = vmatprep.subr.mxu0 %v2202_v6 }
 0x133   : > { %v5848_v5 = vpop.xlane.xlu1 %925  ;;  %1402 = vadd.xlane.f32.xlu0 %v1401_v52  ;;  %v1070_v52 = vmul.f32 0.00390625, %v5749_v12  ;;  %v1407_v12 = vadd.f32 %v1270_v18, %v1269_v17  ;;  %2367 = vmatpush2.msra.mxu0 %v2201_v53  ;;  %v1410_v6 = vadd.f32 %v1272_v55, %v1271_v51  ;;  %v1273_v53 = vmul.f32 %v5871_v41, %v5871_v41 }
 0x134   : > { %2368 = vmatprep.subr.mxu0 %v2200_v3  ;;  %v1072_v51 = vmul.f32 0.00390625, %v5772_v43  ;;  %v398_v3 = vld [vmem:[%s5101_s11 + $0x3c0] sm:$0xff] }
 0x135   : > { %v5885_v61 = vsub.f32 %v5242_v35, %v1070_v52  ;;  %v5888_v26 = vsub.f32 %v5245_v39, %v1070_v52  ;;  %2369 = vmatpush2.msra.mxu0 %v2199_v16  ;;  %v1274_v35 = vmul.f32 %v5874_v38, %v5874_v38  ;;  %v396_v39 = vld [vmem:[%s5101_s11 + $0x3b0] sm:$0xff]  ;;  %v397_v52 = vld [vmem:[%s5101_s11 + $0x3b8] sm:$0xff]  ;;  %v534_v16 = vadd.s32 %v5116_v1, %v469_v58  ;;  %v399_v58 = vld [vmem:[%s5101_s11 + $0x3c8] sm:$0xff] }
 0x136   : > { %1030 = vadd.xlane.f32.xlu1 %v1029_v36  ;;  %v395_v36 = vld [vmem:[%s5101_s11 + $0x3a8] sm:$0xff]  ;;  %v5910_v55 = vsel %vm596_vm11, %v397_v52, 0.0 }
 0x137   : > { %v5868_v31 = vpop.xlane.xlu1 %928  ;;  %1405 = vadd.xlane.f32.xlu0 %v1404_v37  ;;  %v533_v37 = vadd.s32 %v5116_v1, %v468_v27  ;;  %8791 = vst [vmem:[#allocation98_spill] sm:$0xff] %v5885_v61  ;;  %8792 = vst [vmem:[#allocation99_spill] sm:$0xff] %v5888_v26  ;;  %v5891_v17 = vsel %vm595_vm10, %v395_v36, 0.0  ;;  %v1071_v27 = vmul.f32 0.00390625, %v908_v47  ;;  %v5907_v47 = vsel %vm596_vm11, %v396_v39, 0.0  ;;  %v914_v39 = vpop.xlane.xlu0 %913 }
 0x138   : > { %v1038_v21 = vadd.f32 %v5891_v17, %v5880_v62  ;;  %v1275_v46 = vmul.f32 %v5885_v61, %v5885_v61  ;;  %v1276_v44 = vmul.f32 %v5888_v26, %v5888_v26  ;;  %v1041_v52 = vadd.f32 %v5910_v55, %v5907_v47 }
 0x139   : > { %vm597_vm12 = vcmp.lt.s32.totalorder %v533_v37, 600  ;;  %v5918_v36 = vsub.f32 %v5290_v25, %v1071_v27  ;;  %v5921_v43 = vsub.f32 %v5292_v28, %v1071_v27  ;;  %v471_v25 = vadd.s32 504, %v5118_v2 }
 0x13a   : > { %1033 = vadd.xlane.f32.xlu1 %v1032_v4  ;;  %v470_v4 = vadd.s32 496, %v5118_v2  ;;  %v5929_v61 = vsel %vm597_vm12, %v398_v3, 0.0  ;;  %v5934_v28 = vsub.f32 %v5265_v59, %v1072_v51  ;;  %v5937_v27 = vsub.f32 %v5267_v60, %v1072_v51  ;;  %v401_v60 = vld [vmem:[%s5101_s11 + $0x3d8] sm:$0xff] }
 0x13b   : > { %v5893_v18 = vpop.xlane.xlu1 %931  ;;  %1408 = vadd.xlane.f32.xlu0 %v1407_v12  ;;  %8793 = vst [vmem:[#allocation100_spill] sm:$0xff] %v5918_v36  ;;  %8794 = vst [vmem:[#allocation101_spill] sm:$0xff] %v5921_v43  ;;  %vm598_vm13 = vcmp.lt.s32.totalorder %v534_v16, 600  ;;  %v1416_v3 = vadd.f32 %v1276_v44, %v1275_v46  ;;  %v1277_v41 = vmul.f32 %v5918_v36, %v5918_v36  ;;  %v1074_v16 = vmul.f32 0.00390625, %v5799_v42 }
 0x13c   : > { %8795 = vst [vmem:[#allocation102_spill] sm:$0xff] %v5934_v28  ;;  %8796 = vst [vmem:[#allocation103_spill] sm:$0xff] %v5937_v27  ;;  %v1278_v59 = vmul.f32 %v5921_v43, %v5921_v43  ;;  %v5955_v51 = vsel %vm598_vm13, %v401_v60, 0.0  ;;  %v1279_v46 = vmul.f32 %v5934_v28, %v5934_v28  ;;  %v536_v44 = vadd.s32 %v5116_v1, %v471_v25  ;;  %v920_v60 = vpop.xlane.xlu0 %919  ;;  %v404_v28 = vld [vmem:[%s5101_s11 + $0x3f0] sm:$0xff] }
 0x13d   : > { %v1280_v42 = vmul.f32 %v5937_v27, %v5937_v27  ;;  %v405_v27 = vld [vmem:[%s5101_s11 + $0x3f8] sm:$0xff] }
 0x13e   : > { %1036 = vadd.xlane.f32.xlu1 %v1035_v0  ;;  %v1413_v0 = vadd.f32 %v1274_v35, %v1273_v53  ;;  %v5940_v53 = vsel %vm597_vm12, %v399_v58, 0.0  ;;  %v400_v35 = vld [vmem:[%s5101_s11 + $0x3d0] sm:$0xff]  ;;  %v1419_v36 = vadd.f32 %v1278_v59, %v1277_v41  ;;  %vm600_vm15 = vcmp.lt.s32.totalorder %v536_v44, 600 }
 0x13f   : > { %v5915_v12 = vpop.xlane.xlu1 %934  ;;  %1411 = vadd.xlane.f32.xlu0 %v1410_v6  ;;  %v535_v6 = vadd.s32 %v5116_v1, %v470_v4  ;;  %v1073_v4 = vmul.f32 0.00390625, %v914_v39  ;;  %v1044_v37 = vadd.f32 %v5940_v53, %v5929_v61  ;;  %v1075_v59 = vmul.f32 0.00390625, %v920_v60 }
 0x141   : > { %vm599_vm14 = vcmp.lt.s32.totalorder %v535_v6, 600  ;;  %v5964_v39 = vsub.f32 %v5308_v49, %v1073_v4  ;;  %v5978_v49 = vsub.f32 %v5282_v13, %v1074_v16  ;;  %v1076_v6 = vmul.f32 0.00390625, %v5822_v24 }
 0x142   : > { %1039 = vadd.xlane.f32.xlu1 %v1038_v21  ;;  %v5952_v21 = vsel %vm598_vm13, %v400_v35, 0.0  ;;  %v5967_v35 = vsub.f32 %v5314_v56, %v1073_v4  ;;  %v5981_v56 = vsub.f32 %v5284_v15, %v1074_v16  ;;  %v1422_v4 = vadd.f32 %v1280_v42, %v1279_v46 }
 0x143   : > { %v5943_v26 = vpop.xlane.xlu1 %937  ;;  %1414 = vadd.xlane.f32.xlu0 %v1413_v0  ;;  %v402_v0 = vld [vmem:[%s5101_s11 + $0x3e0] sm:$0xff]  ;;  %8797 = vst [vmem:[#allocation104_spill] sm:$0xff] %v5964_v39  ;;  %v1047_v1 = vadd.f32 %v5955_v51, %v5952_v21  ;;  %8799 = vst [vmem:[#allocation106_spill] sm:$0xff] %v5978_v49  ;;  %v5999_v16 = vsel %vm600_vm15, %v405_v27, 0.0  ;;  %v6006_v44 = vsub.f32 %v5331_v22, %v1075_v59  ;;  %v1077_v27 = vmul.f32 0.00390625, %v5848_v5  ;;  %v8806_v5 = vld [vmem:[#allocation15_spill] sm:$0xff] }
 0x144   : > { %8798 = vst [vmem:[#allocation105_spill] sm:$0xff] %v5967_v35  ;;  %v5975_v25 = vsel %vm599_vm14, %v402_v0, 0.0  ;;  %8800 = vst [vmem:[#allocation107_spill] sm:$0xff] %v5981_v56  ;;  %v1281_v0 = vmul.f32 %v5964_v39, %v5964_v39  ;;  %v1282_v13 = vmul.f32 %v5967_v35, %v5967_v35  ;;  %v6009_v42 = vsub.f32 %v5333_v23, %v1075_v59 }
 0x145   : > { %8801 = vst [vmem:[#allocation108_spill] sm:$0xff] %v6006_v44  ;;  %v1284_v24 = vmul.f32 %v5981_v56, %v5981_v56  ;;  %v6029_v59 = vsub.f32 %v5323_v8, %v1077_v27 }
 0x146   : > { %1042 = vadd.xlane.f32.xlu1 %v1041_v52  ;;  %v403_v52 = vld [vmem:[%s5101_s11 + $0x3e8] sm:$0xff]  ;;  %8802 = vst [vmem:[#allocation109_spill] sm:$0xff] %v6009_v42 }
 0x147   : > { %v5961_v58 = vpop.xlane.xlu1 %940  ;;  %1417 = vadd.xlane.f32.xlu0 %v1416_v3  ;;  %v5984_v41 = vsel %vm599_vm14, %v403_v52, 0.0  ;;  %v1425_v52 = vadd.f32 %v1282_v13, %v1281_v0  ;;  %8805 = vst [vmem:[#allocation112_spill] sm:$0xff] %v6029_v59  ;;  %v6032_v0 = vsub.f32 %v8806_v5, %v1077_v27  ;;  %v1080_v5 = vmul.f32 0.00390625, %v5915_v12  ;;  %v8818_v12 = vld [vmem:[#allocation21_spill] sm:$0xff] }
 0x148   : > { %v1050_v15 = vadd.f32 %v5984_v41, %v5975_v25 }
 0x149   : > { %8807 = vst [vmem:[#allocation15_spill] sm:$0xff] %v6032_v0  ;;  %v1290_v8 = vmul.f32 %v6032_v0, %v6032_v0 }
 0x14a   : > { %1045 = vadd.xlane.f32.xlu1 %v1044_v37  ;;  %v5997_v37 = vsel %vm600_vm15, %v404_v28, 0.0  ;;  %v6014_v28 = vsub.f32 %v5303_v45, %v1076_v6  ;;  %v1286_v45 = vmul.f32 %v6009_v42, %v6009_v42 }
 0x14b   : > { %v5986_v3 = vpop.xlane.xlu1 %943  ;;  %1420 = vadd.xlane.f32.xlu0 %v1419_v36  ;;  %v1283_v36 = vmul.f32 %v5978_v49, %v5978_v49  ;;  %v1053_v60 = vadd.f32 %v5999_v16, %v5997_v37 }
 0x14c   : > { %8803 = vst [vmem:[#allocation110_spill] sm:$0xff] %v6014_v28 }
 0x14d   : > { %v1428_v23 = vadd.f32 %v1284_v24, %v1283_v36  ;;  %v8808_v24 = vld [vmem:[#allocation16_spill] sm:$0xff] }
 0x14e   : > { %1048 = vadd.xlane.f32.xlu1 %v1047_v1  ;;  %v6020_v1 = vsub.f32 %v5306_v48, %v1076_v6  ;;  %v1078_v48 = vmul.f32 0.00390625, %v5868_v31  ;;  %v1287_v6 = vmul.f32 %v6014_v28, %v6014_v28 }
 0x14f   : > { %v6003_v46 = vpop.xlane.xlu1 %946  ;;  %1423 = vadd.xlane.f32.xlu0 %v1422_v4  ;;  %v1285_v4 = vmul.f32 %v6006_v44, %v6006_v44 }
 0x150   : > { %8804 = vst [vmem:[#allocation111_spill] sm:$0xff] %v6020_v1  ;;  %v1288_v36 = vmul.f32 %v6020_v1, %v6020_v1  ;;  %v6044_v27 = vsub.f32 %v8808_v24, %v1078_v48  ;;  %v8812_v1 = vld [vmem:[#allocation18_spill] sm:$0xff] }
 0x152   : > { %1051 = vadd.xlane.f32.xlu1 %v1050_v15  ;;  %v1431_v15 = vadd.f32 %v1286_v45, %v1285_v4  ;;  %8809 = vst [vmem:[#allocation16_spill] sm:$0xff] %v6044_v27  ;;  %v1434_v45 = vadd.f32 %v1288_v36, %v1287_v6  ;;  %v6067_v36 = vsub.f32 %v8818_v12, %v1080_v5  ;;  %v1083_v12 = vmul.f32 0.00390625, %v5986_v3  ;;  %v8830_v3 = vld [vmem:[#allocation27_spill] sm:$0xff] }
 0x153   : > { %v6022_v22 = vpop.xlane.xlu1 %949  ;;  %1426 = vadd.xlane.f32.xlu0 %v1425_v52  ;;  %v1289_v52 = vmul.f32 %v6029_v59, %v6029_v59  ;;  %v8814_v59 = vld [vmem:[#allocation19_spill] sm:$0xff] }
 0x154   : > { %8819 = vst [vmem:[#allocation21_spill] sm:$0xff] %v6067_v36 }
 0x155   : > { %v1437_v28 = vadd.f32 %v1290_v8, %v1289_v52 }
 0x156   : > { %1054 = vadd.xlane.f32.xlu1 %v1053_v60  ;;  %v8810_v60 = vld [vmem:[#allocation17_spill] sm:$0xff] }
 0x157   : > { %v953_v13 = vpop.xlane.xlu1 %952  ;;  %1429 = vadd.xlane.f32.xlu0 %v1428_v23  ;;  %v6047_v31 = vsub.f32 %v8810_v60, %v1078_v48  ;;  %v1079_v23 = vmul.f32 0.00390625, %v5893_v18  ;;  %v1291_v48 = vmul.f32 %v6044_v27, %v6044_v27 }
 0x159   : > { %8811 = vst [vmem:[#allocation17_spill] sm:$0xff] %v6047_v31  ;;  %v6052_v44 = vsub.f32 %v8812_v1, %v1079_v23  ;;  %v6055_v42 = vsub.f32 %v8814_v59, %v1079_v23  ;;  %v1292_v18 = vmul.f32 %v6047_v31, %v6047_v31  ;;  %v1081_v1 = vmul.f32 0.00390625, %v5943_v26 }
 0x15a   : > { %v1296_v23 = vmul.f32 %v6067_v36, %v6067_v36 }
 0x15b   : > { %v956_v4 = vpop.xlane.xlu1 %955  ;;  %1432 = vadd.xlane.f32.xlu0 %v1431_v15  ;;  %8813 = vst [vmem:[#allocation18_spill] sm:$0xff] %v6052_v44  ;;  %8815 = vst [vmem:[#allocation19_spill] sm:$0xff] %v6055_v42  ;;  %v8816_v15 = vld [vmem:[#allocation20_spill] sm:$0xff]  ;;  %v1440_v59 = vadd.f32 %v1292_v18, %v1291_v48  ;;  %v1293_v8 = vmul.f32 %v6052_v44, %v6052_v44  ;;  %v1294_v24 = vmul.f32 %v6055_v42, %v6055_v42 }
 0x15c   : > { %v6064_v6 = vsub.f32 %v8816_v15, %v1080_v5  ;;  %v8822_v15 = vld [vmem:[#allocation23_spill] sm:$0xff]  ;;  %v8824_v42 = vld [vmem:[#allocation24_spill] sm:$0xff] }
 0x15d   : > { %v6082_v26 = vsub.f32 %v8822_v15, %v1081_v1  ;;  %v1443_v18 = vadd.f32 %v1294_v24, %v1293_v8  ;;  %v6102_v24 = vsub.f32 %v8830_v3, %v1083_v12  ;;  %v1086_v3 = vmul.f32 0.00390625, %v953_v13 }
 0x15e   : > { %8817 = vst [vmem:[#allocation20_spill] sm:$0xff] %v6064_v6  ;;  %v1295_v60 = vmul.f32 %v6064_v6, %v6064_v6  ;;  %v8826_v6 = vld [vmem:[#allocation25_spill] sm:$0xff] }
 0x15f   : > { %v6057_v0 = vpop.xlane.xlu1 %958  ;;  %1435 = vadd.xlane.f32.xlu0 %v1434_v45  ;;  %v8820_v45 = vld [vmem:[#allocation22_spill] sm:$0xff]  ;;  %8823 = vst [vmem:[#allocation23_spill] sm:$0xff] %v6082_v26  ;;  %8831 = vst [vmem:[#allocation27_spill] sm:$0xff] %v6102_v24 }
 0x160   : > { %v6079_v5 = vsub.f32 %v8820_v45, %v1081_v1  ;;  %v1446_v44 = vadd.f32 %v1296_v23, %v1295_v60 }
 0x162   : > { %8821 = vst [vmem:[#allocation22_spill] sm:$0xff] %v6079_v5  ;;  %v1297_v1 = vmul.f32 %v6079_v5, %v6079_v5 }
 0x163   : > { %v962_v52 = vpop.xlane.xlu1 %961  ;;  %1438 = vadd.xlane.f32.xlu0 %v1437_v28  ;;  %v1082_v28 = vmul.f32 0.00390625, %v5961_v58  ;;  %v1298_v58 = vmul.f32 %v6082_v26, %v6082_v26 }
 0x165   : > { %v6087_v27 = vsub.f32 %v8824_v42, %v1082_v28  ;;  %v6090_v31 = vsub.f32 %v8826_v6, %v1082_v28  ;;  %v1084_v42 = vmul.f32 0.00390625, %v6003_v46  ;;  %v1449_v6 = vadd.f32 %v1298_v58, %v1297_v1 }
 0x166   : > { %v1302_v28 = vmul.f32 %v6102_v24, %v6102_v24 }
 0x167   : > { %v965_v48 = vpop.xlane.xlu1 %964  ;;  %1441 = vadd.xlane.f32.xlu0 %v1440_v59  ;;  %8825 = vst [vmem:[#allocation24_spill] sm:$0xff] %v6087_v27  ;;  %8827 = vst [vmem:[#allocation25_spill] sm:$0xff] %v6090_v31  ;;  %v8828_v59 = vld [vmem:[#allocation26_spill] sm:$0xff]  ;;  %v1299_v23 = vmul.f32 %v6087_v27, %v6087_v27  ;;  %v1300_v45 = vmul.f32 %v6090_v31, %v6090_v31 }
 0x168   : > { %v6099_v8 = vsub.f32 %v8828_v59, %v1083_v12  ;;  %v8834_v59 = vld [vmem:[#allocation29_spill] sm:$0xff]  ;;  %v8836_v31 = vld [vmem:[#allocation30_spill] sm:$0xff] }
 0x169   : > { %v6117_v46 = vsub.f32 %v8834_v59, %v1084_v42  ;;  %v1452_v58 = vadd.f32 %v1300_v45, %v1299_v23  ;;  %v1087_v23 = vmul.f32 0.00390625, %v956_v4 }
 0x16a   : > { %8829 = vst [vmem:[#allocation26_spill] sm:$0xff] %v6099_v8  ;;  %v1301_v15 = vmul.f32 %v6099_v8, %v6099_v8  ;;  %v8838_v8 = vld [vmem:[#allocation31_spill] sm:$0xff] }
 0x16b   : > { %v6092_v36 = vpop.xlane.xlu1 %967  ;;  %1444 = vadd.xlane.f32.xlu0 %v1443_v18  ;;  %v8832_v18 = vld [vmem:[#allocation28_spill] sm:$0xff]  ;;  %8835 = vst [vmem:[#allocation29_spill] sm:$0xff] %v6117_v46 }
 0x16c   : > { %v6114_v12 = vsub.f32 %v8832_v18, %v1084_v42  ;;  %v1455_v27 = vadd.f32 %v1302_v28, %v1301_v15  ;;  %v1304_v42 = vmul.f32 %v6117_v46, %v6117_v46 }
 0x16e   : > { %8833 = vst [vmem:[#allocation28_spill] sm:$0xff] %v6114_v12  ;;  %v1303_v18 = vmul.f32 %v6114_v12, %v6114_v12 }
 0x16f   : > { %v971_v60 = vpop.xlane.xlu1 %970  ;;  %1447 = vadd.xlane.f32.xlu0 %v1446_v44  ;;  %v1085_v44 = vmul.f32 0.00390625, %v6022_v22  ;;  %v8840_v22 = vld [vmem:[#allocation32_spill] sm:$0xff] }
 0x170   : > { %v6131_v59 = vsub.f32 %v8840_v22, %v1086_v3  ;;  %v1458_v45 = vadd.f32 %v1304_v42, %v1303_v18 }
 0x171   : > { %v6121_v5 = vsub.f32 %v8836_v31, %v1085_v44  ;;  %v6124_v26 = vsub.f32 %v8838_v8, %v1085_v44 }
 0x172   : > { %8841 = vst [vmem:[#allocation32_spill] sm:$0xff] %v6131_v59  ;;  %v1307_v28 = vmul.f32 %v6131_v59, %v6131_v59  ;;  %v8850_v59 = vld [vmem:[#allocation37_spill] sm:$0xff] }
 0x173   : > { %v974_v1 = vpop.xlane.xlu1 %973  ;;  %1450 = vadd.xlane.f32.xlu0 %v1449_v6  ;;  %8837 = vst [vmem:[#allocation30_spill] sm:$0xff] %v6121_v5  ;;  %8839 = vst [vmem:[#allocation31_spill] sm:$0xff] %v6124_v26  ;;  %v8842_v6 = vld [vmem:[#allocation33_spill] sm:$0xff]  ;;  %v1305_v8 = vmul.f32 %v6121_v5, %v6121_v5  ;;  %v1306_v15 = vmul.f32 %v6124_v26, %v6124_v26  ;;  %v8848_v26 = vld [vmem:[#allocation36_spill] sm:$0xff] }
 0x174   : > { %v6134_v13 = vsub.f32 %v8842_v6, %v1086_v3  ;;  %v8846_v3 = vld [vmem:[#allocation35_spill] sm:$0xff]  ;;  %v1089_v6 = vmul.f32 0.00390625, %v962_v52 }
 0x175   : > { %v6148_v4 = vsub.f32 %v8846_v3, %v1087_v23  ;;  %v1461_v42 = vadd.f32 %v1306_v15, %v1305_v8  ;;  %v8854_v52 = vld [vmem:[#allocation39_spill] sm:$0xff] }
 0x176   : > { %8843 = vst [vmem:[#allocation33_spill] sm:$0xff] %v6134_v13  ;;  %v1308_v44 = vmul.f32 %v6134_v13, %v6134_v13  ;;  %v6167_v8 = vsub.f32 %v8854_v52, %v1089_v6  ;;  %v1092_v52 = vmul.f32 0.00390625, %v971_v60  ;;  %v8866_v60 = vld [vmem:[#allocation45_spill] sm:$0xff] }
 0x177   : > { %v977_v24 = vpop.xlane.xlu1 %976  ;;  %1453 = vadd.xlane.f32.xlu0 %v1452_v58  ;;  %v8844_v58 = vld [vmem:[#allocation34_spill] sm:$0xff]  ;;  %8847 = vst [vmem:[#allocation35_spill] sm:$0xff] %v6148_v4 }
 0x178   : > { %v6145_v22 = vsub.f32 %v8844_v58, %v1087_v23  ;;  %v1464_v5 = vadd.f32 %v1308_v44, %v1307_v28  ;;  %v8852_v58 = vld [vmem:[#allocation38_spill] sm:$0xff]  ;;  %8855 = vst [vmem:[#allocation39_spill] sm:$0xff] %v6167_v8 }
 0x17a   : > { %8845 = vst [vmem:[#allocation34_spill] sm:$0xff] %v6145_v22  ;;  %v1309_v23 = vmul.f32 %v6145_v22, %v6145_v22 }
 0x17b   : > { %v980_v31 = vpop.xlane.xlu1 %979  ;;  %1456 = vadd.xlane.f32.xlu0 %v1455_v27  ;;  %v1088_v27 = vmul.f32 0.00390625, %v6057_v0  ;;  %v1310_v0 = vmul.f32 %v6148_v4, %v6148_v4 }
 0x17d   : > { %v6152_v12 = vsub.f32 %v8848_v26, %v1088_v27  ;;  %v6155_v46 = vsub.f32 %v8850_v59, %v1088_v27  ;;  %v1090_v26 = vmul.f32 0.00390625, %v965_v48  ;;  %v1467_v59 = vadd.f32 %v1310_v0, %v1309_v23  ;;  %v8858_v48 = vld [vmem:[#allocation41_spill] sm:$0xff] }
 0x17e   : > { %v1314_v27 = vmul.f32 %v6167_v8, %v6167_v8 }
 0x17f   : > { %v983_v18 = vpop.xlane.xlu1 %982  ;;  %1459 = vadd.xlane.f32.xlu0 %v1458_v45  ;;  %8849 = vst [vmem:[#allocation36_spill] sm:$0xff] %v6152_v12  ;;  %8851 = vst [vmem:[#allocation37_spill] sm:$0xff] %v6155_v46  ;;  %v6164_v45 = vsub.f32 %v8852_v58, %v1089_v6  ;;  %v1311_v28 = vmul.f32 %v6152_v12, %v6152_v12  ;;  %v1312_v44 = vmul.f32 %v6155_v46, %v6155_v46  ;;  %v8860_v46 = vld [vmem:[#allocation42_spill] sm:$0xff] }
 0x180   : > { %v6183_v58 = vsub.f32 %v8858_v48, %v1090_v26  ;;  %v1094_v48 = vmul.f32 0.00390625, %v977_v24  ;;  %v8874_v24 = vld [vmem:[#allocation49_spill] sm:$0xff] }
 0x181   : > { %8853 = vst [vmem:[#allocation38_spill] sm:$0xff] %v6164_v45  ;;  %v1313_v3 = vmul.f32 %v6164_v45, %v6164_v45  ;;  %v1470_v0 = vadd.f32 %v1312_v44, %v1311_v28  ;;  %v8862_v45 = vld [vmem:[#allocation43_spill] sm:$0xff]  ;;  %v6204_v28 = vsub.f32 %v8866_v60, %v1092_v52 }
 0x182   : > { %8859 = vst [vmem:[#allocation41_spill] sm:$0xff] %v6183_v58  ;;  %v8870_v60 = vld [vmem:[#allocation47_spill] sm:$0xff] }
 0x183   : > { %v6157_v13 = vpop.xlane.xlu1 %985  ;;  %1462 = vadd.xlane.f32.xlu0 %v1461_v42  ;;  %v8856_v42 = vld [vmem:[#allocation40_spill] sm:$0xff]  ;;  %v1473_v12 = vadd.f32 %v1314_v27, %v1313_v3  ;;  %8867 = vst [vmem:[#allocation45_spill] sm:$0xff] %v6204_v28 }
 0x184   : > { %v6180_v6 = vsub.f32 %v8856_v42, %v1090_v26  ;;  %v8864_v42 = vld [vmem:[#allocation44_spill] sm:$0xff] }
 0x186   : > { %8857 = vst [vmem:[#allocation40_spill] sm:$0xff] %v6180_v6  ;;  %v1315_v26 = vmul.f32 %v6180_v6, %v6180_v6  ;;  %v8872_v6 = vld [vmem:[#allocation48_spill] sm:$0xff] }
 0x187   : > { %v6169_v15 = vpop.xlane.xlu1 %988  ;;  %1465 = vadd.xlane.f32.xlu0 %v1464_v5  ;;  %v1091_v5 = vmul.f32 0.00390625, %v6092_v36  ;;  %v1316_v36 = vmul.f32 %v6183_v58, %v6183_v58  ;;  %v8876_v58 = vld [vmem:[#allocation50_spill] sm:$0xff] }
 0x188   : > { %v1098_v39 = vmul.f32 0.00390625, %v6169_v15  ;;  %v8894_v15 = vld [vmem:[#allocation70_spill] sm:$0xff] }
 0x189   : > { %v6189_v22 = vsub.f32 %v8860_v46, %v1091_v5  ;;  %v6192_v4 = vsub.f32 %v8862_v45, %v1091_v5  ;;  %v1093_v46 = vmul.f32 0.00390625, %v974_v1  ;;  %v1476_v45 = vadd.f32 %v1316_v36, %v1315_v26 }
 0x18a   : > { %v1095_v5 = vmul.f32 0.00390625, %v980_v31  ;;  %v1096_v26 = vmul.f32 0.00390625, %v983_v18  ;;  %v6226_v31 = vsub.f32 %v8874_v24, %v1094_v48  ;;  %v8881_v18 = vld [vmem:[#allocation64_spill] sm:$0xff] }
 0x18b   : > { %v6186_v23 = vpop.xlane.xlu1 %991  ;;  %1468 = vadd.xlane.f32.xlu0 %v1467_v59  ;;  %8861 = vst [vmem:[#allocation42_spill] sm:$0xff] %v6189_v22  ;;  %8863 = vst [vmem:[#allocation43_spill] sm:$0xff] %v6192_v4  ;;  %v6201_v59 = vsub.f32 %v8864_v42, %v1092_v52  ;;  %v1317_v3 = vmul.f32 %v6189_v22, %v6189_v22  ;;  %v1318_v27 = vmul.f32 %v6192_v4, %v6192_v4  ;;  %v8868_v42 = vld [vmem:[#allocation46_spill] sm:$0xff] }
 0x18c   : > { %v1320_v52 = vmul.f32 %v6204_v28, %v6204_v28  ;;  %v6217_v1 = vsub.f32 %v8868_v42, %v1093_v46  ;;  %v6223_v4 = vsub.f32 %v8872_v6, %v1094_v48  ;;  %8875 = vst [vmem:[#allocation49_spill] sm:$0xff] %v6226_v31  ;;  %v6229_v49 = vsub.f32 %v8876_v58, %v1095_v5  ;;  %v8878_v28 = vld [vmem:[#allocation51_spill] sm:$0xff]  ;;  %v8886_v48 = vld [vmem:[#allocation52_spill] sm:$0xff]  ;;  %v8888_v58 = vld [vmem:[#allocation53_spill] sm:$0xff] }
 0x18d   : > { %8865 = vst [vmem:[#allocation44_spill] sm:$0xff] %v6201_v59  ;;  %v1479_v22 = vadd.f32 %v1318_v27, %v1317_v3  ;;  %v6232_v42 = vsub.f32 %v8878_v28, %v1095_v5  ;;  %v6244_v27 = vsub.s32 1, %v5118_v2  ;;  %v6250_v24 = vsub.f32 %v8888_v58, %v1096_v26 }
 0x18e   : > { %8869 = vst [vmem:[#allocation46_spill] sm:$0xff] %v6217_v1  ;;  %8873 = vst [vmem:[#allocation48_spill] sm:$0xff] %v6223_v4  ;;  %v1321_v5 = vmul.f32 %v6217_v1, %v6217_v1  ;;  %v6268_v1 = vld [vmem:[#allocation5 + $0x1] ss:$4 sm:$0x3]  ;;  %v1099_v35 = vmul.f32 0.00390625, %v6186_v23 }
 0x18f   : > { %v6194_v8 = vpop.xlane.xlu1 %994  ;;  %1471 = vadd.xlane.f32.xlu0 %v1470_v0  ;;  %v1319_v0 = vmul.f32 %v6201_v59, %v6201_v59  ;;  %8877 = vst [vmem:[#allocation50_spill] sm:$0xff] %v6229_v49  ;;  %8879 = vst [vmem:[#allocation51_spill] sm:$0xff] %v6232_v42  ;;  %v1326_v58 = vmul.f32 %v6232_v42, %v6232_v42 }
 0x190   : > { %8885 = vst [vmem:[#allocation114_spill] sm:$0xff] %v6244_v27  ;;  %8889 = vst [vmem:[#allocation53_spill] sm:$0xff] %v6250_v24 }
 0x191   : > { %v1482_v6 = vadd.f32 %v1320_v52, %v1319_v0 }
 0x193   : > { %v6206_v44 = vpop.xlane.xlu1 %997  ;;  %1474 = vadd.xlane.f32.xlu0 %v1473_v12  ;;  %v6220_v12 = vsub.f32 %v8870_v60, %v1093_v46  ;;  %v6235_v46 = vsub.s32 0, %v5118_v2 }
 0x195   : > { %8871 = vst [vmem:[#allocation47_spill] sm:$0xff] %v6220_v12  ;;  %8880 = vst [vmem:[#allocation113_spill] sm:$0xff] %v6235_v46 }
 0x197   : > { %v1001_v36 = vpop.xlane.xlu1 %1000  ;;  %1477 = vadd.xlane.f32.xlu0 %v1476_v45  ;;  %v8883_v45 = vld [vmem:[#allocation65_spill] sm:$0xff] }
 0x198   : > { %v1102_v59 = vmul.f32 0.00390625, %v1001_v36  ;;  %v6247_v36 = vsub.f32 %v8886_v48, %v1096_v26  ;;  %v1323_v26 = vmul.f32 %v6223_v4, %v6223_v4  ;;  %v1325_v48 = vmul.f32 %v6229_v49, %v6229_v49 }
 0x199   : > { %v1328_v49 = vmul.f32 %v6250_v24, %v6250_v24  ;;  %v8890_v24 = vld [vmem:[#allocation54_spill] sm:$0xff] }
 0x19a   : > { %v6238_v60 = vsub.f32 %v8881_v18, %v1102_v59  ;;  %v6241_v3 = vsub.f32 %v8883_v45, %v1102_v59  ;;  %8887 = vst [vmem:[#allocation52_spill] sm:$0xff] %v6247_v36  ;;  %v1322_v18 = vmul.f32 %v6220_v12, %v6220_v12  ;;  %v857_v59 = vld [vmem:[#allocation5] ss:$4 sm:$0x3]  ;;  %v1491_v43 = vadd.f32 %v1326_v58, %v1325_v48  ;;  %v8896_v48 = vld [vmem:[#allocation56_spill] sm:$0xff]  ;;  %v8898_v58 = vld [vmem:[#allocation57_spill] sm:$0xff] }
 0x19b   : > { %v1004_v28 = vpop.xlane.xlu1 %1003  ;;  %1480 = vadd.xlane.f32.xlu0 %v1479_v22  ;;  %v1324_v22 = vmul.f32 %v6226_v31, %v6226_v31  ;;  %v6275_v4 = vrot.slane %v857_v59, %v6244_v27 }
 0x19c   : > { %8882 = vst [vmem:[#allocation64_spill] sm:$0xff] %v6238_v60  ;;  %8884 = vst [vmem:[#allocation65_spill] sm:$0xff] %v6241_v3  ;;  %v1339_v0 = vmul.f32 %v6238_v60, %v6238_v60  ;;  %v1340_v2 = vmul.f32 %v6241_v3, %v6241_v3  ;;  %v1379_v52 = vpop.xlane.xlu0 %1378  ;;  %v1097_v60 = vmul.f32 0.00390625, %v6157_v13  ;;  %v6272_v3 = vrot.slane %v857_v59, %v6235_v46 }
 0x19d   : > { %v1569_v45 = vmul.f32 0.00390625, %v1379_v52  ;;  %v1327_v52 = vmul.f32 %v6247_v36, %v6247_v36  ;;  %v1485_v42 = vadd.f32 %v1322_v18, %v1321_v5  ;;  %v6284_v59 = vrot.slane %v6268_v1, %v6235_v46  ;;  %v8905_v46 = vld [vmem:[#allocation61_spill] sm:$0xff] }
 0x19e   : > { %v1512_v12 = vadd.f32 %v1340_v2, %v1339_v0  ;;  %v1488_v2 = vadd.f32 %v1324_v22, %v1323_v26  ;;  %v1100_v18 = vmul.f32 0.00390625, %v6194_v8  ;;  %v1101_v26 = vmul.f32 0.00390625, %v6206_v44  ;;  %v8899_v8 = vld [vmem:[#allocation58_spill] sm:$0xff]  ;;  %v8901_v44 = vld [vmem:[#allocation59_spill] sm:$0xff] }
 0x19f   : > { %v1633_v31 = vadd.f32 1e-05, %v1569_v45  ;;  %v1007_v56 = vpop.xlane.xlu1 %1006  ;;  %1483 = vadd.xlane.f32.xlu0 %v1482_v6  ;;  %v6288_v45 = vsub.f32 %v8890_v24, %v1097_v60  ;;  %v8892_v6 = vld [vmem:[#allocation55_spill] sm:$0xff]  ;;  %v1494_v22 = vadd.f32 %v1328_v49, %v1327_v52  ;;  %v6302_v24 = vsub.f32 %v8896_v48, %v1098_v39  ;;  %v8903_v48 = vld [vmem:[#allocation60_spill] sm:$0xff] }
 0x1a0   : > { %v1104_v13 = vmul.f32 0.00390625, %v1007_v56  ;;  %1513 = vadd.xlane.f32.xlu1 %v1512_v12  ;;  %v1382_v0 = vpop.xlane.xlu0 %1381  ;;  %v6291_v5 = vsub.f32 %v8892_v6, %v1097_v60  ;;  %v6305_v60 = vsub.f32 %v8898_v58, %v1098_v39  ;;  %v6312_v6 = vsub.f32 %v8899_v8, %v1099_v35  ;;  %v8907_v8 = vld [vmem:[#allocation62_spill] sm:$0xff] }
 0x1a1   : > { %4350 = vrsqrt.f32 %v1633_v31  ;;  %v1570_v36 = vmul.f32 0.00390625, %v1382_v0  ;;  %8891 = vst [vmem:[#allocation54_spill] sm:$0xff] %v6288_v45  ;;  %8897 = vst [vmem:[#allocation56_spill] sm:$0xff] %v6302_v24  ;;  %v1103_v52 = vmul.f32 0.00390625, %v1004_v28  ;;  %v6322_v58 = vsub.f32 %v8903_v48, %v1100_v18  ;;  %v8909_v28 = vld [vmem:[#allocation63_spill] sm:$0xff] }
 0x1a2   : > { %v6294_v56 = vsub.f32 %v5610_v7, %v1104_v13  ;;  %v6297_v12 = vsub.f32 %v8894_v15, %v1104_v13  ;;  %8900 = vst [vmem:[#allocation57_spill] sm:$0xff] %v6312_v6  ;;  %v1330_v39 = vmul.f32 %v6291_v5, %v6291_v5 }
 0x1a3   : > { %v1634_v23 = vadd.f32 1e-05, %v1570_v36  ;;  %v1010_v31 = vpop.xlane.xlu1 %1009  ;;  %1486 = vadd.xlane.f32.xlu0 %v1485_v42  ;;  %v6315_v36 = vsub.f32 %v8901_v44, %v1099_v35  ;;  %v1329_v42 = vmul.f32 %v6288_v45, %v6288_v45  ;;  %8904 = vst [vmem:[#allocation59_spill] sm:$0xff] %v6322_v58  ;;  %v1332_v44 = vmul.f32 %v6305_v60, %v6305_v60 }
 0x1a4   : > { %8893 = vst [vmem:[#allocation55_spill] sm:$0xff] %v6294_v56  ;;  %8895 = vst [vmem:[#allocation70_spill] sm:$0xff] %v6297_v12  ;;  %v1343_v7 = vmul.f32 %v6294_v56, %v6294_v56  ;;  %v1344_v13 = vmul.f32 %v6297_v12, %v6297_v12  ;;  %v1385_v0 = vpop.xlane.xlu0 %1384  ;;  %v6325_v56 = vsub.f32 %v8905_v46, %v1100_v18 }
 0x1a5   : > { %8902 = vst [vmem:[#allocation58_spill] sm:$0xff] %v6315_v36  ;;  %4352 = vrsqrt.f32 %v1634_v23  ;;  %v1571_v49 = vmul.f32 0.00390625, %v1385_v0  ;;  %v6328_v12 = vsub.f32 %v8907_v8, %v1101_v26  ;;  %v1331_v0 = vmul.f32 %v6302_v24, %v6302_v24  ;;  %v8913_v24 = vld [vmem:[#allocation67_spill] sm:$0xff] }
 0x1a6   : > { %v1518_v15 = vadd.f32 %v1344_v13, %v1343_v7  ;;  %8906 = vst [vmem:[#allocation60_spill] sm:$0xff] %v6325_v56  ;;  %v6335_v7 = vsub.f32 %v8909_v28, %v1101_v26  ;;  %v1333_v46 = vmul.f32 %v6312_v6, %v6312_v6  ;;  %v1334_v18 = vmul.f32 %v6315_v36, %v6315_v36 }
 0x1a7   : > { %8908 = vst [vmem:[#allocation61_spill] sm:$0xff] %v6328_v12  ;;  %v1635_v35 = vadd.f32 1e-05, %v1571_v49  ;;  %v1013_v23 = vpop.xlane.xlu1 %1012  ;;  %1489 = vadd.xlane.f32.xlu0 %v1488_v2  ;;  %v8911_v49 = vld [vmem:[#allocation66_spill] sm:$0xff]  ;;  %v6345_v45 = vsub.f32 %v8913_v24, %v1103_v52  ;;  %v1336_v28 = vmul.f32 %v6325_v56, %v6325_v56  ;;  %v1497_v56 = vadd.f32 %v1330_v39, %v1329_v42 }
 0x1a8   : > { %8910 = vst [vmem:[#allocation62_spill] sm:$0xff] %v6335_v7  ;;  %v1106_v13 = vmul.f32 0.00390625, %v1013_v23  ;;  %1519 = vadd.xlane.f32.xlu1 %v1518_v15  ;;  %v1388_v48 = vpop.xlane.xlu0 %1387  ;;  %v6342_v8 = vsub.f32 %v8911_v49, %v1103_v52  ;;  %v1335_v23 = vmul.f32 %v6322_v58, %v6322_v58  ;;  %v1338_v24 = vmul.f32 %v6335_v7, %v6335_v7 }
 0x1a9   : > { %4354 = vrsqrt.f32 %v1635_v35  ;;  %v1572_v2 = vmul.f32 0.00390625, %v1388_v48  ;;  %8914 = vst [vmem:[#allocation66_spill] sm:$0xff] %v6345_v45  ;;  %v1337_v35 = vmul.f32 %v6328_v12, %v6328_v12  ;;  %v6367_v12 = vrot.slane %v6268_v1, %v6244_v27 }
 0x1aa   : > { %8912 = vst [vmem:[#allocation63_spill] sm:$0xff] %v6342_v8  ;;  %v6348_v26 = vsub.f32 %v5666_v54, %v1106_v13  ;;  %v6351_v15 = vsub.f32 %v5670_v57, %v1106_v13  ;;  %v1105_v54 = vmul.f32 0.00390625, %v1010_v31  ;;  %v1342_v31 = vmul.f32 %v6345_v45, %v6345_v45 }
 0x1ab   : > { %v1636_v48 = vadd.f32 1e-05, %v1572_v2  ;;  %v1016_v49 = vpop.xlane.xlu1 %1015  ;;  %1492 = vadd.xlane.f32.xlu0 %v1491_v43  ;;  %v1341_v43 = vmul.f32 %v6342_v8, %v6342_v8  ;;  %v1503_v39 = vadd.f32 %v1334_v18, %v1333_v46  ;;  %v6380_v8 = vadd.f32 %v1338_v24, %v1337_v35 }
 0x1ac   : > { %8915 = vst [vmem:[#allocation67_spill] sm:$0xff] %v6348_v26  ;;  %8916 = vst [vmem:[#allocation115_spill] sm:$0xff] %v6351_v15  ;;  %v1347_v57 = vmul.f32 %v6348_v26, %v6348_v26  ;;  %v1348_v52 = vmul.f32 %v6351_v15, %v6351_v15  ;;  %v1391_v13 = vpop.xlane.xlu0 %1390  ;;  %v1500_v26 = vadd.f32 %v1332_v44, %v1331_v0  ;;  %v1107_v45 = vmul.f32 0.00390625, %v1016_v49 }
 0x1ad   : > { %4356 = vrsqrt.f32 %v1636_v48  ;;  %v1573_v58 = vmul.f32 0.00390625, %v1391_v13  ;;  %v6376_v1 = vsub.f32 %v5633_v29, %v1105_v54  ;;  %v6378_v15 = vadd.f32 %v1336_v28, %v1335_v23 }
 0x1ae   : > { %v4351_v2 = vpop.eup %4350  ;;  %v1524_v7 = vadd.f32 %v1348_v52, %v1347_v57  ;;  %v6400_v28 = vsub.f32 %v5643_v34, %v1105_v54  ;;  %v8922_v54 = vld [vmem:[#allocation79_spill] sm:$0xff] }
 0x1af   : > { %v1637_v6 = vadd.f32 1e-05, %v1573_v58  ;;  %v1019_v36 = vpop.xlane.xlu1 %1018  ;;  %1495 = vadd.xlane.f32.xlu0 %v1494_v22  ;;  %v1773_v48 = vmul.f32 %v4351_v2, %v6275_v4  ;;  %v1772_v42 = vmul.f32 %v4351_v2, %v6272_v3  ;;  %v8917_v58 = vld [vmem:[#allocation69_spill] sm:$0xff]  ;;  %v8918_v22 = vld [vmem:[#allocation68_spill] sm:$0xff]  ;;  %v1345_v49 = vmul.f32 %v6376_v1, %v6376_v1  ;;  %v8921_v2 = vld [vmem:[#allocation74_spill] sm:$0xff] }
 0x1b0   : > { %v1108_v13 = vmul.f32 0.00390625, %v1019_v36  ;;  %1525 = vadd.xlane.f32.xlu1 %v1524_v7  ;;  %v1394_v27 = vpop.xlane.xlu0 %1393  ;;  %v6390_v36 = vadd.f32 %v1342_v31, %v1341_v43  ;;  %v6412_v31 = vsub.f32 %v8922_v54, %v1107_v45 }
 0x1b1   : > { %4358 = vrsqrt.f32 %v1637_v6  ;;  %v1574_v0 = vmul.f32 0.00390625, %v1394_v27  ;;  %v1901_v44 = vmul.f32 %v1773_v48, %v8917_v58  ;;  %v1900_v57 = vmul.f32 %v1772_v42, %v8918_v22  ;;  %v8924_v48 = vld [vmem:[#allocation80_spill] sm:$0xff] }
 0x1b2   : > { %v4353_v52 = vpop.eup %4352  ;;  %v6385_v46 = vsub.f32 %v5712_v30, %v1108_v13  ;;  %v6388_v29 = vsub.f32 %v5714_v20, %v1108_v13  ;;  %8923 = vst [vmem:[#allocation74_spill] sm:$0xff] %v6412_v31  ;;  %v6415_v42 = vsub.f32 %v8924_v48, %v1107_v45 }
 0x1b3   : > { %v1638_v7 = vadd.f32 1e-05, %v1574_v0  ;;  %v1022_v18 = vpop.xlane.xlu1 %1021  ;;  %1498 = vadd.xlane.f32.xlu0 %v1497_v56  ;;  %v6393_v6 = vadd.f32 %v6367_v12, %v1901_v44  ;;  %v6396_v27 = vadd.f32 %v6284_v59, %v1900_v57  ;;  %v1775_v23 = vmul.f32 %v4353_v52, %v6275_v4  ;;  %v8925_v0 = vld [vmem:[#allocation73_spill] sm:$0xff] }
 0x1b4   : > { %v1351_v30 = vmul.f32 %v6385_v46, %v6385_v46  ;;  %v1352_v20 = vmul.f32 %v6388_v29, %v6388_v29  ;;  %v1397_v35 = vpop.xlane.xlu0 %1396  ;;  %v1774_v56 = vmul.f32 %v4353_v52, %v6272_v3  ;;  %v1109_v45 = vmul.f32 0.00390625, %v1022_v18 }
 0x1b5   : > { %8919 = vst [vmem:[#allocation69_spill] sm:$0xff] %v6393_v6  ;;  %8920 = vst [vmem:[#allocation68_spill] sm:$0xff] %v6396_v27  ;;  %4360 = vrsqrt.f32 %v1638_v7  ;;  %v1575_v24 = vmul.f32 0.00390625, %v1397_v35  ;;  %2370 = vmatprep.mubr.f32.mxu0 %v6393_v6  ;;  %v1903_v43 = vmul.f32 %v1775_v23, %v8921_v2  ;;  %v1346_v23 = vmul.f32 %v6400_v28, %v6400_v28 }
 0x1b6   : > { %v4355_v34 = vpop.eup %4354  ;;  %2371 = vmatmul.mubr.f32.vlgmr.msra.gmra.mxu0 %v6396_v27  ;;  %v1530_v13 = vadd.f32 %v1352_v20, %v1351_v30  ;;  %v1902_v58 = vmul.f32 %v1774_v56, %v8925_v0  ;;  %v1350_v18 = vmul.f32 %v6415_v42, %v6415_v42 }
 0x1b7   : > { %v1639_v44 = vadd.f32 1e-05, %v1575_v24  ;;  %v1025_v22 = vpop.xlane.xlu1 %1024  ;;  %1501 = vadd.xlane.f32.xlu0 %v1500_v26  ;;  %v6420_v57 = vadd.f32 %v6367_v12, %v1903_v43  ;;  %v1777_v52 = vmul.f32 %v4355_v34, %v6275_v4  ;;  %v1776_v7 = vmul.f32 %v4355_v34, %v6272_v3  ;;  %v8928_v26 = vld [vmem:[#allocation72_spill] sm:$0xff]  ;;  %v8929_v24 = vld [vmem:[#allocation71_spill] sm:$0xff] }
 0x1b8   : > { %v1110_v35 = vmul.f32 0.00390625, %v1025_v22  ;;  %1531 = vadd.xlane.f32.xlu1 %v1530_v13  ;;  %v1400_v2 = vpop.xlane.xlu0 %1399  ;;  %v6427_v30 = vadd.f32 %v6284_v59, %v1902_v58  ;;  %v1349_v34 = vmul.f32 %v6412_v31, %v6412_v31 }
 0x1b9   : > { %8926 = vst [vmem:[#allocation79_spill] sm:$0xff] %v6420_v57  ;;  %4362 = vrsqrt.f32 %v1639_v44  ;;  %v1576_v20 = vmul.f32 0.00390625, %v1400_v2  ;;  %2376 = vmatprep.mubr.f32.mxu0 %v6420_v57  ;;  %v1905_v56 = vmul.f32 %v1777_v52, %v8928_v26  ;;  %v1904_v43 = vmul.f32 %v1776_v7, %v8929_v24  ;;  %v8932_v7 = vld [vmem:[#allocation85_spill] sm:$0xff]  ;;  %v8933_v26 = vld [vmem:[#allocation76_spill] sm:$0xff] }
 0x1ba   : > { %8927 = vst [vmem:[#allocation80_spill] sm:$0xff] %v6427_v30  ;;  %v4357_v54 = vpop.eup %4356  ;;  %v6437_v48 = vsub.f32 %v5760_v63, %v1110_v35  ;;  %v6440_v13 = vsub.f32 %v5765_v9, %v1110_v35  ;;  %2377 = vmatmul.mubr.f32.gmra.mxu0 %v6427_v30  ;;  %v6451_v2 = vsub.f32 %v8932_v7, %v1109_v45  ;;  %v8934_v30 = vld [vmem:[#allocation75_spill] sm:$0xff] }
 0x1bb   : > { %v1640_v0 = vadd.f32 1e-05, %v1576_v20  ;;  %v1028_v58 = vpop.xlane.xlu1 %1027  ;;  %1504 = vadd.xlane.f32.xlu0 %v1503_v39  ;;  %v6444_v44 = vadd.f32 %v6367_v12, %v1905_v56  ;;  %v6447_v22 = vadd.f32 %v6284_v59, %v1904_v43  ;;  %v1779_v52 = vmul.f32 %v4357_v54, %v6275_v4 }
 0x1bc   : > { %8930 = vst [vmem:[#allocation73_spill] sm:$0xff] %v6437_v48  ;;  %v1355_v63 = vmul.f32 %v6437_v48, %v6437_v48  ;;  %v1356_v9 = vmul.f32 %v6440_v13, %v6440_v13  ;;  %v1403_v35 = vpop.xlane.xlu0 %1402  ;;  %v1778_v39 = vmul.f32 %v4357_v54, %v6272_v3  ;;  %v6460_v24 = vadd.f32 %v1346_v23, %v1345_v49  ;;  %v8936_v23 = vld [vmem:[#allocation88_spill] sm:$0xff] }
 0x1bd   : > { %8931 = vst [vmem:[#allocation72_spill] sm:$0xff] %v6444_v44  ;;  %4364 = vrsqrt.f32 %v1640_v0  ;;  %v1577_v20 = vmul.f32 0.00390625, %v1403_v35  ;;  %2382 = vmatprep.mubr.f32.mxu0 %v6444_v44  ;;  %v1907_v56 = vmul.f32 %v1779_v52, %v8933_v26  ;;  %v1111_v7 = vmul.f32 0.00390625, %v1028_v58  ;;  %v8939_v35 = vld [vmem:[#allocation77_spill] sm:$0xff] }
 0x1be   : > { %v4359_v43 = vpop.eup %4358  ;;  %2383 = vmatmul.mubr.f32.gmra.mxu0 %v6447_v22  ;;  %v1536_v57 = vadd.f32 %v1356_v9, %v1355_v63  ;;  %v1906_v6 = vmul.f32 %v1778_v39, %v8934_v30  ;;  %v6464_v27 = vadd.f32 %v1350_v18, %v1349_v34  ;;  %v6473_v58 = vsub.f32 %v8936_v23, %v1109_v45  ;;  %v8938_v63 = vld [vmem:[#allocation78_spill] sm:$0xff] }
 0x1bf   : > { %v1641_v31 = vadd.f32 1e-05, %v1577_v20  ;;  %v1031_v48 = vpop.xlane.xlu1 %1030  ;;  %1507 = vadd.xlane.f32.xlu0 %v6378_v15  ;;  %v6468_v54 = vadd.f32 %v6367_v12, %v1907_v56  ;;  %v1781_v0 = vmul.f32 %v4359_v43, %v6275_v4  ;;  %v1780_v49 = vmul.f32 %v4359_v43, %v6272_v3  ;;  %v8942_v23 = vld [vmem:[#allocation82_spill] sm:$0xff] }
 0x1c0   : > { %v6477_v52 = vmul.f32 %v6451_v2, %v6451_v2  ;;  %v1112_v30 = vmul.f32 0.00390625, %v1031_v48  ;;  %1537 = vadd.xlane.f32.xlu1 %v1536_v57  ;;  %v1406_v34 = vpop.xlane.xlu0 %1405  ;;  %v6480_v18 = vadd.f32 %v6284_v59, %v1906_v6  ;;  %v6486_v20 = vsub.f32 %v5785_v14, %v1111_v7 }
 0x1c1   : > { %8935 = vst [vmem:[#allocation71_spill] sm:$0xff] %v6468_v54  ;;  %4366 = vrsqrt.f32 %v1641_v31  ;;  %v1578_v15 = vmul.f32 0.00390625, %v1406_v34  ;;  %2388 = vmatprep.mubr.f32.mxu0 %v6468_v54  ;;  %v1909_v9 = vmul.f32 %v1781_v0, %v8938_v63  ;;  %v1908_v39 = vmul.f32 %v1780_v49, %v8939_v35  ;;  %v8943_v35 = vld [vmem:[#allocation81_spill] sm:$0xff]  ;;  %v8949_v54 = vld [vmem:[#allocation86_spill] sm:$0xff] }
 0x1c2   : > { %8937 = vst [vmem:[#allocation85_spill] sm:$0xff] %v6480_v18  ;;  %v4361_v45 = vpop.eup %4360  ;;  %v6489_v26 = vsub.f32 %v5795_v50, %v1111_v7  ;;  %v6492_v57 = vsub.f32 %v5808_v10, %v1112_v30  ;;  %v6495_v6 = vsub.f32 %v5811_v33, %v1112_v30  ;;  %2389 = vmatmul.mubr.f32.gmra.mxu0 %v6480_v18 }
 0x1c3   : > { %v1642_v31 = vadd.f32 1e-05, %v1578_v15  ;;  %v1034_v48 = vpop.xlane.xlu1 %1033  ;;  %1510 = vadd.xlane.f32.xlu0 %v6380_v8  ;;  %v6500_v56 = vadd.f32 %v6367_v12, %v1909_v9  ;;  %v6503_v14 = vadd.f32 %v6284_v59, %v1908_v39  ;;  %v1783_v50 = vmul.f32 %v4361_v45, %v6275_v4 }
 0x1c4   : > { %v1359_v10 = vmul.f32 %v6492_v57, %v6492_v57  ;;  %v1360_v33 = vmul.f32 %v6495_v6, %v6495_v6  ;;  %v1113_v43 = vmul.f32 0.00390625, %v1034_v48  ;;  %v1409_v7 = vpop.xlane.xlu0 %1408  ;;  %v1782_v0 = vmul.f32 %v4361_v45, %v6272_v3 }
 0x1c5   : > { %8940 = vst [vmem:[#allocation76_spill] sm:$0xff] %v6500_v56  ;;  %8941 = vst [vmem:[#allocation75_spill] sm:$0xff] %v6503_v14  ;;  %v1354_v8 = vmul.f32 %v6473_v58, %v6473_v58  ;;  %4368 = vrsqrt.f32 %v1642_v31  ;;  %v1579_v49 = vmul.f32 0.00390625, %v1409_v7  ;;  %2394 = vmatprep.mubr.f32.mxu0 %v6500_v56  ;;  %v1911_v30 = vmul.f32 %v1783_v50, %v8942_v23  ;;  %v8947_v23 = vld [vmem:[#allocation83_spill] sm:$0xff] }
 0x1c6   : > { %v4363_v34 = vpop.eup %4362  ;;  %v6516_v15 = vsub.f32 %v5833_v19, %v1113_v43  ;;  %v6519_v63 = vsub.f32 %v5836_v40, %v1113_v43  ;;  %2395 = vmatmul.mubr.f32.gmra.mxu0 %v6503_v14  ;;  %v1542_v9 = vadd.f32 %v1360_v33, %v1359_v10  ;;  %v1910_v39 = vmul.f32 %v1782_v0, %v8943_v35  ;;  %v8946_v0 = vld [vmem:[#allocation84_spill] sm:$0xff] }
 0x1c7   : > { %v1643_v45 = vadd.f32 1e-05, %v1579_v49  ;;  %v1037_v48 = vpop.xlane.xlu1 %1036  ;;  %1516 = vadd.xlane.f32.xlu0 %v6390_v36  ;;  %v6525_v31 = vadd.f32 %v6367_v12, %v1911_v30  ;;  %v1785_v50 = vmul.f32 %v4363_v34, %v6275_v4  ;;  %v1784_v19 = vmul.f32 %v4363_v34, %v6272_v3 }
 0x1c8   : > { %v1357_v40 = vmul.f32 %v6486_v20, %v6486_v20  ;;  %v1358_v43 = vmul.f32 %v6489_v26, %v6489_v26  ;;  %v1114_v10 = vmul.f32 0.00390625, %v1037_v48  ;;  %1543 = vadd.xlane.f32.xlu1 %v1542_v9  ;;  %v1412_v33 = vpop.xlane.xlu0 %1411  ;;  %v6534_v7 = vadd.f32 %v6284_v59, %v1910_v39 }
 0x1c9   : > { %8944 = vst [vmem:[#allocation88_spill] sm:$0xff] %v6525_v31  ;;  %4370 = vrsqrt.f32 %v1643_v45  ;;  %v1580_v36 = vmul.f32 0.00390625, %v1412_v33  ;;  %2400 = vmatprep.mubr.f32.mxu0 %v6525_v31  ;;  %v1913_v49 = vmul.f32 %v1785_v50, %v8946_v0  ;;  %v1912_v30 = vmul.f32 %v1784_v19, %v8947_v23 }
 0x1ca   : > { %8945 = vst [vmem:[#allocation78_spill] sm:$0xff] %v6534_v7  ;;  %v4365_v34 = vpop.eup %4364  ;;  %v1361_v35 = vmul.f32 %v6516_v15, %v6516_v15  ;;  %v1362_v48 = vmul.f32 %v6519_v63, %v6519_v63  ;;  %v6544_v9 = vsub.f32 %v5856_v32, %v1114_v10  ;;  %v6547_v39 = vsub.f32 %v5858_v11, %v1114_v10 }
 0x1cb   : > { %2401 = vmatmul.mubr.f32.gmra.mxu0 %v6534_v7  ;;  %v1644_v45 = vadd.f32 1e-05, %v1580_v36  ;;  %v1040_v33 = vpop.xlane.xlu1 %1039  ;;  %1522 = vadd.xlane.f32.xlu0 %v6460_v24  ;;  %v6552_v50 = vadd.f32 %v6367_v12, %v1913_v49  ;;  %v6555_v19 = vadd.f32 %v6284_v59, %v1912_v30  ;;  %v1787_v0 = vmul.f32 %v4365_v34, %v6275_v4  ;;  %v8948_v49 = vld [vmem:[#allocation87_spill] sm:$0xff] }
 0x1cc   : > { %v1363_v32 = vmul.f32 %v6544_v9, %v6544_v9  ;;  %v1364_v11 = vmul.f32 %v6547_v39, %v6547_v39  ;;  %v1115_v10 = vmul.f32 0.00390625, %v1040_v33  ;;  %v1415_v23 = vpop.xlane.xlu0 %1414  ;;  %v1786_v36 = vmul.f32 %v4365_v34, %v6272_v3 }
 0x1cd   : > { %4372 = vrsqrt.f32 %v1644_v45  ;;  %v1581_v24 = vmul.f32 0.00390625, %v1415_v23  ;;  %2406 = vmatprep.mubr.f32.mxu0 %v6552_v50  ;;  %v1915_v31 = vmul.f32 %v1787_v0, %v8948_v49  ;;  %v1533_v30 = vadd.f32 %v1354_v8, %v6477_v52  ;;  %v8952_v23 = vld [vmem:[#allocation89_spill] sm:$0xff] }
 0x1ce   : > { %v4367_v7 = vpop.eup %4366  ;;  %v6567_v56 = vsub.f32 %v5880_v62, %v1115_v10  ;;  %v1548_v14 = vadd.f32 %v1364_v11, %v1363_v32  ;;  %v1914_v33 = vmul.f32 %v1786_v36, %v8949_v54  ;;  %v1539_v18 = vadd.f32 %v1358_v43, %v1357_v40  ;;  %v2262_v43 = vld [vmem:[#allocation8 + $0xf8] sm:$0xff] }
 0x1cf   : > { %2407 = vmatmul.mubr.f32.gmra.mxu0 %v6555_v19  ;;  %v1645_v44 = vadd.f32 1e-05, %v1581_v24  ;;  %v1043_v34 = vpop.xlane.xlu1 %1042  ;;  %1528 = vadd.xlane.f32.xlu0 %v6464_v27  ;;  %v6573_v45 = vadd.f32 %v6367_v12, %v1915_v31  ;;  %v1789_v0 = vmul.f32 %v4367_v7, %v6275_v4  ;;  %v1788_v52 = vmul.f32 %v4367_v7, %v6272_v3  ;;  %v8951_v31 = vld [vmem:[#allocation90_spill] sm:$0xff] }
 0x1d0   : > { %v6578_v62 = vsub.f32 %v5891_v17, %v1115_v10  ;;  %v1116_v8 = vmul.f32 0.00390625, %v1043_v34  ;;  %1549 = vadd.xlane.f32.xlu1 %v1548_v14  ;;  %v1418_v32 = vpop.xlane.xlu0 %1417  ;;  %v6581_v54 = vadd.f32 %v6284_v59, %v1914_v33  ;;  %v6583_v40 = vadd.f32 %v1362_v48, %v1361_v35  ;;  %3406 = vmatprep.subr.mxu1 %v2262_v43  ;;  %v2261_v17 = vld [vmem:[#allocation8 + $0xf0] sm:$0xff] }
 0x1d1   : > { %8950 = vst [vmem:[#allocation77_spill] sm:$0xff] %v6573_v45  ;;  %4374 = vrsqrt.f32 %v1645_v44  ;;  %v1582_v27 = vmul.f32 0.00390625, %v1418_v32  ;;  %2412 = vmatprep.mubr.f32.mxu0 %v6573_v45  ;;  %v1917_v11 = vmul.f32 %v1789_v0, %v8951_v31  ;;  %v1916_v7 = vmul.f32 %v1788_v52, %v8952_v23  ;;  %3407 = vmatpush1.msra.mxu1 %v2261_v17  ;;  %v2260_v44 = vld [vmem:[#allocation8 + $0xe8] sm:$0xff]  ;;  %v2258_v32 = vld [vmem:[#allocation8 + $0xd8] sm:$0xff]  ;;  %v2257_v23 = vld [vmem:[#allocation8 + $0xd0] sm:$0xff] }
 0x1d2   : > { %v4369_v10 = vpop.eup %4368  ;;  %v1365_v14 = vmul.f32 %v6567_v56, %v6567_v56  ;;  %v6591_v36 = vsub.f32 %v5907_v47, %v1116_v8  ;;  %v6594_v35 = vsub.f32 %v5910_v55, %v1116_v8  ;;  %3408 = vmatprep.subr.mxu1 %v2260_v44  ;;  %v2259_v47 = vld [vmem:[#allocation8 + $0xe0] sm:$0xff]  ;;  %v1366_v43 = vmul.f32 %v6578_v62, %v6578_v62  ;;  %v8955_v31 = vld [vmem:[#allocation92_spill] sm:$0xff] }
 0x1d3   : > { %2413 = vmatmul.mubr.f32.gmra.mxu0 %v6581_v54  ;;  %v1646_v48 = vadd.f32 1e-05, %v1582_v27  ;;  %v1046_v24 = vpop.xlane.xlu1 %1045  ;;  %1534 = vadd.xlane.f32.xlu0 %v1533_v30  ;;  %v6598_v49 = vadd.f32 %v6367_v12, %v1917_v11  ;;  %v6601_v33 = vadd.f32 %v6284_v59, %v1916_v7  ;;  %v1791_v34 = vmul.f32 %v4369_v10, %v6275_v4 }
 0x1d4   : > { %v1367_v55 = vmul.f32 %v6591_v36, %v6591_v36  ;;  %v1368_v0 = vmul.f32 %v6594_v35, %v6594_v35  ;;  %v1117_v52 = vmul.f32 0.00390625, %v1046_v24  ;;  %v1421_v8 = vpop.xlane.xlu0 %1420  ;;  %v1790_v30 = vmul.f32 %v4369_v10, %v6272_v3  ;;  %3409 = vmatpush1.msra.mxu1 %v2259_v47  ;;  %v8956_v24 = vld [vmem:[#allocation91_spill] sm:$0xff] }
 0x1d5   : > { %8953 = vst [vmem:[#allocation82_spill] sm:$0xff] %v6598_v49  ;;  %8954 = vst [vmem:[#allocation81_spill] sm:$0xff] %v6601_v33  ;;  %4376 = vrsqrt.f32 %v1646_v48  ;;  %v1583_v27 = vmul.f32 0.00390625, %v1421_v8  ;;  %2418 = vmatprep.mubr.f32.mxu0 %v6598_v49  ;;  %v1919_v11 = vmul.f32 %v1791_v34, %v8955_v31  ;;  %3410 = vmatprep.subr.mxu1 %v2258_v32  ;;  %v2256_v48 = vld [vmem:[#allocation8 + $0xc8] sm:$0xff]  ;;  %v2255_v31 = vld [vmem:[#allocation8 + $0xc0] sm:$0xff] }
 0x1d6   : > { %v4371_v7 = vpop.eup %4370  ;;  %v6614_v17 = vsub.f32 %v5929_v61, %v1117_v52  ;;  %v6617_v44 = vsub.f32 %v5940_v53, %v1117_v52  ;;  %v1554_v10 = vadd.f32 %v1368_v0, %v1367_v55  ;;  %v1918_v47 = vmul.f32 %v1790_v30, %v8956_v24  ;;  %3411 = vmatpush1.msra.mxu1 %v2257_v23  ;;  %v2254_v30 = vld [vmem:[#allocation8 + $0xb8] sm:$0xff]  ;;  %v2253_v49 = vld [vmem:[#allocation8 + $0xb0] sm:$0xff] }
 0x1d7   : > { %2419 = vmatmul.mubr.f32.gmra.mxu0 %v6601_v33  ;;  %v1647_v8 = vadd.f32 1e-05, %v1583_v27  ;;  %v1049_v45 = vpop.xlane.xlu1 %1048  ;;  %1540 = vadd.xlane.f32.xlu0 %v1539_v18  ;;  %v6622_v34 = vadd.f32 %v6367_v12, %v1919_v11  ;;  %v1793_v32 = vmul.f32 %v4371_v7, %v6275_v4  ;;  %v1792_v61 = vmul.f32 %v4371_v7, %v6272_v3  ;;  %v8959_v11 = vld [vmem:[#allocation94_spill] sm:$0xff]  ;;  %v8960_v7 = vld [vmem:[#allocation93_spill] sm:$0xff] }
 0x1d8   : > { %v1369_v53 = vmul.f32 %v6614_v17, %v6614_v17  ;;  %v1370_v55 = vmul.f32 %v6617_v44, %v6617_v44  ;;  %v1118_v0 = vmul.f32 0.00390625, %v1049_v45  ;;  %1555 = vadd.xlane.f32.xlu1 %v1554_v10  ;;  %v1424_v52 = vpop.xlane.xlu0 %1423  ;;  %v6631_v18 = vadd.f32 %v6284_v59, %v1918_v47  ;;  %3412 = vmatprep.subr.mxu1 %v2256_v48  ;;  %v2252_v48 = vld [vmem:[#allocation8 + $0xa8] sm:$0xff] }
 0x1d9   : > { %8957 = vst [vmem:[#allocation84_spill] sm:$0xff] %v6622_v34  ;;  %4378 = vrsqrt.f32 %v1647_v8  ;;  %v1584_v27 = vmul.f32 0.00390625, %v1424_v52  ;;  %2424 = vmatprep.mubr.f32.mxu0 %v6622_v34  ;;  %v1921_v23 = vmul.f32 %v1793_v32, %v8959_v11  ;;  %v1920_v24 = vmul.f32 %v1792_v61, %v8960_v7  ;;  %3413 = vmatpush1.msra.mxu1 %v2255_v31  ;;  %v8962_v11 = vld [vmem:[#allocation96_spill] sm:$0xff]  ;;  %v2249_v7 = vld [vmem:[#allocation8 + $0x90] sm:$0xff] }
 0x1da   : > { %8958 = vst [vmem:[#allocation83_spill] sm:$0xff] %v6631_v18  ;;  %v4373_v33 = vpop.eup %4372  ;;  %v6637_v45 = vsub.f32 %v5952_v21, %v1118_v0  ;;  %v6640_v10 = vsub.f32 %v5955_v51, %v1118_v0  ;;  %v1551_v47 = vadd.f32 %v1366_v43, %v1365_v14  ;;  %3414 = vmatprep.subr.mxu1 %v2254_v30  ;;  %v2251_v51 = vld [vmem:[#allocation8 + $0xa0] sm:$0xff]  ;;  %v2250_v30 = vld [vmem:[#allocation8 + $0x98] sm:$0xff] }
 0x1db   : > { %2425 = vmatmul.mubr.f32.gmra.mxu0 %v6631_v18  ;;  %v1648_v8 = vadd.f32 1e-05, %v1584_v27  ;;  %v1052_v52 = vpop.xlane.xlu1 %1051  ;;  %1546 = vadd.xlane.f32.xlu0 %v6583_v40  ;;  %v6645_v32 = vadd.f32 %v6367_v12, %v1921_v23  ;;  %v6648_v61 = vadd.f32 %v6284_v59, %v1920_v24  ;;  %v1795_v21 = vmul.f32 %v4373_v33, %v6275_v4 }
 0x1dc   : > { %3415 = vmatpush1.msra.mxu1 %v2253_v49  ;;  %v1371_v31 = vmul.f32 %v6637_v45, %v6637_v45  ;;  %v1372_v14 = vmul.f32 %v6640_v10, %v6640_v10  ;;  %v1119_v43 = vmul.f32 0.00390625, %v1052_v52  ;;  %v1427_v0 = vpop.xlane.xlu0 %1426  ;;  %v1794_v40 = vmul.f32 %v4373_v33, %v6272_v3 }
 0x1dd   : > { %8961 = vst [vmem:[#allocation87_spill] sm:$0xff] %v6645_v32  ;;  %3416 = vmatprep.subr.mxu1 %v2252_v48  ;;  %4380 = vrsqrt.f32 %v1648_v8  ;;  %v1585_v27 = vmul.f32 0.00390625, %v1427_v0  ;;  %2430 = vmatprep.mubr.f32.mxu0 %v6645_v32  ;;  %v1923_v23 = vmul.f32 %v1795_v21, %v8962_v11  ;;  %v1557_v49 = vadd.f32 %v1370_v55, %v1369_v53  ;;  %v8963_v48 = vld [vmem:[#allocation95_spill] sm:$0xff]  ;;  %v2248_v0 = vld [vmem:[#allocation8 + $0x88] sm:$0xff] }
 0x1de   : > { %3417 = vmatpush1.msra.mxu1 %v2251_v51  ;;  %v4375_v24 = vpop.eup %4374  ;;  %v6659_v34 = vsub.f32 %v5975_v25, %v1119_v43  ;;  %v6662_v52 = vsub.f32 %v5984_v41, %v1119_v43  ;;  %v1560_v33 = vadd.f32 %v1372_v14, %v1371_v31  ;;  %v1922_v8 = vmul.f32 %v1794_v40, %v8963_v48  ;;  %v2247_v21 = vld [vmem:[#allocation8 + $0x80] sm:$0xff]  ;;  %v2246_v43 = vld [vmem:[#allocation8 + $0x78] sm:$0xff] }
 0x1df   : > { %2431 = vmatmul.mubr.f32.gmra.mxu0 %v6648_v61  ;;  %v1649_v18 = vadd.f32 1e-05, %v1585_v27  ;;  %v1055_v32 = vpop.xlane.xlu1 %1054  ;;  %1552 = vadd.xlane.f32.xlu0 %v1551_v47  ;;  %v6667_v53 = vadd.f32 %v6367_v12, %v1923_v23  ;;  %v1797_v55 = vmul.f32 %v4375_v24, %v6275_v4  ;;  %v1796_v25 = vmul.f32 %v4375_v24, %v6272_v3  ;;  %v8965_v27 = vld [vmem:[#allocation97_spill] sm:$0xff] }
 0x1e0   : > { %3418 = vmatprep.subr.mxu1 %v2250_v30  ;;  %v1373_v41 = vmul.f32 %v6659_v34, %v6659_v34  ;;  %v1374_v51 = vmul.f32 %v6662_v52, %v6662_v52  ;;  %v1120_v31 = vmul.f32 0.00390625, %v1055_v32  ;;  %1561 = vadd.xlane.f32.xlu1 %v1560_v33  ;;  %v1430_v14 = vpop.xlane.xlu0 %1429  ;;  %v6676_v47 = vadd.f32 %v6284_v59, %v1922_v8  ;;  %v2245_v23 = vld [vmem:[#allocation8 + $0x70] sm:$0xff] }
 0x1e1   : > { %8964 = vst [vmem:[#allocation86_spill] sm:$0xff] %v6667_v53  ;;  %3419 = vmatpush1.msra.mxu1 %v2249_v7  ;;  %4382 = vrsqrt.f32 %v1649_v18  ;;  %v1586_v40 = vmul.f32 0.00390625, %v1430_v14  ;;  %2436 = vmatprep.mubr.f32.mxu0 %v6667_v53  ;;  %v1925_v30 = vmul.f32 %v1797_v55, %v5874_v38  ;;  %v1924_v11 = vmul.f32 %v1796_v25, %v8965_v27  ;;  %v2244_v18 = vld [vmem:[#allocation8 + $0x68] sm:$0xff]  ;;  %v2241_v14 = vld [vmem:[#allocation8 + $0x50] sm:$0xff] }
 0x1e2   : > { %3420 = vmatprep.subr.mxu1 %v2248_v0  ;;  %v4377_v24 = vpop.eup %4376  ;;  %v6682_v32 = vsub.f32 %v5997_v37, %v1120_v31  ;;  %v6685_v33 = vsub.f32 %v5999_v16, %v1120_v31  ;;  %v1563_v7 = vadd.f32 %v1374_v51, %v1373_v41  ;;  %v2243_v37 = vld [vmem:[#allocation8 + $0x60] sm:$0xff] }
 0x1e3   : > { %2437 = vmatmul.mubr.f32.gmra.mxu0 %v6676_v47  ;;  %3421 = vmatpush1.msra.mxu1 %v2247_v21  ;;  %v1650_v48 = vadd.f32 1e-05, %v1586_v40  ;;  %v6689_v38 = vadd.f32 %v6367_v12, %v1925_v30  ;;  %v6692_v8 = vadd.f32 %v6284_v59, %v1924_v11  ;;  %v1799_v0 = vmul.f32 %v4377_v24, %v6275_v4  ;;  %v8968_v51 = vld [vmem:[#allocation99_spill] sm:$0xff]  ;;  %v8969_v30 = vld [vmem:[#allocation98_spill] sm:$0xff]  ;;  %v2240_v11 = vld [vmem:[#allocation8 + $0x48] sm:$0xff] }
 0x1e4   : > { %1558 = vadd.xlane.f32.xlu0 %v1557_v49  ;;  %3422 = vmatprep.subr.mxu1 %v2246_v43  ;;  %v1375_v16 = vmul.f32 %v6682_v32, %v6682_v32  ;;  %v1376_v55 = vmul.f32 %v6685_v33, %v6685_v33  ;;  %v1433_v25 = vpop.xlane.xlu0 %1432  ;;  %v1798_v21 = vmul.f32 %v4377_v24, %v6272_v3  ;;  %v2242_v49 = vld [vmem:[#allocation8 + $0x58] sm:$0xff] }
 0x1e5   : > { %8966 = vst [vmem:[#allocation90_spill] sm:$0xff] %v6689_v38  ;;  %8967 = vst [vmem:[#allocation89_spill] sm:$0xff] %v6692_v8  ;;  %3423 = vmatpush1.msra.mxu1 %v2245_v23  ;;  %4384 = vrsqrt.f32 %v1650_v48  ;;  %v1587_v41 = vmul.f32 0.00390625, %v1433_v25  ;;  %2442 = vmatprep.mubr.f32.mxu0 %v6689_v38  ;;  %v1927_v31 = vmul.f32 %v1799_v0, %v8968_v51  ;;  %v2237_v51 = vld [vmem:[#allocation8 + $0x30] sm:$0xff] }
 0x1e6   : > { %3424 = vmatprep.subr.mxu1 %v2244_v18  ;;  %v4379_v43 = vpop.eup %4378  ;;  %v1566_v40 = vadd.f32 %v1376_v55, %v1375_v16  ;;  %v1926_v27 = vmul.f32 %v1798_v21, %v8969_v30  ;;  %v2239_v18 = vld [vmem:[#allocation8 + $0x40] sm:$0xff]  ;;  %v2238_v16 = vld [vmem:[#allocation8 + $0x38] sm:$0xff]  ;;  %v8973_v21 = vld [vmem:[#allocation100_spill] sm:$0xff] }
 0x1e7   : > { %2443 = vmatmul.mubr.f32.gmra.mxu0 %v6692_v8  ;;  %3425 = vmatpush1.msra.mxu1 %v2243_v37  ;;  %v1651_v53 = vadd.f32 1e-05, %v1587_v41  ;;  %v6705_v23 = vadd.f32 %v6367_v12, %v1927_v31  ;;  %v1801_v24 = vmul.f32 %v4379_v43, %v6275_v4  ;;  %v1800_v48 = vmul.f32 %v4379_v43, %v6272_v3  ;;  %v2235_v30 = vld [vmem:[#allocation8 + $0x20] sm:$0xff]  ;;  %v9112_v8 = vld [vmem:[#allocation114_spill] sm:$0xff] }
 0x1e8   : > { %1564 = vadd.xlane.f32.xlu0 %v1563_v7  ;;  %3426 = vmatprep.subr.mxu1 %v2242_v49  ;;  %v1436_v0 = vpop.xlane.xlu0 %1435  ;;  %v6710_v25 = vadd.f32 %v6284_v59, %v1926_v27  ;;  %v8972_v7 = vld [vmem:[#allocation101_spill] sm:$0xff]  ;;  %v2236_v49 = vld [vmem:[#allocation8 + $0x28] sm:$0xff] }
 0x1e9   : > { %8970 = vst [vmem:[#allocation92_spill] sm:$0xff] %v6705_v23  ;;  %1567 = vadd.xlane.f32.xlu1 %v1566_v40  ;;  %3427 = vmatpush1.msra.mxu1 %v2241_v14  ;;  %4386 = vrsqrt.f32 %v1651_v53  ;;  %v1588_v37 = vmul.f32 0.00390625, %v1436_v0  ;;  %v1929_v55 = vmul.f32 %v1801_v24, %v8972_v7  ;;  %v1928_v41 = vmul.f32 %v1800_v48, %v8973_v21  ;;  %v2234_v24 = vld [vmem:[#allocation8 + $0x18] sm:$0xff] }
 0x1ea   : > { %8971 = vst [vmem:[#allocation91_spill] sm:$0xff] %v6710_v25  ;;  %2448 = vmatprep.mubr.f32.mxu0 %v6705_v23  ;;  %3428 = vmatprep.subr.mxu1 %v2240_v11  ;;  %v4381_v31 = vpop.eup %4380 }
 0x1eb   : > { %2449 = vmatmul.mubr.f32.gmra.mxu0 %v6710_v25  ;;  %3429 = vmatpush1.msra.mxu1 %v2239_v18  ;;  %v1652_v43 = vadd.f32 1e-05, %v1588_v37  ;;  %v6717_v40 = vadd.f32 %v6367_v12, %v1929_v55  ;;  %v6720_v53 = vadd.f32 %v6284_v59, %v1928_v41  ;;  %v1803_v14 = vmul.f32 %v4381_v31, %v6275_v4  ;;  %v8976_v18 = vld [vmem:[#allocation103_spill] sm:$0xff]  ;;  %v2233_v37 = vld [vmem:[#allocation8 + $0x10] sm:$0xff]  ;;  %v8977_v55 = vld [vmem:[#allocation102_spill] sm:$0xff] }
 0x1ec   : > { %3430 = vmatprep.subr.mxu1 %v2238_v16  ;;  %v1439_v27 = vpop.xlane.xlu0 %1438  ;;  %v1802_v11 = vmul.f32 %v4381_v31, %v6272_v3  ;;  %v2232_v16 = vld [vmem:[#allocation8 + $0x8] sm:$0xff] }
 0x1ed   : > { %8974 = vst [vmem:[#allocation94_spill] sm:$0xff] %v6717_v40  ;;  %8975 = vst [vmem:[#allocation93_spill] sm:$0xff] %v6720_v53  ;;  %3431 = vmatpush1.msra.mxu1 %v2237_v51  ;;  %4388 = vrsqrt.f32 %v1652_v43  ;;  %v1589_v48 = vmul.f32 0.00390625, %v1439_v27  ;;  %2454 = vmatprep.mubr.f32.mxu0 %v6717_v40  ;;  %v1931_v0 = vmul.f32 %v1803_v14, %v8976_v18  ;;  %v2231_v27 = vld [vmem:[#allocation8] sm:$0xff]  ;;  %v2294_v18 = vld [vmem:[#allocation8 + $0x1f8] sm:$0xff] }
 0x1ee   : > { %3432 = vmatprep.subr.mxu1 %v2236_v49  ;;  %v4383_v7 = vpop.eup %4382  ;;  %v1930_v21 = vmul.f32 %v1802_v11, %v8977_v55  ;;  %v2293_v40 = vld [vmem:[#allocation8 + $0x1f0] sm:$0xff] }
 0x1ef   : > { %2455 = vmatmul.mubr.f32.gmra.mxu0 %v6720_v53  ;;  %3433 = vmatpush1.msra.mxu1 %v2235_v30  ;;  %v1653_v41 = vadd.f32 1e-05, %v1589_v48  ;;  %v6729_v31 = vadd.f32 %v6367_v12, %v1931_v0  ;;  %v1805_v51 = vmul.f32 %v4383_v7, %v6275_v4  ;;  %v1804_v43 = vmul.f32 %v4383_v7, %v6272_v3  ;;  %v8980_v30 = vld [vmem:[#allocation105_spill] sm:$0xff]  ;;  %v8981_v0 = vld [vmem:[#allocation104_spill] sm:$0xff] }
 0x1f0   : > { %3434 = vmatprep.subr.mxu1 %v2234_v24  ;;  %v1442_v14 = vpop.xlane.xlu0 %1441  ;;  %v6734_v49 = vadd.f32 %v6284_v59, %v1930_v21  ;;  %v2292_v24 = vld [vmem:[#allocation8 + $0x1e8] sm:$0xff] }
 0x1f1   : > { %8978 = vst [vmem:[#allocation96_spill] sm:$0xff] %v6729_v31  ;;  %3435 = vmatpush1.msra.mxu1 %v2233_v37  ;;  %4390 = vrsqrt.f32 %v1653_v41  ;;  %v1590_v11 = vmul.f32 0.00390625, %v1442_v14  ;;  %2460 = vmatprep.mubr.f32.mxu0 %v6729_v31  ;;  %v1933_v48 = vmul.f32 %v1805_v51, %v8980_v30  ;;  %v1932_v55 = vmul.f32 %v1804_v43, %v8981_v0  ;;  %v2291_v51 = vld [vmem:[#allocation8 + $0x1e0] sm:$0xff]  ;;  %v2290_v43 = vld [vmem:[#allocation8 + $0x1d8] sm:$0xff] }
 0x1f2   : > { %8979 = vst [vmem:[#allocation95_spill] sm:$0xff] %v6734_v49  ;;  %3436 = vmatprep.subr.mxu1 %v2232_v16  ;;  %v4385_v53 = vpop.eup %4384 }
 0x1f3   : > { %2461 = vmatmul.mubr.f32.gmra.mxu0 %v6734_v49  ;;  %3437 = vmatpush1.msra.mxu1 %v2231_v27  ;;  %v1654_v7 = vadd.f32 1e-05, %v1590_v11  ;;  %v6741_v21 = vadd.f32 %v6367_v12, %v1933_v48  ;;  %v6744_v37 = vadd.f32 %v6284_v59, %v1932_v55  ;;  %v1807_v41 = vmul.f32 %v4385_v53, %v6275_v4  ;;  %v8984_v27 = vld [vmem:[#allocation107_spill] sm:$0xff]  ;;  %v2289_v48 = vld [vmem:[#allocation8 + $0x1d0] sm:$0xff]  ;;  %v8985_v55 = vld [vmem:[#allocation106_spill] sm:$0xff] }
 0x1f4   : > { %3438 = vmatprep.subr.mxu1 %v2294_v18  ;;  %v1445_v14 = vpop.xlane.xlu0 %1444  ;;  %v1806_v16 = vmul.f32 %v4385_v53, %v6272_v3  ;;  %v2288_v18 = vld [vmem:[#allocation8 + $0x1c8] sm:$0xff] }
 0x1f5   : > { %8982 = vst [vmem:[#allocation97_spill] sm:$0xff] %v6741_v21  ;;  %8983 = vst [vmem:[#allocation99_spill] sm:$0xff] %v6744_v37  ;;  %3439 = vmatpush2.msra.mxu1 %v2293_v40  ;;  %4392 = vrsqrt.f32 %v1654_v7  ;;  %v1591_v30 = vmul.f32 0.00390625, %v1445_v14  ;;  %2466 = vmatprep.mubr.f32.mxu0 %v6741_v21  ;;  %v1935_v11 = vmul.f32 %v1807_v41, %v8984_v27  ;;  %v2287_v14 = vld [vmem:[#allocation8 + $0x1c0] sm:$0xff]  ;;  %v2286_v27 = vld [vmem:[#allocation8 + $0x1b8] sm:$0xff] }
 0x1f6   : > { %3440 = vmatprep.subr.mxu1 %v2292_v24  ;;  %v4387_v0 = vpop.eup %4386  ;;  %v1934_v31 = vmul.f32 %v1806_v16, %v8985_v55  ;;  %v2285_v21 = vld [vmem:[#allocation8 + $0x1b0] sm:$0xff] }
 0x1f7   : > { %2467 = vmatmul.mubr.f32.gmra.mxu0 %v6744_v37  ;;  %3441 = vmatpush2.msra.mxu1 %v2291_v51  ;;  %v1655_v49 = vadd.f32 1e-05, %v1591_v30  ;;  %v6753_v53 = vadd.f32 %v6367_v12, %v1935_v11  ;;  %v1809_v40 = vmul.f32 %v4387_v0, %v6275_v4  ;;  %v1808_v7 = vmul.f32 %v4387_v0, %v6272_v3  ;;  %v8988_v51 = vld [vmem:[#allocation109_spill] sm:$0xff]  ;;  %v8989_v11 = vld [vmem:[#allocation108_spill] sm:$0xff] }
 0x1f8   : > { %3442 = vmatprep.subr.mxu1 %v2290_v43  ;;  %v1448_v41 = vpop.xlane.xlu0 %1447  ;;  %v6758_v24 = vadd.f32 %v6284_v59, %v1934_v31  ;;  %v2284_v43 = vld [vmem:[#allocation8 + $0x1a8] sm:$0xff] }
 0x1f9   : > { %8986 = vst [vmem:[#allocation98_spill] sm:$0xff] %v6753_v53  ;;  %3443 = vmatpush2.msra.mxu1 %v2289_v48  ;;  %4394 = vrsqrt.f32 %v1655_v49  ;;  %v1592_v16 = vmul.f32 0.00390625, %v1448_v41  ;;  %2472 = vmatprep.mubr.f32.mxu0 %v6753_v53  ;;  %v1937_v30 = vmul.f32 %v1809_v40, %v8988_v51  ;;  %v1936_v55 = vmul.f32 %v1808_v7, %v8989_v11  ;;  %v2283_v40 = vld [vmem:[#allocation8 + $0x1a0] sm:$0xff]  ;;  %v2282_v7 = vld [vmem:[#allocation8 + $0x198] sm:$0xff] }
 0x1fa   : > { %8987 = vst [vmem:[#allocation101_spill] sm:$0xff] %v6758_v24  ;;  %3444 = vmatprep.subr.mxu1 %v2288_v18  ;;  %v4389_v37 = vpop.eup %4388 }
 0x1fb   : > { %2473 = vmatmul.mubr.f32.gmra.mxu0 %v6758_v24  ;;  %3445 = vmatpush2.msra.mxu1 %v2287_v14  ;;  %v1656_v0 = vadd.f32 1e-05, %v1592_v16  ;;  %v6765_v31 = vadd.f32 %v6367_v12, %v1937_v30  ;;  %v6768_v49 = vadd.f32 %v6284_v59, %v1936_v55  ;;  %v1811_v48 = vmul.f32 %v4389_v37, %v6275_v4  ;;  %v8992_v14 = vld [vmem:[#allocation111_spill] sm:$0xff]  ;;  %v2281_v30 = vld [vmem:[#allocation8 + $0x190] sm:$0xff]  ;;  %v8993_v55 = vld [vmem:[#allocation110_spill] sm:$0xff] }
 0x1fc   : > { %3446 = vmatprep.subr.mxu1 %v2286_v27  ;;  %v1451_v41 = vpop.xlane.xlu0 %1450  ;;  %v1810_v18 = vmul.f32 %v4389_v37, %v6272_v3  ;;  %v2280_v27 = vld [vmem:[#allocation8 + $0x188] sm:$0xff] }
 0x1fd   : > { %8990 = vst [vmem:[#allocation100_spill] sm:$0xff] %v6765_v31  ;;  %8991 = vst [vmem:[#allocation103_spill] sm:$0xff] %v6768_v49  ;;  %3447 = vmatpush2.msra.mxu1 %v2285_v21  ;;  %4396 = vrsqrt.f32 %v1656_v0  ;;  %v1593_v51 = vmul.f32 0.00390625, %v1451_v41  ;;  %2478 = vmatprep.mubr.f32.mxu0 %v6765_v31  ;;  %v1939_v16 = vmul.f32 %v1811_v48, %v8992_v14  ;;  %v2279_v41 = vld [vmem:[#allocation8 + $0x180] sm:$0xff]  ;;  %v2278_v14 = vld [vmem:[#allocation8 + $0x178] sm:$0xff] }
 0x1fe   : > { %3448 = vmatprep.subr.mxu1 %v2284_v43  ;;  %v4391_v11 = vpop.eup %4390  ;;  %v1938_v53 = vmul.f32 %v1810_v18, %v8993_v55  ;;  %v2277_v31 = vld [vmem:[#allocation8 + $0x170] sm:$0xff] }
 0x1ff   : > { %2479 = vmatmul.mubr.f32.gmra.mxu0 %v6768_v49  ;;  %3449 = vmatpush2.msra.mxu1 %v2283_v40  ;;  %v1657_v24 = vadd.f32 1e-05, %v1593_v51  ;;  %v6777_v37 = vadd.f32 %v6367_v12, %v1939_v16  ;;  %v1813_v21 = vmul.f32 %v4391_v11, %v6275_v4  ;;  %v1812_v0 = vmul.f32 %v4391_v11, %v6272_v3  ;;  %v8996_v40 = vld [vmem:[#allocation15_spill] sm:$0xff]  ;;  %v8997_v16 = vld [vmem:[#allocation112_spill] sm:$0xff] }
 0x200   : > { %3450 = vmatprep.subr.mxu1 %v2282_v7  ;;  %v1454_v48 = vpop.xlane.xlu0 %1453  ;;  %v6782_v43 = vadd.f32 %v6284_v59, %v1938_v53  ;;  %v2276_v7 = vld [vmem:[#allocation8 + $0x168] sm:$0xff] }
 0x201   : > { %8994 = vst [vmem:[#allocation102_spill] sm:$0xff] %v6777_v37  ;;  %3451 = vmatpush2.msra.mxu1 %v2281_v30  ;;  %4398 = vrsqrt.f32 %v1657_v24  ;;  %v1594_v18 = vmul.f32 0.00390625, %v1454_v48  ;;  %2484 = vmatprep.mubr.f32.mxu0 %v6777_v37  ;;  %v1941_v51 = vmul.f32 %v1813_v21, %v8996_v40  ;;  %v1940_v55 = vmul.f32 %v1812_v0, %v8997_v16  ;;  %v2275_v21 = vld [vmem:[#allocation8 + $0x160] sm:$0xff]  ;;  %v2274_v0 = vld [vmem:[#allocation8 + $0x158] sm:$0xff] }
 0x202   : > { %8995 = vst [vmem:[#allocation105_spill] sm:$0xff] %v6782_v43  ;;  %3452 = vmatprep.subr.mxu1 %v2280_v27  ;;  %v4393_v49 = vpop.eup %4392 }
 0x203   : > { %2485 = vmatmul.mubr.f32.gmra.mxu0 %v6782_v43  ;;  %3453 = vmatpush2.msra.mxu1 %v2279_v41  ;;  %v1658_v11 = vadd.f32 1e-05, %v1594_v18  ;;  %v6789_v53 = vadd.f32 %v6367_v12, %v1941_v51  ;;  %v6792_v24 = vadd.f32 %v6284_v59, %v1940_v55  ;;  %v1815_v30 = vmul.f32 %v4393_v49, %v6275_v4  ;;  %v9000_v41 = vld [vmem:[#allocation17_spill] sm:$0xff]  ;;  %v9001_v55 = vld [vmem:[#allocation16_spill] sm:$0xff] }
 0x204   : > { %3454 = vmatprep.subr.mxu1 %v2278_v14  ;;  %v1457_v48 = vpop.xlane.xlu0 %1456  ;;  %v1814_v27 = vmul.f32 %v4393_v49, %v6272_v3  ;;  %v2273_v51 = vld [vmem:[#allocation8 + $0x150] sm:$0xff]  ;;  %v2272_v14 = vld [vmem:[#allocation8 + $0x148] sm:$0xff] }
 0x205   : > { %8998 = vst [vmem:[#allocation104_spill] sm:$0xff] %v6789_v53  ;;  %8999 = vst [vmem:[#allocation107_spill] sm:$0xff] %v6792_v24  ;;  %3455 = vmatpush2.msra.mxu1 %v2277_v31  ;;  %4400 = vrsqrt.f32 %v1658_v11  ;;  %v1595_v40 = vmul.f32 0.00390625, %v1457_v48  ;;  %2490 = vmatprep.mubr.f32.mxu0 %v6789_v53  ;;  %v1943_v18 = vmul.f32 %v1815_v30, %v9000_v41  ;;  %v2271_v48 = vld [vmem:[#allocation8 + $0x140] sm:$0xff]  ;;  %v2270_v41 = vld [vmem:[#allocation8 + $0x138] sm:$0xff] }
 0x206   : > { %3456 = vmatprep.subr.mxu1 %v2276_v7  ;;  %v4395_v16 = vpop.eup %4394  ;;  %v1942_v37 = vmul.f32 %v1814_v27, %v9001_v55  ;;  %v2269_v53 = vld [vmem:[#allocation8 + $0x130] sm:$0xff] }
 0x207   : > { %2491 = vmatmul.mubr.f32.gmra.mxu0 %v6792_v24  ;;  %3457 = vmatpush2.msra.mxu1 %v2275_v21  ;;  %v1659_v43 = vadd.f32 1e-05, %v1595_v40  ;;  %v6801_v49 = vadd.f32 %v6367_v12, %v1943_v18  ;;  %v1817_v31 = vmul.f32 %v4395_v16, %v6275_v4  ;;  %v1816_v11 = vmul.f32 %v4395_v16, %v6272_v3  ;;  %v9004_v21 = vld [vmem:[#allocation19_spill] sm:$0xff]  ;;  %v9005_v18 = vld [vmem:[#allocation18_spill] sm:$0xff] }
 0x208   : > { %3458 = vmatprep.subr.mxu1 %v2274_v0  ;;  %v1460_v30 = vpop.xlane.xlu0 %1459  ;;  %v6806_v7 = vadd.f32 %v6284_v59, %v1942_v37  ;;  %v2268_v0 = vld [vmem:[#allocation8 + $0x128] sm:$0xff] }
 0x209   : > { %9002 = vst [vmem:[#allocation106_spill] sm:$0xff] %v6801_v49  ;;  %3459 = vmatpush2.msra.mxu1 %v2273_v51  ;;  %4402 = vrsqrt.f32 %v1659_v43  ;;  %v1596_v27 = vmul.f32 0.00390625, %v1460_v30  ;;  %2496 = vmatprep.mubr.f32.mxu0 %v6801_v49  ;;  %v1945_v40 = vmul.f32 %v1817_v31, %v9004_v21  ;;  %v1944_v55 = vmul.f32 %v1816_v11, %v9005_v18  ;;  %v2267_v31 = vld [vmem:[#allocation8 + $0x120] sm:$0xff]  ;;  %v2266_v11 = vld [vmem:[#allocation8 + $0x118] sm:$0xff] }
 0x20a   : > { %9003 = vst [vmem:[#allocation109_spill] sm:$0xff] %v6806_v7  ;;  %3460 = vmatprep.subr.mxu1 %v2272_v14  ;;  %v4397_v24 = vpop.eup %4396 }
 0x20b   : > { %2497 = vmatmul.mubr.f32.gmra.mxu0 %v6806_v7  ;;  %3461 = vmatpush2.msra.mxu1 %v2271_v48  ;;  %v1660_v16 = vadd.f32 1e-05, %v1596_v27  ;;  %v6813_v37 = vadd.f32 %v6367_v12, %v1945_v40  ;;  %v6816_v43 = vadd.f32 %v6284_v59, %v1944_v55  ;;  %v1819_v51 = vmul.f32 %v4397_v24, %v6275_v4  ;;  %v9008_v48 = vld [vmem:[#allocation21_spill] sm:$0xff]  ;;  %v9009_v55 = vld [vmem:[#allocation20_spill] sm:$0xff] }
 0x20c   : > { %3462 = vmatprep.subr.mxu1 %v2270_v41  ;;  %v1463_v30 = vpop.xlane.xlu0 %1462  ;;  %v1818_v14 = vmul.f32 %v4397_v24, %v6272_v3  ;;  %v2265_v40 = vld [vmem:[#allocation8 + $0x110] sm:$0xff]  ;;  %v2264_v41 = vld [vmem:[#allocation8 + $0x108] sm:$0xff] }
 0x20d   : > { %9006 = vst [vmem:[#allocation108_spill] sm:$0xff] %v6813_v37  ;;  %9007 = vst [vmem:[#allocation111_spill] sm:$0xff] %v6816_v43  ;;  %3463 = vmatpush2.msra.mxu1 %v2269_v53  ;;  %4404 = vrsqrt.f32 %v1660_v16  ;;  %v1597_v21 = vmul.f32 0.00390625, %v1463_v30  ;;  %2502 = vmatprep.mubr.f32.mxu0 %v6813_v37  ;;  %v1947_v27 = vmul.f32 %v1819_v51, %v9008_v48  ;;  %v2263_v30 = vld [vmem:[#allocation8 + $0x100] sm:$0xff] }
 0x20e   : > { %3464 = vmatprep.subr.mxu1 %v2268_v0  ;;  %v4399_v18 = vpop.eup %4398  ;;  %v1946_v49 = vmul.f32 %v1818_v14, %v9009_v55 }
 0x20f   : > { %2503 = vmatmul.mubr.f32.gmra.mxu0 %v6816_v43  ;;  %3465 = vmatpush2.msra.mxu1 %v2267_v31  ;;  %v1661_v7 = vadd.f32 1e-05, %v1597_v21  ;;  %v6825_v24 = vadd.f32 %v6367_v12, %v1947_v27  ;;  %v1821_v53 = vmul.f32 %v4399_v18, %v6275_v4  ;;  %v1820_v16 = vmul.f32 %v4399_v18, %v6272_v3  ;;  %v9012_v31 = vld [vmem:[#allocation23_spill] sm:$0xff]  ;;  %v9013_v21 = vld [vmem:[#allocation22_spill] sm:$0xff] }
 0x210   : > { %3466 = vmatprep.subr.mxu1 %v2266_v11  ;;  %v1466_v51 = vpop.xlane.xlu0 %1465  ;;  %v6830_v0 = vadd.f32 %v6284_v59, %v1946_v49 }
 0x211   : > { %9010 = vst [vmem:[#allocation110_spill] sm:$0xff] %v6825_v24  ;;  %3467 = vmatpush2.msra.mxu1 %v2265_v40  ;;  %4406 = vrsqrt.f32 %v1661_v7  ;;  %v1598_v48 = vmul.f32 0.00390625, %v1466_v51  ;;  %2508 = vmatprep.mubr.f32.mxu0 %v6825_v24  ;;  %v1949_v14 = vmul.f32 %v1821_v53, %v9012_v31  ;;  %v1948_v27 = vmul.f32 %v1820_v16, %v9013_v21 }
 0x212   : > { %9011 = vst [vmem:[#allocation15_spill] sm:$0xff] %v6830_v0  ;;  %3468 = vmatprep.subr.mxu1 %v2264_v41  ;;  %v4401_v55 = vpop.eup %4400  ;;  %v9016_v41 = vld [vmem:[#allocation25_spill] sm:$0xff] }
 0x213   : > { %2509 = vmatmul.mubr.f32.gmra.mxu0 %v6830_v0  ;;  %3469 = vmatpush2.msra.mxu1 %v2263_v30  ;;  %v1662_v11 = vadd.f32 1e-05, %v1598_v48  ;;  %v6837_v18 = vadd.f32 %v6367_v12, %v1949_v14  ;;  %v6840_v49 = vadd.f32 %v6284_v59, %v1948_v27  ;;  %v1823_v7 = vmul.f32 %v4401_v55, %v6275_v4  ;;  %v9017_v30 = vld [vmem:[#allocation24_spill] sm:$0xff] }
 0x214   : > { %v1469_v40 = vpop.xlane.xlu0 %1468  ;;  %v1822_v51 = vmul.f32 %v4401_v55, %v6272_v3 }
 0x215   : > { %9014 = vst [vmem:[#allocation112_spill] sm:$0xff] %v6837_v18  ;;  %9015 = vst [vmem:[#allocation17_spill] sm:$0xff] %v6840_v49  ;;  %4408 = vrsqrt.f32 %v1662_v11  ;;  %v1599_v53 = vmul.f32 0.00390625, %v1469_v40  ;;  %2514 = vmatprep.mubr.f32.mxu0 %v6837_v18  ;;  %v1951_v16 = vmul.f32 %v1823_v7, %v9016_v41  ;;  %v9020_v7 = vld [vmem:[#allocation27_spill] sm:$0xff]  ;;  %v9021_v18 = vld [vmem:[#allocation26_spill] sm:$0xff] }
 0x216   : > { %v4403_v31 = vpop.eup %4402  ;;  %v1950_v48 = vmul.f32 %v1822_v51, %v9017_v30 }
 0x217   : > { %2515 = vmatmul.mubr.f32.gmra.mxu0 %v6840_v49  ;;  %v1663_v14 = vadd.f32 1e-05, %v1599_v53  ;;  %v6849_v21 = vadd.f32 %v6367_v12, %v1951_v16  ;;  %v1825_v27 = vmul.f32 %v4403_v31, %v6275_v4  ;;  %v1824_v24 = vmul.f32 %v4403_v31, %v6272_v3 }
 0x218   : > { %v1472_v55 = vpop.xlane.xlu0 %1471  ;;  %v6854_v11 = vadd.f32 %v6284_v59, %v1950_v48 }
 0x219   : > { %9018 = vst [vmem:[#allocation16_spill] sm:$0xff] %v6849_v21  ;;  %4410 = vrsqrt.f32 %v1663_v14  ;;  %v1600_v40 = vmul.f32 0.00390625, %v1472_v55  ;;  %2520 = vmatprep.mubr.f32.mxu0 %v6849_v21  ;;  %v1953_v41 = vmul.f32 %v1825_v27, %v9020_v7  ;;  %v1952_v51 = vmul.f32 %v1824_v24, %v9021_v18  ;;  %v9024_v24 = vld [vmem:[#allocation29_spill] sm:$0xff] }
 0x21a   : > { %9019 = vst [vmem:[#allocation19_spill] sm:$0xff] %v6854_v11  ;;  %v4405_v53 = vpop.eup %4404 }
 0x21b   : > { %2521 = vmatmul.mubr.f32.gmra.mxu0 %v6854_v11  ;;  %v1664_v16 = vadd.f32 1e-05, %v1600_v40  ;;  %v6861_v30 = vadd.f32 %v6367_v12, %v1953_v41  ;;  %v6864_v31 = vadd.f32 %v6284_v59, %v1952_v51  ;;  %v1827_v48 = vmul.f32 %v4405_v53, %v6275_v4  ;;  %v9025_v40 = vld [vmem:[#allocation28_spill] sm:$0xff] }
 0x21c   : > { %v1475_v14 = vpop.xlane.xlu0 %1474  ;;  %v1826_v55 = vmul.f32 %v4405_v53, %v6272_v3 }
 0x21d   : > { %9022 = vst [vmem:[#allocation18_spill] sm:$0xff] %v6861_v30  ;;  %9023 = vst [vmem:[#allocation21_spill] sm:$0xff] %v6864_v31  ;;  %4412 = vrsqrt.f32 %v1664_v16  ;;  %v1601_v21 = vmul.f32 0.00390625, %v1475_v14  ;;  %2526 = vmatprep.mubr.f32.mxu0 %v6861_v30  ;;  %v1955_v18 = vmul.f32 %v1827_v48, %v9024_v24  ;;  %v9028_v48 = vld [vmem:[#allocation31_spill] sm:$0xff]  ;;  %v9029_v30 = vld [vmem:[#allocation30_spill] sm:$0xff] }
 0x21e   : > { %v4407_v27 = vpop.eup %4406  ;;  %v1954_v7 = vmul.f32 %v1826_v55, %v9025_v40 }
 0x21f   : > { %2527 = vmatmul.mubr.f32.gmra.mxu0 %v6864_v31  ;;  %v1665_v41 = vadd.f32 1e-05, %v1601_v21  ;;  %v6873_v51 = vadd.f32 %v6367_v12, %v1955_v18  ;;  %v1829_v11 = vmul.f32 %v4407_v27, %v6275_v4  ;;  %v1828_v49 = vmul.f32 %v4407_v27, %v6272_v3 }
 0x220   : > { %v1478_v53 = vpop.xlane.xlu0 %1477  ;;  %v6878_v16 = vadd.f32 %v6284_v59, %v1954_v7 }
 0x221   : > { %9026 = vst [vmem:[#allocation20_spill] sm:$0xff] %v6873_v51  ;;  %4414 = vrsqrt.f32 %v1665_v41  ;;  %v1602_v14 = vmul.f32 0.00390625, %v1478_v53  ;;  %2532 = vmatprep.mubr.f32.mxu0 %v6873_v51  ;;  %v1957_v24 = vmul.f32 %v1829_v11, %v9028_v48  ;;  %v1956_v55 = vmul.f32 %v1828_v49, %v9029_v30  ;;  %v9032_v49 = vld [vmem:[#allocation33_spill] sm:$0xff] }
 0x222   : > { %9027 = vst [vmem:[#allocation23_spill] sm:$0xff] %v6878_v16  ;;  %v4409_v21 = vpop.eup %4408 }
 0x223   : > { %2533 = vmatmul.mubr.f32.gmra.mxu0 %v6878_v16  ;;  %v1666_v18 = vadd.f32 1e-05, %v1602_v14  ;;  %v6885_v40 = vadd.f32 %v6367_v12, %v1957_v24  ;;  %v6888_v27 = vadd.f32 %v6284_v59, %v1956_v55  ;;  %v1831_v7 = vmul.f32 %v4409_v21, %v6275_v4  ;;  %v9033_v14 = vld [vmem:[#allocation32_spill] sm:$0xff] }
 0x224   : > { %v1481_v41 = vpop.xlane.xlu0 %1480  ;;  %v1830_v53 = vmul.f32 %v4409_v21, %v6272_v3 }
 0x225   : > { %9030 = vst [vmem:[#allocation22_spill] sm:$0xff] %v6885_v40  ;;  %9031 = vst [vmem:[#allocation25_spill] sm:$0xff] %v6888_v27  ;;  %4416 = vrsqrt.f32 %v1666_v18  ;;  %v1603_v51 = vmul.f32 0.00390625, %v1481_v41  ;;  %2538 = vmatprep.mubr.f32.mxu0 %v6885_v40  ;;  %v1959_v11 = vmul.f32 %v1831_v7, %v9032_v49  ;;  %v9036_v7 = vld [vmem:[#allocation35_spill] sm:$0xff]  ;;  %v9037_v40 = vld [vmem:[#allocation34_spill] sm:$0xff] }
 0x226   : > { %v4411_v30 = vpop.eup %4410  ;;  %v1958_v48 = vmul.f32 %v1830_v53, %v9033_v14 }
 0x227   : > { %2539 = vmatmul.mubr.f32.gmra.mxu0 %v6888_v27  ;;  %v1667_v24 = vadd.f32 1e-05, %v1603_v51  ;;  %v6897_v55 = vadd.f32 %v6367_v12, %v1959_v11  ;;  %v1833_v16 = vmul.f32 %v4411_v30, %v6275_v4  ;;  %v1832_v31 = vmul.f32 %v4411_v30, %v6272_v3 }
 0x228   : > { %v1484_v21 = vpop.xlane.xlu0 %1483  ;;  %v6902_v18 = vadd.f32 %v6284_v59, %v1958_v48 }
 0x229   : > { %9034 = vst [vmem:[#allocation24_spill] sm:$0xff] %v6897_v55  ;;  %4418 = vrsqrt.f32 %v1667_v24  ;;  %v1604_v41 = vmul.f32 0.00390625, %v1484_v21  ;;  %2544 = vmatprep.mubr.f32.mxu0 %v6897_v55  ;;  %v1961_v49 = vmul.f32 %v1833_v16, %v9036_v7  ;;  %v1960_v53 = vmul.f32 %v1832_v31, %v9037_v40  ;;  %v9040_v31 = vld [vmem:[#allocation37_spill] sm:$0xff] }
 0x22a   : > { %9035 = vst [vmem:[#allocation27_spill] sm:$0xff] %v6902_v18  ;;  %v4413_v51 = vpop.eup %4412 }
 0x22b   : > { %2545 = vmatmul.mubr.f32.gmra.mxu0 %v6902_v18  ;;  %v1668_v11 = vadd.f32 1e-05, %v1604_v41  ;;  %v6909_v14 = vadd.f32 %v6367_v12, %v1961_v49  ;;  %v6912_v30 = vadd.f32 %v6284_v59, %v1960_v53  ;;  %v1835_v48 = vmul.f32 %v4413_v51, %v6275_v4  ;;  %v9041_v41 = vld [vmem:[#allocation36_spill] sm:$0xff] }
 0x22c   : > { %v1487_v24 = vpop.xlane.xlu0 %1486  ;;  %v1834_v21 = vmul.f32 %v4413_v51, %v6272_v3 }
 0x22d   : > { %9038 = vst [vmem:[#allocation26_spill] sm:$0xff] %v6909_v14  ;;  %9039 = vst [vmem:[#allocation29_spill] sm:$0xff] %v6912_v30  ;;  %4420 = vrsqrt.f32 %v1668_v11  ;;  %v1605_v55 = vmul.f32 0.00390625, %v1487_v24  ;;  %2550 = vmatprep.mubr.f32.mxu0 %v6909_v14  ;;  %v1963_v16 = vmul.f32 %v1835_v48, %v9040_v31  ;;  %v9044_v48 = vld [vmem:[#allocation39_spill] sm:$0xff]  ;;  %v9045_v14 = vld [vmem:[#allocation38_spill] sm:$0xff] }
 0x22e   : > { %v4415_v40 = vpop.eup %4414  ;;  %v1962_v7 = vmul.f32 %v1834_v21, %v9041_v41 }
 0x22f   : > { %2551 = vmatmul.mubr.f32.gmra.mxu0 %v6912_v30  ;;  %v1669_v49 = vadd.f32 1e-05, %v1605_v55  ;;  %v6921_v53 = vadd.f32 %v6367_v12, %v1963_v16  ;;  %v1837_v18 = vmul.f32 %v4415_v40, %v6275_v4  ;;  %v1836_v27 = vmul.f32 %v4415_v40, %v6272_v3 }
 0x230   : > { %v1490_v51 = vpop.xlane.xlu0 %1489  ;;  %v6926_v11 = vadd.f32 %v6284_v59, %v1962_v7 }
 0x231   : > { %9042 = vst [vmem:[#allocation28_spill] sm:$0xff] %v6921_v53  ;;  %4422 = vrsqrt.f32 %v1669_v49  ;;  %v1606_v24 = vmul.f32 0.00390625, %v1490_v51  ;;  %2556 = vmatprep.mubr.f32.mxu0 %v6921_v53  ;;  %v1965_v31 = vmul.f32 %v1837_v18, %v9044_v48  ;;  %v1964_v21 = vmul.f32 %v1836_v27, %v9045_v14  ;;  %v9048_v27 = vld [vmem:[#allocation41_spill] sm:$0xff] }
 0x232   : > { %9043 = vst [vmem:[#allocation31_spill] sm:$0xff] %v6926_v11  ;;  %v4417_v55 = vpop.eup %4416 }
 0x233   : > { %2557 = vmatmul.mubr.f32.gmra.mxu0 %v6926_v11  ;;  %v1670_v16 = vadd.f32 1e-05, %v1606_v24  ;;  %v6933_v41 = vadd.f32 %v6367_v12, %v1965_v31  ;;  %v6936_v40 = vadd.f32 %v6284_v59, %v1964_v21  ;;  %v1839_v7 = vmul.f32 %v4417_v55, %v6275_v4  ;;  %v9049_v24 = vld [vmem:[#allocation40_spill] sm:$0xff] }
 0x234   : > { %v1493_v49 = vpop.xlane.xlu0 %1492  ;;  %v1838_v51 = vmul.f32 %v4417_v55, %v6272_v3 }
 0x235   : > { %9046 = vst [vmem:[#allocation30_spill] sm:$0xff] %v6933_v41  ;;  %9047 = vst [vmem:[#allocation33_spill] sm:$0xff] %v6936_v40  ;;  %4424 = vrsqrt.f32 %v1670_v16  ;;  %v1607_v53 = vmul.f32 0.00390625, %v1493_v49  ;;  %2562 = vmatprep.mubr.f32.mxu0 %v6933_v41  ;;  %v1967_v18 = vmul.f32 %v1839_v7, %v9048_v27  ;;  %v9052_v7 = vld [vmem:[#allocation43_spill] sm:$0xff]  ;;  %v9053_v41 = vld [vmem:[#allocation42_spill] sm:$0xff] }
 0x236   : > { %v4419_v14 = vpop.eup %4418  ;;  %v1966_v48 = vmul.f32 %v1838_v51, %v9049_v24 }
 0x237   : > { %2563 = vmatmul.mubr.f32.gmra.mxu0 %v6936_v40  ;;  %v1671_v31 = vadd.f32 1e-05, %v1607_v53  ;;  %v6945_v21 = vadd.f32 %v6367_v12, %v1967_v18  ;;  %v1841_v11 = vmul.f32 %v4419_v14, %v6275_v4  ;;  %v1840_v30 = vmul.f32 %v4419_v14, %v6272_v3 }
 0x238   : > { %v1496_v55 = vpop.xlane.xlu0 %1495  ;;  %v6950_v16 = vadd.f32 %v6284_v59, %v1966_v48 }
 0x239   : > { %9050 = vst [vmem:[#allocation32_spill] sm:$0xff] %v6945_v21  ;;  %4426 = vrsqrt.f32 %v1671_v31  ;;  %v1608_v49 = vmul.f32 0.00390625, %v1496_v55  ;;  %2568 = vmatprep.mubr.f32.mxu0 %v6945_v21  ;;  %v1969_v27 = vmul.f32 %v1841_v11, %v9052_v7  ;;  %v1968_v51 = vmul.f32 %v1840_v30, %v9053_v41  ;;  %v9056_v30 = vld [vmem:[#allocation45_spill] sm:$0xff] }
 0x23a   : > { %9051 = vst [vmem:[#allocation35_spill] sm:$0xff] %v6950_v16  ;;  %v4421_v53 = vpop.eup %4420 }
 0x23b   : > { %2569 = vmatmul.mubr.f32.gmra.mxu0 %v6950_v16  ;;  %v1672_v18 = vadd.f32 1e-05, %v1608_v49  ;;  %v6957_v24 = vadd.f32 %v6367_v12, %v1969_v27  ;;  %v6960_v14 = vadd.f32 %v6284_v59, %v1968_v51  ;;  %v1843_v48 = vmul.f32 %v4421_v53, %v6275_v4  ;;  %v9057_v49 = vld [vmem:[#allocation44_spill] sm:$0xff] }
 0x23c   : > { %v1499_v31 = vpop.xlane.xlu0 %1498  ;;  %v1842_v55 = vmul.f32 %v4421_v53, %v6272_v3 }
 0x23d   : > { %9054 = vst [vmem:[#allocation34_spill] sm:$0xff] %v6957_v24  ;;  %9055 = vst [vmem:[#allocation37_spill] sm:$0xff] %v6960_v14  ;;  %4428 = vrsqrt.f32 %v1672_v18  ;;  %v1609_v21 = vmul.f32 0.00390625, %v1499_v31  ;;  %2574 = vmatprep.mubr.f32.mxu0 %v6957_v24  ;;  %v1971_v11 = vmul.f32 %v1843_v48, %v9056_v30  ;;  %v1514_v31 = vpop.xlane.xlu1 %1513  ;;  %v9060_v30 = vld [vmem:[#allocation47_spill] sm:$0xff] }
 0x23e   : > { %v4423_v41 = vpop.eup %4422  ;;  %v1970_v7 = vmul.f32 %v1842_v55, %v9057_v49  ;;  %v9061_v55 = vld [vmem:[#allocation46_spill] sm:$0xff] }
 0x23f   : > { %2575 = vmatmul.mubr.f32.gmra.mxu0 %v6960_v14  ;;  %v1673_v27 = vadd.f32 1e-05, %v1609_v21  ;;  %v6969_v51 = vadd.f32 %v6367_v12, %v1971_v11  ;;  %v1845_v16 = vmul.f32 %v4423_v41, %v6275_v4  ;;  %v1844_v40 = vmul.f32 %v4423_v41, %v6272_v3 }
 0x240   : > { %v1502_v53 = vpop.xlane.xlu0 %1501  ;;  %v6974_v18 = vadd.f32 %v6284_v59, %v1970_v7 }
 0x241   : > { %9058 = vst [vmem:[#allocation36_spill] sm:$0xff] %v6969_v51  ;;  %4430 = vrsqrt.f32 %v1673_v27  ;;  %v1610_v48 = vmul.f32 0.00390625, %v1502_v53  ;;  %2580 = vmatprep.mubr.f32.mxu0 %v6969_v51  ;;  %v1973_v24 = vmul.f32 %v1845_v16, %v9060_v30  ;;  %v1972_v21 = vmul.f32 %v1844_v40, %v9061_v55  ;;  %v9064_v40 = vld [vmem:[#allocation49_spill] sm:$0xff] }
 0x242   : > { %9059 = vst [vmem:[#allocation39_spill] sm:$0xff] %v6974_v18  ;;  %v4425_v49 = vpop.eup %4424  ;;  %v1614_v27 = vmul.f32 0.00390625, %v1514_v31 }
 0x243   : > { %2581 = vmatmul.mubr.f32.gmra.mxu0 %v6974_v18  ;;  %v1674_v11 = vadd.f32 1e-05, %v1610_v48  ;;  %v6981_v14 = vadd.f32 %v6367_v12, %v1973_v24  ;;  %v6984_v41 = vadd.f32 %v6284_v59, %v1972_v21  ;;  %v1847_v7 = vmul.f32 %v4425_v49, %v6275_v4  ;;  %v9065_v24 = vld [vmem:[#allocation48_spill] sm:$0xff]  ;;  %v1520_v18 = vpop.xlane.xlu1 %1519 }
 0x244   : > { %v1505_v53 = vpop.xlane.xlu0 %1504  ;;  %v1846_v51 = vmul.f32 %v4425_v49, %v6272_v3 }
 0x245   : > { %9062 = vst [vmem:[#allocation38_spill] sm:$0xff] %v6981_v14  ;;  %9063 = vst [vmem:[#allocation41_spill] sm:$0xff] %v6984_v41  ;;  %4432 = vrsqrt.f32 %v1674_v11  ;;  %v1611_v16 = vmul.f32 0.00390625, %v1505_v53  ;;  %2586 = vmatprep.mubr.f32.mxu0 %v6981_v14  ;;  %v1975_v30 = vmul.f32 %v1847_v7, %v9064_v40  ;;  %v1678_v11 = vadd.f32 1e-05, %v1614_v27  ;;  %v9068_v40 = vld [vmem:[#allocation51_spill] sm:$0xff] }
 0x246   : > { %v4427_v55 = vpop.eup %4426  ;;  %v1974_v48 = vmul.f32 %v1846_v51, %v9065_v24  ;;  %v9069_v24 = vld [vmem:[#allocation50_spill] sm:$0xff] }
 0x247   : > { %2587 = vmatmul.mubr.f32.gmra.mxu0 %v6984_v41  ;;  %v1675_v21 = vadd.f32 1e-05, %v1611_v16  ;;  %v6993_v0 = vadd.f32 %v6367_v12, %v1975_v30  ;;  %v1849_v31 = vmul.f32 %v4427_v55, %v6275_v4  ;;  %v1848_v49 = vmul.f32 %v4427_v55, %v6272_v3  ;;  %v1526_v30 = vpop.xlane.xlu1 %1525 }
 0x248   : > { %v1508_v53 = vpop.xlane.xlu0 %1507  ;;  %v6998_v14 = vadd.f32 %v6284_v59, %v1974_v48 }
 0x249   : > { %9066 = vst [vmem:[#allocation40_spill] sm:$0xff] %v6993_v0  ;;  %4434 = vrsqrt.f32 %v1675_v21  ;;  %v1612_v7 = vmul.f32 0.00390625, %v1508_v53  ;;  %2592 = vmatprep.mubr.f32.mxu0 %v6993_v0  ;;  %v1977_v51 = vmul.f32 %v1849_v31, %v9068_v40  ;;  %v1976_v16 = vmul.f32 %v1848_v49, %v9069_v24  ;;  %v9072_v40 = vld [vmem:[#allocation53_spill] sm:$0xff] }
 0x24a   : > { %9067 = vst [vmem:[#allocation43_spill] sm:$0xff] %v6998_v14  ;;  %v4429_v41 = vpop.eup %4428  ;;  %4436 = vrsqrt.f32 %v1678_v11  ;;  %v1616_v21 = vmul.f32 0.00390625, %v1520_v18 }
 0x24b   : > { %2593 = vmatmul.mubr.f32.gmra.mxu0 %v6998_v14  ;;  %v1676_v37 = vadd.f32 1e-05, %v1612_v7  ;;  %v7005_v55 = vadd.f32 %v6367_v12, %v1977_v51  ;;  %v7008_v27 = vadd.f32 %v6284_v59, %v1976_v16  ;;  %v1851_v48 = vmul.f32 %v4429_v41, %v6275_v4  ;;  %v9073_v51 = vld [vmem:[#allocation52_spill] sm:$0xff]  ;;  %v1532_v16 = vpop.xlane.xlu1 %1531 }
 0x24c   : > { %v1511_v53 = vpop.xlane.xlu0 %1510  ;;  %v1850_v31 = vmul.f32 %v4429_v41, %v6272_v3 }
 0x24d   : > { %9070 = vst [vmem:[#allocation42_spill] sm:$0xff] %v7005_v55  ;;  %9071 = vst [vmem:[#allocation45_spill] sm:$0xff] %v7008_v27  ;;  %4438 = vrsqrt.f32 %v1676_v37  ;;  %v1613_v49 = vmul.f32 0.00390625, %v1511_v53  ;;  %2598 = vmatprep.mubr.f32.mxu0 %v7005_v55  ;;  %v1979_v24 = vmul.f32 %v1851_v48, %v9072_v40  ;;  %v1680_v37 = vadd.f32 1e-05, %v1616_v21  ;;  %v9076_v40 = vld [vmem:[#allocation54_spill] sm:$0xff] }
 0x24e   : > { %v4431_v7 = vpop.eup %4430  ;;  %v1978_v0 = vmul.f32 %v1850_v31, %v9073_v51 }
 0x24f   : > { %2599 = vmatmul.mubr.f32.gmra.mxu0 %v7008_v27  ;;  %v1677_v14 = vadd.f32 1e-05, %v1613_v49  ;;  %v7017_v43 = vadd.f32 %v6367_v12, %v1979_v24  ;;  %v1853_v18 = vmul.f32 %v4431_v7, %v6275_v4  ;;  %v1852_v41 = vmul.f32 %v4431_v7, %v6272_v3  ;;  %v1538_v24 = vpop.xlane.xlu1 %1537 }
 0x250   : > { %v1517_v11 = vpop.xlane.xlu0 %1516  ;;  %v7022_v53 = vadd.f32 %v6284_v59, %v1978_v0 }
 0x251   : > { %9074 = vst [vmem:[#allocation44_spill] sm:$0xff] %v7017_v43  ;;  %4440 = vrsqrt.f32 %v1677_v14  ;;  %v1615_v48 = vmul.f32 0.00390625, %v1517_v11  ;;  %2604 = vmatprep.mubr.f32.mxu0 %v7017_v43  ;;  %v1981_v31 = vmul.f32 %v1853_v18, %v6291_v5  ;;  %v1980_v49 = vmul.f32 %v1852_v41, %v9076_v40 }
 0x252   : > { %9075 = vst [vmem:[#allocation47_spill] sm:$0xff] %v7022_v53  ;;  %v4433_v51 = vpop.eup %4432  ;;  %4442 = vrsqrt.f32 %v1680_v37  ;;  %v1618_v14 = vmul.f32 0.00390625, %v1526_v30  ;;  %v1620_v40 = vmul.f32 0.00390625, %v1532_v16 }
 0x253   : > { %2605 = vmatmul.mubr.f32.gmra.mxu0 %v7022_v53  ;;  %v1679_v55 = vadd.f32 1e-05, %v1615_v48  ;;  %v7029_v7 = vadd.f32 %v6367_v12, %v1981_v31  ;;  %v7032_v21 = vadd.f32 %v6284_v59, %v1980_v49  ;;  %v1855_v0 = vmul.f32 %v4433_v51, %v6275_v4  ;;  %v9079_v49 = vld [vmem:[#allocation56_spill] sm:$0xff] }
 0x254   : > { %v1523_v11 = vpop.xlane.xlu0 %1522  ;;  %v1854_v5 = vmul.f32 %v4433_v51, %v6272_v3  ;;  %v1622_v31 = vmul.f32 0.00390625, %v1538_v24  ;;  %v1682_v51 = vadd.f32 1e-05, %v1618_v14  ;;  %v9082_v24 = vld [vmem:[#allocation58_spill] sm:$0xff] }
 0x255   : > { %9077 = vst [vmem:[#allocation46_spill] sm:$0xff] %v7029_v7  ;;  %9078 = vst [vmem:[#allocation49_spill] sm:$0xff] %v7032_v21  ;;  %4444 = vrsqrt.f32 %v1679_v55  ;;  %v1617_v18 = vmul.f32 0.00390625, %v1523_v11  ;;  %2610 = vmatprep.mubr.f32.mxu0 %v7029_v7  ;;  %v1983_v41 = vmul.f32 %v1855_v0, %v6305_v60 }
 0x256   : > { %v4435_v48 = vpop.eup %4434  ;;  %v1982_v43 = vmul.f32 %v1854_v5, %v9079_v49  ;;  %v9083_v5 = vld [vmem:[#allocation57_spill] sm:$0xff]  ;;  %v1684_v49 = vadd.f32 1e-05, %v1620_v40  ;;  %v9086_v40 = vld [vmem:[#allocation60_spill] sm:$0xff] }
 0x257   : > { %2611 = vmatmul.mubr.f32.gmra.mxu0 %v7032_v21  ;;  %v1681_v53 = vadd.f32 1e-05, %v1617_v18  ;;  %v7041_v37 = vadd.f32 %v6367_v12, %v1983_v41  ;;  %v1857_v30 = vmul.f32 %v4435_v48, %v6275_v4  ;;  %v1856_v55 = vmul.f32 %v4435_v48, %v6272_v3  ;;  %v4437_v60 = vpop.eup %4436  ;;  %v1544_v48 = vpop.xlane.xlu1 %1543 }
 0x258   : > { %v1529_v11 = vpop.xlane.xlu0 %1528  ;;  %v7046_v7 = vadd.f32 %v6284_v59, %v1982_v43  ;;  %v1686_v21 = vadd.f32 1e-05, %v1622_v31 }
 0x259   : > { %9080 = vst [vmem:[#allocation48_spill] sm:$0xff] %v7041_v37  ;;  %4446 = vrsqrt.f32 %v1681_v53  ;;  %v1619_v16 = vmul.f32 0.00390625, %v1529_v11  ;;  %2616 = vmatprep.mubr.f32.mxu0 %v7041_v37  ;;  %v1985_v0 = vmul.f32 %v1857_v30, %v9082_v24  ;;  %v1984_v18 = vmul.f32 %v1856_v55, %v9083_v5 }
 0x25a   : > { %9081 = vst [vmem:[#allocation51_spill] sm:$0xff] %v7046_v7  ;;  %v4439_v41 = vpop.eup %4438  ;;  %v1863_v30 = vmul.f32 %v4437_v60, %v6275_v4  ;;  %4448 = vrsqrt.f32 %v1682_v51  ;;  %v1624_v5 = vmul.f32 0.00390625, %v1544_v48  ;;  %v1862_v48 = vmul.f32 %v4437_v60, %v6272_v3 }
 0x25b   : > { %2617 = vmatmul.mubr.f32.gmra.mxu0 %v7046_v7  ;;  %v7053_v14 = vadd.f32 %v6367_v12, %v1985_v0  ;;  %v7056_v43 = vadd.f32 %v6284_v59, %v1984_v18  ;;  %v1859_v53 = vmul.f32 %v4439_v41, %v6275_v4  ;;  %v1858_v11 = vmul.f32 %v4439_v41, %v6272_v3  ;;  %v9087_v18 = vld [vmem:[#allocation59_spill] sm:$0xff] }
 0x25c   : > { %v1683_v55 = vadd.f32 1e-05, %v1619_v16  ;;  %4450 = vrsqrt.f32 %v1684_v49  ;;  %v1535_v0 = vpop.xlane.xlu0 %1534  ;;  %v1550_v16 = vpop.xlane.xlu1 %1549  ;;  %v1688_v23 = vadd.f32 1e-05, %v1624_v5 }
 0x25d   : > { %9084 = vst [vmem:[#allocation50_spill] sm:$0xff] %v7053_v14  ;;  %9085 = vst [vmem:[#allocation53_spill] sm:$0xff] %v7056_v43  ;;  %2622 = vmatprep.mubr.f32.mxu0 %v7053_v14  ;;  %v1987_v24 = vmul.f32 %v1859_v53, %v9086_v40  ;;  %v1986_v37 = vmul.f32 %v1858_v11, %v9087_v18  ;;  %4452 = vrsqrt.f32 %v1686_v21  ;;  %v9090_v53 = vld [vmem:[#allocation65_spill] sm:$0xff]  ;;  %v9091_v21 = vld [vmem:[#allocation62_spill] sm:$0xff] }
 0x25e   : > { %v4441_v31 = vpop.eup %4440  ;;  %v1991_v49 = vmul.f32 %v1863_v30, %v9090_v53  ;;  %4454 = vrsqrt.f32 %v1683_v55  ;;  %v9095_v55 = vld [vmem:[#allocation64_spill] sm:$0xff] }
 0x25f   : > { %2623 = vmatmul.mubr.f32.gmra.mxu0 %v7056_v43  ;;  %v7066_v7 = vadd.f32 %v6367_v12, %v1987_v24  ;;  %v1861_v41 = vmul.f32 %v4441_v31, %v6275_v4  ;;  %v1860_v51 = vmul.f32 %v4441_v31, %v6272_v3  ;;  %v7071_v14 = vadd.f32 %v6284_v59, %v1986_v37  ;;  %v4443_v40 = vpop.eup %4442  ;;  %v9092_v24 = vld [vmem:[#allocation61_spill] sm:$0xff] }
 0x260   : > { %v1621_v43 = vmul.f32 0.00390625, %v1535_v0  ;;  %v1626_v31 = vmul.f32 0.00390625, %v1550_v16  ;;  %v1990_v0 = vmul.f32 %v1862_v48, %v9095_v55  ;;  %v7090_v5 = vadd.f32 %v6367_v12, %v1991_v49  ;;  %v9099_v48 = vld [vmem:[#allocation63_spill] sm:$0xff] }
 0x261   : > { %9088 = vst [vmem:[#allocation52_spill] sm:$0xff] %v7066_v7  ;;  %9089 = vst [vmem:[#allocation54_spill] sm:$0xff] %v7071_v14  ;;  %2628 = vmatprep.mubr.f32.mxu0 %v7066_v7  ;;  %v1989_v11 = vmul.f32 %v1861_v41, %v9091_v21  ;;  %v1988_v18 = vmul.f32 %v1860_v51, %v9092_v24  ;;  %v1541_v21 = vpop.xlane.xlu0 %1540  ;;  %v9097_v51 = vld [vmem:[#allocation66_spill] sm:$0xff]  ;;  %4456 = vrsqrt.f32 %v1688_v23  ;;  %v1556_v7 = vpop.xlane.xlu1 %1555 }
 0x262   : > { %v4445_v27 = vpop.eup %4444  ;;  %v1685_v41 = vadd.f32 1e-05, %v1621_v43  ;;  %9096 = vst [vmem:[#allocation57_spill] sm:$0xff] %v7090_v5  ;;  %v7097_v43 = vadd.f32 %v6284_v59, %v1990_v0  ;;  %v1866_v49 = vmul.f32 %v4443_v40, %v6272_v3 }
 0x263   : > { %2629 = vmatmul.mubr.f32.gmra.mxu0 %v7071_v14  ;;  %v7080_v37 = vadd.f32 %v6367_v12, %v1989_v11  ;;  %v7083_v30 = vadd.f32 %v6284_v59, %v1988_v18  ;;  %v1865_v60 = vmul.f32 %v4445_v27, %v6275_v4  ;;  %v1864_v53 = vmul.f32 %v4445_v27, %v6272_v3 }
 0x264   : > { %v1867_v11 = vmul.f32 %v4443_v40, %v6275_v4  ;;  %v1690_v18 = vadd.f32 1e-05, %v1626_v31  ;;  %v1623_v27 = vmul.f32 0.00390625, %v1541_v21  ;;  %9098 = vst [vmem:[#allocation60_spill] sm:$0xff] %v7097_v43  ;;  %4458 = vrsqrt.f32 %v1685_v41  ;;  %v9103_v41 = vld [vmem:[#allocation55_spill] sm:$0xff] }
 0x265   : > { %9093 = vst [vmem:[#allocation56_spill] sm:$0xff] %v7080_v37  ;;  %9094 = vst [vmem:[#allocation58_spill] sm:$0xff] %v7083_v30  ;;  %2634 = vmatprep.mubr.f32.mxu0 %v7080_v37  ;;  %v1993_v16 = vmul.f32 %v1865_v60, %v9097_v51  ;;  %v1992_v55 = vmul.f32 %v1864_v53, %v9099_v48  ;;  %v9101_v51 = vld [vmem:[#allocation70_spill] sm:$0xff]  ;;  %v1547_v0 = vpop.xlane.xlu0 %1546 }
 0x266   : > { %v4447_v24 = vpop.eup %4446  ;;  %v1995_v23 = vmul.f32 %v1867_v11, %v9101_v51  ;;  %4460 = vrsqrt.f32 %v1690_v18  ;;  %v1687_v48 = vadd.f32 1e-05, %v1623_v27  ;;  %v861_v27 = vld [vmem:[#allocation5 + $0x2] ss:$4 sm:$0x3] }
 0x267   : > { %2635 = vmatmul.mubr.f32.gmra.mxu0 %v7083_v30  ;;  %v7102_v60 = vadd.f32 %v6367_v12, %v1993_v16  ;;  %v1869_v37 = vmul.f32 %v4447_v24, %v6275_v4  ;;  %v4449_v31 = vpop.eup %4448  ;;  %v1628_v30 = vmul.f32 0.00390625, %v1556_v7  ;;  %v7109_v40 = vadd.f32 %v6284_v59, %v1992_v55 }
 0x268   : > { %2640 = vmatprep.mubr.f32.mxu0 %v7090_v5  ;;  %v1994_v16 = vmul.f32 %v1866_v49, %v9103_v41  ;;  %v1868_v11 = vmul.f32 %v4447_v24, %v6272_v3  ;;  %v7114_v51 = vadd.f32 %v6367_v12, %v1995_v23  ;;  %v1871_v5 = vmul.f32 %v4449_v31, %v6275_v4 }
 0x269   : > { %9100 = vst [vmem:[#allocation59_spill] sm:$0xff] %v7102_v60  ;;  %v4451_v21 = vpop.eup %4450  ;;  %9102 = vst [vmem:[#allocation65_spill] sm:$0xff] %v7109_v40  ;;  %v1997_v7 = vmul.f32 %v1869_v37, %v6400_v28  ;;  %v1870_v55 = vmul.f32 %v4449_v31, %v6272_v3  ;;  %4462 = vrsqrt.f32 %v1687_v48  ;;  %v1625_v41 = vmul.f32 0.00390625, %v1547_v0 }
 0x26a   : > { %v4453_v53 = vpop.eup %4452  ;;  %9104 = vst [vmem:[#allocation62_spill] sm:$0xff] %v7114_v51  ;;  %v1875_v49 = vmul.f32 %v4451_v21, %v6275_v4  ;;  %v1874_v24 = vmul.f32 %v4451_v21, %v6272_v3  ;;  %v7125_v28 = vadd.f32 %v6284_v59, %v1994_v16  ;;  %v1996_v37 = vmul.f32 %v1868_v11, %v6376_v1  ;;  %v9108_v21 = vld [vmem:[#allocation113_spill] sm:$0xff]  ;;  %v1562_v16 = vpop.xlane.xlu1 %1561  ;;  %v9109_v1 = vld [vmem:[#allocation67_spill] sm:$0xff] }
 0x26b   : > { %2641 = vmatmul.mubr.f32.gmra.mxu0 %v7097_v43  ;;  %v4455_v18 = vpop.eup %4454  ;;  %v1692_v43 = vadd.f32 1e-05, %v1628_v30  ;;  %v1879_v23 = vmul.f32 %v4453_v53, %v6275_v4  ;;  %v1553_v30 = vpop.xlane.xlu0 %1552  ;;  %v7135_v14 = vrot.slane %v861_v27, %v9108_v21  ;;  %v1878_v0 = vmul.f32 %v4453_v53, %v6272_v3 }
 0x26c   : > { %2646 = vmatprep.mubr.f32.mxu0 %v7102_v60  ;;  %9105 = vst [vmem:[#allocation61_spill] sm:$0xff] %v7125_v28  ;;  %v7129_v60 = vadd.f32 %v6367_v12, %v1997_v7  ;;  %v1873_v31 = vmul.f32 %v4455_v18, %v6275_v4  ;;  %v1998_v11 = vmul.f32 %v1870_v55, %v9109_v1  ;;  %v1627_v25 = vmul.f32 0.00390625, %v1553_v30 }
 0x26d   : > { %4464 = vrsqrt.f32 %v1692_v43  ;;  %v2003_v7 = vmul.f32 %v1875_v49, %v6388_v29  ;;  %v1689_v43 = vadd.f32 1e-05, %v1625_v41  ;;  %v1872_v38 = vmul.f32 %v4455_v18, %v6272_v3 }
 0x26e   : > { %9106 = vst [vmem:[#allocation64_spill] sm:$0xff] %v7129_v60  ;;  %v4457_v48 = vpop.eup %4456  ;;  %v2001_v55 = vmul.f32 %v1873_v31, %v6415_v42  ;;  %v1630_v49 = vmul.f32 0.00390625, %v1562_v16  ;;  %v1691_v30 = vadd.f32 1e-05, %v1627_v25 }
 0x26f   : > { %2647 = vmatmul.mubr.f32.gmra.mxu0 %v7109_v40  ;;  %v1559_v41 = vpop.xlane.xlu0 %1558  ;;  %v7165_v42 = vadd.f32 %v6367_v12, %v2003_v7  ;;  %4466 = vrsqrt.f32 %v1689_v43 }
 0x270   : > { %2652 = vmatprep.mubr.f32.mxu0 %v7114_v51  ;;  %v9107_v51 = vld [vmem:[#allocation115_spill] sm:$0xff]  ;;  %v7179_v7 = vadd.f32 %v6367_v12, %v2001_v55 }
 0x271   : > { %v1999_v40 = vmul.f32 %v1871_v5, %v9107_v51  ;;  %v2002_v5 = vmul.f32 %v1874_v24, %v6385_v46  ;;  %v2007_v51 = vmul.f32 %v1879_v23, %v6440_v13  ;;  %v4459_v29 = vpop.eup %4458  ;;  %v9113_v13 = vld [vmem:[#allocation73_spill] sm:$0xff]  ;;  %v1883_v23 = vmul.f32 %v4457_v48, %v6275_v4  ;;  %9115 = vst [vmem:[#allocation55_spill] sm:$0xff] %v7165_v42 }
 0x272   : > { %v2006_v24 = vmul.f32 %v1878_v0, %v9113_v13  ;;  %v9117_v0 = vld [vmem:[#allocation74_spill] sm:$0xff]  ;;  %9119 = vst [vmem:[#allocation67_spill] sm:$0xff] %v7179_v7  ;;  %v1694_v13 = vadd.f32 1e-05, %v1630_v49  ;;  %v1629_v49 = vmul.f32 0.00390625, %v1559_v41 }
 0x273   : > { %2653 = vmatmul.mubr.f32.gmra.mxu0 %v7125_v28  ;;  %v7144_v28 = vadd.f32 %v6284_v59, %v1996_v37  ;;  %v7148_v53 = vadd.f32 %v6367_v12, %v1999_v40  ;;  %v7162_v40 = vadd.f32 %v6284_v59, %v1998_v11  ;;  %v4461_v37 = vpop.eup %4460  ;;  %v2000_v16 = vmul.f32 %v1872_v38, %v9117_v0 }
 0x274   : > { %2658 = vmatprep.mubr.f32.mxu0 %v7129_v60  ;;  %v7151_v60 = vrot.slane %v861_v27, %v9112_v8  ;;  %v7168_v27 = vadd.f32 %v6284_v59, %v2002_v5  ;;  %v7172_v1 = vadd.f32 %v6367_v12, %v2007_v51  ;;  %v1877_v5 = vmul.f32 %v4459_v29, %v6275_v4 }
 0x275   : > { %9110 = vst [vmem:[#allocation66_spill] sm:$0xff] %v7144_v28  ;;  %9111 = vst [vmem:[#allocation63_spill] sm:$0xff] %v7148_v53  ;;  %v7184_v25 = vadd.f32 %v6284_v59, %v2006_v24  ;;  %v2011_v38 = vmul.f32 %v1883_v23, %v6495_v6  ;;  %v1882_v51 = vmul.f32 %v4457_v48, %v6272_v3  ;;  %v1565_v48 = vpop.xlane.xlu0 %1564 }
 0x276   : > { %v2372_v46 = vpop.f32.mrf.mxu0  ;;  %9114 = vst [vmem:[#allocation70_spill] sm:$0xff] %v7162_v40  ;;  %9116 = vst [vmem:[#allocation115_spill] sm:$0xff] %v7168_v27  ;;  %v1887_v55 = vmul.f32 %v4461_v37, %v6275_v4  ;;  %v7195_v24 = vadd.f32 %v6284_v59, %v2000_v16  ;;  %v1876_v6 = vmul.f32 %v4459_v29, %v6272_v3  ;;  %v4463_v23 = vpop.eup %4462 }
 0x277   : > { %2659 = vmatmul.mubr.f32.gmra.mxu0 %v7144_v28  ;;  %v7158_v18 = vadd.f32 %v2372_v46, %v7135_v14  ;;  %9118 = vst [vmem:[#allocation113_spill] sm:$0xff] %v7172_v1  ;;  %9120 = vst [vmem:[#allocation114_spill] sm:$0xff] %v7184_v25  ;;  %v7205_v41 = vadd.f32 %v6367_v12, %v2011_v38  ;;  %v1886_v29 = vmul.f32 %v4461_v37, %v6272_v3 }
 0x278   : > { %2664 = vmatprep.mubr.f32.mxu0 %v7148_v53  ;;  %v2374_v31 = vpop.f32.mrf.mxu0  ;;  %9121 = vst [vmem:[#allocation73_spill] sm:$0xff] %v7195_v24 }
 0x279   : > { %v2883_v46 = vmul.f32 0.70710677, %v7158_v18  ;;  %v7176_v11 = vadd.f32 %v2374_v31, %v7151_v60  ;;  %9122 = vst [vmem:[#allocation74_spill] sm:$0xff] %v7205_v41 }
 0x27a   : > { %v2378_v53 = vpop.f32.mrf.mxu0  ;;  %v4465_v16 = vpop.eup %4464 }
 0x27b   : > { %2665 = vmatmul.mubr.f32.gmra.mxu0 %v7162_v40  ;;  %4468 = verf.f32 %v2883_v46  ;;  %v2884_v43 = vmul.f32 0.70710677, %v7176_v11  ;;  %v7190_v31 = vadd.f32 %v2378_v53, %v7135_v14 }
 0x27c   : > { %2670 = vmatprep.mubr.f32.mxu0 %v7179_v7  ;;  %4470 = vrsqrt.f32 %v1691_v30  ;;  %v2380_v0 = vpop.f32.mrf.mxu0  ;;  %v2005_v7 = vmul.f32 %v1877_v5, %v6473_v58  ;;  %v2010_v30 = vmul.f32 %v1882_v51, %v6492_v57  ;;  %v2015_v58 = vmul.f32 %v1887_v55, %v6547_v39 }
 0x27d   : > { %4472 = verf.f32 %v2884_v43  ;;  %v2885_v46 = vmul.f32 0.70710677, %v7190_v31  ;;  %v7200_v53 = vadd.f32 %v2380_v0, %v7151_v60  ;;  %v1568_v43 = vpop.xlane.xlu1 %1567  ;;  %v1693_v5 = vadd.f32 1e-05, %v1629_v49 }
 0x27e   : > { %4474 = vrsqrt.f32 %v1694_v13  ;;  %v2384_v40 = vpop.f32.mrf.mxu0  ;;  %v1631_v13 = vmul.f32 0.00390625, %v1565_v48  ;;  %v1881_v57 = vmul.f32 %v4463_v23, %v6275_v4  ;;  %v1880_v39 = vmul.f32 %v4463_v23, %v6272_v3 }
 0x27f   : > { %2671 = vmatmul.mubr.f32.gmra.mxu0 %v7195_v24  ;;  %4476 = verf.f32 %v2885_v46  ;;  %v2886_v28 = vmul.f32 0.70710677, %v7200_v53  ;;  %v7211_v0 = vadd.f32 %v2384_v40, %v7135_v14  ;;  %v2004_v24 = vmul.f32 %v1876_v6, %v6451_v2 }
 0x280   : > { %2676 = vmatprep.mubr.f32.mxu0 %v7165_v42  ;;  %v2386_v38 = vpop.f32.mrf.mxu0  ;;  %v7222_v40 = vadd.f32 %v6367_v12, %v2005_v7  ;;  %v1632_v46 = vmul.f32 0.00390625, %v1568_v43  ;;  %v1891_v55 = vmul.f32 %v4465_v16, %v6275_v4  ;;  %v1890_v2 = vmul.f32 %v4465_v16, %v6272_v3 }
 0x281   : > { %4478 = verf.f32 %v2886_v28  ;;  %v2887_v37 = vmul.f32 0.70710677, %v7211_v0  ;;  %v7219_v51 = vadd.f32 %v2386_v38, %v7151_v60  ;;  %v2014_v7 = vmul.f32 %v1886_v29, %v6544_v9  ;;  %v4467_v38 = vpop.eup %4466 }
 0x282   : > { %9123 = vst [vmem:[#allocation116_spill] sm:$0xff] %v7222_v40  ;;  %v2390_v42 = vpop.f32.mrf.mxu0  ;;  %v1695_v6 = vadd.f32 1e-05, %v1631_v13  ;;  %v7235_v43 = vadd.f32 %v6284_v59, %v2004_v24  ;;  %v2009_v23 = vmul.f32 %v1881_v57, %v6489_v26  ;;  %v2008_v29 = vmul.f32 %v1880_v39, %v6486_v20 }
 0x283   : > { %2677 = vmatmul.mubr.f32.gmra.mxu0 %v7168_v27  ;;  %4480 = verf.f32 %v2887_v37  ;;  %v2888_v28 = vmul.f32 0.70710677, %v7219_v51  ;;  %v7230_v49 = vadd.f32 %v2390_v42, %v7135_v14  ;;  %v7243_v42 = vadd.f32 %v6284_v59, %v2010_v30 }
 0x284   : > { %2682 = vmatprep.mubr.f32.mxu0 %v7222_v40  ;;  %4482 = vrsqrt.f32 %v1693_v5  ;;  %v2392_v48 = vpop.f32.mrf.mxu0  ;;  %9124 = vst [vmem:[#allocation117_spill] sm:$0xff] %v7235_v43  ;;  %v1696_v40 = vadd.f32 1e-05, %v1632_v46  ;;  %v2019_v24 = vmul.f32 %v1891_v55, %v6594_v35  ;;  %v2018_v26 = vmul.f32 %v1890_v2, %v6591_v36 }
 0x285   : > { %4484 = verf.f32 %v2888_v28  ;;  %v2889_v16 = vmul.f32 0.70710677, %v7230_v49  ;;  %v7240_v37 = vadd.f32 %v2392_v48, %v7151_v60  ;;  %v7255_v30 = vadd.f32 %v6367_v12, %v2015_v58 }
 0x286   : > { %v2396_v9 = vpop.f32.mrf.mxu0  ;;  %v7258_v20 = vadd.f32 %v6367_v12, %v2009_v23  ;;  %v1885_v35 = vmul.f32 %v4467_v38, %v6275_v4  ;;  %v7262_v36 = vadd.f32 %v6284_v59, %v2014_v7  ;;  %v1884_v58 = vmul.f32 %v4467_v38, %v6272_v3 }
 0x287   : > { %2683 = vmatmul.mubr.f32.gmra.mxu0 %v7235_v43  ;;  %4486 = verf.f32 %v2889_v16  ;;  %v2890_v5 = vmul.f32 0.70710677, %v7240_v37  ;;  %v7251_v13 = vadd.f32 %v2396_v9, %v7135_v14  ;;  %9125 = vst [vmem:[#allocation118_spill] sm:$0xff] %v7255_v30  ;;  %v7271_v48 = vadd.f32 %v6284_v59, %v2008_v29 }
 0x288   : > { %2688 = vmatprep.mubr.f32.mxu0 %v7172_v1  ;;  %v4469_v57 = vpop.eup %4468  ;;  %4488 = vrsqrt.f32 %v1695_v6  ;;  %v2398_v46 = vpop.f32.mrf.mxu0  ;;  %9126 = vst [vmem:[#allocation119_spill] sm:$0xff] %v7258_v20  ;;  %9127 = vst [vmem:[#allocation120_spill] sm:$0xff] %v7262_v36  ;;  %v7274_v7 = vadd.f32 %v6367_v12, %v2019_v24  ;;  %v7277_v23 = vadd.f32 %v6284_v59, %v2018_v26  ;;  %v2755_v29 = vmul.f32 0.5, %v7158_v18 }
 0x289   : > { %v4471_v39 = vpop.eup %4470  ;;  %4490 = verf.f32 %v2890_v5  ;;  %v2891_v55 = vmul.f32 0.70710677, %v7251_v13  ;;  %v7266_v2 = vadd.f32 %v2398_v46, %v7151_v60  ;;  %v2756_v24 = vmul.f32 0.5, %v7176_v11 }
 0x28a   : > { %v4473_v28 = vpop.eup %4472  ;;  %4492 = vrsqrt.f32 %v1696_v40  ;;  %v3139_v40 = vadd.f32 1.0, %v4469_v57  ;;  %v2013_v26 = vmul.f32 %v1885_v35, %v6519_v63  ;;  %v1889_v27 = vmul.f32 %v4471_v39, %v6275_v4 }
 0x28b   : > { %v2402_v6 = vpop.f32.mrf.mxu0  ;;  %2689 = vmatmul.mubr.f32.gmra.mxu0 %v7184_v25  ;;  %v4475_v16 = vpop.eup %4474  ;;  %4494 = verf.f32 %v2891_v55  ;;  %v2892_v9 = vmul.f32 0.70710677, %v7266_v2  ;;  %v3140_v1 = vadd.f32 1.0, %v4473_v28  ;;  %v1888_v11 = vmul.f32 %v4471_v39, %v6272_v3 }
 0x28c   : > { %v7281_v38 = vadd.f32 %v2402_v6, %v7135_v14  ;;  %2694 = vmatprep.mubr.f32.mxu0 %v7258_v20  ;;  %v4477_v5 = vpop.eup %4476  ;;  %v2012_v6 = vmul.f32 %v1884_v58, %v6516_v15  ;;  %v3267_v28 = vmul.f32 %v3139_v40, %v2755_v29  ;;  %v2757_v58 = vmul.f32 0.5, %v7190_v31 }
 0x28d   : > { %v2404_v46 = vpop.f32.mrf.mxu0  ;;  %4496 = verf.f32 %v2892_v9  ;;  %v3268_v57 = vmul.f32 %v3140_v1, %v2756_v24  ;;  %v3141_v18 = vadd.f32 1.0, %v4477_v5  ;;  %v2758_v9 = vmul.f32 0.5, %v7200_v53 }
 0x28e   : > { %v2893_v55 = vmul.f32 0.70710677, %v7281_v38  ;;  %v7289_v25 = vadd.f32 %v2404_v46, %v7151_v60  ;;  %v4479_v43 = vpop.eup %4478  ;;  %v7303_v5 = vadd.f32 %v6367_v12, %v2013_v26  ;;  %v7310_v40 = vadd.f32 %v6284_v59, %v2012_v6 }
 0x28f   : > { %v2408_v20 = vpop.f32.mrf.mxu0  ;;  %2695 = vmatmul.mubr.f32.gmra.mxu0 %v7271_v48  ;;  %3470 = vmatprep.mubr.f32.mxu1 %v3268_v57  ;;  %v3142_v39 = vadd.f32 1.0, %v4479_v43  ;;  %v2017_v26 = vmul.f32 %v1889_v27, %v6578_v62  ;;  %v2016_v43 = vmul.f32 %v1888_v11, %v6567_v56  ;;  %v1894_v62 = vmul.f32 %v4475_v16, %v6272_v3 }
 0x290   : > { %4498 = verf.f32 %v2893_v55  ;;  %v2894_v63 = vmul.f32 0.70710677, %v7289_v25  ;;  %v7297_v35 = vadd.f32 %v2408_v20, %v7135_v14  ;;  %2700 = vmatprep.mubr.f32.mxu0 %v7205_v41  ;;  %v4481_v15 = vpop.eup %4480  ;;  %3471 = vmatmul.mubr.f32.vlgmr.msra.gmra.mxu1 %v3267_v28  ;;  %v3269_v55 = vmul.f32 %v3141_v18, %v2757_v58 }
 0x291   : > { %v2410_v1 = vpop.f32.mrf.mxu0  ;;  %v4483_v46 = vpop.eup %4482  ;;  %v3270_v53 = vmul.f32 %v3142_v39, %v2758_v9  ;;  %v3143_v6 = vadd.f32 1.0, %v4481_v15  ;;  %v1895_v18 = vmul.f32 %v4475_v16, %v6275_v4  ;;  %v2759_v27 = vmul.f32 0.5, %v7211_v0 }
 0x292   : > { %4500 = verf.f32 %v2894_v63  ;;  %v2895_v24 = vmul.f32 0.70710677, %v7297_v35  ;;  %v7307_v20 = vadd.f32 %v2410_v1, %v7151_v60  ;;  %v4485_v31 = vpop.eup %4484  ;;  %v2760_v1 = vmul.f32 0.5, %v7219_v51 }
 0x293   : > { %v2414_v29 = vpop.f32.mrf.mxu0  ;;  %2701 = vmatmul.mubr.f32.gmra.mxu0 %v7243_v42  ;;  %3476 = vmatprep.mubr.f32.mxu1 %v3270_v53  ;;  %v3144_v9 = vadd.f32 1.0, %v4485_v31  ;;  %v1893_v31 = vmul.f32 %v4483_v46, %v6275_v4  ;;  %v1892_v16 = vmul.f32 %v4483_v46, %v6272_v3  ;;  %v7343_v46 = vadd.f32 %v6367_v12, %v2017_v26 }
 0x294   : > { %4502 = verf.f32 %v2895_v24  ;;  %v2896_v57 = vmul.f32 0.70710677, %v7307_v20  ;;  %v7317_v63 = vadd.f32 %v2414_v29, %v7135_v14  ;;  %2706 = vmatprep.mubr.f32.mxu0 %v7303_v5  ;;  %v4487_v28 = vpop.eup %4486  ;;  %3477 = vmatmul.mubr.f32.gmra.mxu1 %v3269_v55 }
 0x295   : > { %v2416_v41 = vpop.f32.mrf.mxu0  ;;  %v7323_v56 = vpop.eup %4488  ;;  %v3272_v39 = vmul.f32 %v3144_v9, %v2760_v1  ;;  %v3145_v24 = vadd.f32 1.0, %v4487_v28  ;;  %v2762_v28 = vmul.f32 0.5, %v7240_v37  ;;  %v2021_v26 = vmul.f32 %v1893_v31, %v6617_v44 }
 0x296   : > { %4504 = verf.f32 %v2896_v57  ;;  %v2897_v11 = vmul.f32 0.70710677, %v7317_v63  ;;  %v7328_v58 = vadd.f32 %v2416_v41, %v7151_v60  ;;  %v4491_v15 = vpop.eup %4490  ;;  %v3271_v41 = vmul.f32 %v3143_v6, %v2759_v27 }
 0x297   : > { %v2420_v51 = vpop.f32.mrf.mxu0  ;;  %2707 = vmatmul.mubr.f32.gmra.mxu0 %v7310_v40  ;;  %v7333_v29 = vpop.eup %4492  ;;  %v2761_v57 = vmul.f32 0.5, %v7230_v49  ;;  %3482 = vmatprep.mubr.f32.mxu1 %v3272_v39  ;;  %v3146_v9 = vadd.f32 1.0, %v4491_v15  ;;  %v7350_v6 = vadd.f32 %v6284_v59, %v2016_v43  ;;  %v2020_v15 = vmul.f32 %v1892_v16, %v6614_v17 }
 0x298   : > { %4506 = verf.f32 %v2897_v11  ;;  %v2898_v0 = vmul.f32 0.70710677, %v7328_v58  ;;  %v7337_v53 = vadd.f32 %v2420_v51, %v7135_v14  ;;  %2712 = vmatprep.mubr.f32.mxu0 %v7255_v30  ;;  %v4495_v55 = vpop.eup %4494  ;;  %3483 = vmatmul.mubr.f32.gmra.mxu1 %v3271_v41  ;;  %v2764_v30 = vmul.f32 0.5, %v7266_v2 }
 0x299   : > { %v2422_v1 = vpop.f32.mrf.mxu0  ;;  %v3274_v37 = vmul.f32 %v3146_v9, %v2762_v28  ;;  %v3273_v39 = vmul.f32 %v3145_v24, %v2761_v57  ;;  %v3147_v43 = vadd.f32 1.0, %v4495_v55  ;;  %v2023_v24 = vmul.f32 %v1895_v18, %v6640_v10 }
 0x29a   : > { %4508 = verf.f32 %v2898_v0  ;;  %v2899_v11 = vmul.f32 0.70710677, %v7337_v53  ;;  %v7347_v51 = vadd.f32 %v2422_v1, %v7151_v60  ;;  %v4497_v27 = vpop.eup %4496  ;;  %v2022_v44 = vmul.f32 %v1894_v62, %v6637_v45 }
 0x29b   : > { %v2426_v49 = vpop.f32.mrf.mxu0  ;;  %2713 = vmatmul.mubr.f32.gmra.mxu0 %v7262_v36  ;;  %3488 = vmatprep.mubr.f32.mxu1 %v3274_v37  ;;  %v3148_v28 = vadd.f32 1.0, %v4497_v27  ;;  %v2763_v17 = vmul.f32 0.5, %v7251_v13  ;;  %v7370_v9 = vadd.f32 %v6367_v12, %v2021_v26  ;;  %v7373_v45 = vadd.f32 %v6284_v59, %v2020_v15 }
 0x29c   : > { %4510 = verf.f32 %v2899_v11  ;;  %v2900_v0 = vmul.f32 0.70710677, %v7347_v51  ;;  %v7357_v1 = vadd.f32 %v2426_v49, %v7135_v14  ;;  %2718 = vmatprep.mubr.f32.mxu0 %v7343_v46  ;;  %3489 = vmatmul.mubr.f32.gmra.mxu1 %v3273_v39  ;;  %v2765_v11 = vmul.f32 0.5, %v7281_v38 }
 0x29d   : > { %v4499_v41 = vpop.eup %4498  ;;  %v2428_v36 = vpop.f32.mrf.mxu0  ;;  %v3276_v2 = vmul.f32 %v3148_v28, %v2764_v30  ;;  %v2766_v30 = vmul.f32 0.5, %v7289_v25  ;;  %v1897_v37 = vmul.f32 %v7323_v56, %v6275_v4  ;;  %v7389_v15 = vadd.f32 %v6367_v12, %v2023_v24 }
 0x29e   : > { %4512 = verf.f32 %v2900_v0  ;;  %v2901_v31 = vmul.f32 0.70710677, %v7357_v1  ;;  %v7366_v16 = vadd.f32 %v2428_v36, %v7151_v60  ;;  %v3149_v10 = vadd.f32 1.0, %v4499_v41 }
 0x29f   : > { %v4501_v55 = vpop.eup %4500  ;;  %v2432_v57 = vpop.f32.mrf.mxu0  ;;  %2719 = vmatmul.mubr.f32.gmra.mxu0 %v7350_v6  ;;  %v3275_v36 = vmul.f32 %v3147_v43, %v2763_v17  ;;  %3494 = vmatprep.mubr.f32.mxu1 %v3276_v2  ;;  %v7393_v41 = vadd.f32 %v6284_v59, %v2022_v44  ;;  %v1896_v28 = vmul.f32 %v7323_v56, %v6272_v3 }
 0x2a0   : > { %4514 = verf.f32 %v2901_v31  ;;  %v2902_v13 = vmul.f32 0.70710677, %v7366_v16  ;;  %v7377_v18 = vadd.f32 %v2432_v57, %v7135_v14  ;;  %2724 = vmatprep.mubr.f32.mxu0 %v7274_v7  ;;  %v3150_v49 = vadd.f32 1.0, %v4501_v55 }
 0x2a1   : > { %v4503_v62 = vpop.eup %4502  ;;  %v2434_v27 = vpop.f32.mrf.mxu0  ;;  %3495 = vmatmul.mubr.f32.gmra.mxu1 %v3275_v36  ;;  %v3277_v43 = vmul.f32 %v3149_v10, %v2765_v11  ;;  %v2768_v57 = vmul.f32 0.5, %v7307_v20  ;;  %v2025_v44 = vmul.f32 %v1897_v37, %v6662_v52  ;;  %v1899_v56 = vmul.f32 %v7333_v29, %v6275_v4 }
 0x2a2   : > { %4516 = verf.f32 %v2902_v13  ;;  %v2903_v39 = vmul.f32 0.70710677, %v7377_v18  ;;  %v7386_v26 = vadd.f32 %v2434_v27, %v7151_v60  ;;  %v3278_v25 = vmul.f32 %v3150_v49, %v2766_v30 }
 0x2a3   : > { %v4505_v0 = vpop.eup %4504  ;;  %v2438_v38 = vpop.f32.mrf.mxu0  ;;  %2725 = vmatmul.mubr.f32.gmra.mxu0 %v7277_v23  ;;  %v3151_v24 = vadd.f32 1.0, %v4503_v62  ;;  %v2767_v13 = vmul.f32 0.5, %v7297_v35  ;;  %v2024_v52 = vmul.f32 %v1896_v28, %v6659_v34  ;;  %v1898_v4 = vmul.f32 %v7333_v29, %v6272_v3 }
 0x2a4   : > { %4518 = verf.f32 %v2903_v39  ;;  %v2904_v17 = vmul.f32 0.70710677, %v7386_v26  ;;  %v7399_v31 = vadd.f32 %v2438_v38, %v7135_v14  ;;  %2730 = vmatprep.mubr.f32.mxu0 %v7370_v9  ;;  %3500 = vmatprep.mubr.f32.mxu1 %v3278_v25  ;;  %v3152_v10 = vadd.f32 1.0, %v4505_v0 }
 0x2a5   : > { %v4507_v55 = vpop.eup %4506  ;;  %v2440_v2 = vpop.f32.mrf.mxu0  ;;  %3501 = vmatmul.mubr.f32.gmra.mxu1 %v3277_v43  ;;  %v3279_v37 = vmul.f32 %v3151_v24, %v2767_v13  ;;  %v2769_v0 = vmul.f32 0.5, %v7317_v63  ;;  %v2770_v38 = vmul.f32 0.5, %v7328_v58  ;;  %v2027_v43 = vmul.f32 %v1899_v56, %v6685_v33 }
 0x2a6   : > { %4520 = verf.f32 %v2904_v17  ;;  %v2905_v36 = vmul.f32 0.70710677, %v7399_v31  ;;  %v7409_v11 = vadd.f32 %v2440_v2, %v7151_v60  ;;  %v3280_v20 = vmul.f32 %v3152_v10, %v2768_v57 }
 0x2a7   : > { %v4509_v62 = vpop.eup %4508  ;;  %v2444_v30 = vpop.f32.mrf.mxu0  ;;  %2731 = vmatmul.mubr.f32.gmra.mxu0 %v7373_v45  ;;  %v3153_v27 = vadd.f32 1.0, %v4507_v55  ;;  %v7428_v28 = vadd.f32 %v6367_v12, %v2025_v44  ;;  %v2026_v55 = vmul.f32 %v1898_v4, %v6682_v32  ;;  %v2772_v44 = vmul.f32 0.5, %v7347_v51 }
 0x2a8   : > { %4522 = verf.f32 %v2905_v36  ;;  %v2906_v35 = vmul.f32 0.70710677, %v7409_v11  ;;  %v7417_v49 = vadd.f32 %v2444_v30, %v7135_v14  ;;  %2736 = vmatprep.mubr.f32.mxu0 %v7389_v15  ;;  %3506 = vmatprep.mubr.f32.mxu1 %v3280_v20  ;;  %v3154_v34 = vadd.f32 1.0, %v4509_v62 }
 0x2a9   : > { %v4511_v39 = vpop.eup %4510  ;;  %v2446_v25 = vpop.f32.mrf.mxu0  ;;  %3507 = vmatmul.mubr.f32.gmra.mxu1 %v3279_v37  ;;  %v3281_v58 = vmul.f32 %v3153_v27, %v2769_v0  ;;  %v7439_v13 = vadd.f32 %v6284_v59, %v2024_v52  ;;  %v7442_v36 = vadd.f32 %v6367_v12, %v2027_v43  ;;  %v2771_v62 = vmul.f32 0.5, %v7337_v53 }
 0x2aa   : > { %4524 = verf.f32 %v2906_v35  ;;  %v2907_v3 = vmul.f32 0.70710677, %v7417_v49  ;;  %v7425_v29 = vadd.f32 %v2446_v25, %v7151_v60  ;;  %v3282_v63 = vmul.f32 %v3154_v34, %v2770_v38 }
 0x2ab   : > { %v4513_v17 = vpop.eup %4512  ;;  %v2450_v24 = vpop.f32.mrf.mxu0  ;;  %2737 = vmatmul.mubr.f32.gmra.mxu0 %v7393_v41  ;;  %v3155_v2 = vadd.f32 1.0, %v4511_v39  ;;  %v2773_v39 = vmul.f32 0.5, %v7357_v1  ;;  %v2774_v0 = vmul.f32 0.5, %v7366_v16  ;;  %v7458_v25 = vadd.f32 %v6284_v59, %v2026_v55 }
 0x2ac   : > { %4526 = verf.f32 %v2907_v3  ;;  %v2908_v33 = vmul.f32 0.70710677, %v7425_v29  ;;  %v7434_v57 = vadd.f32 %v2450_v24, %v7135_v14  ;;  %2742 = vmatprep.mubr.f32.mxu0 %v7428_v28  ;;  %3512 = vmatprep.mubr.f32.mxu1 %v3282_v63  ;;  %v3156_v32 = vadd.f32 1.0, %v4513_v17 }
 0x2ad   : > { %v4515_v10 = vpop.eup %4514  ;;  %v2452_v56 = vpop.f32.mrf.mxu0  ;;  %3513 = vmatmul.mubr.f32.gmra.mxu1 %v3281_v58  ;;  %v3283_v53 = vmul.f32 %v3155_v2, %v2771_v62 }
 0x2ae   : > { %4528 = verf.f32 %v2908_v33  ;;  %v2909_v30 = vmul.f32 0.70710677, %v7434_v57  ;;  %v7447_v20 = vadd.f32 %v2452_v56, %v7151_v60  ;;  %v3284_v4 = vmul.f32 %v3156_v32, %v2772_v44 }
 0x2af   : > { %v4517_v27 = vpop.eup %4516  ;;  %v2456_v51 = vpop.f32.mrf.mxu0  ;;  %2743 = vmatmul.mubr.f32.gmra.mxu0 %v7439_v13  ;;  %v3157_v52 = vadd.f32 1.0, %v4515_v10  ;;  %v2776_v33 = vmul.f32 0.5, %v7386_v26  ;;  %v2775_v44 = vmul.f32 0.5, %v7377_v18  ;;  %v2777_v18 = vmul.f32 0.5, %v7399_v31 }
 0x2b0   : > { %4530 = verf.f32 %v2909_v30  ;;  %v2910_v12 = vmul.f32 0.70710677, %v7447_v20  ;;  %v7452_v35 = vadd.f32 %v2456_v51, %v7135_v14  ;;  %2748 = vmatprep.mubr.f32.mxu0 %v7442_v36  ;;  %3518 = vmatprep.mubr.f32.mxu1 %v3284_v4  ;;  %v3158_v34 = vadd.f32 1.0, %v4517_v27 }
 0x2b1   : > { %v4519_v37 = vpop.eup %4518  ;;  %v2458_v38 = vpop.f32.mrf.mxu0  ;;  %3519 = vmatmul.mubr.f32.gmra.mxu1 %v3283_v53  ;;  %v3285_v63 = vmul.f32 %v3157_v52, %v2773_v39  ;;  %v2778_v53 = vmul.f32 0.5, %v7409_v11 }
 0x2b2   : > { %4532 = verf.f32 %v2910_v12  ;;  %v2911_v43 = vmul.f32 0.70710677, %v7452_v35  ;;  %v7462_v3 = vadd.f32 %v2458_v38, %v7151_v60  ;;  %v3286_v1 = vmul.f32 %v3158_v34, %v2774_v0 }
 0x2b3   : > { %v4521_v17 = vpop.eup %4520  ;;  %v2462_v24 = vpop.f32.mrf.mxu0  ;;  %2749 = vmatmul.mubr.f32.gmra.mxu0 %v7458_v25  ;;  %v3159_v58 = vadd.f32 1.0, %v4519_v37 }
 0x2b4   : > { %4534 = verf.f32 %v2911_v43  ;;  %v2912_v16 = vmul.f32 0.70710677, %v7462_v3  ;;  %v7467_v59 = vadd.f32 %v2462_v24, %v7135_v14  ;;  %3524 = vmatprep.mubr.f32.mxu1 %v3286_v1  ;;  %v3160_v10 = vadd.f32 1.0, %v4521_v17 }
 0x2b5   : > { %v4523_v55 = vpop.eup %4522  ;;  %v2464_v2 = vpop.f32.mrf.mxu0  ;;  %3525 = vmatmul.mubr.f32.gmra.mxu1 %v3285_v63  ;;  %v3287_v52 = vmul.f32 %v3159_v58, %v2775_v44 }
 0x2b6   : > { %4536 = verf.f32 %v2912_v16  ;;  %v2913_v56 = vmul.f32 0.70710677, %v7467_v59  ;;  %v7473_v32 = vadd.f32 %v2464_v2, %v7151_v60  ;;  %v3288_v27 = vmul.f32 %v3160_v10, %v2776_v33 }
 0x2b7   : > { %v4525_v62 = vpop.eup %4524  ;;  %v2468_v30 = vpop.f32.mrf.mxu0  ;;  %v3161_v51 = vadd.f32 1.0, %v4523_v55  ;;  %v2780_v16 = vmul.f32 0.5, %v7425_v29  ;;  %v2779_v33 = vmul.f32 0.5, %v7417_v49  ;;  %v2781_v49 = vmul.f32 0.5, %v7434_v57 }
 0x2b8   : > { %4538 = verf.f32 %v2913_v56  ;;  %v2914_v4 = vmul.f32 0.70710677, %v7473_v32  ;;  %v7477_v26 = vadd.f32 %v2468_v30, %v7135_v14  ;;  %3530 = vmatprep.mubr.f32.mxu1 %v3288_v27  ;;  %v3162_v39 = vadd.f32 1.0, %v4525_v62 }
 0x2b9   : > { %v4527_v12 = vpop.eup %4526  ;;  %v2470_v37 = vpop.f32.mrf.mxu0  ;;  %3531 = vmatmul.mubr.f32.gmra.mxu1 %v3287_v52  ;;  %v3289_v24 = vmul.f32 %v3161_v51, %v2777_v18  ;;  %v2782_v52 = vmul.f32 0.5, %v7447_v20 }
 0x2ba   : > { %4540 = verf.f32 %v2914_v4  ;;  %v2915_v0 = vmul.f32 0.70710677, %v7477_v26  ;;  %v7483_v38 = vadd.f32 %v2470_v37, %v7151_v60  ;;  %v3290_v17 = vmul.f32 %v3162_v39, %v2778_v53 }
 0x2bb   : > { %v4529_v34 = vpop.eup %4528  ;;  %v2474_v43 = vpop.f32.mrf.mxu0  ;;  %v3163_v11 = vadd.f32 1.0, %v4527_v12 }
 0x2bc   : > { %4542 = verf.f32 %v2915_v0  ;;  %v2916_v1 = vmul.f32 0.70710677, %v7483_v38  ;;  %v7487_v31 = vadd.f32 %v2474_v43, %v7135_v14  ;;  %3536 = vmatprep.mubr.f32.mxu1 %v3290_v17  ;;  %v3164_v55 = vadd.f32 1.0, %v4529_v34 }
 0x2bd   : > { %v4531_v63 = vpop.eup %4530  ;;  %v2476_v58 = vpop.f32.mrf.mxu0  ;;  %3537 = vmatmul.mubr.f32.gmra.mxu1 %v3289_v24  ;;  %v3291_v51 = vmul.f32 %v3163_v11, %v2779_v33 }
 0x2be   : > { %4544 = verf.f32 %v2916_v1  ;;  %v2917_v2 = vmul.f32 0.70710677, %v7487_v31  ;;  %v7493_v10 = vadd.f32 %v2476_v58, %v7151_v60  ;;  %v3292_v62 = vmul.f32 %v3164_v55, %v2780_v16 }
 0x2bf   : > { %v4533_v44 = vpop.eup %4532  ;;  %v2480_v56 = vpop.f32.mrf.mxu0  ;;  %v3165_v30 = vadd.f32 1.0, %v4531_v63  ;;  %v2784_v1 = vmul.f32 0.5, %v7462_v3  ;;  %v2783_v16 = vmul.f32 0.5, %v7452_v35  ;;  %v2785_v35 = vmul.f32 0.5, %v7467_v59 }
 0x2c0   : > { %4546 = verf.f32 %v2917_v2  ;;  %v2918_v27 = vmul.f32 0.70710677, %v7493_v10  ;;  %v7497_v29 = vadd.f32 %v2480_v56, %v7135_v14  ;;  %3542 = vmatprep.mubr.f32.mxu1 %v3292_v62  ;;  %v3166_v18 = vadd.f32 1.0, %v4533_v44 }
 0x2c1   : > { %v4535_v4 = vpop.eup %4534  ;;  %v2482_v12 = vpop.f32.mrf.mxu0  ;;  %3543 = vmatmul.mubr.f32.gmra.mxu1 %v3291_v51  ;;  %v3293_v43 = vmul.f32 %v3165_v30, %v2781_v49  ;;  %v2786_v51 = vmul.f32 0.5, %v7473_v32 }
 0x2c2   : > { %4548 = verf.f32 %v2918_v27  ;;  %v2919_v53 = vmul.f32 0.70710677, %v7497_v29  ;;  %v7503_v37 = vadd.f32 %v2482_v12, %v7151_v60  ;;  %v3294_v34 = vmul.f32 %v3166_v18, %v2782_v52 }
 0x2c3   : > { %v4537_v39 = vpop.eup %4536  ;;  %v2486_v0 = vpop.f32.mrf.mxu0  ;;  %v3167_v20 = vadd.f32 1.0, %v4535_v4 }
 0x2c4   : > { %4550 = verf.f32 %v2919_v53  ;;  %v2920_v17 = vmul.f32 0.70710677, %v7503_v37  ;;  %v7507_v57 = vadd.f32 %v2486_v0, %v7135_v14  ;;  %3548 = vmatprep.mubr.f32.mxu1 %v3294_v34  ;;  %v3168_v63 = vadd.f32 1.0, %v4537_v39 }
 0x2c5   : > { %v4539_v24 = vpop.eup %4538  ;;  %v2488_v11 = vpop.f32.mrf.mxu0  ;;  %3549 = vmatmul.mubr.f32.gmra.mxu1 %v3293_v43  ;;  %v3295_v30 = vmul.f32 %v3167_v20, %v2783_v16 }
 0x2c6   : > { %4552 = verf.f32 %v2920_v17  ;;  %v2921_v58 = vmul.f32 0.70710677, %v7507_v57  ;;  %v7513_v55 = vadd.f32 %v2488_v11, %v7151_v60  ;;  %v3296_v44 = vmul.f32 %v3168_v63, %v2784_v1 }
 0x2c7   : > { %v4541_v33 = vpop.eup %4540  ;;  %v2492_v2 = vpop.f32.mrf.mxu0  ;;  %v3169_v56 = vadd.f32 1.0, %v4539_v24  ;;  %v2788_v17 = vmul.f32 0.5, %v7483_v38  ;;  %v2787_v1 = vmul.f32 0.5, %v7477_v26  ;;  %v2789_v26 = vmul.f32 0.5, %v7487_v31 }
 0x2c8   : > { %4554 = verf.f32 %v2921_v58  ;;  %v2922_v62 = vmul.f32 0.70710677, %v7513_v55  ;;  %v7517_v3 = vadd.f32 %v2492_v2, %v7135_v14  ;;  %3554 = vmatprep.mubr.f32.mxu1 %v3296_v44  ;;  %v3170_v49 = vadd.f32 1.0, %v4541_v33 }
 0x2c9   : > { %v4543_v27 = vpop.eup %4542  ;;  %v2494_v4 = vpop.f32.mrf.mxu0  ;;  %3555 = vmatmul.mubr.f32.gmra.mxu1 %v3295_v30  ;;  %v3297_v0 = vmul.f32 %v3169_v56, %v2785_v35  ;;  %v2790_v30 = vmul.f32 0.5, %v7493_v10 }
 0x2ca   : > { %4556 = verf.f32 %v2922_v62  ;;  %v2923_v52 = vmul.f32 0.70710677, %v7517_v3  ;;  %v7523_v12 = vadd.f32 %v2494_v4, %v7151_v60  ;;  %v3298_v39 = vmul.f32 %v3170_v49, %v2786_v51 }
 0x2cb   : > { %v4545_v18 = vpop.eup %4544  ;;  %v2498_v53 = vpop.f32.mrf.mxu0  ;;  %v3171_v32 = vadd.f32 1.0, %v4543_v27 }
 0x2cc   : > { %4558 = verf.f32 %v2923_v52  ;;  %v2924_v34 = vmul.f32 0.70710677, %v7523_v12  ;;  %v7527_v59 = vadd.f32 %v2498_v53, %v7135_v14  ;;  %3560 = vmatprep.mubr.f32.mxu1 %v3298_v39  ;;  %v3172_v24 = vadd.f32 1.0, %v4545_v18 }
 0x2cd   : > { %v4547_v43 = vpop.eup %4546  ;;  %v2500_v20 = vpop.f32.mrf.mxu0  ;;  %3561 = vmatmul.mubr.f32.gmra.mxu1 %v3297_v0  ;;  %v3299_v56 = vmul.f32 %v3171_v32, %v2787_v1 }
 0x2ce   : > { %4560 = verf.f32 %v2924_v34  ;;  %v2925_v11 = vmul.f32 0.70710677, %v7527_v59  ;;  %v7533_v63 = vadd.f32 %v2500_v20, %v7151_v60  ;;  %v3300_v33 = vmul.f32 %v3172_v24, %v2788_v17 }
 0x2cf   : > { %v4549_v16 = vpop.eup %4548  ;;  %v2504_v58 = vpop.f32.mrf.mxu0  ;;  %v3173_v2 = vadd.f32 1.0, %v4547_v43  ;;  %v2792_v34 = vmul.f32 0.5, %v7503_v37  ;;  %v2791_v17 = vmul.f32 0.5, %v7497_v29  ;;  %v2793_v29 = vmul.f32 0.5, %v7507_v57 }
 0x2d0   : > { %4562 = verf.f32 %v2925_v11  ;;  %v2926_v44 = vmul.f32 0.70710677, %v7533_v63  ;;  %v7537_v38 = vadd.f32 %v2504_v58, %v7135_v14  ;;  %3566 = vmatprep.mubr.f32.mxu1 %v3300_v33  ;;  %v3174_v35 = vadd.f32 1.0, %v4549_v16 }
 0x2d1   : > { %v4551_v62 = vpop.eup %4550  ;;  %v2506_v27 = vpop.f32.mrf.mxu0  ;;  %3567 = vmatmul.mubr.f32.gmra.mxu1 %v3299_v56  ;;  %v3301_v53 = vmul.f32 %v3173_v2, %v2789_v26  ;;  %v2794_v56 = vmul.f32 0.5, %v7513_v55 }
 0x2d2   : > { %4564 = verf.f32 %v2926_v44  ;;  %v2927_v51 = vmul.f32 0.70710677, %v7537_v38  ;;  %v7543_v4 = vadd.f32 %v2506_v27, %v7151_v60  ;;  %v3302_v18 = vmul.f32 %v3174_v35, %v2790_v30 }
 0x2d3   : > { %v4553_v49 = vpop.eup %4552  ;;  %v2510_v52 = vpop.f32.mrf.mxu0  ;;  %v3175_v10 = vadd.f32 1.0, %v4551_v62 }
 0x2d4   : > { %4566 = verf.f32 %v2927_v51  ;;  %v2928_v39 = vmul.f32 0.70710677, %v7543_v4  ;;  %v7547_v31 = vadd.f32 %v2510_v52, %v7135_v14  ;;  %3572 = vmatprep.mubr.f32.mxu1 %v3302_v18  ;;  %v3176_v43 = vadd.f32 1.0, %v4553_v49 }
 0x2d5   : > { %v4555_v0 = vpop.eup %4554  ;;  %v2512_v32 = vpop.f32.mrf.mxu0  ;;  %3573 = vmatmul.mubr.f32.gmra.mxu1 %v3301_v53  ;;  %v3303_v2 = vmul.f32 %v3175_v10, %v2791_v17 }
 0x2d6   : > { %4568 = verf.f32 %v2928_v39  ;;  %v2929_v20 = vmul.f32 0.70710677, %v7547_v31  ;;  %v7553_v24 = vadd.f32 %v2512_v32, %v7151_v60  ;;  %v3304_v16 = vmul.f32 %v3176_v43, %v2792_v34 }
 0x2d7   : > { %v4557_v1 = vpop.eup %4556  ;;  %v2516_v11 = vpop.f32.mrf.mxu0  ;;  %v3177_v58 = vadd.f32 1.0, %v4555_v0  ;;  %v2796_v39 = vmul.f32 0.5, %v7523_v12  ;;  %v2795_v34 = vmul.f32 0.5, %v7517_v3  ;;  %v2797_v3 = vmul.f32 0.5, %v7527_v59 }
 0x2d8   : > { %4570 = verf.f32 %v2929_v20  ;;  %v2930_v33 = vmul.f32 0.70710677, %v7553_v24  ;;  %v7557_v37 = vadd.f32 %v2516_v11, %v7135_v14  ;;  %3578 = vmatprep.mubr.f32.mxu1 %v3304_v16  ;;  %v3178_v26 = vadd.f32 1.0, %v4557_v1 }
 0x2d9   : > { %v4559_v44 = vpop.eup %4558  ;;  %v2518_v62 = vpop.f32.mrf.mxu0  ;;  %3579 = vmatmul.mubr.f32.gmra.mxu1 %v3303_v2  ;;  %v3305_v52 = vmul.f32 %v3177_v58, %v2793_v29  ;;  %v2798_v2 = vmul.f32 0.5, %v7533_v63 }
 0x2da   : > { %4572 = verf.f32 %v2930_v33  ;;  %v2931_v30 = vmul.f32 0.70710677, %v7557_v37  ;;  %v7563_v27 = vadd.f32 %v2518_v62, %v7151_v60  ;;  %v3306_v49 = vmul.f32 %v3178_v26, %v2794_v56 }
 0x2db   : > { %v4561_v35 = vpop.eup %4560  ;;  %v2522_v51 = vpop.f32.mrf.mxu0  ;;  %v3179_v55 = vadd.f32 1.0, %v4559_v44 }
 0x2dc   : > { %4574 = verf.f32 %v2931_v30  ;;  %v2932_v18 = vmul.f32 0.70710677, %v7563_v27  ;;  %v7567_v57 = vadd.f32 %v2522_v51, %v7135_v14  ;;  %3584 = vmatprep.mubr.f32.mxu1 %v3306_v49  ;;  %v3180_v0 = vadd.f32 1.0, %v4561_v35 }
 0x2dd   : > { %v4563_v53 = vpop.eup %4562  ;;  %v2524_v10 = vpop.f32.mrf.mxu0  ;;  %3585 = vmatmul.mubr.f32.gmra.mxu1 %v3305_v52  ;;  %v3307_v58 = vmul.f32 %v3179_v55, %v2795_v34 }
 0x2de   : > { %4576 = verf.f32 %v2932_v18  ;;  %v2933_v32 = vmul.f32 0.70710677, %v7567_v57  ;;  %v7573_v43 = vadd.f32 %v2524_v10, %v7151_v60  ;;  %v3308_v1 = vmul.f32 %v3180_v0, %v2796_v39 }
 0x2df   : > { %v4565_v17 = vpop.eup %4564  ;;  %v2528_v20 = vpop.f32.mrf.mxu0  ;;  %v3181_v11 = vadd.f32 1.0, %v4563_v53  ;;  %v2800_v18 = vmul.f32 0.5, %v7543_v4  ;;  %v2799_v39 = vmul.f32 0.5, %v7537_v38  ;;  %v2801_v38 = vmul.f32 0.5, %v7547_v31 }
 0x2e0   : > { %4578 = verf.f32 %v2933_v32  ;;  %v2934_v16 = vmul.f32 0.70710677, %v7573_v43  ;;  %v7577_v12 = vadd.f32 %v2528_v20, %v7135_v14  ;;  %3590 = vmatprep.mubr.f32.mxu1 %v3308_v1  ;;  %v3182_v29 = vadd.f32 1.0, %v4565_v17 }
 0x2e1   : > { %v4567_v33 = vpop.eup %4566  ;;  %v2530_v44 = vpop.f32.mrf.mxu0  ;;  %3591 = vmatmul.mubr.f32.gmra.mxu1 %v3307_v58  ;;  %v3309_v51 = vmul.f32 %v3181_v11, %v2797_v3  ;;  %v2802_v58 = vmul.f32 0.5, %v7553_v24 }
 0x2e2   : > { %4580 = verf.f32 %v2934_v16  ;;  %v2935_v56 = vmul.f32 0.70710677, %v7577_v12  ;;  %v7583_v62 = vadd.f32 %v2530_v44, %v7151_v60  ;;  %v3310_v35 = vmul.f32 %v3182_v29, %v2798_v2 }
 0x2e3   : > { %v4569_v26 = vpop.eup %4568  ;;  %v2534_v30 = vpop.f32.mrf.mxu0  ;;  %v3183_v63 = vadd.f32 1.0, %v4567_v33 }
 0x2e4   : > { %4582 = verf.f32 %v2935_v56  ;;  %v2936_v49 = vmul.f32 0.70710677, %v7583_v62  ;;  %v7587_v59 = vadd.f32 %v2534_v30, %v7135_v14  ;;  %3596 = vmatprep.mubr.f32.mxu1 %v3310_v35  ;;  %v3184_v53 = vadd.f32 1.0, %v4569_v26 }
 0x2e5   : > { %v4571_v52 = vpop.eup %4570  ;;  %v2536_v55 = vpop.f32.mrf.mxu0  ;;  %3597 = vmatmul.mubr.f32.gmra.mxu1 %v3309_v51  ;;  %v3311_v11 = vmul.f32 %v3183_v63, %v2799_v39 }
 0x2e6   : > { %4584 = verf.f32 %v2936_v49  ;;  %v2937_v10 = vmul.f32 0.70710677, %v7587_v59  ;;  %v7593_v0 = vadd.f32 %v2536_v55, %v7151_v60  ;;  %v3312_v17 = vmul.f32 %v3184_v53, %v2800_v18 }
 0x2e7   : > { %v4573_v34 = vpop.eup %4572  ;;  %v2540_v32 = vpop.f32.mrf.mxu0  ;;  %v3185_v20 = vadd.f32 1.0, %v4571_v52  ;;  %v2804_v49 = vmul.f32 0.5, %v7563_v27  ;;  %v2803_v18 = vmul.f32 0.5, %v7557_v37  ;;  %v2805_v37 = vmul.f32 0.5, %v7567_v57 }
 0x2e8   : > { %4586 = verf.f32 %v2937_v10  ;;  %v2938_v1 = vmul.f32 0.70710677, %v7593_v0  ;;  %v7597_v4 = vadd.f32 %v2540_v32, %v7135_v14  ;;  %3602 = vmatprep.mubr.f32.mxu1 %v3312_v17  ;;  %v3186_v3 = vadd.f32 1.0, %v4573_v34 }
 0x2e9   : > { %v4575_v16 = vpop.eup %4574  ;;  %v2542_v33 = vpop.f32.mrf.mxu0  ;;  %3603 = vmatmul.mubr.f32.gmra.mxu1 %v3311_v11  ;;  %v3313_v30 = vmul.f32 %v3185_v20, %v2801_v38  ;;  %v2806_v11 = vmul.f32 0.5, %v7573_v43 }
 0x2ea   : > { %4588 = verf.f32 %v2938_v1  ;;  %v2939_v2 = vmul.f32 0.70710677, %v7597_v4  ;;  %v7603_v44 = vadd.f32 %v2542_v33, %v7151_v60  ;;  %v3314_v26 = vmul.f32 %v3186_v3, %v2802_v58 }
 0x2eb   : > { %v4577_v29 = vpop.eup %4576  ;;  %v2546_v56 = vpop.f32.mrf.mxu0  ;;  %v3187_v24 = vadd.f32 1.0, %v4575_v16 }
 0x2ec   : > { %4590 = verf.f32 %v2939_v2  ;;  %v2940_v35 = vmul.f32 0.70710677, %v7603_v44  ;;  %v7607_v31 = vadd.f32 %v2546_v56, %v7135_v14  ;;  %3608 = vmatprep.mubr.f32.mxu1 %v3314_v26  ;;  %v3188_v52 = vadd.f32 1.0, %v4577_v29 }
 0x2ed   : > { %v4579_v51 = vpop.eup %4578  ;;  %v2548_v63 = vpop.f32.mrf.mxu0  ;;  %3609 = vmatmul.mubr.f32.gmra.mxu1 %v3313_v30  ;;  %v3315_v20 = vmul.f32 %v3187_v24, %v2803_v18 }
 0x2ee   : > { %4592 = verf.f32 %v2940_v35  ;;  %v2941_v55 = vmul.f32 0.70710677, %v7607_v31  ;;  %v7613_v53 = vadd.f32 %v2548_v63, %v7151_v60  ;;  %v3316_v34 = vmul.f32 %v3188_v52, %v2804_v49 }
 0x2ef   : > { %v4581_v39 = vpop.eup %4580  ;;  %v2552_v10 = vpop.f32.mrf.mxu0  ;;  %v3189_v32 = vadd.f32 1.0, %v4579_v51  ;;  %v2808_v35 = vmul.f32 0.5, %v7583_v62  ;;  %v2807_v49 = vmul.f32 0.5, %v7577_v12  ;;  %v2809_v12 = vmul.f32 0.5, %v7587_v59 }
 0x2f0   : > { %4594 = verf.f32 %v2941_v55  ;;  %v2942_v17 = vmul.f32 0.70710677, %v7613_v53  ;;  %v7617_v27 = vadd.f32 %v2552_v10, %v7135_v14  ;;  %3614 = vmatprep.mubr.f32.mxu1 %v3316_v34  ;;  %v3190_v38 = vadd.f32 1.0, %v4581_v39 }
 0x2f1   : > { %v4583_v1 = vpop.eup %4582  ;;  %v2554_v16 = vpop.f32.mrf.mxu0  ;;  %3615 = vmatmul.mubr.f32.gmra.mxu1 %v3315_v20  ;;  %v3317_v56 = vmul.f32 %v3189_v32, %v2805_v37  ;;  %v2810_v20 = vmul.f32 0.5, %v7593_v0 }
 0x2f2   : > { %4596 = verf.f32 %v2942_v17  ;;  %v2943_v58 = vmul.f32 0.70710677, %v7617_v27  ;;  %v7623_v33 = vadd.f32 %v2554_v16, %v7151_v60  ;;  %v3318_v29 = vmul.f32 %v3190_v38, %v2806_v11 }
 0x2f3   : > { %v4585_v3 = vpop.eup %4584  ;;  %v2558_v2 = vpop.f32.mrf.mxu0  ;;  %v3191_v43 = vadd.f32 1.0, %v4583_v1 }
 0x2f4   : > { %4598 = verf.f32 %v2943_v58  ;;  %v2944_v26 = vmul.f32 0.70710677, %v7623_v33  ;;  %v7627_v57 = vadd.f32 %v2558_v2, %v7135_v14  ;;  %3620 = vmatprep.mubr.f32.mxu1 %v3318_v29  ;;  %v3192_v51 = vadd.f32 1.0, %v4585_v3 }
 0x2f5   : > { %v4587_v30 = vpop.eup %4586  ;;  %v2560_v24 = vpop.f32.mrf.mxu0  ;;  %3621 = vmatmul.mubr.f32.gmra.mxu1 %v3317_v56  ;;  %v3319_v32 = vmul.f32 %v3191_v43, %v2807_v49 }
 0x2f6   : > { %4600 = verf.f32 %v2944_v26  ;;  %v2945_v63 = vmul.f32 0.70710677, %v7627_v57  ;;  %v7633_v52 = vadd.f32 %v2560_v24, %v7151_v60  ;;  %v3320_v39 = vmul.f32 %v3192_v51, %v2808_v35 }
 0x2f7   : > { %v4589_v18 = vpop.eup %4588  ;;  %v2564_v55 = vpop.f32.mrf.mxu0  ;;  %v3193_v10 = vadd.f32 1.0, %v4587_v30  ;;  %v2812_v26 = vmul.f32 0.5, %v7603_v44  ;;  %v2811_v35 = vmul.f32 0.5, %v7597_v4  ;;  %v2813_v4 = vmul.f32 0.5, %v7607_v31 }
 0x2f8   : > { %4602 = verf.f32 %v2945_v63  ;;  %v2946_v34 = vmul.f32 0.70710677, %v7633_v52  ;;  %v7637_v62 = vadd.f32 %v2564_v55, %v7135_v14  ;;  %3626 = vmatprep.mubr.f32.mxu1 %v3320_v39  ;;  %v3194_v37 = vadd.f32 1.0, %v4589_v18 }
 0x2f9   : > { %v4591_v17 = vpop.eup %4590  ;;  %v2566_v1 = vpop.f32.mrf.mxu0  ;;  %3627 = vmatmul.mubr.f32.gmra.mxu1 %v3319_v32  ;;  %v3321_v2 = vmul.f32 %v3193_v10, %v2809_v12  ;;  %v2814_v32 = vmul.f32 0.5, %v7613_v53 }
 0x2fa   : > { %4604 = verf.f32 %v2946_v34  ;;  %v2947_v11 = vmul.f32 0.70710677, %v7637_v62  ;;  %v7643_v16 = vadd.f32 %v2566_v1, %v7151_v60  ;;  %v3322_v3 = vmul.f32 %v3194_v37, %v2810_v20 }
 0x2fb   : > { %v4593_v38 = vpop.eup %4592  ;;  %v2570_v58 = vpop.f32.mrf.mxu0  ;;  %v3195_v0 = vadd.f32 1.0, %v4591_v17 }
 0x2fc   : > { %4606 = verf.f32 %v2947_v11  ;;  %v2948_v29 = vmul.f32 0.70710677, %v7643_v16  ;;  %v7647_v59 = vadd.f32 %v2570_v58, %v7135_v14  ;;  %3632 = vmatprep.mubr.f32.mxu1 %v3322_v3  ;;  %v3196_v30 = vadd.f32 1.0, %v4593_v38 }
 0x2fd   : > { %v4595_v56 = vpop.eup %4594  ;;  %v2572_v43 = vpop.f32.mrf.mxu0  ;;  %3633 = vmatmul.mubr.f32.gmra.mxu1 %v3321_v2  ;;  %v3323_v10 = vmul.f32 %v3195_v0, %v2811_v35 }
 0x2fe   : > { %4608 = verf.f32 %v2948_v29  ;;  %v2949_v24 = vmul.f32 0.70710677, %v7647_v59  ;;  %v7653_v51 = vadd.f32 %v2572_v43, %v7151_v60  ;;  %v3324_v18 = vmul.f32 %v3196_v30, %v2812_v26 }
 0x2ff   : > { %v4597_v49 = vpop.eup %4596  ;;  %v2576_v63 = vpop.f32.mrf.mxu0  ;;  %v3197_v55 = vadd.f32 1.0, %v4595_v56  ;;  %v2816_v29 = vmul.f32 0.5, %v7623_v33  ;;  %v2815_v26 = vmul.f32 0.5, %v7617_v27  ;;  %v2817_v27 = vmul.f32 0.5, %v7627_v57 }
 0x300   : > { %4610 = verf.f32 %v2949_v24  ;;  %v2950_v39 = vmul.f32 0.70710677, %v7653_v51  ;;  %v7657_v44 = vadd.f32 %v2576_v63, %v7135_v14  ;;  %3638 = vmatprep.mubr.f32.mxu1 %v3324_v18  ;;  %v3198_v12 = vadd.f32 1.0, %v4597_v49 }
 0x301   : > { %v4599_v34 = vpop.eup %4598  ;;  %v2578_v17 = vpop.f32.mrf.mxu0  ;;  %3639 = vmatmul.mubr.f32.gmra.mxu1 %v3323_v10  ;;  %v3325_v58 = vmul.f32 %v3197_v55, %v2813_v4  ;;  %v2818_v10 = vmul.f32 0.5, %v7633_v52 }
 0x302   : > { %4612 = verf.f32 %v2950_v39  ;;  %v2951_v20 = vmul.f32 0.70710677, %v7657_v44  ;;  %v7663_v1 = vadd.f32 %v2578_v17, %v7151_v60  ;;  %v3326_v38 = vmul.f32 %v3198_v12, %v2814_v32 }
 0x303   : > { %v4601_v37 = vpop.eup %4600  ;;  %v2582_v11 = vpop.f32.mrf.mxu0  ;;  %v3199_v53 = vadd.f32 1.0, %v4599_v34 }
 0x304   : > { %4614 = verf.f32 %v2951_v20  ;;  %v2952_v3 = vmul.f32 0.70710677, %v7663_v1  ;;  %v7667_v31 = vadd.f32 %v2582_v11, %v7135_v14  ;;  %3644 = vmatprep.mubr.f32.mxu1 %v3326_v38  ;;  %v3200_v56 = vadd.f32 1.0, %v4601_v37 }
 0x305   : > { %v4603_v2 = vpop.eup %4602  ;;  %v2584_v0 = vpop.f32.mrf.mxu0  ;;  %3645 = vmatmul.mubr.f32.gmra.mxu1 %v3325_v58  ;;  %v3327_v55 = vmul.f32 %v3199_v53, %v2815_v26 }
 0x306   : > { %4616 = verf.f32 %v2952_v3  ;;  %v2953_v43 = vmul.f32 0.70710677, %v7667_v31  ;;  %v7673_v30 = vadd.f32 %v2584_v0, %v7151_v60  ;;  %v3328_v49 = vmul.f32 %v3200_v56, %v2816_v29 }
 0x307   : > { %v4605_v35 = vpop.eup %4604  ;;  %v2588_v24 = vpop.f32.mrf.mxu0  ;;  %v3201_v63 = vadd.f32 1.0, %v4603_v2  ;;  %v2820_v3 = vmul.f32 0.5, %v7643_v16  ;;  %v2819_v29 = vmul.f32 0.5, %v7637_v62  ;;  %v2821_v62 = vmul.f32 0.5, %v7647_v59 }
 0x308   : > { %4618 = verf.f32 %v2953_v43  ;;  %v2954_v18 = vmul.f32 0.70710677, %v7673_v30  ;;  %v7677_v33 = vadd.f32 %v2588_v24, %v7135_v14  ;;  %3650 = vmatprep.mubr.f32.mxu1 %v3328_v49  ;;  %v3202_v4 = vadd.f32 1.0, %v4605_v35 }
 0x309   : > { %v4607_v39 = vpop.eup %4606  ;;  %v2590_v34 = vpop.f32.mrf.mxu0  ;;  %3651 = vmatmul.mubr.f32.gmra.mxu1 %v3327_v55  ;;  %v3329_v11 = vmul.f32 %v3201_v63, %v2817_v27  ;;  %v2822_v55 = vmul.f32 0.5, %v7653_v51 }
 0x30a   : > { %4620 = verf.f32 %v2954_v18  ;;  %v2955_v32 = vmul.f32 0.70710677, %v7677_v33  ;;  %v7683_v17 = vadd.f32 %v2590_v34, %v7151_v60  ;;  %v3330_v37 = vmul.f32 %v3202_v4, %v2818_v10 }
 0x30b   : > { %v4609_v12 = vpop.eup %4608  ;;  %v2594_v20 = vpop.f32.mrf.mxu0  ;;  %v3203_v52 = vadd.f32 1.0, %v4607_v39 }
 0x30c   : > { %4622 = verf.f32 %v2955_v32  ;;  %v2956_v38 = vmul.f32 0.70710677, %v7683_v17  ;;  %v7687_v57 = vadd.f32 %v2594_v20, %v7135_v14  ;;  %3656 = vmatprep.mubr.f32.mxu1 %v3330_v37  ;;  %v3204_v2 = vadd.f32 1.0, %v4609_v12 }
 0x30d   : > { %v4611_v58 = vpop.eup %4610  ;;  %v2596_v53 = vpop.f32.mrf.mxu0  ;;  %3657 = vmatmul.mubr.f32.gmra.mxu1 %v3329_v11  ;;  %v3331_v63 = vmul.f32 %v3203_v52, %v2819_v29 }
 0x30e   : > { %4624 = verf.f32 %v2956_v38  ;;  %v2957_v0 = vmul.f32 0.70710677, %v7687_v57  ;;  %v7693_v56 = vadd.f32 %v2596_v53, %v7151_v60  ;;  %v3332_v35 = vmul.f32 %v3204_v2, %v2820_v3 }
 0x30f   : > { %v4613_v26 = vpop.eup %4612  ;;  %v2600_v43 = vpop.f32.mrf.mxu0  ;;  %v3205_v24 = vadd.f32 1.0, %v4611_v58  ;;  %v2824_v38 = vmul.f32 0.5, %v7663_v1  ;;  %v2823_v3 = vmul.f32 0.5, %v7657_v44  ;;  %v2825_v44 = vmul.f32 0.5, %v7667_v31 }
 0x310   : > { %4626 = verf.f32 %v2957_v0  ;;  %v2958_v49 = vmul.f32 0.70710677, %v7693_v56  ;;  %v7697_v16 = vadd.f32 %v2600_v43, %v7135_v14  ;;  %3662 = vmatprep.mubr.f32.mxu1 %v3332_v35  ;;  %v3206_v27 = vadd.f32 1.0, %v4613_v26 }
 0x311   : > { %v4615_v18 = vpop.eup %4614  ;;  %v2602_v39 = vpop.f32.mrf.mxu0  ;;  %3663 = vmatmul.mubr.f32.gmra.mxu1 %v3331_v63  ;;  %v3333_v20 = vmul.f32 %v3205_v24, %v2821_v62  ;;  %v2826_v63 = vmul.f32 0.5, %v7673_v30 }
 0x312   : > { %4628 = verf.f32 %v2958_v49  ;;  %v2959_v10 = vmul.f32 0.70710677, %v7697_v16  ;;  %v7703_v34 = vadd.f32 %v2602_v39, %v7151_v60  ;;  %v3334_v12 = vmul.f32 %v3206_v27, %v2822_v55 }
 0x313   : > { %v4617_v4 = vpop.eup %4616  ;;  %v2606_v32 = vpop.f32.mrf.mxu0  ;;  %v3207_v51 = vadd.f32 1.0, %v4615_v18 }
 0x314   : > { %4630 = verf.f32 %v2959_v10  ;;  %v2960_v37 = vmul.f32 0.70710677, %v7703_v34  ;;  %v7707_v59 = vadd.f32 %v2606_v32, %v7135_v14  ;;  %3668 = vmatprep.mubr.f32.mxu1 %v3334_v12  ;;  %v3208_v58 = vadd.f32 1.0, %v4617_v4 }
 0x315   : > { %v4619_v11 = vpop.eup %4618  ;;  %v2608_v52 = vpop.f32.mrf.mxu0  ;;  %3669 = vmatmul.mubr.f32.gmra.mxu1 %v3333_v20  ;;  %v3335_v24 = vmul.f32 %v3207_v51, %v2823_v3 }
 0x316   : > { %4632 = verf.f32 %v2960_v37  ;;  %v2961_v53 = vmul.f32 0.70710677, %v7707_v59  ;;  %v7713_v2 = vadd.f32 %v2608_v52, %v7151_v60  ;;  %v3336_v26 = vmul.f32 %v3208_v58, %v2824_v38 }
 0x317   : > { %v4621_v29 = vpop.eup %4620  ;;  %v2612_v0 = vpop.f32.mrf.mxu0  ;;  %v3209_v43 = vadd.f32 1.0, %v4619_v11  ;;  %v2828_v37 = vmul.f32 0.5, %v7683_v17  ;;  %v2827_v38 = vmul.f32 0.5, %v7677_v33  ;;  %v2829_v33 = vmul.f32 0.5, %v7687_v57 }
 0x318   : > { %4634 = verf.f32 %v2961_v53  ;;  %v2962_v35 = vmul.f32 0.70710677, %v7713_v2  ;;  %v7717_v1 = vadd.f32 %v2612_v0, %v7135_v14  ;;  %3674 = vmatprep.mubr.f32.mxu1 %v3336_v26  ;;  %v3210_v62 = vadd.f32 1.0, %v4621_v29 }
 0x319   : > { %v4623_v49 = vpop.eup %4622  ;;  %v2614_v18 = vpop.f32.mrf.mxu0  ;;  %3675 = vmatmul.mubr.f32.gmra.mxu1 %v3335_v24  ;;  %v3337_v32 = vmul.f32 %v3209_v43, %v2825_v44  ;;  %v2830_v24 = vmul.f32 0.5, %v7693_v56 }
 0x31a   : > { %4636 = verf.f32 %v2962_v35  ;;  %v2963_v55 = vmul.f32 0.70710677, %v7717_v1  ;;  %v7723_v39 = vadd.f32 %v2614_v18, %v7151_v60  ;;  %v3338_v4 = vmul.f32 %v3210_v62, %v2826_v63 }
 0x31b   : > { %v4625_v27 = vpop.eup %4624  ;;  %v2618_v10 = vpop.f32.mrf.mxu0  ;;  %v3211_v30 = vadd.f32 1.0, %v4623_v49 }
 0x31c   : > { %4638 = verf.f32 %v2963_v55  ;;  %v2964_v12 = vmul.f32 0.70710677, %v7723_v39  ;;  %v7727_v31 = vadd.f32 %v2618_v10, %v7135_v14  ;;  %3680 = vmatprep.mubr.f32.mxu1 %v3338_v4  ;;  %v3212_v11 = vadd.f32 1.0, %v4625_v27 }
 0x31d   : > { %v4627_v20 = vpop.eup %4626  ;;  %v2620_v51 = vpop.f32.mrf.mxu0  ;;  %3681 = vmatmul.mubr.f32.gmra.mxu1 %v3337_v32  ;;  %v3339_v43 = vmul.f32 %v3211_v30, %v2827_v38 }
 0x31e   : > { %4640 = verf.f32 %v2964_v12  ;;  %v2965_v52 = vmul.f32 0.70710677, %v7727_v31  ;;  %v7733_v58 = vadd.f32 %v2620_v51, %v7151_v60  ;;  %v3340_v29 = vmul.f32 %v3212_v11, %v2828_v37 }
 0x31f   : > { %v4629_v3 = vpop.eup %4628  ;;  %v2624_v53 = vpop.f32.mrf.mxu0  ;;  %v3213_v0 = vadd.f32 1.0, %v4627_v20  ;;  %v2832_v12 = vmul.f32 0.5, %v7703_v34  ;;  %v2831_v37 = vmul.f32 0.5, %v7697_v16  ;;  %v2833_v16 = vmul.f32 0.5, %v7707_v59 }
 0x320   : > { %4642 = verf.f32 %v2965_v52  ;;  %v2966_v26 = vmul.f32 0.70710677, %v7733_v58  ;;  %v7737_v17 = vadd.f32 %v2624_v53, %v7135_v14  ;;  %3686 = vmatprep.mubr.f32.mxu1 %v3340_v29  ;;  %v3214_v44 = vadd.f32 1.0, %v4629_v3 }
 0x321   : > { %v4631_v35 = vpop.eup %4630  ;;  %v2626_v49 = vpop.f32.mrf.mxu0  ;;  %3687 = vmatmul.mubr.f32.gmra.mxu1 %v3339_v43  ;;  %v3341_v10 = vmul.f32 %v3213_v0, %v2829_v33  ;;  %v2834_v43 = vmul.f32 0.5, %v7713_v2 }
 0x322   : > { %4644 = verf.f32 %v2966_v26  ;;  %v2967_v63 = vmul.f32 0.70710677, %v7737_v17  ;;  %v7743_v18 = vadd.f32 %v2626_v49, %v7151_v60  ;;  %v3342_v27 = vmul.f32 %v3214_v44, %v2830_v24 }
 0x323   : > { %v4633_v62 = vpop.eup %4632  ;;  %v2630_v55 = vpop.f32.mrf.mxu0  ;;  %v3215_v56 = vadd.f32 1.0, %v4631_v35 }
 0x324   : > { %4646 = verf.f32 %v2967_v63  ;;  %v2968_v4 = vmul.f32 0.70710677, %v7743_v18  ;;  %v7747_v57 = vadd.f32 %v2630_v55, %v7135_v14  ;;  %3692 = vmatprep.mubr.f32.mxu1 %v3342_v27  ;;  %v3216_v20 = vadd.f32 1.0, %v4633_v62 }
 0x325   : > { %v4635_v32 = vpop.eup %4634  ;;  %v2632_v30 = vpop.f32.mrf.mxu0  ;;  %3693 = vmatmul.mubr.f32.gmra.mxu1 %v3341_v10  ;;  %v3343_v0 = vmul.f32 %v3215_v56, %v2831_v37 }
 0x326   : > { %4648 = verf.f32 %v2968_v4  ;;  %v2969_v51 = vmul.f32 0.70710677, %v7747_v57  ;;  %v7753_v11 = vadd.f32 %v2632_v30, %v7151_v60  ;;  %v3344_v3 = vmul.f32 %v3216_v20, %v2832_v12 }
 0x327   : > { %v4637_v38 = vpop.eup %4636  ;;  %v2636_v52 = vpop.f32.mrf.mxu0  ;;  %v3217_v53 = vadd.f32 1.0, %v4635_v32  ;;  %v2836_v4 = vmul.f32 0.5, %v7723_v39  ;;  %v2835_v12 = vmul.f32 0.5, %v7717_v1  ;;  %v2837_v1 = vmul.f32 0.5, %v7727_v31 }
 0x328   : > { %4650 = verf.f32 %v2969_v51  ;;  %v2970_v29 = vmul.f32 0.70710677, %v7753_v11  ;;  %v7757_v34 = vadd.f32 %v2636_v52, %v7135_v14  ;;  %3698 = vmatprep.mubr.f32.mxu1 %v3344_v3  ;;  %v3218_v33 = vadd.f32 1.0, %v4637_v38 }
 0x329   : > { %v4639_v26 = vpop.eup %4638  ;;  %v2638_v35 = vpop.f32.mrf.mxu0  ;;  %3699 = vmatmul.mubr.f32.gmra.mxu1 %v3343_v0  ;;  %v3345_v55 = vmul.f32 %v3217_v53, %v2833_v16  ;;  %v2838_v0 = vmul.f32 0.5, %v7733_v58 }
 0x32a   : > { %4652 = verf.f32 %v2970_v29  ;;  %v2971_v24 = vmul.f32 0.70710677, %v7757_v34  ;;  %v7763_v49 = vadd.f32 %v2638_v35, %v7151_v60  ;;  %v3346_v62 = vmul.f32 %v3218_v33, %v2834_v43 }
 0x32b   : > { %v4641_v44 = vpop.eup %4640  ;;  %v2642_v63 = vpop.f32.mrf.mxu0  ;;  %v3219_v2 = vadd.f32 1.0, %v4639_v26 }
 0x32c   : > { %4654 = verf.f32 %v2971_v24  ;;  %v2972_v27 = vmul.f32 0.70710677, %v7763_v49  ;;  %v7767_v59 = vadd.f32 %v2642_v63, %v7135_v14  ;;  %3704 = vmatprep.mubr.f32.mxu1 %v3346_v62  ;;  %v3220_v32 = vadd.f32 1.0, %v4641_v44 }
 0x32d   : > { %v4643_v10 = vpop.eup %4642  ;;  %v2644_v56 = vpop.f32.mrf.mxu0  ;;  %3705 = vmatmul.mubr.f32.gmra.mxu1 %v3345_v55  ;;  %v3347_v53 = vmul.f32 %v3219_v2, %v2835_v12 }
 0x32e   : > { %4656 = verf.f32 %v2972_v27  ;;  %v2973_v30 = vmul.f32 0.70710677, %v7767_v59  ;;  %v7773_v20 = vadd.f32 %v2644_v56, %v7151_v60  ;;  %v3348_v38 = vmul.f32 %v3220_v32, %v2836_v4 }
 0x32f   : > { %v4645_v37 = vpop.eup %4644  ;;  %v2648_v51 = vpop.f32.mrf.mxu0  ;;  %v3221_v52 = vadd.f32 1.0, %v4643_v10  ;;  %v2840_v27 = vmul.f32 0.5, %v7743_v18  ;;  %v2839_v4 = vmul.f32 0.5, %v7737_v17  ;;  %v2841_v17 = vmul.f32 0.5, %v7747_v57 }
 0x330   : > { %4658 = verf.f32 %v2973_v30  ;;  %v2974_v3 = vmul.f32 0.70710677, %v7773_v20  ;;  %v7777_v39 = vadd.f32 %v2648_v51, %v7135_v14  ;;  %3710 = vmatprep.mubr.f32.mxu1 %v3348_v38  ;;  %v3222_v16 = vadd.f32 1.0, %v4645_v37 }
 0x331   : > { %v4647_v29 = vpop.eup %4646  ;;  %v2650_v26 = vpop.f32.mrf.mxu0  ;;  %3711 = vmatmul.mubr.f32.gmra.mxu1 %v3347_v53  ;;  %v3349_v63 = vmul.f32 %v3221_v52, %v2837_v1  ;;  %v2842_v53 = vmul.f32 0.5, %v7753_v11 }
 0x332   : > { %4660 = verf.f32 %v2974_v3  ;;  %v2975_v43 = vmul.f32 0.70710677, %v7777_v39  ;;  %v7783_v35 = vadd.f32 %v2650_v26, %v7151_v60  ;;  %v3350_v44 = vmul.f32 %v3222_v16, %v2838_v0 }
 0x333   : > { %v4649_v33 = vpop.eup %4648  ;;  %v2654_v24 = vpop.f32.mrf.mxu0  ;;  %v3223_v58 = vadd.f32 1.0, %v4647_v29 }
 0x334   : > { %4662 = verf.f32 %v2975_v43  ;;  %v2976_v62 = vmul.f32 0.70710677, %v7783_v35  ;;  %v7787_v31 = vadd.f32 %v2654_v24, %v7135_v14  ;;  %3716 = vmatprep.mubr.f32.mxu1 %v3350_v44  ;;  %v3224_v10 = vadd.f32 1.0, %v4649_v33 }
 0x335   : > { %v4651_v55 = vpop.eup %4650  ;;  %v2656_v2 = vpop.f32.mrf.mxu0  ;;  %3717 = vmatmul.mubr.f32.gmra.mxu1 %v3349_v63  ;;  %v3351_v52 = vmul.f32 %v3223_v58, %v2839_v4 }
 0x336   : > { %4664 = verf.f32 %v2976_v62  ;;  %v2977_v56 = vmul.f32 0.70710677, %v7787_v31  ;;  %v7793_v32 = vadd.f32 %v2656_v2, %v7151_v60  ;;  %v3352_v37 = vmul.f32 %v3224_v10, %v2840_v27 }
 0x337   : > { %v4653_v12 = vpop.eup %4652  ;;  %v2660_v30 = vpop.f32.mrf.mxu0  ;;  %v3225_v51 = vadd.f32 1.0, %v4651_v55  ;;  %v2844_v62 = vmul.f32 0.5, %v7763_v49  ;;  %v2843_v27 = vmul.f32 0.5, %v7757_v34  ;;  %v2845_v34 = vmul.f32 0.5, %v7767_v59 }
 0x338   : > { %4666 = verf.f32 %v2977_v56  ;;  %v2978_v38 = vmul.f32 0.70710677, %v7793_v32  ;;  %v7797_v18 = vadd.f32 %v2660_v30, %v7135_v14  ;;  %3722 = vmatprep.mubr.f32.mxu1 %v3352_v37  ;;  %v3226_v1 = vadd.f32 1.0, %v4653_v12 }
 0x339   : > { %v4655_v3 = vpop.eup %4654  ;;  %v2662_v29 = vpop.f32.mrf.mxu0  ;;  %3723 = vmatmul.mubr.f32.gmra.mxu1 %v3351_v52  ;;  %v3353_v24 = vmul.f32 %v3225_v51, %v2841_v17  ;;  %v2846_v52 = vmul.f32 0.5, %v7773_v20 }
 0x33a   : > { %4668 = verf.f32 %v2978_v38  ;;  %v2979_v0 = vmul.f32 0.70710677, %v7797_v18  ;;  %v7803_v26 = vadd.f32 %v2662_v29, %v7151_v60  ;;  %v3354_v33 = vmul.f32 %v3226_v1, %v2842_v53 }
 0x33b   : > { %v4657_v16 = vpop.eup %4656  ;;  %v2666_v43 = vpop.f32.mrf.mxu0  ;;  %v3227_v11 = vadd.f32 1.0, %v4655_v3 }
 0x33c   : > { %4670 = verf.f32 %v2979_v0  ;;  %v2980_v44 = vmul.f32 0.70710677, %v7803_v26  ;;  %v7807_v57 = vadd.f32 %v2666_v43, %v7135_v14  ;;  %3728 = vmatprep.mubr.f32.mxu1 %v3354_v33  ;;  %v3228_v55 = vadd.f32 1.0, %v4657_v16 }
 0x33d   : > { %v4659_v63 = vpop.eup %4658  ;;  %v2668_v58 = vpop.f32.mrf.mxu0  ;;  %3729 = vmatmul.mubr.f32.gmra.mxu1 %v3353_v24  ;;  %v3355_v51 = vmul.f32 %v3227_v11, %v2843_v27 }
 0x33e   : > { %4672 = verf.f32 %v2980_v44  ;;  %v2981_v2 = vmul.f32 0.70710677, %v7807_v57  ;;  %v7813_v10 = vadd.f32 %v2668_v58, %v7151_v60  ;;  %v3356_v12 = vmul.f32 %v3228_v55, %v2844_v62 }
 0x33f   : > { %v4661_v4 = vpop.eup %4660  ;;  %v2672_v56 = vpop.f32.mrf.mxu0  ;;  %v3229_v30 = vadd.f32 1.0, %v4659_v63  ;;  %v2848_v44 = vmul.f32 0.5, %v7783_v35  ;;  %v2847_v62 = vmul.f32 0.5, %v7777_v39  ;;  %v2849_v39 = vmul.f32 0.5, %v7787_v31 }
 0x340   : > { %4674 = verf.f32 %v2981_v2  ;;  %v2982_v37 = vmul.f32 0.70710677, %v7813_v10  ;;  %v7817_v49 = vadd.f32 %v2672_v56, %v7135_v14  ;;  %3734 = vmatprep.mubr.f32.mxu1 %v3356_v12  ;;  %v3230_v17 = vadd.f32 1.0, %v4661_v4 }
 0x341   : > { %v4663_v38 = vpop.eup %4662  ;;  %v2674_v3 = vpop.f32.mrf.mxu0  ;;  %3735 = vmatmul.mubr.f32.gmra.mxu1 %v3355_v51  ;;  %v3357_v43 = vmul.f32 %v3229_v30, %v2845_v34  ;;  %v2850_v51 = vmul.f32 0.5, %v7793_v32  ;;  %v863_v32 = vld [vmem:[#allocation5 + $0x3] ss:$4 sm:$0x3] }
 0x342   : > { %4676 = verf.f32 %v2982_v37  ;;  %v2983_v53 = vmul.f32 0.70710677, %v7817_v49  ;;  %v7823_v29 = vadd.f32 %v2674_v3, %v7151_v60  ;;  %v3358_v16 = vmul.f32 %v3230_v17, %v2846_v52 }
 0x343   : > { %v4665_v1 = vpop.eup %4664  ;;  %v2678_v0 = vpop.f32.mrf.mxu0  ;;  %v3231_v20 = vadd.f32 1.0, %v4663_v38 }
 0x344   : > { %4678 = verf.f32 %v2983_v53  ;;  %v2984_v33 = vmul.f32 0.70710677, %v7823_v29  ;;  %v7827_v59 = vadd.f32 %v2678_v0, %v7135_v14  ;;  %3740 = vmatprep.mubr.f32.mxu1 %v3358_v16  ;;  %v3232_v63 = vadd.f32 1.0, %v4665_v1 }
 0x345   : > { %v4667_v24 = vpop.eup %4666  ;;  %v2680_v11 = vpop.f32.mrf.mxu0  ;;  %3741 = vmatmul.mubr.f32.gmra.mxu1 %v3357_v43  ;;  %v3359_v30 = vmul.f32 %v3231_v20, %v2847_v62  ;;  %v2852_v20 = vmul.f32 0.5, %v7803_v26 }
 0x346   : > { %4680 = verf.f32 %v2984_v33  ;;  %v2985_v58 = vmul.f32 0.70710677, %v7827_v59  ;;  %v7833_v55 = vadd.f32 %v2680_v11, %v7151_v60  ;;  %v3360_v4 = vmul.f32 %v3232_v63, %v2848_v44 }
 0x347   : > { %v4669_v27 = vpop.eup %4668  ;;  %v2684_v2 = vpop.f32.mrf.mxu0  ;;  %v3233_v56 = vadd.f32 1.0, %v4667_v24  ;;  %v2851_v11 = vmul.f32 0.5, %v7797_v18 }
 0x348   : > { %4682 = verf.f32 %v2985_v58  ;;  %v2986_v12 = vmul.f32 0.70710677, %v7833_v55  ;;  %v7837_v35 = vadd.f32 %v2684_v2, %v7135_v14  ;;  %3746 = vmatprep.mubr.f32.mxu1 %v3360_v4  ;;  %v3234_v34 = vadd.f32 1.0, %v4669_v27 }
 0x349   : > { %v4671_v37 = vpop.eup %4670  ;;  %v2686_v38 = vpop.f32.mrf.mxu0  ;;  %3747 = vmatmul.mubr.f32.gmra.mxu1 %v3359_v30  ;;  %v3361_v0 = vmul.f32 %v3233_v56, %v2849_v39  ;;  %v7856_v4 = vrot.slane %v863_v32, %v9108_v21  ;;  %v2854_v39 = vmul.f32 0.5, %v7813_v10 }
 0x34a   : > { %4684 = verf.f32 %v2986_v12  ;;  %v2987_v52 = vmul.f32 0.70710677, %v7837_v35  ;;  %v7843_v3 = vadd.f32 %v2686_v38, %v7151_v60  ;;  %v3362_v1 = vmul.f32 %v3234_v34, %v2850_v51 }
 0x34b   : > { %v4673_v17 = vpop.eup %4672  ;;  %v2690_v53 = vpop.f32.mrf.mxu0  ;;  %v3235_v43 = vadd.f32 1.0, %v4671_v37  ;;  %v2853_v37 = vmul.f32 0.5, %v7807_v57  ;;  %v7865_v38 = vrot.slane %v863_v32, %v9112_v8 }
 0x34c   : > { %4686 = verf.f32 %v2987_v52  ;;  %v2988_v16 = vmul.f32 0.70710677, %v7843_v3  ;;  %v7847_v31 = vadd.f32 %v2690_v53, %v7135_v14  ;;  %3752 = vmatprep.mubr.f32.mxu1 %v3362_v1  ;;  %v3236_v44 = vadd.f32 1.0, %v4673_v17 }
 0x34d   : > { %v4675_v33 = vpop.eup %4674  ;;  %v2692_v24 = vpop.f32.mrf.mxu0  ;;  %3753 = vmatmul.mubr.f32.gmra.mxu1 %v3361_v0  ;;  %v3363_v18 = vmul.f32 %v3235_v43, %v2851_v11  ;;  %v2855_v1 = vmul.f32 0.5, %v7817_v49 }
 0x34e   : > { %4688 = verf.f32 %v2988_v16  ;;  %v2989_v63 = vmul.f32 0.70710677, %v7847_v31  ;;  %v7853_v62 = vadd.f32 %v2692_v24, %v7151_v60  ;;  %v3364_v2 = vmul.f32 %v3236_v44, %v2852_v20  ;;  %v9128_v44 = vld [vmem:[#allocation68_spill] sm:$0xff] }
 0x34f   : > { %v4677_v58 = vpop.eup %4676  ;;  %v2696_v27 = vpop.f32.mrf.mxu0  ;;  %v3237_v56 = vadd.f32 1.0, %v4675_v33  ;;  %v2856_v24 = vmul.f32 0.5, %v7823_v29  ;;  %v9129_v29 = vld [vmem:[#allocation69_spill] sm:$0xff] }
 0x350   : > { %4690 = verf.f32 %v2989_v63  ;;  %v2990_v26 = vmul.f32 0.70710677, %v7853_v62  ;;  %v7860_v12 = vadd.f32 %v2696_v27, %v7135_v14  ;;  %3758 = vmatprep.mubr.f32.mxu1 %v3364_v2  ;;  %v3238_v21 = vadd.f32 1.0, %v4677_v58  ;;  %v3472_v17 = vpop.f32.mrf.mxu1 }
 0x351   : > { %v4679_v30 = vpop.eup %4678  ;;  %v2698_v51 = vpop.f32.mrf.mxu0  ;;  %3759 = vmatmul.mubr.f32.gmra.mxu1 %v3363_v18  ;;  %v3473_v57 = vadd.f32 %v3472_v17, %v7856_v4  ;;  %v3365_v16 = vmul.f32 %v3237_v56, %v2853_v37  ;;  %v2857_v27 = vmul.f32 0.5, %v7827_v59 }
 0x352   : > { %4692 = verf.f32 %v2990_v26  ;;  %v2991_v34 = vmul.f32 0.70710677, %v7860_v12  ;;  %v7869_v52 = vadd.f32 %v2698_v51, %v7151_v60  ;;  %v3366_v0 = vmul.f32 %v3238_v21, %v2854_v39  ;;  %v3474_v43 = vpop.f32.mrf.mxu1 }
 0x353   : > { %v4681_v53 = vpop.eup %4680  ;;  %v2702_v10 = vpop.f32.mrf.mxu0  ;;  %v3239_v33 = vadd.f32 1.0, %v4679_v30  ;;  %v3855_v11 = vadd.f32 %v3473_v57, %v9128_v44  ;;  %v3475_v49 = vadd.f32 %v3474_v43, %v7865_v38 }
 0x354   : > { %4694 = verf.f32 %v2991_v34  ;;  %v2992_v8 = vmul.f32 0.70710677, %v7869_v52  ;;  %v7875_v32 = vadd.f32 %v2702_v10, %v7135_v14  ;;  %3764 = vmatprep.mubr.f32.mxu1 %v3366_v0  ;;  %v3240_v58 = vadd.f32 1.0, %v4681_v53  ;;  %v3478_v26 = vpop.f32.mrf.mxu1  ;;  %v9130_v0 = vld [vmem:[#allocation80_spill] sm:$0xff] }
 0x355   : > { %v4683_v20 = vpop.eup %4682  ;;  %v2704_v63 = vpop.f32.mrf.mxu0  ;;  %3765 = vmatmul.mubr.f32.gmra.mxu1 %v3365_v16  ;;  %3983 = vst [vmem:[%s7887_s26] sm:$0xff] %v3855_v11  ;;  %v3856_v30 = vadd.f32 %v3475_v49, %v9129_v29  ;;  %v3479_v37 = vadd.f32 %v3478_v26, %v7856_v4  ;;  %v3367_v53 = vmul.f32 %v3239_v33, %v2855_v1  ;;  %v2858_v10 = vmul.f32 0.5, %v7833_v55  ;;  %v9131_v55 = vld [vmem:[#allocation79_spill] sm:$0xff] }
 0x356   : > { %4696 = verf.f32 %v2992_v8  ;;  %v2993_v2 = vmul.f32 0.70710677, %v7875_v32  ;;  %v7883_v56 = vadd.f32 %v2704_v63, %v7151_v60  ;;  %v3368_v39 = vmul.f32 %v3240_v58, %v2856_v24  ;;  %v3480_v17 = vpop.f32.mrf.mxu1 }
 0x357   : > { %v4685_v18 = vpop.eup %4684  ;;  %v2708_v59 = vpop.f32.mrf.mxu0  ;;  %v3241_v51 = vadd.f32 1.0, %v4683_v20  ;;  %3984 = vst [vmem:[%s7887_s26 + $0x8] sm:$0xff] %v3856_v30  ;;  %v3857_v16 = vadd.f32 %v3479_v37, %v9130_v0  ;;  %v3481_v8 = vadd.f32 %v3480_v17, %v7865_v38  ;;  %v2862_v0 = vmul.f32 0.5, %v7853_v62  ;;  %v9133_v62 = vld [vmem:[#allocation85_spill] sm:$0xff] }
 0x358   : > { %4698 = verf.f32 %v2993_v2  ;;  %v2994_v21 = vmul.f32 0.70710677, %v7883_v56  ;;  %v7894_v34 = vadd.f32 %v2708_v59, %v7135_v14  ;;  %3770 = vmatprep.mubr.f32.mxu1 %v3368_v39  ;;  %v3242_v20 = vadd.f32 1.0, %v4685_v18  ;;  %v3484_v11 = vpop.f32.mrf.mxu1 }
 0x359   : > { %v4687_v57 = vpop.eup %4686  ;;  %v2710_v43 = vpop.f32.mrf.mxu0  ;;  %3771 = vmatmul.mubr.f32.gmra.mxu1 %v3367_v53  ;;  %3985 = vst [vmem:[%s7887_s26 + $0x10] sm:$0xff] %v3857_v16  ;;  %v3858_v33 = vadd.f32 %v3481_v8, %v9131_v55  ;;  %v3485_v49 = vadd.f32 %v3484_v11, %v7856_v4  ;;  %v3369_v2 = vmul.f32 %v3241_v51, %v2857_v27  ;;  %v2860_v59 = vmul.f32 0.5, %v7843_v3 }
 0x35a   : > { %4700 = verf.f32 %v2994_v21  ;;  %v2995_v24 = vmul.f32 0.70710677, %v7894_v34  ;;  %v7902_v44 = vadd.f32 %v2710_v43, %v7151_v60  ;;  %v3370_v58 = vmul.f32 %v3242_v20, %v2858_v10  ;;  %v3486_v29 = vpop.f32.mrf.mxu1 }
 0x35b   : > { %v4689_v1 = vpop.eup %4688  ;;  %v2714_v63 = vpop.f32.mrf.mxu0  ;;  %v3243_v30 = vadd.f32 1.0, %v4687_v57  ;;  %3986 = vst [vmem:[%s7887_s26 + $0x18] sm:$0xff] %v3858_v33  ;;  %v3859_v39 = vadd.f32 %v3485_v49, %v6447_v22  ;;  %v3487_v21 = vadd.f32 %v3486_v29, %v7865_v38  ;;  %v2859_v51 = vmul.f32 0.5, %v7837_v35  ;;  %v9132_v22 = vld [vmem:[#allocation72_spill] sm:$0xff] }
 0x35c   : > { %4702 = verf.f32 %v2995_v24  ;;  %v2996_v26 = vmul.f32 0.70710677, %v7902_v44  ;;  %v7909_v18 = vadd.f32 %v2714_v63, %v7135_v14  ;;  %3776 = vmatprep.mubr.f32.mxu1 %v3370_v58  ;;  %v3244_v27 = vadd.f32 1.0, %v4689_v1  ;;  %v3490_v57 = vpop.f32.mrf.mxu1 }
 0x35d   : > { %v4691_v37 = vpop.eup %4690  ;;  %v2716_v17 = vpop.f32.mrf.mxu0  ;;  %3777 = vmatmul.mubr.f32.gmra.mxu1 %v3369_v2  ;;  %3987 = vst [vmem:[%s7887_s26 + $0x20] sm:$0xff] %v3859_v39  ;;  %v3860_v16 = vadd.f32 %v3487_v21, %v9132_v22  ;;  %v3491_v8 = vadd.f32 %v3490_v57, %v7856_v4  ;;  %v3371_v1 = vmul.f32 %v3243_v30, %v2859_v51  ;;  %v2863_v39 = vmul.f32 0.5, %v7860_v12  ;;  %v9134_v21 = vld [vmem:[#allocation71_spill] sm:$0xff] }
 0x35e   : > { %4704 = verf.f32 %v2996_v26  ;;  %v2997_v53 = vmul.f32 0.70710677, %v7909_v18  ;;  %v7918_v10 = vadd.f32 %v2716_v17, %v7151_v60  ;;  %v3372_v20 = vmul.f32 %v3244_v27, %v2860_v59  ;;  %v3492_v11 = vpop.f32.mrf.mxu1  ;;  %v9135_v12 = vld [vmem:[#allocation75_spill] sm:$0xff] }
 0x35f   : > { %v4693_v3 = vpop.eup %4692  ;;  %v2720_v43 = vpop.f32.mrf.mxu0  ;;  %v3245_v55 = vadd.f32 1.0, %v4691_v37  ;;  %3988 = vst [vmem:[%s7887_s26 + $0x28] sm:$0xff] %v3860_v16  ;;  %v3861_v49 = vadd.f32 %v3491_v8, %v9133_v62  ;;  %v3493_v63 = vadd.f32 %v3492_v11, %v7865_v38  ;;  %v2861_v26 = vmul.f32 0.5, %v7847_v31 }
 0x360   : > { %v2998_v35 = vmul.f32 0.70710677, %v7918_v10  ;;  %v7926_v24 = vadd.f32 %v2720_v43, %v7135_v14  ;;  %4706 = verf.f32 %v2997_v53  ;;  %3782 = vmatprep.mubr.f32.mxu1 %v3372_v20  ;;  %v3246_v2 = vadd.f32 1.0, %v4693_v3 }
 0x361   : > { %v4695_v33 = vpop.eup %4694  ;;  %v2722_v58 = vpop.f32.mrf.mxu0  ;;  %3783 = vmatmul.mubr.f32.gmra.mxu1 %v3371_v1  ;;  %3989 = vst [vmem:[%s7887_s26 + $0x30] sm:$0xff] %v3861_v49  ;;  %v3862_v17 = vadd.f32 %v3493_v63, %v9134_v21  ;;  %v3373_v22 = vmul.f32 %v3245_v55, %v2861_v26  ;;  %v2864_v43 = vmul.f32 0.5, %v7869_v52  ;;  %v2866_v1 = vmul.f32 0.5, %v7883_v56  ;;  %v9136_v49 = vld [vmem:[#allocation76_spill] sm:$0xff] }
 0x362   : > { %4708 = verf.f32 %v2998_v35  ;;  %v2999_v29 = vmul.f32 0.70710677, %v7926_v24  ;;  %v7934_v59 = vadd.f32 %v2722_v58, %v7151_v60  ;;  %v3496_v30 = vpop.f32.mrf.mxu1  ;;  %v3374_v53 = vmul.f32 %v3246_v2, %v2862_v0 }
 0x363   : > { %v4697_v37 = vpop.eup %4696  ;;  %v3497_v27 = vadd.f32 %v3496_v30, %v7856_v4  ;;  %v2726_v51 = vpop.f32.mrf.mxu0  ;;  %v3247_v16 = vadd.f32 1.0, %v4695_v33  ;;  %3990 = vst [vmem:[%s7887_s26 + $0x38] sm:$0xff] %v3862_v17 }
 0x364   : > { %v3000_v31 = vmul.f32 0.70710677, %v7934_v59  ;;  %v7942_v57 = vadd.f32 %v2726_v51, %v7135_v14  ;;  %v3498_v3 = vpop.f32.mrf.mxu1  ;;  %3788 = vmatprep.mubr.f32.mxu1 %v3374_v53  ;;  %v3248_v0 = vadd.f32 1.0, %v4697_v37  ;;  %4710 = verf.f32 %v2999_v29 }
 0x365   : > { %v4699_v8 = vpop.eup %4698  ;;  %v3863_v20 = vadd.f32 %v3497_v27, %v9135_v12  ;;  %v3499_v35 = vadd.f32 %v3498_v3, %v7865_v38  ;;  %v2728_v11 = vpop.f32.mrf.mxu0  ;;  %3789 = vmatmul.mubr.f32.gmra.mxu1 %v3373_v22  ;;  %v3375_v37 = vmul.f32 %v3247_v16, %v2863_v39  ;;  %v9137_v27 = vld [vmem:[#allocation78_spill] sm:$0xff]  ;;  %v2865_v22 = vmul.f32 0.5, %v7875_v32  ;;  %v9138_v16 = vld [vmem:[#allocation88_spill] sm:$0xff] }
 0x366   : > { %v3001_v62 = vmul.f32 0.70710677, %v7942_v57  ;;  %v7951_v55 = vadd.f32 %v2728_v11, %v7151_v60  ;;  %v3502_v33 = vpop.f32.mrf.mxu1  ;;  %4712 = verf.f32 %v3000_v31  ;;  %v3376_v26 = vmul.f32 %v3248_v0, %v2864_v43 }
 0x367   : > { %v4701_v52 = vpop.eup %4700  ;;  %3991 = vst [vmem:[%s7887_s26 + $0x40] sm:$0xff] %v3863_v20  ;;  %v3864_v63 = vadd.f32 %v3499_v35, %v9136_v49  ;;  %v3503_v58 = vadd.f32 %v3502_v33, %v7856_v4  ;;  %v2732_v2 = vpop.f32.mrf.mxu0  ;;  %v3249_v21 = vadd.f32 1.0, %v4699_v8 }
 0x368   : > { %v3002_v56 = vmul.f32 0.70710677, %v7951_v55  ;;  %v7958_v29 = vadd.f32 %v2732_v2, %v7135_v14  ;;  %v3504_v30 = vpop.f32.mrf.mxu1  ;;  %4714 = verf.f32 %v3001_v62  ;;  %3794 = vmatprep.mubr.f32.mxu1 %v3376_v26  ;;  %v3250_v3 = vadd.f32 1.0, %v4701_v52 }
 0x369   : > { %v4703_v17 = vpop.eup %4702  ;;  %3992 = vst [vmem:[%s7887_s26 + $0x48] sm:$0xff] %v3864_v63  ;;  %v3865_v51 = vadd.f32 %v3503_v58, %v9137_v27  ;;  %v3505_v53 = vadd.f32 %v3504_v30, %v7865_v38  ;;  %v2734_v31 = vpop.f32.mrf.mxu0  ;;  %3795 = vmatmul.mubr.f32.gmra.mxu1 %v3375_v37  ;;  %v3377_v52 = vmul.f32 %v3249_v21, %v2865_v22  ;;  %v2868_v63 = vmul.f32 0.5, %v7902_v44 }
 0x36a   : > { %4716 = verf.f32 %v3002_v56  ;;  %v3003_v43 = vmul.f32 0.70710677, %v7958_v29  ;;  %v3508_v12 = vpop.f32.mrf.mxu1  ;;  %v7968_v20 = vadd.f32 %v2734_v31, %v7151_v60  ;;  %v3378_v0 = vmul.f32 %v3250_v3, %v2866_v1 }
 0x36b   : > { %v4705_v39 = vpop.eup %4704  ;;  %3993 = vst [vmem:[%s7887_s26 + $0x50] sm:$0xff] %v3865_v51  ;;  %v3866_v8 = vadd.f32 %v3505_v53, %v9138_v16  ;;  %v3509_v35 = vadd.f32 %v3508_v12, %v7856_v4  ;;  %v2738_v11 = vpop.f32.mrf.mxu0  ;;  %v3251_v62 = vadd.f32 1.0, %v4703_v17  ;;  %v2867_v30 = vmul.f32 0.5, %v7894_v34 }
 0x36c   : > { %v7972_v32 = vadd.f32 %v2738_v11, %v7135_v14  ;;  %v3510_v33 = vpop.f32.mrf.mxu1  ;;  %v3252_v49 = vadd.f32 1.0, %v4705_v39  ;;  %v3004_v58 = vmul.f32 0.70710677, %v7968_v20  ;;  %3800 = vmatprep.mubr.f32.mxu1 %v3378_v0  ;;  %4718 = verf.f32 %v3003_v43 }
 0x36d   : > { %3994 = vst [vmem:[%s7887_s26 + $0x58] sm:$0xff] %v3866_v8  ;;  %v3867_v2 = vadd.f32 %v3509_v35, %v6555_v19  ;;  %v3511_v26 = vadd.f32 %v3510_v33, %v7865_v38  ;;  %v2740_v56 = vpop.f32.mrf.mxu0  ;;  %v4707_v1 = vpop.eup %4706  ;;  %3801 = vmatmul.mubr.f32.gmra.mxu1 %v3377_v52  ;;  %v3379_v31 = vmul.f32 %v3251_v62, %v2867_v30  ;;  %v2870_v8 = vmul.f32 0.5, %v7918_v10  ;;  %v9139_v62 = vld [vmem:[#allocation77_spill] sm:$0xff] }
 0x36e   : > { %v3005_v37 = vmul.f32 0.70710677, %v7972_v32  ;;  %v7982_v21 = vadd.f32 %v2740_v56, %v7151_v60  ;;  %v3514_v44 = vpop.f32.mrf.mxu1  ;;  %4720 = verf.f32 %v3004_v58  ;;  %v3380_v53 = vmul.f32 %v3252_v49, %v2868_v63  ;;  %v9140_v56 = vld [vmem:[#allocation81_spill] sm:$0xff] }
 0x36f   : > { %v4709_v17 = vpop.eup %4708  ;;  %3995 = vst [vmem:[%s7887_s26 + $0x60] sm:$0xff] %v3867_v2  ;;  %v3868_v19 = vadd.f32 %v3511_v26, %v6552_v50  ;;  %v3515_v27 = vadd.f32 %v3514_v44, %v7856_v4  ;;  %v2744_v51 = vpop.f32.mrf.mxu0  ;;  %v3253_v16 = vadd.f32 1.0, %v4707_v1  ;;  %v2869_v10 = vmul.f32 0.5, %v7909_v18 }
 0x370   : > { %v3006_v34 = vmul.f32 0.70710677, %v7982_v21  ;;  %v3516_v3 = vpop.f32.mrf.mxu1  ;;  %v7991_v43 = vadd.f32 %v2744_v51, %v7135_v14  ;;  %3806 = vmatprep.mubr.f32.mxu1 %v3380_v53  ;;  %v3254_v50 = vadd.f32 1.0, %v4709_v17 }
 0x371   : > { %3996 = vst [vmem:[%s7887_s26 + $0x68] sm:$0xff] %v3868_v19  ;;  %v3869_v22 = vadd.f32 %v3515_v27, %v6581_v54  ;;  %v3517_v12 = vadd.f32 %v3516_v3, %v7865_v38  ;;  %v2746_v39 = vpop.f32.mrf.mxu0  ;;  %3807 = vmatmul.mubr.f32.gmra.mxu1 %v3379_v31  ;;  %v4711_v0 = vpop.eup %4710  ;;  %v3381_v19 = vmul.f32 %v3253_v16, %v2869_v10 }
 0x372   : > { %4722 = verf.f32 %v3006_v34  ;;  %v7996_v35 = vadd.f32 %v2746_v39, %v7151_v60  ;;  %v3520_v11 = vpop.f32.mrf.mxu1  ;;  %v3007_v54 = vmul.f32 0.70710677, %v7991_v43  ;;  %v3255_v27 = vadd.f32 1.0, %v4711_v0  ;;  %v9142_v0 = vld [vmem:[#allocation83_spill] sm:$0xff] }
 0x373   : > { %4724 = verf.f32 %v3005_v37  ;;  %3997 = vst [vmem:[%s7887_s26 + $0x70] sm:$0xff] %v3869_v22  ;;  %v3870_v33 = vadd.f32 %v3517_v12, %v9139_v62  ;;  %v3521_v52 = vadd.f32 %v3520_v11, %v7856_v4  ;;  %v2750_v49 = vpop.f32.mrf.mxu0  ;;  %v4713_v63 = vpop.eup %4712  ;;  %v3382_v37 = vmul.f32 %v3254_v50, %v2870_v8 }
 0x374   : > { %v3008_v58 = vmul.f32 0.70710677, %v7996_v35  ;;  %v8005_v2 = vadd.f32 %v2750_v49, %v7135_v14  ;;  %v3522_v26 = vpop.f32.mrf.mxu1  ;;  %4726 = verf.f32 %v3007_v54  ;;  %v9141_v14 = vld [vmem:[#allocation82_spill] sm:$0xff]  ;;  %v3256_v22 = vadd.f32 1.0, %v4713_v63  ;;  %v9143_v63 = vld [vmem:[#allocation84_spill] sm:$0xff] }
 0x375   : > { %3998 = vst [vmem:[%s7887_s26 + $0x78] sm:$0xff] %v3870_v33  ;;  %v3871_v1 = vadd.f32 %v3521_v52, %v9140_v56  ;;  %v3523_v30 = vadd.f32 %v3522_v26, %v7865_v38  ;;  %v2752_v44 = vpop.f32.mrf.mxu0  ;;  %v4715_v17 = vpop.eup %4714  ;;  %3812 = vmatprep.mubr.f32.mxu1 %v3382_v37  ;;  %v2872_v12 = vmul.f32 0.5, %v7934_v59  ;;  %v2874_v39 = vmul.f32 0.5, %v7951_v55 }
 0x376   : > { %4728 = verf.f32 %v3008_v58  ;;  %v3009_v18 = vmul.f32 0.70710677, %v8005_v2  ;;  %v3526_v51 = vpop.f32.mrf.mxu1  ;;  %v8014_v34 = vadd.f32 %v2752_v44, %v7151_v60  ;;  %3813 = vmatmul.mubr.f32.gmra.mxu1 %v3381_v19  ;;  %v2871_v8 = vmul.f32 0.5, %v7926_v24 }
 0x377   : > { %v4717_v53 = vpop.eup %4716  ;;  %3999 = vst [vmem:[%s7887_s26 + $0x80] sm:$0xff] %v3871_v1  ;;  %v3872_v31 = vadd.f32 %v3523_v30, %v9141_v14  ;;  %v3527_v3 = vadd.f32 %v3526_v51, %v7856_v4  ;;  %v3257_v62 = vadd.f32 1.0, %v4715_v17  ;;  %v3384_v33 = vmul.f32 %v3256_v22, %v2872_v12  ;;  %v9144_v51 = vld [vmem:[#allocation87_spill] sm:$0xff] }
 0x378   : > { %v3528_v50 = vpop.f32.mrf.mxu1  ;;  %v3258_v16 = vadd.f32 1.0, %v4717_v53  ;;  %v3010_v11 = vmul.f32 0.70710677, %v8014_v34  ;;  %4730 = verf.f32 %v3009_v18  ;;  %v3383_v49 = vmul.f32 %v3255_v27, %v2871_v8 }
 0x379   : > { %4000 = vst [vmem:[%s7887_s26 + $0x88] sm:$0xff] %v3872_v31  ;;  %v3873_v54 = vadd.f32 %v3527_v3, %v9142_v0  ;;  %v3529_v60 = vadd.f32 %v3528_v50, %v7865_v38  ;;  %v4719_v55 = vpop.eup %4718  ;;  %v2873_v26 = vmul.f32 0.5, %v7942_v57  ;;  %3818 = vmatprep.mubr.f32.mxu1 %v3384_v33  ;;  %v2876_v1 = vmul.f32 0.5, %v7968_v20 }
 0x37a   : > { %v3532_v59 = vpop.f32.mrf.mxu1  ;;  %v3386_v52 = vmul.f32 %v3258_v16, %v2874_v39  ;;  %4732 = verf.f32 %v3010_v11  ;;  %3819 = vmatmul.mubr.f32.gmra.mxu1 %v3383_v49  ;;  %v3259_v18 = vadd.f32 1.0, %v4719_v55  ;;  %v2875_v22 = vmul.f32 0.5, %v7958_v29 }
 0x37b   : > { %4001 = vst [vmem:[%s7887_s26 + $0x90] sm:$0xff] %v3873_v54  ;;  %v3874_v10 = vadd.f32 %v3529_v60, %v9143_v63  ;;  %v3533_v24 = vadd.f32 %v3532_v59, %v7856_v4  ;;  %v4721_v58 = vpop.eup %4720  ;;  %v3385_v17 = vmul.f32 %v3257_v62, %v2873_v26  ;;  %v2880_v62 = vmul.f32 0.5, %v7996_v35 }
 0x37c   : > { %v3534_v56 = vpop.f32.mrf.mxu1  ;;  %v3260_v44 = vadd.f32 1.0, %v4721_v58  ;;  %3824 = vmatprep.mubr.f32.mxu1 %v3386_v52  ;;  %v3387_v0 = vmul.f32 %v3259_v18, %v2875_v22  ;;  %v2877_v59 = vmul.f32 0.5, %v7972_v32  ;;  %v9146_v52 = vld [vmem:[#allocation89_spill] sm:$0xff] }
 0x37d   : > { %4002 = vst [vmem:[%s7887_s26 + $0x98] sm:$0xff] %v3874_v10  ;;  %v3875_v30 = vadd.f32 %v3533_v24, %v6648_v61  ;;  %v3535_v37 = vadd.f32 %v3534_v56, %v7865_v38  ;;  %v2878_v61 = vmul.f32 0.5, %v7982_v21  ;;  %v9145_v21 = vld [vmem:[#allocation86_spill] sm:$0xff] }
 0x37e   : > { %v3538_v19 = vpop.f32.mrf.mxu1  ;;  %v3388_v14 = vmul.f32 %v3260_v44, %v2876_v1  ;;  %3825 = vmatmul.mubr.f32.gmra.mxu1 %v3385_v17  ;;  %v9147_v56 = vld [vmem:[#allocation90_spill] sm:$0xff]  ;;  %v2882_v44 = vmul.f32 0.5, %v8014_v34  ;;  %v9148_v17 = vld [vmem:[#allocation91_spill] sm:$0xff] }
 0x37f   : > { %v4723_v27 = vpop.eup %4722  ;;  %4003 = vst [vmem:[%s7887_s26 + $0xa0] sm:$0xff] %v3875_v30  ;;  %v3876_v57 = vadd.f32 %v3535_v37, %v9144_v51  ;;  %v3539_v53 = vadd.f32 %v3538_v19, %v7856_v4  ;;  %v2879_v30 = vmul.f32 0.5, %v7991_v43 }
 0x380   : > { %v4725_v20 = vpop.eup %4724  ;;  %v3540_v31 = vpop.f32.mrf.mxu1  ;;  %v3262_v3 = vadd.f32 1.0, %v4723_v27  ;;  %3830 = vmatprep.mubr.f32.mxu1 %v3388_v14  ;;  %v9149_v14 = vld [vmem:[#allocation92_spill] sm:$0xff] }
 0x381   : > { %4004 = vst [vmem:[%s7887_s26 + $0xa8] sm:$0xff] %v3876_v57  ;;  %v3877_v12 = vadd.f32 %v3539_v53, %v6676_v47  ;;  %v3541_v39 = vadd.f32 %v3540_v31, %v7865_v38  ;;  %v4727_v50 = vpop.eup %4726  ;;  %v3261_v54 = vadd.f32 1.0, %v4725_v20  ;;  %v2881_v31 = vmul.f32 0.5, %v8005_v2  ;;  %v9152_v2 = vld [vmem:[#allocation95_spill] sm:$0xff] }
 0x382   : > { %v3544_v16 = vpop.f32.mrf.mxu1  ;;  %v3390_v8 = vmul.f32 %v3262_v3, %v2878_v61  ;;  %3831 = vmatmul.mubr.f32.gmra.mxu1 %v3387_v0  ;;  %v3263_v63 = vadd.f32 1.0, %v4727_v50  ;;  %v9150_v3 = vld [vmem:[#allocation93_spill] sm:$0xff] }
 0x383   : > { %v4729_v11 = vpop.eup %4728  ;;  %4005 = vst [vmem:[%s7887_s26 + $0xb0] sm:$0xff] %v3877_v12  ;;  %v3878_v60 = vadd.f32 %v3541_v39, %v9145_v21  ;;  %v3545_v29 = vadd.f32 %v3544_v16, %v7856_v4  ;;  %v3389_v26 = vmul.f32 %v3261_v54, %v2877_v59  ;;  %v9151_v16 = vld [vmem:[#allocation94_spill] sm:$0xff]  ;;  %v9154_v59 = vld [vmem:[#allocation99_spill] sm:$0xff] }
 0x384   : > { %v3546_v47 = vpop.f32.mrf.mxu1  ;;  %v3264_v33 = vadd.f32 1.0, %v4729_v11  ;;  %3836 = vmatprep.mubr.f32.mxu1 %v3390_v8  ;;  %v3391_v51 = vmul.f32 %v3263_v63, %v2879_v30  ;;  %v9155_v63 = vld [vmem:[#allocation97_spill] sm:$0xff] }
 0x385   : > { %4006 = vst [vmem:[%s7887_s26 + $0xb8] sm:$0xff] %v3878_v60  ;;  %v3879_v55 = vadd.f32 %v3545_v29, %v9146_v52  ;;  %v3547_v49 = vadd.f32 %v3546_v47, %v7865_v38  ;;  %v4731_v58 = vpop.eup %4730  ;;  %v9153_v29 = vld [vmem:[#allocation96_spill] sm:$0xff] }
 0x386   : > { %v3550_v10 = vpop.f32.mrf.mxu1  ;;  %v3392_v24 = vmul.f32 %v3264_v33, %v2880_v62  ;;  %3837 = vmatmul.mubr.f32.gmra.mxu1 %v3389_v26  ;;  %v3265_v53 = vadd.f32 1.0, %v4731_v58  ;;  %v9156_v26 = vld [vmem:[#allocation101_spill] sm:$0xff] }
 0x387   : > { %4007 = vst [vmem:[%s7887_s26 + $0xc0] sm:$0xff] %v3879_v55  ;;  %v3880_v35 = vadd.f32 %v3547_v49, %v9147_v56  ;;  %v3551_v1 = vadd.f32 %v3550_v10, %v7856_v4  ;;  %v4733_v32 = vpop.eup %4732 }
 0x388   : > { %v3552_v37 = vpop.f32.mrf.mxu1  ;;  %v3266_v18 = vadd.f32 1.0, %v4733_v32  ;;  %3842 = vmatprep.mubr.f32.mxu1 %v3392_v24  ;;  %v3393_v50 = vmul.f32 %v3265_v53, %v2881_v31  ;;  %v9157_v32 = vld [vmem:[#allocation98_spill] sm:$0xff] }
 0x389   : > { %4008 = vst [vmem:[%s7887_s26 + $0xc8] sm:$0xff] %v3880_v35  ;;  %v3881_v19 = vadd.f32 %v3551_v1, %v9148_v17  ;;  %v3553_v27 = vadd.f32 %v3552_v37, %v7865_v38  ;;  %v9158_v17 = vld [vmem:[#allocation103_spill] sm:$0xff]  ;;  %v9161_v31 = vld [vmem:[#allocation102_spill] sm:$0xff] }
 0x38a   : > { %v3556_v57 = vpop.f32.mrf.mxu1  ;;  %v3394_v34 = vmul.f32 %v3266_v18, %v2882_v44  ;;  %3843 = vmatmul.mubr.f32.gmra.mxu1 %v3391_v51  ;;  %v9159_v51 = vld [vmem:[#allocation100_spill] sm:$0xff] }
 0x38b   : > { %4009 = vst [vmem:[%s7887_s26 + $0xd0] sm:$0xff] %v3881_v19  ;;  %v3882_v20 = vadd.f32 %v3553_v27, %v9149_v14  ;;  %v3557_v43 = vadd.f32 %v3556_v57, %v7856_v4 }
 0x38c   : > { %v3558_v61 = vpop.f32.mrf.mxu1  ;;  %3848 = vmatprep.mubr.f32.mxu1 %v3394_v34 }
 0x38d   : > { %4010 = vst [vmem:[%s7887_s26 + $0xd8] sm:$0xff] %v3882_v20  ;;  %v3883_v22 = vadd.f32 %v3557_v43, %v9150_v3  ;;  %v3559_v12 = vadd.f32 %v3558_v61, %v7865_v38  ;;  %v9160_v20 = vld [vmem:[#allocation105_spill] sm:$0xff] }
 0x38e   : > { %v3562_v39 = vpop.f32.mrf.mxu1  ;;  %3849 = vmatmul.mubr.f32.gmra.mxu1 %v3393_v50 }
 0x38f   : > { %4011 = vst [vmem:[%s7887_s26 + $0xe0] sm:$0xff] %v3883_v22  ;;  %v3884_v8 = vadd.f32 %v3559_v12, %v9151_v16  ;;  %v3563_v11 = vadd.f32 %v3562_v39, %v7856_v4  ;;  %v9162_v39 = vld [vmem:[#allocation107_spill] sm:$0xff] }
 0x390   : > { %v3564_v0 = vpop.f32.mrf.mxu1 }
 0x391   : > { %4012 = vst [vmem:[%s7887_s26 + $0xe8] sm:$0xff] %v3884_v8  ;;  %v3885_v54 = vadd.f32 %v3563_v11, %v9152_v2  ;;  %v3565_v21 = vadd.f32 %v3564_v0, %v7865_v38  ;;  %v9163_v11 = vld [vmem:[#allocation104_spill] sm:$0xff] }
 0x392   : > { %v3568_v60 = vpop.f32.mrf.mxu1 }
 0x393   : > { %4013 = vst [vmem:[%s7887_s26 + $0xf0] sm:$0xff] %v3885_v54  ;;  %v3886_v62 = vadd.f32 %v3565_v21, %v9153_v29  ;;  %v3569_v47 = vadd.f32 %v3568_v60, %v7856_v4  ;;  %v9164_v21 = vld [vmem:[#allocation109_spill] sm:$0xff] }
 0x394   : > { %v3570_v33 = vpop.f32.mrf.mxu1 }
 0x395   : > { %4014 = vst [vmem:[%s7887_s26 + $0xf8] sm:$0xff] %v3886_v62  ;;  %v3887_v52 = vadd.f32 %v3569_v47, %v9154_v59  ;;  %v3571_v55 = vadd.f32 %v3570_v33, %v7865_v38  ;;  %v9165_v47 = vld [vmem:[#allocation106_spill] sm:$0xff] }
 0x396   : > { %v3574_v49 = vpop.f32.mrf.mxu1 }
 0x397   : > { %4015 = vst [vmem:[%s7887_s26 + $0x100] sm:$0xff] %v3887_v52  ;;  %v3888_v10 = vadd.f32 %v3571_v55, %v9155_v63  ;;  %v3575_v24 = vadd.f32 %v3574_v49, %v7856_v4  ;;  %v9166_v55 = vld [vmem:[#allocation111_spill] sm:$0xff] }
 0x398   : > { %v3576_v58 = vpop.f32.mrf.mxu1 }
 0x399   : > { %4016 = vst [vmem:[%s7887_s26 + $0x108] sm:$0xff] %v3888_v10  ;;  %v3889_v56 = vadd.f32 %v3575_v24, %v9156_v26  ;;  %v3577_v35 = vadd.f32 %v3576_v58, %v7865_v38  ;;  %v9167_v24 = vld [vmem:[#allocation108_spill] sm:$0xff] }
 0x39a   : > { %v3580_v1 = vpop.f32.mrf.mxu1 }
 0x39b   : > { %4017 = vst [vmem:[%s7887_s26 + $0x110] sm:$0xff] %v3889_v56  ;;  %v3890_v30 = vadd.f32 %v3577_v35, %v9157_v32  ;;  %v3581_v37 = vadd.f32 %v3580_v1, %v7856_v4  ;;  %v9168_v35 = vld [vmem:[#allocation15_spill] sm:$0xff] }
 0x39c   : > { %v3582_v44 = vpop.f32.mrf.mxu1 }
 0x39d   : > { %4018 = vst [vmem:[%s7887_s26 + $0x118] sm:$0xff] %v3890_v30  ;;  %v3891_v19 = vadd.f32 %v3581_v37, %v9158_v17  ;;  %v3583_v27 = vadd.f32 %v3582_v44, %v7865_v38  ;;  %v9169_v37 = vld [vmem:[#allocation110_spill] sm:$0xff] }
 0x39e   : > { %v3586_v18 = vpop.f32.mrf.mxu1 }
 0x39f   : > { %4019 = vst [vmem:[%s7887_s26 + $0x120] sm:$0xff] %v3891_v19  ;;  %v3892_v57 = vadd.f32 %v3583_v27, %v9159_v51  ;;  %v3587_v53 = vadd.f32 %v3586_v18, %v7856_v4  ;;  %v9170_v27 = vld [vmem:[#allocation17_spill] sm:$0xff] }
 0x3a0   : > { %v3588_v14 = vpop.f32.mrf.mxu1 }
 0x3a1   : > { %4020 = vst [vmem:[%s7887_s26 + $0x128] sm:$0xff] %v3892_v57  ;;  %v3893_v43 = vadd.f32 %v3587_v53, %v9160_v20  ;;  %v3589_v34 = vadd.f32 %v3588_v14, %v7865_v38  ;;  %v9171_v53 = vld [vmem:[#allocation112_spill] sm:$0xff] }
 0x3a2   : > { %v3592_v61 = vpop.f32.mrf.mxu1 }
 0x3a3   : > { %4021 = vst [vmem:[%s7887_s26 + $0x130] sm:$0xff] %v3893_v43  ;;  %v3894_v3 = vadd.f32 %v3589_v34, %v9161_v31  ;;  %v3593_v22 = vadd.f32 %v3592_v61, %v7856_v4  ;;  %v9172_v34 = vld [vmem:[#allocation19_spill] sm:$0xff] }
 0x3a4   : > { %v3594_v12 = vpop.f32.mrf.mxu1 }
 0x3a5   : > { %4022 = vst [vmem:[%s7887_s26 + $0x138] sm:$0xff] %v3894_v3  ;;  %v3895_v50 = vadd.f32 %v3593_v22, %v9162_v39  ;;  %v3595_v16 = vadd.f32 %v3594_v12, %v7865_v38  ;;  %v9173_v22 = vld [vmem:[#allocation16_spill] sm:$0xff] }
 0x3a6   : > { %v3598_v8 = vpop.f32.mrf.mxu1 }
 0x3a7   : > { %4023 = vst [vmem:[%s7887_s26 + $0x140] sm:$0xff] %v3895_v50  ;;  %v3896_v0 = vadd.f32 %v3595_v16, %v9163_v11  ;;  %v3599_v2 = vadd.f32 %v3598_v8, %v7856_v4  ;;  %v9174_v16 = vld [vmem:[#allocation21_spill] sm:$0xff] }
 0x3a8   : > { %v3600_v54 = vpop.f32.mrf.mxu1 }
 0x3a9   : > { %4024 = vst [vmem:[%s7887_s26 + $0x148] sm:$0xff] %v3896_v0  ;;  %v3897_v60 = vadd.f32 %v3599_v2, %v9164_v21  ;;  %v3601_v29 = vadd.f32 %v3600_v54, %v7865_v38  ;;  %v9175_v2 = vld [vmem:[#allocation18_spill] sm:$0xff] }
 0x3aa   : > { %v3604_v62 = vpop.f32.mrf.mxu1 }
 0x3ab   : > { %4025 = vst [vmem:[%s7887_s26 + $0x150] sm:$0xff] %v3897_v60  ;;  %v3898_v33 = vadd.f32 %v3601_v29, %v9165_v47  ;;  %v3605_v59 = vadd.f32 %v3604_v62, %v7856_v4  ;;  %v9176_v29 = vld [vmem:[#allocation23_spill] sm:$0xff] }
 0x3ac   : > { %v3606_v52 = vpop.f32.mrf.mxu1 }
 0x3ad   : > { %4026 = vst [vmem:[%s7887_s26 + $0x158] sm:$0xff] %v3898_v33  ;;  %v3899_v49 = vadd.f32 %v3605_v59, %v9166_v55  ;;  %v3607_v63 = vadd.f32 %v3606_v52, %v7865_v38  ;;  %v9177_v59 = vld [vmem:[#allocation20_spill] sm:$0xff] }
 0x3ae   : > { %v3610_v10 = vpop.f32.mrf.mxu1 }
 0x3af   : > { %4027 = vst [vmem:[%s7887_s26 + $0x160] sm:$0xff] %v3899_v49  ;;  %v3900_v58 = vadd.f32 %v3607_v63, %v9167_v24  ;;  %v3611_v26 = vadd.f32 %v3610_v10, %v7856_v4  ;;  %v9178_v63 = vld [vmem:[#allocation25_spill] sm:$0xff] }
 0x3b0   : > { %v3612_v56 = vpop.f32.mrf.mxu1 }
 0x3b1   : > { %4028 = vst [vmem:[%s7887_s26 + $0x168] sm:$0xff] %v3900_v58  ;;  %v3901_v1 = vadd.f32 %v3611_v26, %v9168_v35  ;;  %v3613_v32 = vadd.f32 %v3612_v56, %v7865_v38  ;;  %v9179_v26 = vld [vmem:[#allocation22_spill] sm:$0xff] }
 0x3b2   : > { %v3616_v30 = vpop.f32.mrf.mxu1 }
 0x3b3   : > { %4029 = vst [vmem:[%s7887_s26 + $0x170] sm:$0xff] %v3901_v1  ;;  %v3902_v44 = vadd.f32 %v3613_v32, %v9169_v37  ;;  %v3617_v17 = vadd.f32 %v3616_v30, %v7856_v4  ;;  %v9180_v32 = vld [vmem:[#allocation27_spill] sm:$0xff] }
 0x3b4   : > { %v3618_v19 = vpop.f32.mrf.mxu1 }
 0x3b5   : > { %4030 = vst [vmem:[%s7887_s26 + $0x178] sm:$0xff] %v3902_v44  ;;  %v3903_v18 = vadd.f32 %v3617_v17, %v9170_v27  ;;  %v3619_v51 = vadd.f32 %v3618_v19, %v7865_v38  ;;  %v9181_v17 = vld [vmem:[#allocation24_spill] sm:$0xff] }
 0x3b6   : > { %v3622_v57 = vpop.f32.mrf.mxu1 }
 0x3b7   : > { %4031 = vst [vmem:[%s7887_s26 + $0x180] sm:$0xff] %v3903_v18  ;;  %v3904_v14 = vadd.f32 %v3619_v51, %v9171_v53  ;;  %v3623_v20 = vadd.f32 %v3622_v57, %v7856_v4  ;;  %v9182_v51 = vld [vmem:[#allocation29_spill] sm:$0xff] }
 0x3b8   : > { %v3624_v43 = vpop.f32.mrf.mxu1 }
 0x3b9   : > { %4032 = vst [vmem:[%s7887_s26 + $0x188] sm:$0xff] %v3904_v14  ;;  %v3905_v61 = vadd.f32 %v3623_v20, %v9172_v34  ;;  %v3625_v31 = vadd.f32 %v3624_v43, %v7865_v38  ;;  %v9183_v20 = vld [vmem:[#allocation26_spill] sm:$0xff] }
 0x3ba   : > { %v3628_v3 = vpop.f32.mrf.mxu1 }
 0x3bb   : > { %4033 = vst [vmem:[%s7887_s26 + $0x190] sm:$0xff] %v3905_v61  ;;  %v3906_v12 = vadd.f32 %v3625_v31, %v9173_v22  ;;  %v3629_v39 = vadd.f32 %v3628_v3, %v7856_v4  ;;  %v9184_v31 = vld [vmem:[#allocation31_spill] sm:$0xff] }
 0x3bc   : > { %v3630_v50 = vpop.f32.mrf.mxu1 }
 0x3bd   : > { %4034 = vst [vmem:[%s7887_s26 + $0x198] sm:$0xff] %v3906_v12  ;;  %v3907_v8 = vadd.f32 %v3629_v39, %v9174_v16  ;;  %v3631_v11 = vadd.f32 %v3630_v50, %v7865_v38  ;;  %v9185_v39 = vld [vmem:[#allocation28_spill] sm:$0xff] }
 0x3be   : > { %v3634_v0 = vpop.f32.mrf.mxu1 }
 0x3bf   : > { %4035 = vst [vmem:[%s7887_s26 + $0x1a0] sm:$0xff] %v3907_v8  ;;  %v3908_v54 = vadd.f32 %v3631_v11, %v9175_v2  ;;  %v3635_v21 = vadd.f32 %v3634_v0, %v7856_v4  ;;  %v9186_v11 = vld [vmem:[#allocation33_spill] sm:$0xff] }
 0x3c0   : > { %v3636_v60 = vpop.f32.mrf.mxu1 }
 0x3c1   : > { %4036 = vst [vmem:[%s7887_s26 + $0x1a8] sm:$0xff] %v3908_v54  ;;  %v3909_v62 = vadd.f32 %v3635_v21, %v9176_v29  ;;  %v3637_v47 = vadd.f32 %v3636_v60, %v7865_v38  ;;  %v9187_v21 = vld [vmem:[#allocation30_spill] sm:$0xff] }
 0x3c2   : > { %v3640_v33 = vpop.f32.mrf.mxu1 }
 0x3c3   : > { %4037 = vst [vmem:[%s7887_s26 + $0x1b0] sm:$0xff] %v3909_v62  ;;  %v3910_v52 = vadd.f32 %v3637_v47, %v9177_v59  ;;  %v3641_v55 = vadd.f32 %v3640_v33, %v7856_v4  ;;  %v9188_v47 = vld [vmem:[#allocation35_spill] sm:$0xff] }
 0x3c4   : > { %v3642_v49 = vpop.f32.mrf.mxu1 }
 0x3c5   : > { %4038 = vst [vmem:[%s7887_s26 + $0x1b8] sm:$0xff] %v3910_v52  ;;  %v3911_v10 = vadd.f32 %v3641_v55, %v9178_v63  ;;  %v3643_v24 = vadd.f32 %v3642_v49, %v7865_v38  ;;  %v9189_v55 = vld [vmem:[#allocation32_spill] sm:$0xff] }
 0x3c6   : > { %v3646_v58 = vpop.f32.mrf.mxu1 }
 0x3c7   : > { %4039 = vst [vmem:[%s7887_s26 + $0x1c0] sm:$0xff] %v3911_v10  ;;  %v3912_v56 = vadd.f32 %v3643_v24, %v9179_v26  ;;  %v3647_v35 = vadd.f32 %v3646_v58, %v7856_v4  ;;  %v9190_v24 = vld [vmem:[#allocation37_spill] sm:$0xff] }
 0x3c8   : > { %v3648_v1 = vpop.f32.mrf.mxu1 }
 0x3c9   : > { %4040 = vst [vmem:[%s7887_s26 + $0x1c8] sm:$0xff] %v3912_v56  ;;  %v3913_v30 = vadd.f32 %v3647_v35, %v9180_v32  ;;  %v3649_v37 = vadd.f32 %v3648_v1, %v7865_v38  ;;  %v9191_v35 = vld [vmem:[#allocation34_spill] sm:$0xff] }
 0x3ca   : > { %v3652_v44 = vpop.f32.mrf.mxu1 }
 0x3cb   : > { %4041 = vst [vmem:[%s7887_s26 + $0x1d0] sm:$0xff] %v3913_v30  ;;  %v3914_v19 = vadd.f32 %v3649_v37, %v9181_v17  ;;  %v3653_v27 = vadd.f32 %v3652_v44, %v7856_v4  ;;  %v9192_v37 = vld [vmem:[#allocation39_spill] sm:$0xff] }
 0x3cc   : > { %v3654_v18 = vpop.f32.mrf.mxu1 }
 0x3cd   : > { %4042 = vst [vmem:[%s7887_s26 + $0x1d8] sm:$0xff] %v3914_v19  ;;  %v3915_v57 = vadd.f32 %v3653_v27, %v9182_v51  ;;  %v3655_v53 = vadd.f32 %v3654_v18, %v7865_v38  ;;  %v9193_v27 = vld [vmem:[#allocation36_spill] sm:$0xff] }
 0x3ce   : > { %v3658_v14 = vpop.f32.mrf.mxu1 }
 0x3cf   : > { %4043 = vst [vmem:[%s7887_s26 + $0x1e0] sm:$0xff] %v3915_v57  ;;  %v3916_v43 = vadd.f32 %v3655_v53, %v9183_v20  ;;  %v3659_v34 = vadd.f32 %v3658_v14, %v7856_v4  ;;  %v9194_v53 = vld [vmem:[#allocation41_spill] sm:$0xff] }
 0x3d0   : > { %v3660_v61 = vpop.f32.mrf.mxu1 }
 0x3d1   : > { %4044 = vst [vmem:[%s7887_s26 + $0x1e8] sm:$0xff] %v3916_v43  ;;  %v3917_v3 = vadd.f32 %v3659_v34, %v9184_v31  ;;  %v3661_v22 = vadd.f32 %v3660_v61, %v7865_v38  ;;  %v9195_v34 = vld [vmem:[#allocation38_spill] sm:$0xff] }
 0x3d2   : > { %v3664_v12 = vpop.f32.mrf.mxu1 }
 0x3d3   : > { %4045 = vst [vmem:[%s7887_s26 + $0x1f0] sm:$0xff] %v3917_v3  ;;  %v3918_v50 = vadd.f32 %v3661_v22, %v9185_v39  ;;  %v3665_v16 = vadd.f32 %v3664_v12, %v7856_v4  ;;  %v9196_v22 = vld [vmem:[#allocation43_spill] sm:$0xff] }
 0x3d4   : > { %v3666_v8 = vpop.f32.mrf.mxu1 }
 0x3d5   : > { %4046 = vst [vmem:[%s7887_s26 + $0x1f8] sm:$0xff] %v3918_v50  ;;  %v3919_v0 = vadd.f32 %v3665_v16, %v9186_v11  ;;  %v3667_v2 = vadd.f32 %v3666_v8, %v7865_v38  ;;  %v9197_v16 = vld [vmem:[#allocation40_spill] sm:$0xff] }
 0x3d6   : > { %v3670_v54 = vpop.f32.mrf.mxu1 }
 0x3d7   : > { %4047 = vst [vmem:[%s7887_s26 + $0x200] sm:$0xff] %v3919_v0  ;;  %v3920_v60 = vadd.f32 %v3667_v2, %v9187_v21  ;;  %v3671_v29 = vadd.f32 %v3670_v54, %v7856_v4  ;;  %v9198_v2 = vld [vmem:[#allocation45_spill] sm:$0xff] }
 0x3d8   : > { %v3672_v62 = vpop.f32.mrf.mxu1 }
 0x3d9   : > { %4048 = vst [vmem:[%s7887_s26 + $0x208] sm:$0xff] %v3920_v60  ;;  %v3921_v33 = vadd.f32 %v3671_v29, %v9188_v47  ;;  %v3673_v59 = vadd.f32 %v3672_v62, %v7865_v38  ;;  %v9199_v29 = vld [vmem:[#allocation42_spill] sm:$0xff] }
 0x3da   : > { %v3676_v52 = vpop.f32.mrf.mxu1 }
 0x3db   : > { %4049 = vst [vmem:[%s7887_s26 + $0x210] sm:$0xff] %v3921_v33  ;;  %v3922_v49 = vadd.f32 %v3673_v59, %v9189_v55  ;;  %v3677_v63 = vadd.f32 %v3676_v52, %v7856_v4  ;;  %v9200_v59 = vld [vmem:[#allocation47_spill] sm:$0xff] }
 0x3dc   : > { %v3678_v10 = vpop.f32.mrf.mxu1 }
 0x3dd   : > { %4050 = vst [vmem:[%s7887_s26 + $0x218] sm:$0xff] %v3922_v49  ;;  %v3923_v58 = vadd.f32 %v3677_v63, %v9190_v24  ;;  %v3679_v26 = vadd.f32 %v3678_v10, %v7865_v38  ;;  %v9201_v63 = vld [vmem:[#allocation44_spill] sm:$0xff] }
 0x3de   : > { %v3682_v56 = vpop.f32.mrf.mxu1 }
 0x3df   : > { %4051 = vst [vmem:[%s7887_s26 + $0x220] sm:$0xff] %v3923_v58  ;;  %v3924_v1 = vadd.f32 %v3679_v26, %v9191_v35  ;;  %v3683_v32 = vadd.f32 %v3682_v56, %v7856_v4  ;;  %v9202_v26 = vld [vmem:[#allocation49_spill] sm:$0xff] }
 0x3e0   : > { %v3684_v30 = vpop.f32.mrf.mxu1 }
 0x3e1   : > { %4052 = vst [vmem:[%s7887_s26 + $0x228] sm:$0xff] %v3924_v1  ;;  %v3925_v44 = vadd.f32 %v3683_v32, %v9192_v37  ;;  %v3685_v17 = vadd.f32 %v3684_v30, %v7865_v38  ;;  %v9203_v32 = vld [vmem:[#allocation46_spill] sm:$0xff] }
 0x3e2   : > { %v3688_v19 = vpop.f32.mrf.mxu1 }
 0x3e3   : > { %4053 = vst [vmem:[%s7887_s26 + $0x230] sm:$0xff] %v3925_v44  ;;  %v3926_v18 = vadd.f32 %v3685_v17, %v9193_v27  ;;  %v3689_v51 = vadd.f32 %v3688_v19, %v7856_v4  ;;  %v9204_v17 = vld [vmem:[#allocation51_spill] sm:$0xff] }
 0x3e4   : > { %v3690_v57 = vpop.f32.mrf.mxu1 }
 0x3e5   : > { %4054 = vst [vmem:[%s7887_s26 + $0x238] sm:$0xff] %v3926_v18  ;;  %v3927_v14 = vadd.f32 %v3689_v51, %v9194_v53  ;;  %v3691_v20 = vadd.f32 %v3690_v57, %v7865_v38  ;;  %v9205_v51 = vld [vmem:[#allocation48_spill] sm:$0xff] }
 0x3e6   : > { %v3694_v43 = vpop.f32.mrf.mxu1 }
 0x3e7   : > { %4055 = vst [vmem:[%s7887_s26 + $0x240] sm:$0xff] %v3927_v14  ;;  %v3928_v61 = vadd.f32 %v3691_v20, %v9195_v34  ;;  %v3695_v31 = vadd.f32 %v3694_v43, %v7856_v4  ;;  %v9206_v20 = vld [vmem:[#allocation53_spill] sm:$0xff] }
 0x3e8   : > { %v3696_v3 = vpop.f32.mrf.mxu1 }
 0x3e9   : > { %4056 = vst [vmem:[%s7887_s26 + $0x248] sm:$0xff] %v3928_v61  ;;  %v3929_v12 = vadd.f32 %v3695_v31, %v9196_v22  ;;  %v3697_v39 = vadd.f32 %v3696_v3, %v7865_v38  ;;  %v9207_v31 = vld [vmem:[#allocation50_spill] sm:$0xff] }
 0x3ea   : > { %v3700_v50 = vpop.f32.mrf.mxu1 }
 0x3eb   : > { %4057 = vst [vmem:[%s7887_s26 + $0x250] sm:$0xff] %v3929_v12  ;;  %v3930_v8 = vadd.f32 %v3697_v39, %v9197_v16  ;;  %v3701_v11 = vadd.f32 %v3700_v50, %v7856_v4  ;;  %v9208_v39 = vld [vmem:[#allocation54_spill] sm:$0xff] }
 0x3ec   : > { %v3702_v0 = vpop.f32.mrf.mxu1 }
 0x3ed   : > { %4058 = vst [vmem:[%s7887_s26 + $0x258] sm:$0xff] %v3930_v8  ;;  %v3931_v54 = vadd.f32 %v3701_v11, %v9198_v2  ;;  %v3703_v21 = vadd.f32 %v3702_v0, %v7865_v38  ;;  %v9209_v11 = vld [vmem:[#allocation52_spill] sm:$0xff] }
 0x3ee   : > { %v3706_v60 = vpop.f32.mrf.mxu1 }
 0x3ef   : > { %4059 = vst [vmem:[%s7887_s26 + $0x260] sm:$0xff] %v3931_v54  ;;  %v3932_v62 = vadd.f32 %v3703_v21, %v9199_v29  ;;  %v3707_v47 = vadd.f32 %v3706_v60, %v7856_v4  ;;  %v9210_v21 = vld [vmem:[#allocation58_spill] sm:$0xff] }
 0x3f0   : > { %v3708_v33 = vpop.f32.mrf.mxu1 }
 0x3f1   : > { %4060 = vst [vmem:[%s7887_s26 + $0x268] sm:$0xff] %v3932_v62  ;;  %v3933_v52 = vadd.f32 %v3707_v47, %v9200_v59  ;;  %v3709_v55 = vadd.f32 %v3708_v33, %v7865_v38  ;;  %v9211_v47 = vld [vmem:[#allocation56_spill] sm:$0xff] }
 0x3f2   : > { %v3712_v49 = vpop.f32.mrf.mxu1 }
 0x3f3   : > { %4061 = vst [vmem:[%s7887_s26 + $0x270] sm:$0xff] %v3933_v52  ;;  %v3934_v10 = vadd.f32 %v3709_v55, %v9201_v63  ;;  %v3713_v24 = vadd.f32 %v3712_v49, %v7856_v4  ;;  %v9212_v55 = vld [vmem:[#allocation60_spill] sm:$0xff] }
 0x3f4   : > { %v3714_v58 = vpop.f32.mrf.mxu1 }
 0x3f5   : > { %4062 = vst [vmem:[%s7887_s26 + $0x278] sm:$0xff] %v3934_v10  ;;  %v3935_v56 = vadd.f32 %v3713_v24, %v9202_v26  ;;  %v3715_v35 = vadd.f32 %v3714_v58, %v7865_v38  ;;  %v9213_v24 = vld [vmem:[#allocation57_spill] sm:$0xff] }
 0x3f6   : > { %v3718_v1 = vpop.f32.mrf.mxu1 }
 0x3f7   : > { %4063 = vst [vmem:[%s7887_s26 + $0x280] sm:$0xff] %v3935_v56  ;;  %v3936_v30 = vadd.f32 %v3715_v35, %v9203_v32  ;;  %v3719_v37 = vadd.f32 %v3718_v1, %v7856_v4  ;;  %v9214_v35 = vld [vmem:[#allocation65_spill] sm:$0xff] }
 0x3f8   : > { %v3720_v44 = vpop.f32.mrf.mxu1 }
 0x3f9   : > { %4064 = vst [vmem:[%s7887_s26 + $0x288] sm:$0xff] %v3936_v30  ;;  %v3937_v19 = vadd.f32 %v3719_v37, %v9204_v17  ;;  %v3721_v27 = vadd.f32 %v3720_v44, %v7865_v38  ;;  %v9215_v37 = vld [vmem:[#allocation59_spill] sm:$0xff] }
 0x3fa   : > { %v3724_v18 = vpop.f32.mrf.mxu1 }
 0x3fb   : > { %4065 = vst [vmem:[%s7887_s26 + $0x290] sm:$0xff] %v3937_v19  ;;  %v3938_v57 = vadd.f32 %v3721_v27, %v9205_v51  ;;  %v3725_v53 = vadd.f32 %v3724_v18, %v7856_v4  ;;  %v9216_v27 = vld [vmem:[#allocation61_spill] sm:$0xff] }
 0x3fc   : > { %v3726_v14 = vpop.f32.mrf.mxu1 }
 0x3fd   : > { %4066 = vst [vmem:[%s7887_s26 + $0x298] sm:$0xff] %v3938_v57  ;;  %v3939_v43 = vadd.f32 %v3725_v53, %v9206_v20  ;;  %v3727_v34 = vadd.f32 %v3726_v14, %v7865_v38  ;;  %v9217_v53 = vld [vmem:[#allocation62_spill] sm:$0xff] }
 0x3fe   : > { %v3730_v61 = vpop.f32.mrf.mxu1 }
 0x3ff   : > { %4067 = vst [vmem:[%s7887_s26 + $0x2a0] sm:$0xff] %v3939_v43  ;;  %v3940_v3 = vadd.f32 %v3727_v34, %v9207_v31  ;;  %v3731_v22 = vadd.f32 %v3730_v61, %v7856_v4  ;;  %v9218_v34 = vld [vmem:[#allocation66_spill] sm:$0xff] }
 0x400   : > { %v3732_v12 = vpop.f32.mrf.mxu1 }
 0x401   : > { %4068 = vst [vmem:[%s7887_s26 + $0x2a8] sm:$0xff] %v3940_v3  ;;  %v3941_v50 = vadd.f32 %v3731_v22, %v9208_v39  ;;  %v3733_v16 = vadd.f32 %v3732_v12, %v7865_v38  ;;  %v9219_v22 = vld [vmem:[#allocation64_spill] sm:$0xff] }
 0x402   : > { %v3736_v8 = vpop.f32.mrf.mxu1 }
 0x403   : > { %4069 = vst [vmem:[%s7887_s26 + $0x2b0] sm:$0xff] %v3941_v50  ;;  %v3942_v0 = vadd.f32 %v3733_v16, %v9209_v11  ;;  %v3737_v2 = vadd.f32 %v3736_v8, %v7856_v4  ;;  %v9220_v16 = vld [vmem:[#allocation70_spill] sm:$0xff] }
 0x404   : > { %v3738_v54 = vpop.f32.mrf.mxu1 }
 0x405   : > { %4070 = vst [vmem:[%s7887_s26 + $0x2b8] sm:$0xff] %v3942_v0  ;;  %v3943_v60 = vadd.f32 %v3737_v2, %v9210_v21  ;;  %v3739_v29 = vadd.f32 %v3738_v54, %v7865_v38  ;;  %v9221_v2 = vld [vmem:[#allocation63_spill] sm:$0xff] }
 0x406   : > { %v3742_v62 = vpop.f32.mrf.mxu1 }
 0x407   : > { %4071 = vst [vmem:[%s7887_s26 + $0x2c0] sm:$0xff] %v3943_v60  ;;  %v3944_v33 = vadd.f32 %v3739_v29, %v9211_v47  ;;  %v3743_v59 = vadd.f32 %v3742_v62, %v7856_v4  ;;  %v9222_v29 = vld [vmem:[#allocation73_spill] sm:$0xff] }
 0x408   : > { %v3744_v52 = vpop.f32.mrf.mxu1 }
 0x409   : > { %4072 = vst [vmem:[%s7887_s26 + $0x2c8] sm:$0xff] %v3944_v33  ;;  %v3945_v49 = vadd.f32 %v3743_v59, %v9212_v55  ;;  %v3745_v63 = vadd.f32 %v3744_v52, %v7865_v38  ;;  %v9223_v59 = vld [vmem:[#allocation67_spill] sm:$0xff] }
 0x40a   : > { %v3748_v10 = vpop.f32.mrf.mxu1 }
 0x40b   : > { %4073 = vst [vmem:[%s7887_s26 + $0x2d0] sm:$0xff] %v3945_v49  ;;  %v3946_v58 = vadd.f32 %v3745_v63, %v9213_v24  ;;  %v3749_v26 = vadd.f32 %v3748_v10, %v7856_v4  ;;  %v9224_v63 = vld [vmem:[#allocation115_spill] sm:$0xff] }
 0x40c   : > { %v3750_v56 = vpop.f32.mrf.mxu1 }
 0x40d   : > { %4074 = vst [vmem:[%s7887_s26 + $0x2d8] sm:$0xff] %v3946_v58  ;;  %v3947_v1 = vadd.f32 %v3749_v26, %v9214_v35  ;;  %v3751_v32 = vadd.f32 %v3750_v56, %v7865_v38  ;;  %v9225_v26 = vld [vmem:[#allocation55_spill] sm:$0xff] }
 0x40e   : > { %v3754_v30 = vpop.f32.mrf.mxu1 }
 0x40f   : > { %4075 = vst [vmem:[%s7887_s26 + $0x2e0] sm:$0xff] %v3947_v1  ;;  %v3948_v44 = vadd.f32 %v3751_v32, %v9215_v37  ;;  %v3755_v17 = vadd.f32 %v3754_v30, %v7856_v4  ;;  %v9226_v32 = vld [vmem:[#allocation117_spill] sm:$0xff] }
 0x410   : > { %v3756_v19 = vpop.f32.mrf.mxu1 }
 0x411   : > { %4076 = vst [vmem:[%s7887_s26 + $0x2e8] sm:$0xff] %v3948_v44  ;;  %v3949_v18 = vadd.f32 %v3755_v17, %v9216_v27  ;;  %v3757_v51 = vadd.f32 %v3756_v19, %v7865_v38  ;;  %v9227_v17 = vld [vmem:[#allocation116_spill] sm:$0xff] }
 0x412   : > { %v3760_v57 = vpop.f32.mrf.mxu1 }
 0x413   : > { %4077 = vst [vmem:[%s7887_s26 + $0x2f0] sm:$0xff] %v3949_v18  ;;  %v3950_v14 = vadd.f32 %v3757_v51, %v9217_v53  ;;  %v3761_v20 = vadd.f32 %v3760_v57, %v7856_v4  ;;  %v9228_v51 = vld [vmem:[#allocation114_spill] sm:$0xff] }
 0x414   : > { %v3762_v43 = vpop.f32.mrf.mxu1 }
 0x415   : > { %4078 = vst [vmem:[%s7887_s26 + $0x2f8] sm:$0xff] %v3950_v14  ;;  %v3951_v61 = vadd.f32 %v3761_v20, %v9218_v34  ;;  %v3763_v31 = vadd.f32 %v3762_v43, %v7865_v38  ;;  %v9229_v20 = vld [vmem:[#allocation113_spill] sm:$0xff] }
 0x416   : > { %v3766_v3 = vpop.f32.mrf.mxu1 }
 0x417   : > { %4079 = vst [vmem:[%s7887_s26 + $0x300] sm:$0xff] %v3951_v61  ;;  %v3952_v12 = vadd.f32 %v3763_v31, %v9219_v22  ;;  %v3767_v39 = vadd.f32 %v3766_v3, %v7856_v4 }
 0x418   : > { %v3768_v50 = vpop.f32.mrf.mxu1 }
 0x419   : > { %4080 = vst [vmem:[%s7887_s26 + $0x308] sm:$0xff] %v3952_v12  ;;  %v3953_v8 = vadd.f32 %v3767_v39, %v9220_v16  ;;  %v3769_v11 = vadd.f32 %v3768_v50, %v7865_v38  ;;  %v9230_v12 = vld [vmem:[#allocation119_spill] sm:$0xff] }
 0x41a   : > { %v3772_v0 = vpop.f32.mrf.mxu1 }
 0x41b   : > { %4081 = vst [vmem:[%s7887_s26 + $0x310] sm:$0xff] %v3953_v8  ;;  %v3954_v54 = vadd.f32 %v3769_v11, %v9221_v2  ;;  %v3773_v21 = vadd.f32 %v3772_v0, %v7856_v4 }
 0x41c   : > { %v3774_v60 = vpop.f32.mrf.mxu1 }
 0x41d   : > { %4082 = vst [vmem:[%s7887_s26 + $0x318] sm:$0xff] %v3954_v54  ;;  %v3955_v62 = vadd.f32 %v3773_v21, %v9222_v29  ;;  %v3775_v47 = vadd.f32 %v3774_v60, %v7865_v38 }
 0x41e   : > { %v3778_v33 = vpop.f32.mrf.mxu1 }
 0x41f   : > { %4083 = vst [vmem:[%s7887_s26 + $0x320] sm:$0xff] %v3955_v62  ;;  %v3956_v52 = vadd.f32 %v3775_v47, %v9223_v59  ;;  %v3779_v55 = vadd.f32 %v3778_v33, %v7856_v4  ;;  %v9232_v59 = vld [vmem:[#allocation120_spill] sm:$0xff] }
 0x420   : > { %v3780_v49 = vpop.f32.mrf.mxu1 }
 0x421   : > { %4084 = vst [vmem:[%s7887_s26 + $0x328] sm:$0xff] %v3956_v52  ;;  %v3957_v10 = vadd.f32 %v3779_v55, %v9224_v63  ;;  %v3781_v24 = vadd.f32 %v3780_v49, %v7865_v38  ;;  %v9233_v49 = vld [vmem:[#allocation118_spill] sm:$0xff] }
 0x422   : > { %v3784_v58 = vpop.f32.mrf.mxu1 }
 0x423   : > { %4085 = vst [vmem:[%s7887_s26 + $0x330] sm:$0xff] %v3957_v10  ;;  %v3958_v56 = vadd.f32 %v3781_v24, %v9225_v26  ;;  %v3785_v35 = vadd.f32 %v3784_v58, %v7856_v4 }
 0x424   : > { %v3786_v1 = vpop.f32.mrf.mxu1 }
 0x425   : > { %4086 = vst [vmem:[%s7887_s26 + $0x338] sm:$0xff] %v3958_v56  ;;  %v3959_v30 = vadd.f32 %v3785_v35, %v9226_v32  ;;  %v3787_v37 = vadd.f32 %v3786_v1, %v7865_v38 }
 0x426   : > { %v3790_v44 = vpop.f32.mrf.mxu1 }
 0x427   : > { %4087 = vst [vmem:[%s7887_s26 + $0x340] sm:$0xff] %v3959_v30  ;;  %v3960_v19 = vadd.f32 %v3787_v37, %v9227_v17  ;;  %v3791_v27 = vadd.f32 %v3790_v44, %v7856_v4 }
 0x428   : > { %v3792_v18 = vpop.f32.mrf.mxu1 }
 0x429   : > { %4088 = vst [vmem:[%s7887_s26 + $0x348] sm:$0xff] %v3960_v19  ;;  %v3961_v57 = vadd.f32 %v3791_v27, %v9228_v51  ;;  %v3793_v53 = vadd.f32 %v3792_v18, %v7865_v38 }
 0x42a   : > { %v3796_v14 = vpop.f32.mrf.mxu1 }
 0x42b   : > { %4089 = vst [vmem:[%s7887_s26 + $0x350] sm:$0xff] %v3961_v57  ;;  %v3962_v43 = vadd.f32 %v3793_v53, %v9229_v20  ;;  %v3797_v34 = vadd.f32 %v3796_v14, %v7856_v4 }
 0x42c   : > { %v3798_v61 = vpop.f32.mrf.mxu1 }
 0x42d   : > { %4090 = vst [vmem:[%s7887_s26 + $0x358] sm:$0xff] %v3962_v43  ;;  %v3963_v31 = vadd.f32 %v3797_v34, %v7271_v48  ;;  %v3799_v3 = vadd.f32 %v3798_v61, %v7865_v38  ;;  %v9231_v48 = vld [vmem:[#allocation74_spill] sm:$0xff] }
 0x42e   : > { %v3802_v22 = vpop.f32.mrf.mxu1 }
 0x42f   : > { %4091 = vst [vmem:[%s7887_s26 + $0x360] sm:$0xff] %v3963_v31  ;;  %v3964_v39 = vadd.f32 %v3799_v3, %v9230_v12  ;;  %v3803_v50 = vadd.f32 %v3802_v22, %v7856_v4 }
 0x430   : > { %v3804_v16 = vpop.f32.mrf.mxu1 }
 0x431   : > { %4092 = vst [vmem:[%s7887_s26 + $0x368] sm:$0xff] %v3964_v39  ;;  %v3965_v8 = vadd.f32 %v3803_v50, %v7243_v42  ;;  %v3805_v11 = vadd.f32 %v3804_v16, %v7865_v38 }
 0x432   : > { %v3808_v0 = vpop.f32.mrf.mxu1 }
 0x433   : > { %4093 = vst [vmem:[%s7887_s26 + $0x370] sm:$0xff] %v3965_v8  ;;  %v3966_v2 = vadd.f32 %v3805_v11, %v9231_v48  ;;  %v3809_v54 = vadd.f32 %v3808_v0, %v7856_v4 }
 0x434   : > { %v3810_v21 = vpop.f32.mrf.mxu1 }
 0x435   : > { %4094 = vst [vmem:[%s7887_s26 + $0x378] sm:$0xff] %v3966_v2  ;;  %v3967_v60 = vadd.f32 %v3809_v54, %v7310_v40  ;;  %v3811_v29 = vadd.f32 %v3810_v21, %v7865_v38 }
 0x436   : > { %v3814_v42 = vpop.f32.mrf.mxu1 }
 0x437   : > { %4095 = vst [vmem:[%s7887_s26 + $0x380] sm:$0xff] %v3967_v60  ;;  %v3968_v62 = vadd.f32 %v3811_v29, %v7303_v5  ;;  %v3815_v47 = vadd.f32 %v3814_v42, %v7856_v4 }
 0x438   : > { %v3816_v33 = vpop.f32.mrf.mxu1 }
 0x439   : > { %4096 = vst [vmem:[%s7887_s26 + $0x388] sm:$0xff] %v3968_v62  ;;  %v3969_v52 = vadd.f32 %v3815_v47, %v9232_v59  ;;  %v3817_v55 = vadd.f32 %v3816_v33, %v7865_v38 }
 0x43a   : > { %v3820_v40 = vpop.f32.mrf.mxu1 }
 0x43b   : > { %4097 = vst [vmem:[%s7887_s26 + $0x390] sm:$0xff] %v3969_v52  ;;  %v3970_v63 = vadd.f32 %v3817_v55, %v9233_v49  ;;  %v3821_v10 = vadd.f32 %v3820_v40, %v7856_v4 }
 0x43c   : > { %v3822_v5 = vpop.f32.mrf.mxu1 }
 0x43d   : > { %4098 = vst [vmem:[%s7887_s26 + $0x398] sm:$0xff] %v3970_v63  ;;  %v3971_v24 = vadd.f32 %v3821_v10, %v7350_v6  ;;  %v3823_v58 = vadd.f32 %v3822_v5, %v7865_v38 }
 0x43e   : > { %v3826_v26 = vpop.f32.mrf.mxu1 }
 0x43f   : > { %4099 = vst [vmem:[%s7887_s26 + $0x3a0] sm:$0xff] %v3971_v24  ;;  %v3972_v56 = vadd.f32 %v3823_v58, %v7343_v46  ;;  %v3827_v35 = vadd.f32 %v3826_v26, %v7856_v4 }
 0x440   : > { %v3828_v1 = vpop.f32.mrf.mxu1 }
 0x441   : > { %4100 = vst [vmem:[%s7887_s26 + $0x3a8] sm:$0xff] %v3972_v56  ;;  %v3973_v32 = vadd.f32 %v3827_v35, %v7277_v23  ;;  %v3829_v30 = vadd.f32 %v3828_v1, %v7865_v38 }
 0x442   : > { %v3832_v37 = vpop.f32.mrf.mxu1 }
 0x443   : > { %4101 = vst [vmem:[%s7887_s26 + $0x3b0] sm:$0xff] %v3973_v32  ;;  %v3974_v6 = vadd.f32 %v3829_v30, %v7274_v7  ;;  %v3833_v44 = vadd.f32 %v3832_v37, %v7856_v4 }
 0x444   : > { %v3834_v17 = vpop.f32.mrf.mxu1 }
 0x445   : > { %4102 = vst [vmem:[%s7887_s26 + $0x3b8] sm:$0xff] %v3974_v6  ;;  %v3975_v46 = vadd.f32 %v3833_v44, %v7373_v45  ;;  %v3835_v19 = vadd.f32 %v3834_v17, %v7865_v38 }
 0x446   : > { %v3838_v27 = vpop.f32.mrf.mxu1 }
 0x447   : > { %4103 = vst [vmem:[%s7887_s26 + $0x3c0] sm:$0xff] %v3975_v46  ;;  %v3976_v23 = vadd.f32 %v3835_v19, %v7370_v9  ;;  %v3839_v18 = vadd.f32 %v3838_v27, %v7856_v4 }
 0x448   : > { %v3840_v51 = vpop.f32.mrf.mxu1 }
 0x449   : > { %4104 = vst [vmem:[%s7887_s26 + $0x3c8] sm:$0xff] %v3976_v23  ;;  %v3977_v7 = vadd.f32 %v3839_v18, %v7393_v41  ;;  %v3841_v57 = vadd.f32 %v3840_v51, %v7865_v38 }
 0x44a   : > { %v3844_v53 = vpop.f32.mrf.mxu1 }
 0x44b   : > { %4105 = vst [vmem:[%s7887_s26 + $0x3d0] sm:$0xff] %v3977_v7  ;;  %v3978_v45 = vadd.f32 %v3841_v57, %v7389_v15  ;;  %v3845_v14 = vadd.f32 %v3844_v53, %v7856_v4 }
 0x44c   : > { %v3846_v20 = vpop.f32.mrf.mxu1 }
 0x44d   : > { %4106 = vst [vmem:[%s7887_s26 + $0x3d8] sm:$0xff] %v3978_v45  ;;  %v3979_v9 = vadd.f32 %v3845_v14, %v7439_v13  ;;  %v3847_v43 = vadd.f32 %v3846_v20, %v7865_v38 }
 0x44e   : > { %v3850_v34 = vpop.f32.mrf.mxu1 }
 0x44f   : > { %4107 = vst [vmem:[%s7887_s26 + $0x3e0] sm:$0xff] %v3979_v9  ;;  %v3980_v41 = vadd.f32 %v3847_v43, %v7428_v28  ;;  %v3851_v61 = vadd.f32 %v3850_v34, %v7856_v4 }
 0x450   : > { %v3852_v31 = vpop.f32.mrf.mxu1 }
 0x451   : > { %4108 = vst [vmem:[%s7887_s26 + $0x3e8] sm:$0xff] %v3980_v41  ;;  %v3981_v15 = vadd.f32 %v3851_v61, %v7458_v25  ;;  %v3853_v3 = vadd.f32 %v3852_v31, %v7865_v38  ;;  %4118 = sbr.rel (!%p9234_p5) target bundleno = 1137 (0x471), region = 56 }
 0x453   : > { %4109 = vst [vmem:[%s7887_s26 + $0x3f0] sm:$0xff] %v3981_v15  ;;  %v3982_v22 = vadd.f32 %v3853_v3, %v7442_v36 }
 0x455   : > { %4110 = vst [vmem:[%s7887_s26 + $0x3f8] sm:$0xff] %v3982_v22 }
 0x456   : > { %s9243_s30 = smov (!%p4121_p13, %s4120_s30), 64 }
 0x457   : > { %s8364_s5 = sshll.u32 %s9243_s30, 8 }
 0x458   : > { %s4126_s12 = ssub.s32 16384, %s8364_s5 }
 0x459   : > { %4127 = vsyncadd %s4112_s8, %s4126_s12  ;;  %p4261_p8 = scmp.ne.s32.totalorder %s8364_s5, 0  ;;  %s4273_s27 = sshll.u32 %s4969_s19, 14 }
 0x45a   : > { %s8374_s25 = scalar_lea.hbm %s8426_s4, %s4273_s27  ;;  %s4133_s22 = sshll.u32 %s7887_s26, 4  ;;  %s8377_s22 = int_to_ptr.vmem [resolvable:$true] %s4133_s22 }
 0x45b   : > { %s4838_s23 = scalar_lea.vmem %s8377_s22, %s8364_s5  ;;  %s4920_s6 = smov [#allocation10]  }
 0x45c   : > { %p4839_p10 = scmp.ne.s32.totalorder %s8377_s22, %s4838_s23  ;;  %s4842_s7 = sshll.u32 %s4920_s6, 4  ;;  %s4843_s7 = int_to_ptr.vmem [resolvable:$false] %s4842_s7 }
 0x45d   : > { %s4844_s19 = scalar_lea.vmem %s4843_s7, 32768  ;;  %p4845_p3 = scmp.lt.s32.totalorder %s8377_s22, %s4843_s7 }
 0x45e   : > { %p4840_p2 = pnand %p4839_p10, %p4261_p8  ;;  %p4846_p7 = scmp.lt.s32.totalorder %s4844_s19, %s4838_s23 }
 0x460   : > { %p4841_p1 = pneg %p4840_p2  ;;  %p4847_p11 = por %p4846_p7, %p4845_p3 }
 0x462   : > { %p4848_p0 = pnand %p4847_p11, %p4841_p1 }
 0x464   : > { %4851 = shalt.err (!%p4848_p0)
}
 0x465   : > { %s4852_s10 = scalar_lea.hbm %s8374_s25, %s8364_s5  ;;  %s4856_s26 = scalar_lea.hbm %s8426_s4, 19200 }
 0x466   : > { %p4853_p4 = scmp.ne.s32.totalorder %s8374_s25, %s4852_s10  ;;  %p4857_p5 = scmp.lt.s32.totalorder %s8374_s25, %s8426_s4 }
 0x467   : > { %p4858_p13 = scmp.lt.s32.totalorder %s4856_s26, %s4852_s10 }
 0x468   : > { %p4854_p12 = pnand %p4853_p4, %p4261_p8 }
 0x469   : > { %p4859_p10 = por %p4858_p13, %p4857_p5 }
 0x46a   : > { %p4855_p6 = pneg %p4854_p12 }
 0x46c   : > { %p4860_p2 = pnand %p4859_p10, %p4855_p6 }
 0x46e   : > { %4863 = shalt.err (!%p4860_p2)
}
 0x46f   : > { %s4921_s12 = smov 256   ;;  %s4922_s27 = smov 16  }
 0x470   : > { %4139 = dma.vmem_to_hbm [thread:$0]  (%p4261_p8), %s8377_s22, %s8364_s5, %s8374_s25, %s4112_s8, %s4921_s12, %s4921_s12, %s4922_s27  }
 0x471 PF: > { %s4148_s13 = sand.u32 1, %s4898_s15   ;;  %p9235_p1 = scmp.ne.s32.totalorder %s8698_s28, 0 }
 0x472   : > { %s4149_s20 = scalar_lea.sflag [#allocation4], %s4148_s13 }
 0x473   : > { %p4299_p3 = pnand %p4240_p9, %p9235_p1 }
 0x475   : > { %p4300_p7 = pneg %p4299_p3 }
 0x477   : > { %4893 = dma.done.wait (%p4300_p7), %s4149_s20, 16384  }
 0x478   : > { %4895 = vsyncadd (%p4300_p7), %s4149_s20, 4294950912  ;;  %p19_p11 = scmp.ge.s32.totalorder %s4973_s21, 4   ;;  %s9236_s15 = smov %s4902_s16 }
 0x479   : > { %s9237_s16 = smov %s4906_s17  ;;  %s9238_s17 = smov %s4985_s24 }
 0x47a   : > { %s9239_s18 = smov %s4973_s21  ;;  %21 = sbr.rel (!%p19_p11) target bundleno = 7 (0x7), region = 96 }
 0x47f   :  { %4154 = vsyncpa [#allocation3], 1 }
 0x480   :  { %4156 = vsyncpa [#allocation3 + $0x1], 1 }
 0x481   :  { %4157 = vsyncpa [#allocation6], 1 }
 0x482   :  { %4158 = vsyncpa [#allocation9], 1 }
 0x483   :  { %4159 = vsyncpa [#allocation4], 1 }
 0x484   :  { %4161 = vsyncpa [#allocation4 + $0x1], 1 }

</bundles_post_ra>
